<compile_context>
chip_gen: v7x
topology: tpu7x:2x2x1
jax: 0.10.0
libtpu: 0.0.40
codegen_flags: <defaults>
</compile_context>

<pallas_src>
import functools
import math

import jax
import jax.numpy as jnp
from jax import lax
from jax.experimental import pallas as pl
from jax.experimental.pallas import tpu as pltpu

_MASK_VALUE = -1e30                 # finite fill -> masked rows can never 0/0
_MIN_VMEM = 32 * 1024 * 1024
_MAX_VMEM = 128 * 1024 * 1024


def _pick_block(t, cap=256):
    for b in (256, 128, 64, 32, 16, 8):
        if b <= cap and t % b == 0:
            return b
    return t                         # fall back to the full (unblocked) dim


def _vmem_limit(nbytes):
    return int(min(max(nbytes, _MIN_VMEM), _MAX_VMEM))


# ---------------------------------------------------------------------------
# Stage 1: fused QKV projection    qkv = x @ [Wq*scale | Wk | Wv]
# ---------------------------------------------------------------------------
def _qkv_proj_kernel(x_ref, wqkv_ref, qkv_ref):
    # One wide MXU pass (N = 3C); f32 accumulation inside the MXU, result
    # emitted directly in the compute dtype (halves the (T,3C) intermediate
    # for bf16).  The softmax scale is already folded into the Q columns.
    qkv_ref[0] = jnp.dot(x_ref[0], wqkv_ref[...],
                         preferred_element_type=qkv_ref.dtype)


def _qkv_projection(x, wqkv, *, block_t):
    B, T, C = x.shape
    C3 = wqkv.shape[1]
    isz = x.dtype.itemsize
    est = 2 * (block_t * C + C * C3 + block_t * C3) * isz   # double-buffered
    return pl.pallas_call(
        _qkv_proj_kernel,
        out_shape=jax.ShapeDtypeStruct((B, T, C3), x.dtype),
        grid_spec=pltpu.PrefetchScalarGridSpec(
            num_scalar_prefetch=0,
            grid=(B, T // block_t),
            in_specs=[
                pl.BlockSpec((1, block_t, C), lambda b, t: (b, t, 0)),
                pl.BlockSpec((C, C3), lambda b, t: (0, 0)),     # resident weight
            ],
            out_specs=pl.BlockSpec((1, block_t, C3), lambda b, t: (b, t, 0)),
        ),
        compiler_params=pltpu.CompilerParams(
            dimension_semantics=("parallel", "parallel"),
            vmem_limit_bytes=_vmem_limit(2 * est),
        ),
        cost_estimate=pl.CostEstimate(
            flops=2 * B * T * C * C3,
            transcendentals=0,
            bytes_accessed=B * T * C * isz + C * C3 * isz + B * T * C3 * isz),
    )(x, wqkv)


# ---------------------------------------------------------------------------
# Stage 2: flash-style causal attention + output projection
#   grid = (B, q_tiles, head_groups, kv_tiles)
# ---------------------------------------------------------------------------
def _flash_mha_kernel(q_ref, k_ref, v_ref, wp_ref, bp_ref, o_ref,
                      m_ref, l_ref, acc_ref, proj_ref,
                      *, heads_per_group, head_size):
    G, hs = heads_per_group, head_size
    qi = pl.program_id(1)
    g = pl.program_id(2)
    ki = pl.program_id(3)
    num_groups = pl.num_programs(2)
    num_kv = pl.num_programs(3)

    # -- per-(batch, q-tile, head-group) online-softmax state reset ----------
    @pl.when(ki == 0)
    def _init_group():
        m_ref[...] = jnp.full(m_ref.shape, -jnp.inf, m_ref.dtype)
        l_ref[...] = jnp.zeros(l_ref.shape, l_ref.dtype)
        acc_ref[...] = jnp.zeros(acc_ref.shape, acc_ref.dtype)

    # -- per-(batch, q-tile) output-projection accumulator reset -------------
    @pl.when((ki == 0) & (g == 0))
    def _init_proj():
        proj_ref[...] = jnp.zeros(proj_ref.shape, proj_ref.dtype)

    def _attend(mask_diagonal):
        q_blk = q_ref[0]                       # (tq, G*hs), compute dtype
        k_blk = k_ref[0]                       # (tk, G*hs)
        v_blk = v_ref[0]                       # (tk, G*hs)
        tq, tk = q_blk.shape[0], k_blk.shape[0]
        if mask_diagonal:
            # Diagonal tile only (tq == tk): local indices match global ones.
            row = lax.broadcasted_iota(jnp.int32, (tq, tk), 0)
            col = lax.broadcasted_iota(jnp.int32, (tq, tk), 1)
            keep = row >= col
        dn_qkT = (((1,), (1,)), ((), ()))      # q @ k^T without an XLU transpose
        for h in range(G):                     # tiny unroll (G <= 4)
            sl = slice(h * hs, (h + 1) * hs)
            s = lax.dot_general(q_blk[:, sl], k_blk[:, sl], dn_qkT,
                                preferred_element_type=jnp.float32)   # (tq, tk)
            if mask_diagonal:
                s = jnp.where(keep, s, _MASK_VALUE)
            m_prev = m_ref[h]                                         # (tq, 1)
            m_new = jnp.maximum(m_prev, jnp.max(s, axis=-1, keepdims=True))
            alpha = jnp.exp(m_prev - m_new)
            p = jnp.exp(s - m_new)                                    # f32
            l_ref[h] = alpha * l_ref[h] + jnp.sum(p, axis=-1, keepdims=True)
            pv = jnp.dot(p.astype(v_blk.dtype), v_blk[:, sl],
                         preferred_element_type=jnp.float32)          # (tq, hs)
            acc_ref[:, sl] = alpha * acc_ref[:, sl] + pv
            m_ref[h] = m_new

    # -- causal tile skipping: tiles strictly above the diagonal do nothing;
    #    only the diagonal tile pays for the mask/select. ---------------------
    @pl.when(ki < qi)
    def _below_diagonal():
        _attend(mask_diagonal=False)

    @pl.when(ki == qi)
    def _on_diagonal():
        _attend(mask_diagonal=True)

    # -- after the last kv tile: normalise this head group and fold it into
    #    the output projection (reduction over head groups). ------------------
    @pl.when(ki == num_kv - 1)
    def _finalize_group():
        for h in range(G):
            sl = slice(h * hs, (h + 1) * hs)
            acc_ref[:, sl] = acc_ref[:, sl] * pl.reciprocal(l_ref[h], approx=True)
        o_group = acc_ref[...].astype(q_ref.dtype)            # (tq, G*hs)
        proj_ref[...] += jnp.dot(o_group, wp_ref[...],
                                 preferred_element_type=jnp.float32)

    @pl.when((ki == num_kv - 1) & (g == num_groups - 1))
    def _write_output():
        o_ref[0] = (proj_ref[...] + bp_ref[...]).astype(o_ref.dtype)


def _flash_attention_proj(qkv, wp, bp, *, num_heads, head_size,
                          block_q, block_k, out_dtype):
    B, T, C3 = qkv.shape
    hs = head_size
    C = num_heads * hs
    assert C3 == 3 * C

    # Lane-dense head grouping: pack lcm(hs,128)/hs heads per block so q/k/v
    # tiles, the accumulator and the projection matmul are >=128 lanes wide.
    gw = hs * 128 // math.gcd(hs, 128)           # lcm(hs, 128)
    G = gw // hs
    if G > num_heads:
        G, gw = num_heads, num_heads * hs
    assert num_heads % G == 0, "num_heads must be a multiple of the head group"
    assert gw % 128 == 0, "head-group width must be a multiple of 128 lanes"
    num_groups = num_heads // G

    assert block_q == block_k, "causal tile skipping assumes square tiles"
    assert T % block_q == 0
    nq, nk = T // block_q, T // block_k

    kcol0 = C // gw            # block-column offset of K inside (T, 3C)
    vcol0 = 2 * C // gw        # block-column offset of V

    isz = qkv.dtype.itemsize
    osz = jnp.dtype(out_dtype).itemsize
    blk_bytes = (2 * isz * (block_q * gw + 2 * block_k * gw + gw * C)
                 + 2 * 4 * C + 2 * osz * block_q * C)          # double-buffered
    scratch_bytes = 4 * (2 * G * block_q * 128 + block_q * gw + block_q * C)
    vmem = _vmem_limit(2 * (blk_bytes + scratch_bytes))

    kernel = functools.partial(_flash_mha_kernel,
                               heads_per_group=G, head_size=hs)

    flops = 4 * B * num_heads * T * T * hs // 2 + 2 * B * T * C * C   # ~causal
    trans = B * num_heads * T * T // 2
    bytes_accessed = int(B * T * C3 * isz * (1 + nq) // 2
                         + C * C * isz + B * T * C * osz)

    return pl.pallas_call(
        kernel,
        out_shape=jax.ShapeDtypeStruct((B, T, C), out_dtype),
        grid_spec=pltpu.PrefetchScalarGridSpec(
            num_scalar_prefetch=0,
            grid=(B, nq, num_groups, nk),
            in_specs=[
                # q tile for this head group
                pl.BlockSpec((1, block_q, gw),
                             lambda b, q, g, k: (b, q, g)),
                # k/v tiles; skipped (fully-masked) tiles are clamped onto the
                # block that is already resident -> no DMA is issued for them.
                pl.BlockSpec((1, block_k, gw),
                             lambda b, q, g, k: (b, jnp.minimum(k, q), kcol0 + g)),
                pl.BlockSpec((1, block_k, gw),
                             lambda b, q, g, k: (b, jnp.minimum(k, q), vcol0 + g)),
                # rows of the output projection matrix for this head group
                pl.BlockSpec((gw, C), lambda b, q, g, k: (g, 0)),
                # projection bias (f32)
                pl.BlockSpec((1, C), lambda b, q, g, k: (0, 0)),
            ],
            out_specs=pl.BlockSpec((1, block_q, C), lambda b, q, g, k: (b, q, 0)),
            scratch_shapes=[
                pltpu.VMEM((G, block_q, 1), jnp.float32),   # running max / head
                pltpu.VMEM((G, block_q, 1), jnp.float32),   # running denom / head
                pltpu.VMEM((block_q, gw), jnp.float32),     # attention accumulator
                pltpu.VMEM((block_q, C), jnp.float32),      # projection accumulator
            ],
        ),
        compiler_params=pltpu.CompilerParams(
            dimension_semantics=("parallel", "parallel", "arbitrary", "arbitrary"),
            vmem_limit_bytes=vmem,
        ),
        cost_estimate=pl.CostEstimate(flops=flops, transcendentals=trans,
                                      bytes_accessed=bytes_accessed),
    )(qkv, qkv, qkv, wp, bp)


# ---------------------------------------------------------------------------
# Wrappers
# ---------------------------------------------------------------------------
def prepare_mha_weights(wq, wk, wv, wp, bp, *, head_size, compute_dtype):
    """Fuse Q/K/V weights (softmax scale folded into the Q columns) and cast to
    the MXU compute dtype.  Hoisted out of the forward path -- call once."""
    scale = head_size ** -0.5
    wqkv = jnp.concatenate([wq * scale, wk, wv], axis=1).astype(compute_dtype)
    return wqkv, wp.astype(compute_dtype), bp.astype(jnp.float32)


def mha_forward(x, wqkv, wp, bp, *, num_heads, head_size,
                block_q=None, block_k=None):
    """x: (B, T, C); wqkv: (C, 3C) fused/scaled; wp: (C, C) = torch weight.T;
    bp: (1, C) f32.  Returns (B, T, C) in x.dtype."""
    B, T, C = x.shape
    assert C == num_heads * head_size
    bq = block_q if block_q is not None else _pick_block(T)
    bk = block_k if block_k is not None else bq
    qkv = _qkv_projection(x, wqkv, block_t=_pick_block(T))
    return _flash_attention_proj(qkv, wp, bp, num_heads=num_heads,
                                 head_size=head_size, block_q=bq, block_k=bk,
                                 out_dtype=x.dtype)


def multi_head_attention(x, wq, wk, wv, wp, bp, *, num_heads, head_size,
                         block_q=None, block_k=None):
    """Convenience wrapper matching the torch module's parameters.  For repeated
    calls, use prepare_mha_weights(...) once and call mha_forward directly."""
    wqkv, wp_c, bp_c = prepare_mha_weights(wq, wk, wv, wp, bp,
                                           head_size=head_size,
                                           compute_dtype=x.dtype)
    return mha_forward(x, wqkv, wp_c, bp_c, num_heads=num_heads,
                       head_size=head_size, block_q=block_q, block_k=block_k)


# ---------------------------------------------------------------------------
# Pure-JAX reference (matches the PyTorch module, eval mode)
# ---------------------------------------------------------------------------
def _reference(x, wq, wk, wv, wp, bp, *, num_heads, head_size):
    B, T, C = x.shape
    q = x @ wq
    k = x @ wk
    v = x @ wv
    tril = jnp.tril(jnp.ones((T, T), dtype=bool))
    outs = []
    for h in range(num_heads):
        sl = slice(h * head_size, (h + 1) * head_size)
        wei = jnp.einsum("btd,bsd->bts", q[..., sl], k[..., sl]) * head_size ** -0.5
        wei = jnp.where(tril[None], wei, -jnp.inf)
        wei = jax.nn.softmax(wei, axis=-1)
        outs.append(jnp.einsum("bts,bsd->btd", wei, v[..., sl]))
    cat = jnp.concatenate(outs, axis=-1)
    return cat @ wp + bp[0]


if __name__ == "__main__":
    f32, bf16 = jnp.float32, jnp.bfloat16

    # ---- config A: exercises 2x2 q/kv tiling, causal skip, 4-head packing ---
    B, T, H, hs = 2, 128, 4, 32
    C = H * hs                                                 # 128
    key = jax.random.PRNGKey(0)
    kx, kq, kk, kv, kp, kb = jax.random.split(key, 6)
    x = jax.random.normal(kx, (B, T, C), f32)
    wq = jax.random.normal(kq, (C, C), f32) * 0.05             # (in, out) = W.T
    wk = jax.random.normal(kk, (C, C), f32) * 0.05
    wv = jax.random.normal(kv, (C, C), f32) * 0.05
    wp = jax.random.normal(kp, (C, C), f32) * 0.05
    bp = jax.random.normal(kb, (1, C), f32) * 0.05

    fwd = jax.jit(mha_forward,
                  static_argnames=("num_heads", "head_size", "block_q", "block_k"))

    # f32 path (tolerance loosened only for the approx EUP reciprocal)
    wqkv, wp_c, bp_c = prepare_mha_weights(wq, wk, wv, wp, bp,
                                           head_size=hs, compute_dtype=f32)
    out = jax.block_until_ready(fwd(x, wqkv, wp_c, bp_c, num_heads=H,
                                    head_size=hs, block_q=64, block_k=64))
    ref = _reference(x, wq, wk, wv, wp, bp, num_heads=H, head_size=hs)
    assert out.shape == (B, T, C)
    assert jnp.allclose(out, ref, atol=5e-3, rtol=5e-3), "f32 mismatch vs reference"

    # bf16 MXU-operand path; softmax math stays f32 in-kernel.
    wqkv_b, wp_b, bp_b = prepare_mha_weights(wq, wk, wv, wp, bp,
                                             head_size=hs, compute_dtype=bf16)
    out_bf = jax.block_until_ready(fwd(x.astype(bf16), wqkv_b, wp_b, bp_b,
                                       num_heads=H, head_size=hs,
                                       block_q=64, block_k=64))
    ref_bf = _reference(x.astype(bf16).astype(f32),
                        wq.astype(bf16).astype(f32), wk.astype(bf16).astype(f32),
                        wv.astype(bf16).astype(f32), wp.astype(bf16).astype(f32),
                        bp, num_heads=H, head_size=hs)
    assert jnp.allclose(out_bf.astype(f32), ref_bf, atol=6e-2, rtol=6e-2), \
        "bf16 mismatch vs reference"

    # ---- config B: hs=64 head pairing (G=2) and a 2-group projection reduce -
    B2, T2, H2, hs2 = 1, 64, 4, 64
    C2 = H2 * hs2                                              # 256
    k0, k1, k2, k3, k4, k5 = jax.random.split(jax.random.PRNGKey(1), 6)
    x2 = jax.random.normal(k0, (B2, T2, C2), f32)
    wq2 = jax.random.normal(k1, (C2, C2), f32) * 0.03
    wk2 = jax.random.normal(k2, (C2, C2), f32) * 0.03
    wv2 = jax.random.normal(k3, (C2, C2), f32) * 0.03
    wp2 = jax.random.normal(k4, (C2, C2), f32) * 0.03
    bp2 = jax.random.normal(k5, (1, C2), f32) * 0.03
    out2 = jax.block_until_ready(
        multi_head_attention(x2, wq2, wk2, wv2, wp2, bp2,
                             num_heads=H2, head_size=hs2,
                             block_q=32, block_k=32))
    ref2 = _reference(x2, wq2, wk2, wv2, wp2, bp2, num_heads=H2, head_size=hs2)
    assert jnp.allclose(out2, ref2, atol=5e-3, rtol=5e-3), "config B mismatch"

    print("KERNEL_OK")
</pallas_src>

<mosaic_0001>
module attributes {stable_mosaic.version = 11 : i64} {
  func.func @_qkv_proj_kernel(%arg0: i32, %arg1: i32, %arg2: memref<1x128x128xf32, #tpu.memory_space<vmem>>, %arg3: memref<128x384xf32, #tpu.memory_space<vmem>>, %arg4: memref<1x128x384xf32, #tpu.memory_space<vmem>>) attributes {dimension_semantics = [#tpu.dimension_semantics<parallel>, #tpu.dimension_semantics<parallel>], iteration_bounds = array<i64: 2, 1>, scalar_prefetch = 0 : i64, scratch_operands = 0 : i64, tpu.core_type = #tpu.core_type<tc>, window_params = [{transform_indices = @transform_0, window_bounds = array<i64: 1, 128, 128>}, {pipeline_mode = #tpu.pipeline_mode<synchronous>, transform_indices = @transform_1, window_bounds = array<i64: 128, 384>}, {transform_indices = @transform_2, window_bounds = array<i64: 1, 128, 384>}]} {
    %c0 = arith.constant 0 : index
    %c0_0 = arith.constant 0 : index
    %c0_1 = arith.constant 0 : index
    %0 = vector.load %arg2[%c0, %c0_0, %c0_1] : memref<1x128x128xf32, #tpu.memory_space<vmem>>, vector<1x128x128xf32>
    %1 = vector.shape_cast %0 : vector<1x128x128xf32> to vector<128x128xf32>
    %c0_2 = arith.constant 0 : index
    %c0_3 = arith.constant 0 : index
    %2 = vector.load %arg3[%c0_2, %c0_3] : memref<128x384xf32, #tpu.memory_space<vmem>>, vector<128x384xf32>
    %cst = arith.constant dense<0.000000e+00> : vector<128x384xf32>
    %3 = tpu.matmul %1, %2, %cst {dimension_numbers = #tpu.dot_dimension_numbers<[1], [0], [0], [1], [0, 0, 1, 1], [], []>} : vector<128x128xf32>, vector<128x384xf32>, vector<128x384xf32> -> vector<128x384xf32>
    %c0_4 = arith.constant 0 : index
    %c0_5 = arith.constant 0 : index
    %c0_6 = arith.constant 0 : index
    %4 = vector.load %arg4[%c0_4, %c0_5, %c0_6] : memref<1x128x384xf32, #tpu.memory_space<vmem>>, vector<1x128x384xf32>
    %5 = vector.shape_cast %4 : vector<1x128x384xf32> to vector<128x384xf32>
    %6 = vector.shape_cast %3 : vector<128x384xf32> to vector<1x128x384xf32>
    tpu.vector_store %arg4[%c0_4, %c0_5, %c0_6], %6 {strides = array<i32>} : memref<1x128x384xf32, #tpu.memory_space<vmem>>, vector<1x128x384xf32>,
    return
  }
  func.func @transform_0(%arg0: i32, %arg1: i32) -> (i32, i32, i32) {
    %c0_i32 = arith.constant 0 : i32
    %c0_i32_0 = arith.constant 0 : i32
    return %arg0, %arg1, %c0_i32 : i32, i32, i32
  }
  func.func @transform_1(%arg0: i32, %arg1: i32) -> (i32, i32) {
    %c0_i32 = arith.constant 0 : i32
    %c0_i32_0 = arith.constant 0 : i32
    %c0_i32_1 = arith.constant 0 : i32
    return %c0_i32, %c0_i32_0 : i32, i32
  }
  func.func @transform_2(%arg0: i32, %arg1: i32) -> (i32, i32, i32) {
    %c0_i32 = arith.constant 0 : i32
    %c0_i32_0 = arith.constant 0 : i32
    return %arg0, %arg1, %c0_i32 : i32, i32, i32
  }
}

module attributes {stable_mosaic.version = 11 : i64} {
  func.func @_flash_mha_kernel(%arg0: i32, %arg1: i32, %arg2: i32, %arg3: i32, %arg4: memref<1x64x128xf32, #tpu.memory_space<vmem>>, %arg5: memref<1x64x128xf32, #tpu.memory_space<vmem>>, %arg6: memref<1x64x128xf32, #tpu.memory_space<vmem>>, %arg7: memref<128x128xf32, #tpu.memory_space<vmem>>, %arg8: memref<1x128xf32, #tpu.memory_space<vmem>>, %arg9: memref<1x64x128xf32, #tpu.memory_space<vmem>>, %arg10: memref<4x64x1xf32, #tpu.memory_space<vmem>>, %arg11: memref<4x64x1xf32, #tpu.memory_space<vmem>>, %arg12: memref<64x128xf32, #tpu.memory_space<vmem>>, %arg13: memref<64x128xf32, #tpu.memory_space<vmem>>) attributes {dimension_semantics = [#tpu.dimension_semantics<parallel>, #tpu.dimension_semantics<parallel>, #tpu.dimension_semantics<arbitrary>, #tpu.dimension_semantics<arbitrary>], iteration_bounds = array<i64: 2, 2, 1, 2>, scalar_prefetch = 0 : i64, scratch_operands = 4 : i64, tpu.core_type = #tpu.core_type<tc>, window_params = [{transform_indices = @transform_0, window_bounds = array<i64: 1, 64, 128>}, {transform_indices = @transform_1, window_bounds = array<i64: 1, 64, 128>}, {transform_indices = @transform_2, window_bounds = array<i64: 1, 64, 128>}, {transform_indices = @transform_3, window_bounds = array<i64: 128, 128>}, {pipeline_mode = #tpu.pipeline_mode<synchronous>, transform_indices = @transform_4, window_bounds = array<i64: 1, 128>}, {transform_indices = @transform_5, window_bounds = array<i64: 1, 64, 128>}]} {
    %c0_i32 = arith.constant 0 : i32
    %0 = arith.cmpi eq, %arg3, %c0_i32 : i32
    %1 = arith.extui %0 : i1 to i32
    %c0_i32_0 = arith.constant 0 : i32
    %2 = arith.cmpi ne, %1, %c0_i32_0 : i32
    scf.if %2 {
      %cst = arith.constant 0xFF800000 : f32
      %22 = vector.broadcast %cst : f32 to vector<4x64x1xf32>
      %c0 = arith.constant 0 : index
      %c0_10 = arith.constant 0 : index
      %c0_11 = arith.constant 0 : index
      %23 = vector.load %arg10[%c0, %c0_10, %c0_11] : memref<4x64x1xf32, #tpu.memory_space<vmem>>, vector<4x64x1xf32>
      tpu.vector_store %arg10[%c0, %c0_10, %c0_11], %22 {strides = array<i32>} : memref<4x64x1xf32, #tpu.memory_space<vmem>>, vector<4x64x1xf32>,
      %cst_12 = arith.constant 0.000000e+00 : f32
      %24 = vector.broadcast %cst_12 : f32 to vector<4x64x1xf32>
      %c0_13 = arith.constant 0 : index
      %c0_14 = arith.constant 0 : index
      %c0_15 = arith.constant 0 : index
      %25 = vector.load %arg11[%c0_13, %c0_14, %c0_15] : memref<4x64x1xf32, #tpu.memory_space<vmem>>, vector<4x64x1xf32>
      tpu.vector_store %arg11[%c0_13, %c0_14, %c0_15], %24 {strides = array<i32>} : memref<4x64x1xf32, #tpu.memory_space<vmem>>, vector<4x64x1xf32>,
      %cst_16 = arith.constant 0.000000e+00 : f32
      %26 = vector.broadcast %cst_16 : f32 to vector<64x128xf32>
      %c0_17 = arith.constant 0 : index
      %c0_18 = arith.constant 0 : index
      %27 = vector.load %arg12[%c0_17, %c0_18] : memref<64x128xf32, #tpu.memory_space<vmem>>, vector<64x128xf32>
      tpu.vector_store %arg12[%c0_17, %c0_18], %26 {strides = array<i32>} : memref<64x128xf32, #tpu.memory_space<vmem>>, vector<64x128xf32>,
    } else {
    }
    %c0_i32_1 = arith.constant 0 : i32
    %3 = arith.cmpi eq, %arg3, %c0_i32_1 : i32
    %c0_i32_2 = arith.constant 0 : i32
    %4 = arith.cmpi eq, %arg2, %c0_i32_2 : i32
    %5 = arith.andi %3, %4 : i1
    %6 = arith.extui %5 : i1 to i32
    %c0_i32_3 = arith.constant 0 : i32
    %7 = arith.cmpi ne, %6, %c0_i32_3 : i32
    scf.if %7 {
      %cst = arith.constant 0.000000e+00 : f32
      %22 = vector.broadcast %cst : f32 to vector<64x128xf32>
      %c0 = arith.constant 0 : index
      %c0_10 = arith.constant 0 : index
      %23 = vector.load %arg13[%c0, %c0_10] : memref<64x128xf32, #tpu.memory_space<vmem>>, vector<64x128xf32>
      tpu.vector_store %arg13[%c0, %c0_10], %22 {strides = array<i32>} : memref<64x128xf32, #tpu.memory_space<vmem>>, vector<64x128xf32>,
    } else {
    }
    %8 = arith.cmpi slt, %arg3, %arg1 : i32
    %9 = arith.extui %8 : i1 to i32
    %c0_i32_4 = arith.constant 0 : i32
    %10 = arith.cmpi ne, %9, %c0_i32_4 : i32
    scf.if %10 {
      %c0 = arith.constant 0 : index
      %c0_10 = arith.constant 0 : index
      %c0_11 = arith.constant 0 : index
      %22 = vector.load %arg4[%c0, %c0_10, %c0_11] : memref<1x64x128xf32, #tpu.memory_space<vmem>>, vector<1x64x128xf32>
      %23 = vector.shape_cast %22 : vector<1x64x128xf32> to vector<64x128xf32>
      %c0_12 = arith.constant 0 : index
      %c0_13 = arith.constant 0 : index
      %c0_14 = arith.constant 0 : index
      %24 = vector.load %arg5[%c0_12, %c0_13, %c0_14] : memref<1x64x128xf32, #tpu.memory_space<vmem>>, vector<1x64x128xf32>
      %25 = vector.shape_cast %24 : vector<1x64x128xf32> to vector<64x128xf32>
      %c0_15 = arith.constant 0 : index
      %c0_16 = arith.constant 0 : index
      %c0_17 = arith.constant 0 : index
      %26 = vector.load %arg6[%c0_15, %c0_16, %c0_17] : memref<1x64x128xf32, #tpu.memory_space<vmem>>, vector<1x64x128xf32>
      %27 = vector.shape_cast %26 : vector<1x64x128xf32> to vector<64x128xf32>
      %28 = vector.extract_strided_slice %23 {offsets = [0, 0], sizes = [64, 32], strides = [1, 1]} : vector<64x128xf32> to vector<64x32xf32>
      %29 = vector.extract_strided_slice %25 {offsets = [0, 0], sizes = [64, 32], strides = [1, 1]} : vector<64x128xf32> to vector<64x32xf32>
      %cst = arith.constant dense<0.000000e+00> : vector<64x64xf32>
      %30 = tpu.matmul %28, %29, %cst {dimension_numbers = #tpu.dot_dimension_numbers<[1], [1], [0], [0], [0, 0, 1, 0], [], []>} : vector<64x32xf32>, vector<64x32xf32>, vector<64x64xf32> -> vector<64x64xf32>
      %c0_18 = arith.constant 0 : index
      %c0_19 = arith.constant 0 : index
      %c0_20 = arith.constant 0 : index
      %31 = vector.load %arg10[%c0_18, %c0_19, %c0_20] : memref<4x64x1xf32, #tpu.memory_space<vmem>>, vector<1x64x1xf32>
      %32 = vector.shape_cast %31 : vector<1x64x1xf32> to vector<64x1xf32>
      %cst_21 = arith.constant dense<0xFF800000> : vector<64xf32>
      %33 = vector.multi_reduction <maximumf>, %30, %cst_21 [1] : vector<64x64xf32> to vector<64xf32>
      %34 = vector.shape_cast %33 : vector<64xf32> to vector<64x1xf32>
      %35 = arith.maximumf %32, %34 : vector<64x1xf32>
      %36 = arith.subf %32, %35 : vector<64x1xf32>
      %37 = math.exp %36 : vector<64x1xf32>
      %38 = vector.broadcast %35 : vector<64x1xf32> to vector<64x64xf32>
      %39 = arith.subf %30, %38 : vector<64x64xf32>
      %40 = math.exp %39 : vector<64x64xf32>
      %c0_22 = arith.constant 0 : index
      %c0_23 = arith.constant 0 : index
      %c0_24 = arith.constant 0 : index
      %41 = vector.load %arg11[%c0_22, %c0_23, %c0_24] : memref<4x64x1xf32, #tpu.memory_space<vmem>>, vector<1x64x1xf32>
      %42 = vector.shape_cast %41 : vector<1x64x1xf32> to vector<64x1xf32>
      %43 = arith.mulf %37, %42 : vector<64x1xf32>
      %cst_25 = arith.constant dense<0.000000e+00> : vector<64xf32>
      %44 = vector.multi_reduction <add>, %40, %cst_25 [1] : vector<64x64xf32> to vector<64xf32>
      %45 = vector.shape_cast %44 : vector<64xf32> to vector<64x1xf32>
      %46 = arith.addf %43, %45 : vector<64x1xf32>
      %c0_26 = arith.constant 0 : index
      %c0_27 = arith.constant 0 : index
      %c0_28 = arith.constant 0 : index
      %47 = vector.load %arg11[%c0_26, %c0_27, %c0_28] : memref<4x64x1xf32, #tpu.memory_space<vmem>>, vector<1x64x1xf32>
      %48 = vector.shape_cast %47 : vector<1x64x1xf32> to vector<64x1xf32>
      %49 = vector.shape_cast %46 : vector<64x1xf32> to vector<1x64x1xf32>
      tpu.vector_store %arg11[%c0_26, %c0_27, %c0_28], %49 {strides = array<i32>} : memref<4x64x1xf32, #tpu.memory_space<vmem>>, vector<1x64x1xf32>,
      %50 = vector.extract_strided_slice %27 {offsets = [0, 0], sizes = [64, 32], strides = [1, 1]} : vector<64x128xf32> to vector<64x32xf32>
      %cst_29 = arith.constant dense<0.000000e+00> : vector<64x32xf32>
      %51 = tpu.matmul %40, %50, %cst_29 {dimension_numbers = #tpu.dot_dimension_numbers<[1], [0], [0], [1], [0, 0, 1, 1], [], []>} : vector<64x64xf32>, vector<64x32xf32>, vector<64x32xf32> -> vector<64x32xf32>
      %c0_30 = arith.constant 0 : index
      %c0_31 = arith.constant 0 : index
      %52 = vector.load %arg12[%c0_30, %c0_31] : memref<64x128xf32, #tpu.memory_space<vmem>>, vector<64x32xf32>
      %53 = vector.broadcast %37 : vector<64x1xf32> to vector<64x32xf32>
      %54 = arith.mulf %53, %52 : vector<64x32xf32>
      %55 = arith.addf %54, %51 : vector<64x32xf32>
      %c0_32 = arith.constant 0 : index
      %c0_33 = arith.constant 0 : index
      %56 = vector.load %arg12[%c0_32, %c0_33] : memref<64x128xf32, #tpu.memory_space<vmem>>, vector<64x32xf32>
      tpu.vector_store %arg12[%c0_32, %c0_33], %55 {strides = array<i32>} : memref<64x128xf32, #tpu.memory_space<vmem>>, vector<64x32xf32>,
      %c0_34 = arith.constant 0 : index
      %c0_35 = arith.constant 0 : index
      %c0_36 = arith.constant 0 : index
      %57 = vector.load %arg10[%c0_34, %c0_35, %c0_36] : memref<4x64x1xf32, #tpu.memory_space<vmem>>, vector<1x64x1xf32>
      %58 = vector.shape_cast %57 : vector<1x64x1xf32> to vector<64x1xf32>
      %59 = vector.shape_cast %35 : vector<64x1xf32> to vector<1x64x1xf32>
      tpu.vector_store %arg10[%c0_34, %c0_35, %c0_36], %59 {strides = array<i32>} : memref<4x64x1xf32, #tpu.memory_space<vmem>>, vector<1x64x1xf32>,
      %60 = vector.extract_strided_slice %23 {offsets = [0, 32], sizes = [64, 32], strides = [1, 1]} : vector<64x128xf32> to vector<64x32xf32>
      %61 = vector.extract_strided_slice %25 {offsets = [0, 32], sizes = [64, 32], strides = [1, 1]} : vector<64x128xf32> to vector<64x32xf32>
      %cst_37 = arith.constant dense<0.000000e+00> : vector<64x64xf32>
      %62 = tpu.matmul %60, %61, %cst_37 {dimension_numbers = #tpu.dot_dimension_numbers<[1], [1], [0], [0], [0, 0, 1, 0], [], []>} : vector<64x32xf32>, vector<64x32xf32>, vector<64x64xf32> -> vector<64x64xf32>
      %c1 = arith.constant 1 : index
      %c0_38 = arith.constant 0 : index
      %c0_39 = arith.constant 0 : index
      %63 = vector.load %arg10[%c1, %c0_38, %c0_39] : memref<4x64x1xf32, #tpu.memory_space<vmem>>, vector<1x64x1xf32>
      %64 = vector.shape_cast %63 : vector<1x64x1xf32> to vector<64x1xf32>
      %cst_40 = arith.constant dense<0xFF800000> : vector<64xf32>
      %65 = vector.multi_reduction <maximumf>, %62, %cst_40 [1] : vector<64x64xf32> to vector<64xf32>
      %66 = vector.shape_cast %65 : vector<64xf32> to vector<64x1xf32>
      %67 = arith.maximumf %64, %66 : vector<64x1xf32>
      %68 = arith.subf %64, %67 : vector<64x1xf32>
      %69 = math.exp %68 : vector<64x1xf32>
      %70 = vector.broadcast %67 : vector<64x1xf32> to vector<64x64xf32>
      %71 = arith.subf %62, %70 : vector<64x64xf32>
      %72 = math.exp %71 : vector<64x64xf32>
      %c1_41 = arith.constant 1 : index
      %c0_42 = arith.constant 0 : index
      %c0_43 = arith.constant 0 : index
      %73 = vector.load %arg11[%c1_41, %c0_42, %c0_43] : memref<4x64x1xf32, #tpu.memory_space<vmem>>, vector<1x64x1xf32>
      %74 = vector.shape_cast %73 : vector<1x64x1xf32> to vector<64x1xf32>
      %75 = arith.mulf %69, %74 : vector<64x1xf32>
      %cst_44 = arith.constant dense<0.000000e+00> : vector<64xf32>
      %76 = vector.multi_reduction <add>, %72, %cst_44 [1] : vector<64x64xf32> to vector<64xf32>
      %77 = vector.shape_cast %76 : vector<64xf32> to vector<64x1xf32>
      %78 = arith.addf %75, %77 : vector<64x1xf32>
      %c1_45 = arith.constant 1 : index
      %c0_46 = arith.constant 0 : index
      %c0_47 = arith.constant 0 : index
      %79 = vector.load %arg11[%c1_45, %c0_46, %c0_47] : memref<4x64x1xf32, #tpu.memory_space<vmem>>, vector<1x64x1xf32>
      %80 = vector.shape_cast %79 : vector<1x64x1xf32> to vector<64x1xf32>
      %81 = vector.shape_cast %78 : vector<64x1xf32> to vector<1x64x1xf32>
      tpu.vector_store %arg11[%c1_45, %c0_46, %c0_47], %81 {strides = array<i32>} : memref<4x64x1xf32, #tpu.memory_space<vmem>>, vector<1x64x1xf32>,
      %82 = vector.extract_strided_slice %27 {offsets = [0, 32], sizes = [64, 32], strides = [1, 1]} : vector<64x128xf32> to vector<64x32xf32>
      %cst_48 = arith.constant dense<0.000000e+00> : vector<64x32xf32>
      %83 = tpu.matmul %72, %82, %cst_48 {dimension_numbers = #tpu.dot_dimension_numbers<[1], [0], [0], [1], [0, 0, 1, 1], [], []>} : vector<64x64xf32>, vector<64x32xf32>, vector<64x32xf32> -> vector<64x32xf32>
      %c0_49 = arith.constant 0 : index
      %c32 = arith.constant 32 : index
      %84 = vector.load %arg12[%c0_49, %c32] : memref<64x128xf32, #tpu.memory_space<vmem>>, vector<64x32xf32>
      %85 = vector.broadcast %69 : vector<64x1xf32> to vector<64x32xf32>
      %86 = arith.mulf %85, %84 : vector<64x32xf32>
      %87 = arith.addf %86, %83 : vector<64x32xf32>
      %c0_50 = arith.constant 0 : index
      %c32_51 = arith.constant 32 : index
      %88 = vector.load %arg12[%c0_50, %c32_51] : memref<64x128xf32, #tpu.memory_space<vmem>>, vector<64x32xf32>
      tpu.vector_store %arg12[%c0_50, %c32_51], %87 {strides = array<i32>} : memref<64x128xf32, #tpu.memory_space<vmem>>, vector<64x32xf32>,
      %c1_52 = arith.constant 1 : index
      %c0_53 = arith.constant 0 : index
      %c0_54 = arith.constant 0 : index
      %89 = vector.load %arg10[%c1_52, %c0_53, %c0_54] : memref<4x64x1xf32, #tpu.memory_space<vmem>>, vector<1x64x1xf32>
      %90 = vector.shape_cast %89 : vector<1x64x1xf32> to vector<64x1xf32>
      %91 = vector.shape_cast %67 : vector<64x1xf32> to vector<1x64x1xf32>
      tpu.vector_store %arg10[%c1_52, %c0_53, %c0_54], %91 {strides = array<i32>} : memref<4x64x1xf32, #tpu.memory_space<vmem>>, vector<1x64x1xf32>,
      %92 = vector.extract_strided_slice %23 {offsets = [0, 64], sizes = [64, 32], strides = [1, 1]} : vector<64x128xf32> to vector<64x32xf32>
      %93 = vector.extract_strided_slice %25 {offsets = [0, 64], sizes = [64, 32], strides = [1, 1]} : vector<64x128xf32> to vector<64x32xf32>
      %cst_55 = arith.constant dense<0.000000e+00> : vector<64x64xf32>
      %94 = tpu.matmul %92, %93, %cst_55 {dimension_numbers = #tpu.dot_dimension_numbers<[1], [1], [0], [0], [0, 0, 1, 0], [], []>} : vector<64x32xf32>, vector<64x32xf32>, vector<64x64xf32> -> vector<64x64xf32>
      %c2 = arith.constant 2 : index
      %c0_56 = arith.constant 0 : index
      %c0_57 = arith.constant 0 : index
      %95 = vector.load %arg10[%c2, %c0_56, %c0_57] : memref<4x64x1xf32, #tpu.memory_space<vmem>>, vector<1x64x1xf32>
      %96 = vector.shape_cast %95 : vector<1x64x1xf32> to vector<64x1xf32>
      %cst_58 = arith.constant dense<0xFF800000> : vector<64xf32>
      %97 = vector.multi_reduction <maximumf>, %94, %cst_58 [1] : vector<64x64xf32> to vector<64xf32>
      %98 = vector.shape_cast %97 : vector<64xf32> to vector<64x1xf32>
      %99 = arith.maximumf %96, %98 : vector<64x1xf32>
      %100 = arith.subf %96, %99 : vector<64x1xf32>
      %101 = math.exp %100 : vector<64x1xf32>
      %102 = vector.broadcast %99 : vector<64x1xf32> to vector<64x64xf32>
      %103 = arith.subf %94, %102 : vector<64x64xf32>
      %104 = math.exp %103 : vector<64x64xf32>
      %c2_59 = arith.constant 2 : index
      %c0_60 = arith.constant 0 : index
      %c0_61 = arith.constant 0 : index
      %105 = vector.load %arg11[%c2_59, %c0_60, %c0_61] : memref<4x64x1xf32, #tpu.memory_space<vmem>>, vector<1x64x1xf32>
      %106 = vector.shape_cast %105 : vector<1x64x1xf32> to vector<64x1xf32>
      %107 = arith.mulf %101, %106 : vector<64x1xf32>
      %cst_62 = arith.constant dense<0.000000e+00> : vector<64xf32>
      %108 = vector.multi_reduction <add>, %104, %cst_62 [1] : vector<64x64xf32> to vector<64xf32>
      %109 = vector.shape_cast %108 : vector<64xf32> to vector<64x1xf32>
      %110 = arith.addf %107, %109 : vector<64x1xf32>
      %c2_63 = arith.constant 2 : index
      %c0_64 = arith.constant 0 : index
      %c0_65 = arith.constant 0 : index
      %111 = vector.load %arg11[%c2_63, %c0_64, %c0_65] : memref<4x64x1xf32, #tpu.memory_space<vmem>>, vector<1x64x1xf32>
      %112 = vector.shape_cast %111 : vector<1x64x1xf32> to vector<64x1xf32>
      %113 = vector.shape_cast %110 : vector<64x1xf32> to vector<1x64x1xf32>
      tpu.vector_store %arg11[%c2_63, %c0_64, %c0_65], %113 {strides = array<i32>} : memref<4x64x1xf32, #tpu.memory_space<vmem>>, vector<1x64x1xf32>,
      %114 = vector.extract_strided_slice %27 {offsets = [0, 64], sizes = [64, 32], strides = [1, 1]} : vector<64x128xf32> to vector<64x32xf32>
      %cst_66 = arith.constant dense<0.000000e+00> : vector<64x32xf32>
      %115 = tpu.matmul %104, %114, %cst_66 {dimension_numbers = #tpu.dot_dimension_numbers<[1], [0], [0], [1], [0, 0, 1, 1], [], []>} : vector<64x64xf32>, vector<64x32xf32>, vector<64x32xf32> -> vector<64x32xf32>
      %c0_67 = arith.constant 0 : index
      %c64 = arith.constant 64 : index
      %116 = vector.load %arg12[%c0_67, %c64] : memref<64x128xf32, #tpu.memory_space<vmem>>, vector<64x32xf32>
      %117 = vector.broadcast %101 : vector<64x1xf32> to vector<64x32xf32>
      %118 = arith.mulf %117, %116 : vector<64x32xf32>
      %119 = arith.addf %118, %115 : vector<64x32xf32>
      %c0_68 = arith.constant 0 : index
      %c64_69 = arith.constant 64 : index
      %120 = vector.load %arg12[%c0_68, %c64_69] : memref<64x128xf32, #tpu.memory_space<vmem>>, vector<64x32xf32>
      tpu.vector_store %arg12[%c0_68, %c64_69], %119 {strides = array<i32>} : memref<64x128xf32, #tpu.memory_space<vmem>>, vector<64x32xf32>,
      %c2_70 = arith.constant 2 : index
      %c0_71 = arith.constant 0 : index
      %c0_72 = arith.constant 0 : index
      %121 = vector.load %arg10[%c2_70, %c0_71, %c0_72] : memref<4x64x1xf32, #tpu.memory_space<vmem>>, vector<1x64x1xf32>
      %122 = vector.shape_cast %121 : vector<1x64x1xf32> to vector<64x1xf32>
      %123 = vector.shape_cast %99 : vector<64x1xf32> to vector<1x64x1xf32>
      tpu.vector_store %arg10[%c2_70, %c0_71, %c0_72], %123 {strides = array<i32>} : memref<4x64x1xf32, #tpu.memory_space<vmem>>, vector<1x64x1xf32>,
      %124 = vector.extract_strided_slice %23 {offsets = [0, 96], sizes = [64, 32], strides = [1, 1]} : vector<64x128xf32> to vector<64x32xf32>
      %125 = vector.extract_strided_slice %25 {offsets = [0, 96], sizes = [64, 32], strides = [1, 1]} : vector<64x128xf32> to vector<64x32xf32>
      %cst_73 = arith.constant dense<0.000000e+00> : vector<64x64xf32>
      %126 = tpu.matmul %124, %125, %cst_73 {dimension_numbers = #tpu.dot_dimension_numbers<[1], [1], [0], [0], [0, 0, 1, 0], [], []>} : vector<64x32xf32>, vector<64x32xf32>, vector<64x64xf32> -> vector<64x64xf32>
      %c3 = arith.constant 3 : index
      %c0_74 = arith.constant 0 : index
      %c0_75 = arith.constant 0 : index
      %127 = vector.load %arg10[%c3, %c0_74, %c0_75] : memref<4x64x1xf32, #tpu.memory_space<vmem>>, vector<1x64x1xf32>
      %128 = vector.shape_cast %127 : vector<1x64x1xf32> to vector<64x1xf32>
      %cst_76 = arith.constant dense<0xFF800000> : vector<64xf32>
      %129 = vector.multi_reduction <maximumf>, %126, %cst_76 [1] : vector<64x64xf32> to vector<64xf32>
      %130 = vector.shape_cast %129 : vector<64xf32> to vector<64x1xf32>
      %131 = arith.maximumf %128, %130 : vector<64x1xf32>
      %132 = arith.subf %128, %131 : vector<64x1xf32>
      %133 = math.exp %132 : vector<64x1xf32>
      %134 = vector.broadcast %131 : vector<64x1xf32> to vector<64x64xf32>
      %135 = arith.subf %126, %134 : vector<64x64xf32>
      %136 = math.exp %135 : vector<64x64xf32>
      %c3_77 = arith.constant 3 : index
      %c0_78 = arith.constant 0 : index
      %c0_79 = arith.constant 0 : index
      %137 = vector.load %arg11[%c3_77, %c0_78, %c0_79] : memref<4x64x1xf32, #tpu.memory_space<vmem>>, vector<1x64x1xf32>
      %138 = vector.shape_cast %137 : vector<1x64x1xf32> to vector<64x1xf32>
      %139 = arith.mulf %133, %138 : vector<64x1xf32>
      %cst_80 = arith.constant dense<0.000000e+00> : vector<64xf32>
      %140 = vector.multi_reduction <add>, %136, %cst_80 [1] : vector<64x64xf32> to vector<64xf32>
      %141 = vector.shape_cast %140 : vector<64xf32> to vector<64x1xf32>
      %142 = arith.addf %139, %141 : vector<64x1xf32>
      %c3_81 = arith.constant 3 : index
      %c0_82 = arith.constant 0 : index
      %c0_83 = arith.constant 0 : index
      %143 = vector.load %arg11[%c3_81, %c0_82, %c0_83] : memref<4x64x1xf32, #tpu.memory_space<vmem>>, vector<1x64x1xf32>
      %144 = vector.shape_cast %143 : vector<1x64x1xf32> to vector<64x1xf32>
      %145 = vector.shape_cast %142 : vector<64x1xf32> to vector<1x64x1xf32>
      tpu.vector_store %arg11[%c3_81, %c0_82, %c0_83], %145 {strides = array<i32>} : memref<4x64x1xf32, #tpu.memory_space<vmem>>, vector<1x64x1xf32>,
      %146 = vector.extract_strided_slice %27 {offsets = [0, 96], sizes = [64, 32], strides = [1, 1]} : vector<64x128xf32> to vector<64x32xf32>
      %cst_84 = arith.constant dense<0.000000e+00> : vector<64x32xf32>
      %147 = tpu.matmul %136, %146, %cst_84 {dimension_numbers = #tpu.dot_dimension_numbers<[1], [0], [0], [1], [0, 0, 1, 1], [], []>} : vector<64x64xf32>, vector<64x32xf32>, vector<64x32xf32> -> vector<64x32xf32>
      %c0_85 = arith.constant 0 : index
      %c96 = arith.constant 96 : index
      %148 = vector.load %arg12[%c0_85, %c96] : memref<64x128xf32, #tpu.memory_space<vmem>>, vector<64x32xf32>
      %149 = vector.broadcast %133 : vector<64x1xf32> to vector<64x32xf32>
      %150 = arith.mulf %149, %148 : vector<64x32xf32>
      %151 = arith.addf %150, %147 : vector<64x32xf32>
      %c0_86 = arith.constant 0 : index
      %c96_87 = arith.constant 96 : index
      %152 = vector.load %arg12[%c0_86, %c96_87] : memref<64x128xf32, #tpu.memory_space<vmem>>, vector<64x32xf32>
      tpu.vector_store %arg12[%c0_86, %c96_87], %151 {strides = array<i32>} : memref<64x128xf32, #tpu.memory_space<vmem>>, vector<64x32xf32>,
      %c3_88 = arith.constant 3 : index
      %c0_89 = arith.constant 0 : index
      %c0_90 = arith.constant 0 : index
      %153 = vector.load %arg10[%c3_88, %c0_89, %c0_90] : memref<4x64x1xf32, #tpu.memory_space<vmem>>, vector<1x64x1xf32>
      %154 = vector.shape_cast %153 : vector<1x64x1xf32> to vector<64x1xf32>
      %155 = vector.shape_cast %131 : vector<64x1xf32> to vector<1x64x1xf32>
      tpu.vector_store %arg10[%c3_88, %c0_89, %c0_90], %155 {strides = array<i32>} : memref<4x64x1xf32, #tpu.memory_space<vmem>>, vector<1x64x1xf32>,
    } else {
    }
    %11 = arith.cmpi eq, %arg3, %arg1 : i32
    %12 = arith.extui %11 : i1 to i32
    %c0_i32_5 = arith.constant 0 : i32
    %13 = arith.cmpi ne, %12, %c0_i32_5 : i32
    scf.if %13 {
      %c0 = arith.constant 0 : index
      %c0_10 = arith.constant 0 : index
      %c0_11 = arith.constant 0 : index
      %22 = vector.load %arg4[%c0, %c0_10, %c0_11] : memref<1x64x128xf32, #tpu.memory_space<vmem>>, vector<1x64x128xf32>
      %23 = vector.shape_cast %22 : vector<1x64x128xf32> to vector<64x128xf32>
      %c0_12 = arith.constant 0 : index
      %c0_13 = arith.constant 0 : index
      %c0_14 = arith.constant 0 : index
      %24 = vector.load %arg5[%c0_12, %c0_13, %c0_14] : memref<1x64x128xf32, #tpu.memory_space<vmem>>, vector<1x64x128xf32>
      %25 = vector.shape_cast %24 : vector<1x64x128xf32> to vector<64x128xf32>
      %c0_15 = arith.constant 0 : index
      %c0_16 = arith.constant 0 : index
      %c0_17 = arith.constant 0 : index
      %26 = vector.load %arg6[%c0_15, %c0_16, %c0_17] : memref<1x64x128xf32, #tpu.memory_space<vmem>>, vector<1x64x128xf32>
      %27 = vector.shape_cast %26 : vector<1x64x128xf32> to vector<64x128xf32>
      %28 = tpu.iota {dimensions = array<i32: 0>} : vector<64x64xi32>
      %29 = tpu.iota {dimensions = array<i32: 1>} : vector<64x64xi32>
      %30 = arith.cmpi sge, %28, %29 : vector<64x64xi32>
      %31 = vector.extract_strided_slice %23 {offsets = [0, 0], sizes = [64, 32], strides = [1, 1]} : vector<64x128xf32> to vector<64x32xf32>
      %32 = vector.extract_strided_slice %25 {offsets = [0, 0], sizes = [64, 32], strides = [1, 1]} : vector<64x128xf32> to vector<64x32xf32>
      %cst = arith.constant dense<0.000000e+00> : vector<64x64xf32>
      %33 = tpu.matmul %31, %32, %cst {dimension_numbers = #tpu.dot_dimension_numbers<[1], [1], [0], [0], [0, 0, 1, 0], [], []>} : vector<64x32xf32>, vector<64x32xf32>, vector<64x64xf32> -> vector<64x64xf32>
      %cst_18 = arith.constant -1.000000e+30 : f32
      %34 = vector.broadcast %cst_18 : f32 to vector<64x64xf32>
      %35 = arith.select %30, %33, %34 : vector<64x64xi1>, vector<64x64xf32>
      %c0_19 = arith.constant 0 : index
      %c0_20 = arith.constant 0 : index
      %c0_21 = arith.constant 0 : index
      %36 = vector.load %arg10[%c0_19, %c0_20, %c0_21] : memref<4x64x1xf32, #tpu.memory_space<vmem>>, vector<1x64x1xf32>
      %37 = vector.shape_cast %36 : vector<1x64x1xf32> to vector<64x1xf32>
      %cst_22 = arith.constant dense<0xFF800000> : vector<64xf32>
      %38 = vector.multi_reduction <maximumf>, %35, %cst_22 [1] : vector<64x64xf32> to vector<64xf32>
      %39 = vector.shape_cast %38 : vector<64xf32> to vector<64x1xf32>
      %40 = arith.maximumf %37, %39 : vector<64x1xf32>
      %41 = arith.subf %37, %40 : vector<64x1xf32>
      %42 = math.exp %41 : vector<64x1xf32>
      %43 = vector.broadcast %40 : vector<64x1xf32> to vector<64x64xf32>
      %44 = arith.subf %35, %43 : vector<64x64xf32>
      %45 = math.exp %44 : vector<64x64xf32>
      %c0_23 = arith.constant 0 : index
      %c0_24 = arith.constant 0 : index
      %c0_25 = arith.constant 0 : index
      %46 = vector.load %arg11[%c0_23, %c0_24, %c0_25] : memref<4x64x1xf32, #tpu.memory_space<vmem>>, vector<1x64x1xf32>
      %47 = vector.shape_cast %46 : vector<1x64x1xf32> to vector<64x1xf32>
      %48 = arith.mulf %42, %47 : vector<64x1xf32>
      %cst_26 = arith.constant dense<0.000000e+00> : vector<64xf32>
      %49 = vector.multi_reduction <add>, %45, %cst_26 [1] : vector<64x64xf32> to vector<64xf32>
      %50 = vector.shape_cast %49 : vector<64xf32> to vector<64x1xf32>
      %51 = arith.addf %48, %50 : vector<64x1xf32>
      %c0_27 = arith.constant 0 : index
      %c0_28 = arith.constant 0 : index
      %c0_29 = arith.constant 0 : index
      %52 = vector.load %arg11[%c0_27, %c0_28, %c0_29] : memref<4x64x1xf32, #tpu.memory_space<vmem>>, vector<1x64x1xf32>
      %53 = vector.shape_cast %52 : vector<1x64x1xf32> to vector<64x1xf32>
      %54 = vector.shape_cast %51 : vector<64x1xf32> to vector<1x64x1xf32>
      tpu.vector_store %arg11[%c0_27, %c0_28, %c0_29], %54 {strides = array<i32>} : memref<4x64x1xf32, #tpu.memory_space<vmem>>, vector<1x64x1xf32>,
      %55 = vector.extract_strided_slice %27 {offsets = [0, 0], sizes = [64, 32], strides = [1, 1]} : vector<64x128xf32> to vector<64x32xf32>
      %cst_30 = arith.constant dense<0.000000e+00> : vector<64x32xf32>
      %56 = tpu.matmul %45, %55, %cst_30 {dimension_numbers = #tpu.dot_dimension_numbers<[1], [0], [0], [1], [0, 0, 1, 1], [], []>} : vector<64x64xf32>, vector<64x32xf32>, vector<64x32xf32> -> vector<64x32xf32>
      %c0_31 = arith.constant 0 : index
      %c0_32 = arith.constant 0 : index
      %57 = vector.load %arg12[%c0_31, %c0_32] : memref<64x128xf32, #tpu.memory_space<vmem>>, vector<64x32xf32>
      %58 = vector.broadcast %42 : vector<64x1xf32> to vector<64x32xf32>
      %59 = arith.mulf %58, %57 : vector<64x32xf32>
      %60 = arith.addf %59, %56 : vector<64x32xf32>
      %c0_33 = arith.constant 0 : index
      %c0_34 = arith.constant 0 : index
      %61 = vector.load %arg12[%c0_33, %c0_34] : memref<64x128xf32, #tpu.memory_space<vmem>>, vector<64x32xf32>
      tpu.vector_store %arg12[%c0_33, %c0_34], %60 {strides = array<i32>} : memref<64x128xf32, #tpu.memory_space<vmem>>, vector<64x32xf32>,
      %c0_35 = arith.constant 0 : index
      %c0_36 = arith.constant 0 : index
      %c0_37 = arith.constant 0 : index
      %62 = vector.load %arg10[%c0_35, %c0_36, %c0_37] : memref<4x64x1xf32, #tpu.memory_space<vmem>>, vector<1x64x1xf32>
      %63 = vector.shape_cast %62 : vector<1x64x1xf32> to vector<64x1xf32>
      %64 = vector.shape_cast %40 : vector<64x1xf32> to vector<1x64x1xf32>
      tpu.vector_store %arg10[%c0_35, %c0_36, %c0_37], %64 {strides = array<i32>} : memref<4x64x1xf32, #tpu.memory_space<vmem>>, vector<1x64x1xf32>,
      %65 = vector.extract_strided_slice %23 {offsets = [0, 32], sizes = [64, 32], strides = [1, 1]} : vector<64x128xf32> to vector<64x32xf32>
      %66 = vector.extract_strided_slice %25 {offsets = [0, 32], sizes = [64, 32], strides = [1, 1]} : vector<64x128xf32> to vector<64x32xf32>
      %cst_38 = arith.constant dense<0.000000e+00> : vector<64x64xf32>
      %67 = tpu.matmul %65, %66, %cst_38 {dimension_numbers = #tpu.dot_dimension_numbers<[1], [1], [0], [0], [0, 0, 1, 0], [], []>} : vector<64x32xf32>, vector<64x32xf32>, vector<64x64xf32> -> vector<64x64xf32>
      %cst_39 = arith.constant -1.000000e+30 : f32
      %68 = vector.broadcast %cst_39 : f32 to vector<64x64xf32>
      %69 = arith.select %30, %67, %68 : vector<64x64xi1>, vector<64x64xf32>
      %c1 = arith.constant 1 : index
      %c0_40 = arith.constant 0 : index
      %c0_41 = arith.constant 0 : index
      %70 = vector.load %arg10[%c1, %c0_40, %c0_41] : memref<4x64x1xf32, #tpu.memory_space<vmem>>, vector<1x64x1xf32>
      %71 = vector.shape_cast %70 : vector<1x64x1xf32> to vector<64x1xf32>
      %cst_42 = arith.constant dense<0xFF800000> : vector<64xf32>
      %72 = vector.multi_reduction <maximumf>, %69, %cst_42 [1] : vector<64x64xf32> to vector<64xf32>
      %73 = vector.shape_cast %72 : vector<64xf32> to vector<64x1xf32>
      %74 = arith.maximumf %71, %73 : vector<64x1xf32>
      %75 = arith.subf %71, %74 : vector<64x1xf32>
      %76 = math.exp %75 : vector<64x1xf32>
      %77 = vector.broadcast %74 : vector<64x1xf32> to vector<64x64xf32>
      %78 = arith.subf %69, %77 : vector<64x64xf32>
      %79 = math.exp %78 : vector<64x64xf32>
      %c1_43 = arith.constant 1 : index
      %c0_44 = arith.constant 0 : index
      %c0_45 = arith.constant 0 : index
      %80 = vector.load %arg11[%c1_43, %c0_44, %c0_45] : memref<4x64x1xf32, #tpu.memory_space<vmem>>, vector<1x64x1xf32>
      %81 = vector.shape_cast %80 : vector<1x64x1xf32> to vector<64x1xf32>
      %82 = arith.mulf %76, %81 : vector<64x1xf32>
      %cst_46 = arith.constant dense<0.000000e+00> : vector<64xf32>
      %83 = vector.multi_reduction <add>, %79, %cst_46 [1] : vector<64x64xf32> to vector<64xf32>
      %84 = vector.shape_cast %83 : vector<64xf32> to vector<64x1xf32>
      %85 = arith.addf %82, %84 : vector<64x1xf32>
      %c1_47 = arith.constant 1 : index
      %c0_48 = arith.constant 0 : index
      %c0_49 = arith.constant 0 : index
      %86 = vector.load %arg11[%c1_47, %c0_48, %c0_49] : memref<4x64x1xf32, #tpu.memory_space<vmem>>, vector<1x64x1xf32>
      %87 = vector.shape_cast %86 : vector<1x64x1xf32> to vector<64x1xf32>
      %88 = vector.shape_cast %85 : vector<64x1xf32> to vector<1x64x1xf32>
      tpu.vector_store %arg11[%c1_47, %c0_48, %c0_49], %88 {strides = array<i32>} : memref<4x64x1xf32, #tpu.memory_space<vmem>>, vector<1x64x1xf32>,
      %89 = vector.extract_strided_slice %27 {offsets = [0, 32], sizes = [64, 32], strides = [1, 1]} : vector<64x128xf32> to vector<64x32xf32>
      %cst_50 = arith.constant dense<0.000000e+00> : vector<64x32xf32>
      %90 = tpu.matmul %79, %89, %cst_50 {dimension_numbers = #tpu.dot_dimension_numbers<[1], [0], [0], [1], [0, 0, 1, 1], [], []>} : vector<64x64xf32>, vector<64x32xf32>, vector<64x32xf32> -> vector<64x32xf32>
      %c0_51 = arith.constant 0 : index
      %c32 = arith.constant 32 : index
      %91 = vector.load %arg12[%c0_51, %c32] : memref<64x128xf32, #tpu.memory_space<vmem>>, vector<64x32xf32>
      %92 = vector.broadcast %76 : vector<64x1xf32> to vector<64x32xf32>
      %93 = arith.mulf %92, %91 : vector<64x32xf32>
      %94 = arith.addf %93, %90 : vector<64x32xf32>
      %c0_52 = arith.constant 0 : index
      %c32_53 = arith.constant 32 : index
      %95 = vector.load %arg12[%c0_52, %c32_53] : memref<64x128xf32, #tpu.memory_space<vmem>>, vector<64x32xf32>
      tpu.vector_store %arg12[%c0_52, %c32_53], %94 {strides = array<i32>} : memref<64x128xf32, #tpu.memory_space<vmem>>, vector<64x32xf32>,
      %c1_54 = arith.constant 1 : index
      %c0_55 = arith.constant 0 : index
      %c0_56 = arith.constant 0 : index
      %96 = vector.load %arg10[%c1_54, %c0_55, %c0_56] : memref<4x64x1xf32, #tpu.memory_space<vmem>>, vector<1x64x1xf32>
      %97 = vector.shape_cast %96 : vector<1x64x1xf32> to vector<64x1xf32>
      %98 = vector.shape_cast %74 : vector<64x1xf32> to vector<1x64x1xf32>
      tpu.vector_store %arg10[%c1_54, %c0_55, %c0_56], %98 {strides = array<i32>} : memref<4x64x1xf32, #tpu.memory_space<vmem>>, vector<1x64x1xf32>,
      %99 = vector.extract_strided_slice %23 {offsets = [0, 64], sizes = [64, 32], strides = [1, 1]} : vector<64x128xf32> to vector<64x32xf32>
      %100 = vector.extract_strided_slice %25 {offsets = [0, 64], sizes = [64, 32], strides = [1, 1]} : vector<64x128xf32> to vector<64x32xf32>
      %cst_57 = arith.constant dense<0.000000e+00> : vector<64x64xf32>
      %101 = tpu.matmul %99, %100, %cst_57 {dimension_numbers = #tpu.dot_dimension_numbers<[1], [1], [0], [0], [0, 0, 1, 0], [], []>} : vector<64x32xf32>, vector<64x32xf32>, vector<64x64xf32> -> vector<64x64xf32>
      %cst_58 = arith.constant -1.000000e+30 : f32
      %102 = vector.broadcast %cst_58 : f32 to vector<64x64xf32>
      %103 = arith.select %30, %101, %102 : vector<64x64xi1>, vector<64x64xf32>
      %c2 = arith.constant 2 : index
      %c0_59 = arith.constant 0 : index
      %c0_60 = arith.constant 0 : index
      %104 = vector.load %arg10[%c2, %c0_59, %c0_60] : memref<4x64x1xf32, #tpu.memory_space<vmem>>, vector<1x64x1xf32>
      %105 = vector.shape_cast %104 : vector<1x64x1xf32> to vector<64x1xf32>
      %cst_61 = arith.constant dense<0xFF800000> : vector<64xf32>
      %106 = vector.multi_reduction <maximumf>, %103, %cst_61 [1] : vector<64x64xf32> to vector<64xf32>
      %107 = vector.shape_cast %106 : vector<64xf32> to vector<64x1xf32>
      %108 = arith.maximumf %105, %107 : vector<64x1xf32>
      %109 = arith.subf %105, %108 : vector<64x1xf32>
      %110 = math.exp %109 : vector<64x1xf32>
      %111 = vector.broadcast %108 : vector<64x1xf32> to vector<64x64xf32>
      %112 = arith.subf %103, %111 : vector<64x64xf32>
      %113 = math.exp %112 : vector<64x64xf32>
      %c2_62 = arith.constant 2 : index
      %c0_63 = arith.constant 0 : index
      %c0_64 = arith.constant 0 : index
      %114 = vector.load %arg11[%c2_62, %c0_63, %c0_64] : memref<4x64x1xf32, #tpu.memory_space<vmem>>, vector<1x64x1xf32>
      %115 = vector.shape_cast %114 : vector<1x64x1xf32> to vector<64x1xf32>
      %116 = arith.mulf %110, %115 : vector<64x1xf32>
      %cst_65 = arith.constant dense<0.000000e+00> : vector<64xf32>
      %117 = vector.multi_reduction <add>, %113, %cst_65 [1] : vector<64x64xf32> to vector<64xf32>
      %118 = vector.shape_cast %117 : vector<64xf32> to vector<64x1xf32>
      %119 = arith.addf %116, %118 : vector<64x1xf32>
      %c2_66 = arith.constant 2 : index
      %c0_67 = arith.constant 0 : index
      %c0_68 = arith.constant 0 : index
      %120 = vector.load %arg11[%c2_66, %c0_67, %c0_68] : memref<4x64x1xf32, #tpu.memory_space<vmem>>, vector<1x64x1xf32>
      %121 = vector.shape_cast %120 : vector<1x64x1xf32> to vector<64x1xf32>
      %122 = vector.shape_cast %119 : vector<64x1xf32> to vector<1x64x1xf32>
      tpu.vector_store %arg11[%c2_66, %c0_67, %c0_68], %122 {strides = array<i32>} : memref<4x64x1xf32, #tpu.memory_space<vmem>>, vector<1x64x1xf32>,
      %123 = vector.extract_strided_slice %27 {offsets = [0, 64], sizes = [64, 32], strides = [1, 1]} : vector<64x128xf32> to vector<64x32xf32>
      %cst_69 = arith.constant dense<0.000000e+00> : vector<64x32xf32>
      %124 = tpu.matmul %113, %123, %cst_69 {dimension_numbers = #tpu.dot_dimension_numbers<[1], [0], [0], [1], [0, 0, 1, 1], [], []>} : vector<64x64xf32>, vector<64x32xf32>, vector<64x32xf32> -> vector<64x32xf32>
      %c0_70 = arith.constant 0 : index
      %c64 = arith.constant 64 : index
      %125 = vector.load %arg12[%c0_70, %c64] : memref<64x128xf32, #tpu.memory_space<vmem>>, vector<64x32xf32>
      %126 = vector.broadcast %110 : vector<64x1xf32> to vector<64x32xf32>
      %127 = arith.mulf %126, %125 : vector<64x32xf32>
      %128 = arith.addf %127, %124 : vector<64x32xf32>
      %c0_71 = arith.constant 0 : index
      %c64_72 = arith.constant 64 : index
      %129 = vector.load %arg12[%c0_71, %c64_72] : memref<64x128xf32, #tpu.memory_space<vmem>>, vector<64x32xf32>
      tpu.vector_store %arg12[%c0_71, %c64_72], %128 {strides = array<i32>} : memref<64x128xf32, #tpu.memory_space<vmem>>, vector<64x32xf32>,
      %c2_73 = arith.constant 2 : index
      %c0_74 = arith.constant 0 : index
      %c0_75 = arith.constant 0 : index
      %130 = vector.load %arg10[%c2_73, %c0_74, %c0_75] : memref<4x64x1xf32, #tpu.memory_space<vmem>>, vector<1x64x1xf32>
      %131 = vector.shape_cast %130 : vector<1x64x1xf32> to vector<64x1xf32>
      %132 = vector.shape_cast %108 : vector<64x1xf32> to vector<1x64x1xf32>
      tpu.vector_store %arg10[%c2_73, %c0_74, %c0_75], %132 {strides = array<i32>} : memref<4x64x1xf32, #tpu.memory_space<vmem>>, vector<1x64x1xf32>,
      %133 = vector.extract_strided_slice %23 {offsets = [0, 96], sizes = [64, 32], strides = [1, 1]} : vector<64x128xf32> to vector<64x32xf32>
      %134 = vector.extract_strided_slice %25 {offsets = [0, 96], sizes = [64, 32], strides = [1, 1]} : vector<64x128xf32> to vector<64x32xf32>
      %cst_76 = arith.constant dense<0.000000e+00> : vector<64x64xf32>
      %135 = tpu.matmul %133, %134, %cst_76 {dimension_numbers = #tpu.dot_dimension_numbers<[1], [1], [0], [0], [0, 0, 1, 0], [], []>} : vector<64x32xf32>, vector<64x32xf32>, vector<64x64xf32> -> vector<64x64xf32>
      %cst_77 = arith.constant -1.000000e+30 : f32
      %136 = vector.broadcast %cst_77 : f32 to vector<64x64xf32>
      %137 = arith.select %30, %135, %136 : vector<64x64xi1>, vector<64x64xf32>
      %c3 = arith.constant 3 : index
      %c0_78 = arith.constant 0 : index
      %c0_79 = arith.constant 0 : index
      %138 = vector.load %arg10[%c3, %c0_78, %c0_79] : memref<4x64x1xf32, #tpu.memory_space<vmem>>, vector<1x64x1xf32>
      %139 = vector.shape_cast %138 : vector<1x64x1xf32> to vector<64x1xf32>
      %cst_80 = arith.constant dense<0xFF800000> : vector<64xf32>
      %140 = vector.multi_reduction <maximumf>, %137, %cst_80 [1] : vector<64x64xf32> to vector<64xf32>
      %141 = vector.shape_cast %140 : vector<64xf32> to vector<64x1xf32>
      %142 = arith.maximumf %139, %141 : vector<64x1xf32>
      %143 = arith.subf %139, %142 : vector<64x1xf32>
      %144 = math.exp %143 : vector<64x1xf32>
      %145 = vector.broadcast %142 : vector<64x1xf32> to vector<64x64xf32>
      %146 = arith.subf %137, %145 : vector<64x64xf32>
      %147 = math.exp %146 : vector<64x64xf32>
      %c3_81 = arith.constant 3 : index
      %c0_82 = arith.constant 0 : index
      %c0_83 = arith.constant 0 : index
      %148 = vector.load %arg11[%c3_81, %c0_82, %c0_83] : memref<4x64x1xf32, #tpu.memory_space<vmem>>, vector<1x64x1xf32>
      %149 = vector.shape_cast %148 : vector<1x64x1xf32> to vector<64x1xf32>
      %150 = arith.mulf %144, %149 : vector<64x1xf32>
      %cst_84 = arith.constant dense<0.000000e+00> : vector<64xf32>
      %151 = vector.multi_reduction <add>, %147, %cst_84 [1] : vector<64x64xf32> to vector<64xf32>
      %152 = vector.shape_cast %151 : vector<64xf32> to vector<64x1xf32>
      %153 = arith.addf %150, %152 : vector<64x1xf32>
      %c3_85 = arith.constant 3 : index
      %c0_86 = arith.constant 0 : index
      %c0_87 = arith.constant 0 : index
      %154 = vector.load %arg11[%c3_85, %c0_86, %c0_87] : memref<4x64x1xf32, #tpu.memory_space<vmem>>, vector<1x64x1xf32>
      %155 = vector.shape_cast %154 : vector<1x64x1xf32> to vector<64x1xf32>
      %156 = vector.shape_cast %153 : vector<64x1xf32> to vector<1x64x1xf32>
      tpu.vector_store %arg11[%c3_85, %c0_86, %c0_87], %156 {strides = array<i32>} : memref<4x64x1xf32, #tpu.memory_space<vmem>>, vector<1x64x1xf32>,
      %157 = vector.extract_strided_slice %27 {offsets = [0, 96], sizes = [64, 32], strides = [1, 1]} : vector<64x128xf32> to vector<64x32xf32>
      %cst_88 = arith.constant dense<0.000000e+00> : vector<64x32xf32>
      %158 = tpu.matmul %147, %157, %cst_88 {dimension_numbers = #tpu.dot_dimension_numbers<[1], [0], [0], [1], [0, 0, 1, 1], [], []>} : vector<64x64xf32>, vector<64x32xf32>, vector<64x32xf32> -> vector<64x32xf32>
      %c0_89 = arith.constant 0 : index
      %c96 = arith.constant 96 : index
      %159 = vector.load %arg12[%c0_89, %c96] : memref<64x128xf32, #tpu.memory_space<vmem>>, vector<64x32xf32>
      %160 = vector.broadcast %144 : vector<64x1xf32> to vector<64x32xf32>
      %161 = arith.mulf %160, %159 : vector<64x32xf32>
      %162 = arith.addf %161, %158 : vector<64x32xf32>
      %c0_90 = arith.constant 0 : index
      %c96_91 = arith.constant 96 : index
      %163 = vector.load %arg12[%c0_90, %c96_91] : memref<64x128xf32, #tpu.memory_space<vmem>>, vector<64x32xf32>
      tpu.vector_store %arg12[%c0_90, %c96_91], %162 {strides = array<i32>} : memref<64x128xf32, #tpu.memory_space<vmem>>, vector<64x32xf32>,
      %c3_92 = arith.constant 3 : index
      %c0_93 = arith.constant 0 : index
      %c0_94 = arith.constant 0 : index
      %164 = vector.load %arg10[%c3_92, %c0_93, %c0_94] : memref<4x64x1xf32, #tpu.memory_space<vmem>>, vector<1x64x1xf32>
      %165 = vector.shape_cast %164 : vector<1x64x1xf32> to vector<64x1xf32>
      %166 = vector.shape_cast %142 : vector<64x1xf32> to vector<1x64x1xf32>
      tpu.vector_store %arg10[%c3_92, %c0_93, %c0_94], %166 {strides = array<i32>} : memref<4x64x1xf32, #tpu.memory_space<vmem>>, vector<1x64x1xf32>,
    } else {
    }
    %c1_i32 = arith.constant 1 : i32
    %14 = arith.cmpi eq, %arg3, %c1_i32 : i32
    %15 = arith.extui %14 : i1 to i32
    %c0_i32_6 = arith.constant 0 : i32
    %16 = arith.cmpi ne, %15, %c0_i32_6 : i32
    scf.if %16 {
      %c0 = arith.constant 0 : index
      %c0_10 = arith.constant 0 : index
      %22 = vector.load %arg12[%c0, %c0_10] : memref<64x128xf32, #tpu.memory_space<vmem>>, vector<64x32xf32>
      %c0_11 = arith.constant 0 : index
      %c0_12 = arith.constant 0 : index
      %c0_13 = arith.constant 0 : index
      %23 = vector.load %arg11[%c0_11, %c0_12, %c0_13] : memref<4x64x1xf32, #tpu.memory_space<vmem>>, vector<1x64x1xf32>
      %24 = vector.shape_cast %23 : vector<1x64x1xf32> to vector<64x1xf32>
      %25 = tpu.reciprocal %24 {approx = true} : vector<64x1xf32> -> vector<64x1xf32>
      %26 = vector.broadcast %25 : vector<64x1xf32> to vector<64x32xf32>
      %27 = arith.mulf %22, %26 : vector<64x32xf32>
      %c0_14 = arith.constant 0 : index
      %c0_15 = arith.constant 0 : index
      %28 = vector.load %arg12[%c0_14, %c0_15] : memref<64x128xf32, #tpu.memory_space<vmem>>, vector<64x32xf32>
      tpu.vector_store %arg12[%c0_14, %c0_15], %27 {strides = array<i32>} : memref<64x128xf32, #tpu.memory_space<vmem>>, vector<64x32xf32>,
      %c0_16 = arith.constant 0 : index
      %c32 = arith.constant 32 : index
      %29 = vector.load %arg12[%c0_16, %c32] : memref<64x128xf32, #tpu.memory_space<vmem>>, vector<64x32xf32>
      %c1 = arith.constant 1 : index
      %c0_17 = arith.constant 0 : index
      %c0_18 = arith.constant 0 : index
      %30 = vector.load %arg11[%c1, %c0_17, %c0_18] : memref<4x64x1xf32, #tpu.memory_space<vmem>>, vector<1x64x1xf32>
      %31 = vector.shape_cast %30 : vector<1x64x1xf32> to vector<64x1xf32>
      %32 = tpu.reciprocal %31 {approx = true} : vector<64x1xf32> -> vector<64x1xf32>
      %33 = vector.broadcast %32 : vector<64x1xf32> to vector<64x32xf32>
      %34 = arith.mulf %29, %33 : vector<64x32xf32>
      %c0_19 = arith.constant 0 : index
      %c32_20 = arith.constant 32 : index
      %35 = vector.load %arg12[%c0_19, %c32_20] : memref<64x128xf32, #tpu.memory_space<vmem>>, vector<64x32xf32>
      tpu.vector_store %arg12[%c0_19, %c32_20], %34 {strides = array<i32>} : memref<64x128xf32, #tpu.memory_space<vmem>>, vector<64x32xf32>,
      %c0_21 = arith.constant 0 : index
      %c64 = arith.constant 64 : index
      %36 = vector.load %arg12[%c0_21, %c64] : memref<64x128xf32, #tpu.memory_space<vmem>>, vector<64x32xf32>
      %c2 = arith.constant 2 : index
      %c0_22 = arith.constant 0 : index
      %c0_23 = arith.constant 0 : index
      %37 = vector.load %arg11[%c2, %c0_22, %c0_23] : memref<4x64x1xf32, #tpu.memory_space<vmem>>, vector<1x64x1xf32>
      %38 = vector.shape_cast %37 : vector<1x64x1xf32> to vector<64x1xf32>
      %39 = tpu.reciprocal %38 {approx = true} : vector<64x1xf32> -> vector<64x1xf32>
      %40 = vector.broadcast %39 : vector<64x1xf32> to vector<64x32xf32>
      %41 = arith.mulf %36, %40 : vector<64x32xf32>
      %c0_24 = arith.constant 0 : index
      %c64_25 = arith.constant 64 : index
      %42 = vector.load %arg12[%c0_24, %c64_25] : memref<64x128xf32, #tpu.memory_space<vmem>>, vector<64x32xf32>
      tpu.vector_store %arg12[%c0_24, %c64_25], %41 {strides = array<i32>} : memref<64x128xf32, #tpu.memory_space<vmem>>, vector<64x32xf32>,
      %c0_26 = arith.constant 0 : index
      %c96 = arith.constant 96 : index
      %43 = vector.load %arg12[%c0_26, %c96] : memref<64x128xf32, #tpu.memory_space<vmem>>, vector<64x32xf32>
      %c3 = arith.constant 3 : index
      %c0_27 = arith.constant 0 : index
      %c0_28 = arith.constant 0 : index
      %44 = vector.load %arg11[%c3, %c0_27, %c0_28] : memref<4x64x1xf32, #tpu.memory_space<vmem>>, vector<1x64x1xf32>
      %45 = vector.shape_cast %44 : vector<1x64x1xf32> to vector<64x1xf32>
      %46 = tpu.reciprocal %45 {approx = true} : vector<64x1xf32> -> vector<64x1xf32>
      %47 = vector.broadcast %46 : vector<64x1xf32> to vector<64x32xf32>
      %48 = arith.mulf %43, %47 : vector<64x32xf32>
      %c0_29 = arith.constant 0 : index
      %c96_30 = arith.constant 96 : index
      %49 = vector.load %arg12[%c0_29, %c96_30] : memref<64x128xf32, #tpu.memory_space<vmem>>, vector<64x32xf32>
      tpu.vector_store %arg12[%c0_29, %c96_30], %48 {strides = array<i32>} : memref<64x128xf32, #tpu.memory_space<vmem>>, vector<64x32xf32>,
      %c0_31 = arith.constant 0 : index
      %c0_32 = arith.constant 0 : index
      %50 = vector.load %arg12[%c0_31, %c0_32] : memref<64x128xf32, #tpu.memory_space<vmem>>, vector<64x128xf32>
      %c0_33 = arith.constant 0 : index
      %c0_34 = arith.constant 0 : index
      %51 = vector.load %arg13[%c0_33, %c0_34] : memref<64x128xf32, #tpu.memory_space<vmem>>, vector<64x128xf32>
      %c0_35 = arith.constant 0 : index
      %c0_36 = arith.constant 0 : index
      %52 = vector.load %arg7[%c0_35, %c0_36] : memref<128x128xf32, #tpu.memory_space<vmem>>, vector<128x128xf32>
      %cst = arith.constant dense<0.000000e+00> : vector<64x128xf32>
      %53 = tpu.matmul %50, %52, %cst {dimension_numbers = #tpu.dot_dimension_numbers<[1], [0], [0], [1], [0, 0, 1, 1], [], []>} : vector<64x128xf32>, vector<128x128xf32>, vector<64x128xf32> -> vector<64x128xf32>
      %54 = arith.addf %51, %53 : vector<64x128xf32>
      %c0_37 = arith.constant 0 : index
      %c0_38 = arith.constant 0 : index
      %55 = vector.load %arg13[%c0_37, %c0_38] : memref<64x128xf32, #tpu.memory_space<vmem>>, vector<64x128xf32>
      tpu.vector_store %arg13[%c0_37, %c0_38], %54 {strides = array<i32>} : memref<64x128xf32, #tpu.memory_space<vmem>>, vector<64x128xf32>,
    } else {
    }
    %c1_i32_7 = arith.constant 1 : i32
    %17 = arith.cmpi eq, %arg3, %c1_i32_7 : i32
    %c0_i32_8 = arith.constant 0 : i32
    %18 = arith.cmpi eq, %arg2, %c0_i32_8 : i32
    %19 = arith.andi %17, %18 : i1
    %20 = arith.extui %19 : i1 to i32
    %c0_i32_9 = arith.constant 0 : i32
    %21 = arith.cmpi ne, %20, %c0_i32_9 : i32
    scf.if %21 {
      %c0 = arith.constant 0 : index
      %c0_10 = arith.constant 0 : index
      %22 = vector.load %arg13[%c0, %c0_10] : memref<64x128xf32, #tpu.memory_space<vmem>>, vector<64x128xf32>
      %c0_11 = arith.constant 0 : index
      %c0_12 = arith.constant 0 : index
      %23 = vector.load %arg8[%c0_11, %c0_12] : memref<1x128xf32, #tpu.memory_space<vmem>>, vector<1x128xf32>
      %24 = vector.broadcast %23 : vector<1x128xf32> to vector<64x128xf32>
      %25 = arith.addf %22, %24 : vector<64x128xf32>
      %c0_13 = arith.constant 0 : index
      %c0_14 = arith.constant 0 : index
      %c0_15 = arith.constant 0 : index
      %26 = vector.load %arg9[%c0_13, %c0_14, %c0_15] : memref<1x64x128xf32, #tpu.memory_space<vmem>>, vector<1x64x128xf32>
      %27 = vector.shape_cast %26 : vector<1x64x128xf32> to vector<64x128xf32>
      %28 = vector.shape_cast %25 : vector<64x128xf32> to vector<1x64x128xf32>
      tpu.vector_store %arg9[%c0_13, %c0_14, %c0_15], %28 {strides = array<i32>} : memref<1x64x128xf32, #tpu.memory_space<vmem>>, vector<1x64x128xf32>,
    } else {
    }
    return
  }
  func.func @transform_0(%arg0: i32, %arg1: i32, %arg2: i32, %arg3: i32) -> (i32, i32, i32) {
    %c0_i32 = arith.constant 0 : i32
    return %arg0, %arg1, %arg2 : i32, i32, i32
  }
  func.func @transform_1(%arg0: i32, %arg1: i32, %arg2: i32, %arg3: i32) -> (i32, i32, i32) {
    %0 = arith.minsi %arg3, %arg1 : i32
    %c1_i32 = arith.constant 1 : i32
    %1 = arith.addi %c1_i32, %arg2 : i32
    %c0_i32 = arith.constant 0 : i32
    return %arg0, %0, %1 : i32, i32, i32
  }
  func.func @transform_2(%arg0: i32, %arg1: i32, %arg2: i32, %arg3: i32) -> (i32, i32, i32) {
    %0 = arith.minsi %arg3, %arg1 : i32
    %c2_i32 = arith.constant 2 : i32
    %1 = arith.addi %c2_i32, %arg2 : i32
    %c0_i32 = arith.constant 0 : i32
    return %arg0, %0, %1 : i32, i32, i32
  }
  func.func @transform_3(%arg0: i32, %arg1: i32, %arg2: i32, %arg3: i32) -> (i32, i32) {
    %c0_i32 = arith.constant 0 : i32
    %c0_i32_0 = arith.constant 0 : i32
    return %arg2, %c0_i32 : i32, i32
  }
  func.func @transform_4(%arg0: i32, %arg1: i32, %arg2: i32, %arg3: i32) -> (i32, i32) {
    %c0_i32 = arith.constant 0 : i32
    %c0_i32_0 = arith.constant 0 : i32
    %c0_i32_1 = arith.constant 0 : i32
    return %c0_i32, %c0_i32_0 : i32, i32
  }
  func.func @transform_5(%arg0: i32, %arg1: i32, %arg2: i32, %arg3: i32) -> (i32, i32, i32) {
    %c0_i32 = arith.constant 0 : i32
    %c0_i32_0 = arith.constant 0 : i32
    return %arg0, %arg1, %c0_i32 : i32, i32, i32
  }
}

</mosaic_0001>

<bundles_post_ra>
// kernel: mha_forward.2
= control target key start
LH: loop header
LB: loop body
LE: loop exit
PB: predicated region body
PF: predicated region fallthrough
CT: control target
= control target key end

     0   :  { %7 = vsyncpa [#allocation3], 0  ;;  %s1359_s0 = inlined_call_operand.hbm [shape: f32[2,128,128], index: 0, kind: input, shape index: {}]   ;;  %s1360_s1 = inlined_call_operand.hbm [shape: f32[128,384], index: 1, kind: input, shape index: {}]   ;;  %s1361_s2 = inlined_call_operand.vmem [shape: f32[2,128,384], index: 2, kind: output, shape index: {}]  }
   0x1   :  { %9 = vsyncpa [#allocation3 + $0x1], 0 }
   0x2   :  { %10 = vsyncpa [#allocation5], 0  ;;  %s1113_s9 = smov 0   ;;  %s1115_s10 = smov 0  }
   0x3   :  { %s1117_s11 = smov 0   ;;  %s1119_s12 = smov 0  }
   0x4   :  { %s1121_s13 = smov 0   ;;  %s1123_s14 = smov 0  }
   0x5 LB: > { %s738_s15 = sadd.s32 4294967295, %s1089_s14   ;;  %p50_p0 = scmp.ne.s32.totalorder %s1073_s10, %s1069_s9  ;;  %s1089_s14 = sphi %s1123_s14, %s16_s14   ;;  %s1085_s13 = sphi %s1121_s13, %s1378_s13   ;;  %s1081_s12 = sphi %s1119_s12, %s1377_s12   ;;  %s1077_s11 = sphi %s1117_s11, %s1376_s11   ;;  %s1073_s10 = sphi %s1115_s10, %s1375_s10   ;;  %s1069_s9 = sphi %s1113_s9, %s1374_s9  }
   0x6   : > { %p1143_p1 = scmp.eq.s32.totalorder %s738_s15, 0  ;;  %p740_p2 = scmp.ge.s32.totalorder %s1089_s14, 1 }
   0x7   : > { %p110_p3 = scmp.lt.s32.totalorder %s1089_s14, 3  ;;  %s1091_s19 = smov [#allocation4]  }
   0x8   : > { %s1366_s16 = scalar_select %p1143_p1, 1, 0 }
   0x9   : > { %p1151_p4 = por %p1143_p1, %p50_p0  ;;  %p1155_p5 = pnand %p740_p2, %p110_p3 }
   0xa   : > { %s122_s20 = sshll.u32 %s1091_s19, 4  ;;  %s28_s22 = sadd.s32 1, %s1085_s13  ;;  %s123_s20 = int_to_ptr.vmem [resolvable:$true] %s122_s20 }
   0xb   : > { %s1367_s17 = scalar_select %p1151_p4, 1, 0 }
   0xc   : > { %s1368_s18 = scalar_select %p1155_p5, 1, 0 }
   0xd   : > { %p912_p6 = pneg %p1155_p5  ;;  %s977_s25 = scalar_lea.hbm %s1360_s1, 6144 }
   0xe   : > { %p978_p8 = scmp.ne.s32.totalorder %s1360_s1, %s977_s25  ;;  %p984_p12 = scmp.lt.u32.totalorder %s977_s25, %s1360_s1 }
   0xf   : > { %p1163_p7 = pnand %p912_p6, %p1143_p1 }
  0x11   : > { %p979_p9 = pneg %p1163_p7 }
  0x13   : > { %p980_p10 = pnand %p979_p9, %p978_p8 }
  0x15   : > { %p981_p11 = pneg %p980_p10 }
  0x17   : > { %p986_p13 = pnand %p984_p12, %p981_p11 }
  0x19   : > { %989 = shalt.err (!%p986_p13)
}
  0x1a   : > { %s990_s30 = scalar_lea.vmem %s123_s20, 6144  ;;  %p998_p6 = scmp.lt.s32.totalorder %s123_s20, %s123_s20 }
  0x1b   : > { %p991_p0 = scmp.ne.s32.totalorder %s123_s20, %s990_s30  ;;  %p999_p1 = scmp.lt.s32.totalorder %s990_s30, %s990_s30 }
  0x1d   : > { %p993_p2 = pnand %p991_p0, %p979_p9  ;;  %p1000_p4 = por %p999_p1, %p998_p6 }
  0x1f   : > { %p994_p3 = pneg %p993_p2 }
  0x21   : > { %p1001_p5 = pnand %p1000_p4, %p994_p3 }
  0x23   : > { %1004 = shalt.err (!%p1001_p5)
}
  0x24   : > { %s1092_s3 = smov 384   ;;  %s1093_s4 = smov 24  }
  0x25   : > { %915 = dma.hbm_to_vmem [thread:$0]  (!%p1163_p7), %s1360_s1, 6144, %s123_s20, [#allocation5], %s1092_s3, %s1092_s3, %s1093_s4  }
  0x26   : > { %p30_p1 = scmp.ge.s32.totalorder %s28_s22, 2  ;;  %s37_s7 = sadd.s32 1, %s1077_s11 }
  0x27   : > { %p44_p4 = scmp.ne.s32.totalorder %s1077_s11, %s1073_s10  ;;  %p45_p5 = scmp.eq.s32.totalorder %s1089_s14, 0 }
  0x28   : > { %s1380_s22 = smov (%p30_p1, %s28_s22), 0  ;;  %p921_p9 = scmp.lt.s32.totalorder %s1089_s14, 2 }
  0x29   : > { %p46_p8 = por %p45_p5, %p44_p4  ;;  %s32_s8 = ssub.s32 %s1085_s13, %s1380_s22 }
  0x2a   : > { %s136_s9 = sand.u32 1, %s1077_s11   ;;  %p35_p10 = scmp.eq.s32.totalorder %s32_s8, 0 }
  0x2b   : > { %s743_s15 = sshll.u32 %s136_s9, 7  ;;  %s752_s19 = sshll.u32 %s1085_s13, 11 }
  0x2c   : > { %s1196_s23 = scalar_select %p35_p10, %s1077_s11, %s37_s7  }
  0x2d   : > { %s1201_s20 = scalar_lea.hbm %s1359_s0, %s752_s19  ;;  %s140_s25 = scalar_lea.vmem [#allocation2], %s743_s15 }
  0x2e   : > { %s149_s26 = sshll.u32 %s140_s25, 4  ;;  %p1203_p7 = pnand %p921_p9, %p46_p8  ;;  %s1207_s26 = int_to_ptr.vmem [resolvable:$true] %s149_s26 }
  0x2f   : > { %s1209_s28 = scalar_lea.sflag [#allocation3], %s136_s9  ;;  %s1005_s29 = scalar_lea.hbm %s1201_s20, 2048 }
  0x30   : > { %p1006_p11 = scmp.ne.s32.totalorder %s1201_s20, %s1005_s29  ;;  %p1007_p12 = pneg %p1203_p7 }
  0x31   : > { %s1010_s4 = scalar_lea.hbm %s1359_s0, 4096  ;;  %p1011_p2 = scmp.lt.u32.totalorder %s1201_s20, %s1359_s0 }
  0x32   : > { %p1008_p13 = pnand %p1007_p12, %p1006_p11  ;;  %p1012_p3 = scmp.lt.u32.totalorder %s1010_s4, %s1005_s29 }
  0x33   : > { %p1014_p1 = scmp.lt.u32.totalorder %s1005_s29, %s1201_s20 }
  0x34   : > { %p1009_p0 = pneg %p1008_p13  ;;  %p1013_p6 = por %p1012_p3, %p1011_p2 }
  0x36   : > { %p1015_p4 = por %p1014_p1, %p1013_p6 }
  0x38   : > { %p1016_p5 = pnand %p1015_p4, %p1009_p0 }
  0x3a   : > { %1019 = shalt.err (!%p1016_p5)
}
  0x3b   : > { %s1020_s7 = scalar_lea.vmem %s1207_s26, 2048  ;;  %s1094_s8 = smov [#allocation2]  }
  0x3c   : > { %p1021_p8 = scmp.ne.s32.totalorder %s1207_s26, %s1020_s7  ;;  %s1025_s9 = sshll.u32 %s1094_s8, 4  ;;  %s1026_s9 = int_to_ptr.vmem [resolvable:$false] %s1025_s9 }
  0x3d   : > { %s1027_s15 = scalar_lea.vmem %s1026_s9, 4096  ;;  %p1028_p11 = scmp.lt.s32.totalorder %s1207_s26, %s1026_s9 }
  0x3e   : > { %p1023_p9 = pnand %p1021_p8, %p1007_p12  ;;  %p1029_p13 = scmp.lt.s32.totalorder %s1027_s15, %s1020_s7 }
  0x40   : > { %p1024_p10 = pneg %p1023_p9  ;;  %p1030_p2 = por %p1029_p13, %p1028_p11 }
  0x42   : > { %p1031_p3 = pnand %p1030_p2, %p1024_p10 }
  0x44   : > { %1034 = shalt.err (!%p1031_p3)
}
  0x45   : > { %s1095_s19 = smov 128   ;;  %s1096_s21 = smov 8  }
  0x46   : > { %919 = dma.hbm_to_vmem [thread:$0]  (!%p1203_p7), %s1201_s20, 2048, %s1207_s26, %s1209_s28, %s1095_s19, %s1095_s19, %s1096_s21  }
  0x47   : > { %p1371_p12 = scmp.ne.s32.totalorder %s1368_s18, 0 }
  0x48   : > { %s163_s24 = sand.u32 (!%p1371_p12), 1, %s1073_s10   ;;  %p1372_p0 = scmp.ne.s32.totalorder (!%p1371_p12), %s1367_s17, 0 }
  0x49   : > { %161 = sbr.rel (%p1371_p12) target bundleno = 393 (0x189), region = 28  ;;  %s747_s25 = sshll.u32 (!%p1371_p12), %s163_s24, 7 }
  0x4a   : > { %s164_s29 = scalar_lea.sflag (!%p1371_p12), [#allocation3], %s163_s24  ;;  %s1240_s30 = scalar_lea.vmem (!%p1371_p12), [#allocation2], %s747_s25 }
  0x50   : > { %1060 = dma.done.wait (%p1372_p0), %s164_s29, 2048  }
  0x51   : > { %1062 = vsyncadd (%p1372_p0), %s164_s29, 4294965248  ;;  %p1373_p6 = scmp.ne.s32.totalorder %s1366_s16, 0 }
  0x53   : > { %1064 = dma.done.wait (%p1373_p6), [#allocation5], 6144  }
  0x54   : > { %1066 = vsyncadd (%p1373_p6), [#allocation5], 4294961152  ;;  %v1097_v0 = vmov 0.0   ;;  %v226_v1 = vld [vmem:[#allocation4 + $0x8] sm:$0xff]  ;;  %v229_v2 = vld [vmem:[#allocation4 + $0x20] sm:$0xff]  ;;  %p199_p7 = scmp.lt.s32.totalorder %s1081_s12, 1 }
  0x55   : > { %337 = vmatprep.mubr.f32.mxu0 %v1097_v0  ;;  %v225_v3 = vld [vmem:[#allocation4] sm:$0xff]  ;;  %v841_v4 = vpack.c.bf16 %v229_v2, %v226_v1  ;;  %v228_v5 = vld [vmem:[#allocation4 + $0x18] sm:$0xff]  ;;  %v235_v7 = vld [vmem:[#allocation4 + $0x50] sm:$0xff] }
  0x56   : > { %v232_v6 = vld [vmem:[#allocation4 + $0x38] sm:$0xff]  ;;  %v843_v8 = vpack.c.bf16 %v228_v5, %v225_v3  ;;  %v231_v10 = vld [vmem:[#allocation4 + $0x30] sm:$0xff]  ;;  %v234_v11 = vld [vmem:[#allocation4 + $0x48] sm:$0xff]  ;;  %s1382_s12 = smov (!%p199_p7, %s1081_s12), 1 }
  0x57   : > { %v845_v9 = vpack.c.bf16 %v235_v7, %v232_v6  ;;  %v238_v12 = vld [vmem:[#allocation4 + $0x68] sm:$0xff]  ;;  %842 = vmatprep.subr.bf16.mxu0 %v841_v4  ;;  %v241_v13 = vld [vmem:[#allocation4 + $0x80] sm:$0xff]  ;;  %v847_v14 = vpack.c.bf16 %v234_v11, %v231_v10  ;;  %v240_v17 = vld [vmem:[#allocation4 + $0x78] sm:$0xff]  ;;  %s905_s16 = smul.u32 384, %s1382_s12 }
  0x58   : > { %844 = vmatpush1.bf16.msra.mxu0 %v843_v8  ;;  %v849_v15 = vpack.c.bf16 %v241_v13, %v238_v12  ;;  %v237_v16 = vld [vmem:[#allocation4 + $0x60] sm:$0xff]  ;;  %v244_v18 = vld [vmem:[#allocation4 + $0x98] sm:$0xff]  ;;  %v247_v19 = vld [vmem:[#allocation4 + $0xb0] sm:$0xff] }
  0x59   : > { %846 = vmatprep.subr.bf16.mxu0 %v845_v9  ;;  %v851_v20 = vpack.c.bf16 %v240_v17, %v237_v16  ;;  %v853_v21 = vpack.c.bf16 %v247_v19, %v244_v18  ;;  %v243_v22 = vld [vmem:[#allocation4 + $0x90] sm:$0xff]  ;;  %v246_v23 = vld [vmem:[#allocation4 + $0xa8] sm:$0xff]  ;;  %v253_v25 = vld [vmem:[#allocation4 + $0xe0] sm:$0xff]  ;;  %s1291_s20 = scalar_lea.vmem %s1361_s2, %s905_s16 }
  0x5a   : > { %v250_v24 = vld [vmem:[#allocation4 + $0xc8] sm:$0xff]  ;;  %v227_v26 = vld [vmem:[#allocation4 + $0x10] sm:$0xff]  ;;  %v1252_v28 = vld [vmem:[%s1240_s30] sm:$0xff]  ;;  %v855_v30 = vpack.c.bf16 %v246_v23, %v243_v22 }
  0x5b   : > { %v230_v27 = vld [vmem:[#allocation4 + $0x28] sm:$0xff]  ;;  %v233_v29 = vld [vmem:[#allocation4 + $0x40] sm:$0xff]  ;;  %v236_v33 = vld [vmem:[#allocation4 + $0x58] sm:$0xff]  ;;  %817 = vmatprep.mubr.f32.mxu1 %v1252_v28  ;;  %v857_v34 = vpack.c.bf16 %v253_v25, %v250_v24 }
  0x5c   : > { %848 = vmatpush1.bf16.msra.mxu0 %v847_v14  ;;  %v249_v31 = vld [vmem:[#allocation4 + $0xc0] sm:$0xff]  ;;  %v873_v32 = vpack.c.bf16 %v230_v27, %v227_v26  ;;  %v252_v35 = vld [vmem:[#allocation4 + $0xd8] sm:$0xff]  ;;  %v877_v36 = vpack.c.bf16 %v236_v33, %v233_v29  ;;  %v239_v37 = vld [vmem:[#allocation4 + $0x70] sm:$0xff] }
  0x5d   : > { %850 = vmatprep.subr.bf16.mxu0 %v849_v15  ;;  %v242_v38 = vld [vmem:[#allocation4 + $0x88] sm:$0xff]  ;;  %v256_v39 = vld [vmem:[#allocation4 + $0xf8] sm:$0xff]  ;;  %v259_v40 = vld [vmem:[#allocation4 + $0x110] sm:$0xff]  ;;  %v859_v41 = vpack.c.bf16 %v252_v35, %v249_v31 }
  0x5e   : > { %874 = vmatprep.subr.bf16.mxu1 %v873_v32  ;;  %v255_v42 = vld [vmem:[#allocation4 + $0xf0] sm:$0xff]  ;;  %v881_v43 = vpack.c.bf16 %v242_v38, %v239_v37  ;;  %v861_v44 = vpack.c.bf16 %v259_v40, %v256_v39  ;;  %v258_v45 = vld [vmem:[#allocation4 + $0x108] sm:$0xff]  ;;  %v245_v46 = vld [vmem:[#allocation4 + $0xa0] sm:$0xff] }
  0x5f   : > { %876 = vmatpush3.bf16.msra.mxu1 %v873_v32  ;;  %v248_v47 = vld [vmem:[#allocation4 + $0xb8] sm:$0xff]  ;;  %v262_v48 = vld [vmem:[#allocation4 + $0x128] sm:$0xff]  ;;  %v265_v49 = vld [vmem:[#allocation4 + $0x140] sm:$0xff]  ;;  %v863_v50 = vpack.c.bf16 %v258_v45, %v255_v42 }
  0x60   : > { %852 = vmatpush1.bf16.msra.mxu0 %v851_v20  ;;  %878 = vmatprep.subr.bf16.mxu1 %v877_v36  ;;  %v261_v51 = vld [vmem:[#allocation4 + $0x120] sm:$0xff]  ;;  %v885_v52 = vpack.c.bf16 %v248_v47, %v245_v46  ;;  %v865_v53 = vpack.c.bf16 %v265_v49, %v262_v48  ;;  %v264_v54 = vld [vmem:[#allocation4 + $0x138] sm:$0xff]  ;;  %v251_v55 = vld [vmem:[#allocation4 + $0xd0] sm:$0xff] }
  0x61   : > { %854 = vmatprep.subr.bf16.mxu0 %v853_v21  ;;  %v254_v56 = vld [vmem:[#allocation4 + $0xe8] sm:$0xff]  ;;  %v268_v57 = vld [vmem:[#allocation4 + $0x158] sm:$0xff]  ;;  %v271_v58 = vld [vmem:[#allocation4 + $0x170] sm:$0xff]  ;;  %v867_v59 = vpack.c.bf16 %v264_v54, %v261_v51 }
  0x62   : > { %v267_v60 = vld [vmem:[#allocation4 + $0x150] sm:$0xff]  ;;  %v889_v61 = vpack.c.bf16 %v254_v56, %v251_v55  ;;  %v869_v62 = vpack.c.bf16 %v271_v58, %v268_v57  ;;  %v270_v63 = vld [vmem:[#allocation4 + $0x168] sm:$0xff]  ;;  %v257_v1 = vld [vmem:[#allocation4 + $0x100] sm:$0xff] }
  0x63   : > { %880 = vmatpush3.bf16.msra.mxu1 %v877_v36  ;;  %v260_v2 = vld [vmem:[#allocation4 + $0x118] sm:$0xff]  ;;  %v871_v3 = vpack.c.bf16 %v270_v63, %v267_v60  ;;  %v263_v5 = vld [vmem:[#allocation4 + $0x130] sm:$0xff]  ;;  %v266_v6 = vld [vmem:[#allocation4 + $0x148] sm:$0xff] }
  0x64   : > { %856 = vmatpush1.bf16.msra.mxu0 %v855_v30  ;;  %882 = vmatprep.subr.bf16.mxu1 %v881_v43  ;;  %v893_v4 = vpack.c.bf16 %v260_v2, %v257_v1  ;;  %v897_v7 = vpack.c.bf16 %v266_v6, %v263_v5  ;;  %v269_v8 = vld [vmem:[#allocation4 + $0x160] sm:$0xff]  ;;  %v272_v9 = vld [vmem:[#allocation4 + $0x178] sm:$0xff]  ;;  %v210_v10 = vld [vmem:[%s1240_s30 + $0x8] sm:$0xff] }
  0x65   : > { %858 = vmatprep.subr.bf16.mxu0 %v857_v34  ;;  %v901_v11 = vpack.c.bf16 %v272_v9, %v269_v8  ;;  %v211_v12 = vld [vmem:[%s1240_s30 + $0x10] sm:$0xff]  ;;  %v212_v13 = vld [vmem:[%s1240_s30 + $0x18] sm:$0xff]  ;;  %v213_v14 = vld [vmem:[%s1240_s30 + $0x20] sm:$0xff] }
  0x66   : > { %v214_v15 = vld [vmem:[%s1240_s30 + $0x28] sm:$0xff]  ;;  %v215_v16 = vld [vmem:[%s1240_s30 + $0x30] sm:$0xff]  ;;  %v216_v17 = vld [vmem:[%s1240_s30 + $0x38] sm:$0xff] }
  0x67   : > { %884 = vmatpush3.bf16.msra.mxu1 %v881_v43  ;;  %v217_v18 = vld [vmem:[%s1240_s30 + $0x40] sm:$0xff]  ;;  %v218_v19 = vld [vmem:[%s1240_s30 + $0x48] sm:$0xff]  ;;  %v219_v20 = vld [vmem:[%s1240_s30 + $0x50] sm:$0xff] }
  0x68   : > { %860 = vmatpush1.bf16.msra.mxu0 %v859_v41  ;;  %886 = vmatprep.subr.bf16.mxu1 %v885_v52  ;;  %v220_v21 = vld [vmem:[%s1240_s30 + $0x58] sm:$0xff]  ;;  %v221_v22 = vld [vmem:[%s1240_s30 + $0x60] sm:$0xff]  ;;  %v222_v23 = vld [vmem:[%s1240_s30 + $0x68] sm:$0xff] }
  0x69   : > { %862 = vmatprep.subr.bf16.mxu0 %v861_v44  ;;  %v223_v24 = vld [vmem:[%s1240_s30 + $0x70] sm:$0xff]  ;;  %v224_v25 = vld [vmem:[%s1240_s30 + $0x78] sm:$0xff] }
  0x6b   : > { %888 = vmatpush3.bf16.msra.mxu1 %v885_v52 }
  0x6c   : > { %864 = vmatpush1.bf16.msra.mxu0 %v863_v50  ;;  %890 = vmatprep.subr.bf16.mxu1 %v889_v61 }
  0x6d   : > { %866 = vmatprep.subr.bf16.mxu0 %v865_v53 }
  0x6f   : > { %892 = vmatpush3.bf16.msra.mxu1 %v889_v61 }
  0x70   : > { %868 = vmatpush1.bf16.msra.mxu0 %v867_v59  ;;  %894 = vmatprep.subr.bf16.mxu1 %v893_v4 }
  0x71   : > { %870 = vmatprep.subr.bf16.mxu0 %v869_v62 }
  0x73   : > { %896 = vmatpush3.bf16.msra.mxu1 %v893_v4 }
  0x74   : > { %872 = vmatpush1.bf16.msra.mxu0 %v871_v3  ;;  %898 = vmatprep.subr.bf16.mxu1 %v897_v7 }
  0x77   : > { %338 = vmatmul.mubr.f32.vlgmr.msra.gmra.mrb[0].mxu0 %v1252_v28  ;;  %900 = vmatpush3.bf16.msra.mxu1 %v897_v7 }
  0x78   : > { %343 = vmatprep.mubr.f32.mxu0 %v1097_v0  ;;  %902 = vmatprep.subr.bf16.mxu1 %v901_v11 }
  0x7b   : > { %344 = vmatmul.mubr.f32.gmra.mrb[2].mxu0 %v210_v10  ;;  %904 = vmatpush3.bf16.msra.mxu1 %v901_v11 }
  0x7c   : > { %349 = vmatprep.mubr.f32.mxu0 %v1097_v0 }
  0x7e   : > { %818 = vmatmul.mubr.f32.vlgmr.msra.gmra.mrb[0].mxu1 %v210_v10 }
  0x7f   : > { %350 = vmatmul.mubr.f32.gmra.mrb[4].mxu0 %v211_v12  ;;  %820 = vmatprep.mubr.f32.mxu1 %v211_v12 }
  0x80   : > { %355 = vmatprep.mubr.f32.mxu0 %v1097_v0 }
  0x82   : > { %821 = vmatmul.mubr.f32.gmra.mrb[2].mxu1 %v212_v13 }
  0x83   : > { %356 = vmatmul.mubr.f32.gmra.mrb[6].mxu0 %v212_v13  ;;  %823 = vmatprep.mubr.f32.mxu1 %v213_v14 }
  0x84   : > { %361 = vmatprep.mubr.f32.mxu0 %v1097_v0 }
  0x86   : > { %824 = vmatmul.mubr.f32.gmra.mrb[4].mxu1 %v214_v15 }
  0x87   : > { %362 = vmatmul.mubr.f32.gmra.mrb[8].mxu0 %v213_v14  ;;  %826 = vmatprep.mubr.f32.mxu1 %v215_v16 }
  0x88   : > { %367 = vmatprep.mubr.f32.mxu0 %v1097_v0 }
  0x8a   : > { %827 = vmatmul.mubr.f32.gmra.mrb[6].mxu1 %v216_v17 }
  0x8b   : > { %368 = vmatmul.mubr.f32.gmra.mrb[10].mxu0 %v214_v15  ;;  %829 = vmatprep.mubr.f32.mxu1 %v217_v18 }
  0x8c   : > { %373 = vmatprep.mubr.f32.mxu0 %v1097_v0 }
  0x8e   : > { %830 = vmatmul.mubr.f32.gmra.mrb[8].mxu1 %v218_v19 }
  0x8f   : > { %374 = vmatmul.mubr.f32.gmra.mrb[12].mxu0 %v215_v16  ;;  %832 = vmatprep.mubr.f32.mxu1 %v219_v20 }
  0x90   : > { %379 = vmatprep.mubr.f32.mxu0 %v1097_v0 }
  0x92   : > { %833 = vmatmul.mubr.f32.gmra.mrb[10].mxu1 %v220_v21 }
  0x93   : > { %380 = vmatmul.mubr.f32.gmra.mrb[14].mxu0 %v216_v17  ;;  %835 = vmatprep.mubr.f32.mxu1 %v221_v22 }
  0x94   : > { %385 = vmatprep.mubr.f32.mxu0 %v1097_v0 }
  0x96   : > { %836 = vmatmul.mubr.f32.gmra.mrb[12].mxu1 %v222_v23 }
  0x97   : > { %386 = vmatmul.mubr.f32.gmra.mrb[16].mxu0 %v217_v18  ;;  %838 = vmatprep.mubr.f32.mxu1 %v223_v24 }
  0x98   : > { %391 = vmatprep.mubr.f32.mxu0 %v1097_v0 }
  0x9a   : > { %839 = vmatmul.mubr.f32.gmra.mrb[14].mxu1 %v224_v25 }
  0x9b   : > { %392 = vmatmul.mubr.f32.gmra.mrb[18].mxu0 %v218_v19 }
  0x9c   : > { %397 = vmatprep.mubr.f32.mxu0 %v1097_v0 }
  0x9f   : > { %398 = vmatmul.mubr.f32.gmra.mrb[20].mxu0 %v219_v20 }
  0xa0   : > { %403 = vmatprep.mubr.f32.mxu0 %v1097_v0 }
  0xa3   : > { %404 = vmatmul.mubr.f32.gmra.mrb[22].mxu0 %v220_v21 }
  0xa4   : > { %409 = vmatprep.mubr.f32.mxu0 %v1097_v0 }
  0xa7   : > { %410 = vmatmul.mubr.f32.gmra.mrb[24].mxu0 %v221_v22 }
  0xa8   : > { %415 = vmatprep.mubr.f32.mxu0 %v1097_v0 }
  0xab   : > { %416 = vmatmul.mubr.f32.gmra.mrb[26].mxu0 %v222_v23 }
  0xac   : > { %421 = vmatprep.mubr.f32.mxu0 %v1097_v0 }
  0xaf   : > { %422 = vmatmul.mubr.f32.gmra.mrb[28].mxu0 %v223_v24 }
  0xb0   : > { %427 = vmatprep.mubr.f32.mxu0 %v1097_v0 }
  0xb3   : > { %428 = vmatmul.mubr.f32.gmra.mrb[30].mxu0 %v224_v25 }
 0x14a   : > { %v339_v26 = vpop.f32.mrb[0].mxu0 }
 0x14b   : > { %579 = vst [vmem:[%s1291_s20] sm:$0xff] %v339_v26  ;;  %v341_v0 = vpop.f32.mrb[1].mxu0 }
 0x14c   : > { %580 = vst [vmem:[%s1291_s20 + $0x8] sm:$0xff] %v341_v0 }
 0x14e   : > { %v345_v27 = vpop.f32.mrb[2].mxu0 }
 0x14f   : > { %582 = vst [vmem:[%s1291_s20 + $0x18] sm:$0xff] %v345_v27  ;;  %v347_v28 = vpop.f32.mrb[3].mxu0 }
 0x150   : > { %583 = vst [vmem:[%s1291_s20 + $0x20] sm:$0xff] %v347_v28 }
 0x151   : > { %v819_v31 = vpop.f32.mrb[0].mxu1 }
 0x152   : > { %v351_v29 = vpop.f32.mrb[4].mxu0  ;;  %584 = vst [vmem:[%s1291_s20 + $0x28] sm:$0xff] %v819_v31  ;;  %v500_v33 = vpop.f32.mrb[1].mxu1 }
 0x153   : > { %585 = vst [vmem:[%s1291_s20 + $0x30] sm:$0xff] %v351_v29  ;;  %v353_v30 = vpop.f32.mrb[5].mxu0  ;;  %581 = vst [vmem:[%s1291_s20 + $0x10] sm:$0xff] %v500_v33 }
 0x154   : > { %586 = vst [vmem:[%s1291_s20 + $0x38] sm:$0xff] %v353_v30 }
 0x155   : > { %v822_v35 = vpop.f32.mrb[2].mxu1 }
 0x156   : > { %v357_v32 = vpop.f32.mrb[6].mxu0  ;;  %590 = vst [vmem:[%s1291_s20 + $0x58] sm:$0xff] %v822_v35  ;;  %v510_v37 = vpop.f32.mrb[3].mxu1 }
 0x157   : > { %588 = vst [vmem:[%s1291_s20 + $0x48] sm:$0xff] %v357_v32  ;;  %v359_v34 = vpop.f32.mrb[7].mxu0  ;;  %587 = vst [vmem:[%s1291_s20 + $0x40] sm:$0xff] %v510_v37 }
 0x158   : > { %589 = vst [vmem:[%s1291_s20 + $0x50] sm:$0xff] %v359_v34 }
 0x159   : > { %v825_v39 = vpop.f32.mrb[4].mxu1 }
 0x15a   : > { %v363_v36 = vpop.f32.mrb[8].mxu0  ;;  %596 = vst [vmem:[%s1291_s20 + $0x88] sm:$0xff] %v825_v39  ;;  %v520_v41 = vpop.f32.mrb[5].mxu1 }
 0x15b   : > { %591 = vst [vmem:[%s1291_s20 + $0x60] sm:$0xff] %v363_v36  ;;  %v365_v38 = vpop.f32.mrb[9].mxu0  ;;  %593 = vst [vmem:[%s1291_s20 + $0x70] sm:$0xff] %v520_v41 }
 0x15c   : > { %592 = vst [vmem:[%s1291_s20 + $0x68] sm:$0xff] %v365_v38 }
 0x15d   : > { %v828_v43 = vpop.f32.mrb[6].mxu1 }
 0x15e   : > { %v369_v40 = vpop.f32.mrb[10].mxu0  ;;  %602 = vst [vmem:[%s1291_s20 + $0xb8] sm:$0xff] %v828_v43  ;;  %v530_v45 = vpop.f32.mrb[7].mxu1 }
 0x15f   : > { %594 = vst [vmem:[%s1291_s20 + $0x78] sm:$0xff] %v369_v40  ;;  %v371_v42 = vpop.f32.mrb[11].mxu0  ;;  %599 = vst [vmem:[%s1291_s20 + $0xa0] sm:$0xff] %v530_v45 }
 0x160   : > { %595 = vst [vmem:[%s1291_s20 + $0x80] sm:$0xff] %v371_v42 }
 0x161   : > { %v831_v47 = vpop.f32.mrb[8].mxu1 }
 0x162   : > { %v375_v44 = vpop.f32.mrb[12].mxu0  ;;  %608 = vst [vmem:[%s1291_s20 + $0xe8] sm:$0xff] %v831_v47  ;;  %v540_v49 = vpop.f32.mrb[9].mxu1 }
 0x163   : > { %597 = vst [vmem:[%s1291_s20 + $0x90] sm:$0xff] %v375_v44  ;;  %v377_v46 = vpop.f32.mrb[13].mxu0  ;;  %605 = vst [vmem:[%s1291_s20 + $0xd0] sm:$0xff] %v540_v49 }
 0x164   : > { %598 = vst [vmem:[%s1291_s20 + $0x98] sm:$0xff] %v377_v46 }
 0x165   : > { %v834_v51 = vpop.f32.mrb[10].mxu1 }
 0x166   : > { %v381_v48 = vpop.f32.mrb[14].mxu0  ;;  %614 = vst [vmem:[%s1291_s20 + $0x118] sm:$0xff] %v834_v51  ;;  %v550_v53 = vpop.f32.mrb[11].mxu1 }
 0x167   : > { %600 = vst [vmem:[%s1291_s20 + $0xa8] sm:$0xff] %v381_v48  ;;  %v383_v50 = vpop.f32.mrb[15].mxu0  ;;  %611 = vst [vmem:[%s1291_s20 + $0x100] sm:$0xff] %v550_v53 }
 0x168   : > { %601 = vst [vmem:[%s1291_s20 + $0xb0] sm:$0xff] %v383_v50 }
 0x169   : > { %v837_v55 = vpop.f32.mrb[12].mxu1 }
 0x16a   : > { %v387_v52 = vpop.f32.mrb[16].mxu0  ;;  %620 = vst [vmem:[%s1291_s20 + $0x148] sm:$0xff] %v837_v55  ;;  %v560_v57 = vpop.f32.mrb[13].mxu1 }
 0x16b   : > { %603 = vst [vmem:[%s1291_s20 + $0xc0] sm:$0xff] %v387_v52  ;;  %v389_v54 = vpop.f32.mrb[17].mxu0  ;;  %617 = vst [vmem:[%s1291_s20 + $0x130] sm:$0xff] %v560_v57 }
 0x16c   : > { %604 = vst [vmem:[%s1291_s20 + $0xc8] sm:$0xff] %v389_v54 }
 0x16d   : > { %v840_v59 = vpop.f32.mrb[14].mxu1 }
 0x16e   : > { %v393_v56 = vpop.f32.mrb[18].mxu0  ;;  %626 = vst [vmem:[%s1291_s20 + $0x178] sm:$0xff] %v840_v59  ;;  %v570_v61 = vpop.f32.mrb[15].mxu1 }
 0x16f   : > { %606 = vst [vmem:[%s1291_s20 + $0xd8] sm:$0xff] %v393_v56  ;;  %v395_v58 = vpop.f32.mrb[19].mxu0  ;;  %623 = vst [vmem:[%s1291_s20 + $0x160] sm:$0xff] %v570_v61 }
 0x170   : > { %607 = vst [vmem:[%s1291_s20 + $0xe0] sm:$0xff] %v395_v58 }
 0x172   : > { %v399_v60 = vpop.f32.mrb[20].mxu0 }
 0x173   : > { %609 = vst [vmem:[%s1291_s20 + $0xf0] sm:$0xff] %v399_v60  ;;  %v401_v62 = vpop.f32.mrb[21].mxu0 }
 0x174   : > { %610 = vst [vmem:[%s1291_s20 + $0xf8] sm:$0xff] %v401_v62 }
 0x176   : > { %v405_v63 = vpop.f32.mrb[22].mxu0 }
 0x177   : > { %612 = vst [vmem:[%s1291_s20 + $0x108] sm:$0xff] %v405_v63  ;;  %v407_v1 = vpop.f32.mrb[23].mxu0 }
 0x178   : > { %613 = vst [vmem:[%s1291_s20 + $0x110] sm:$0xff] %v407_v1 }
 0x17a   : > { %v411_v2 = vpop.f32.mrb[24].mxu0 }
 0x17b   : > { %615 = vst [vmem:[%s1291_s20 + $0x120] sm:$0xff] %v411_v2  ;;  %v413_v3 = vpop.f32.mrb[25].mxu0 }
 0x17c   : > { %616 = vst [vmem:[%s1291_s20 + $0x128] sm:$0xff] %v413_v3 }
 0x17e   : > { %v417_v4 = vpop.f32.mrb[26].mxu0 }
 0x17f   : > { %618 = vst [vmem:[%s1291_s20 + $0x138] sm:$0xff] %v417_v4  ;;  %v419_v5 = vpop.f32.mrb[27].mxu0 }
 0x180   : > { %619 = vst [vmem:[%s1291_s20 + $0x140] sm:$0xff] %v419_v5 }
 0x182   : > { %v423_v6 = vpop.f32.mrb[28].mxu0 }
 0x183   : > { %621 = vst [vmem:[%s1291_s20 + $0x150] sm:$0xff] %v423_v6  ;;  %v425_v7 = vpop.f32.mrb[29].mxu0 }
 0x184   : > { %622 = vst [vmem:[%s1291_s20 + $0x158] sm:$0xff] %v425_v7 }
 0x186   : > { %v429_v8 = vpop.f32.mrb[30].mxu0 }
 0x187   : > { %624 = vst [vmem:[%s1291_s20 + $0x168] sm:$0xff] %v429_v8  ;;  %v431_v9 = vpop.f32.mrb[31].mxu0 }
 0x188   : > { %625 = vst [vmem:[%s1291_s20 + $0x170] sm:$0xff] %v431_v9 }
 0x189 PF: > { %s16_s14 = sadd.s32 1, %s1089_s14   ;;  %s1374_s9 = smov %s1073_s10 }
 0x18a   : > { %p13_p1 = scmp.ge.s32.totalorder %s16_s14, 4   ;;  %s1375_s10 = smov %s1077_s11 }
 0x18b   : > { %s1376_s11 = smov %s1196_s23  ;;  %s1377_s12 = smov %s1085_s13 }
 0x18c   : > { %s1378_s13 = smov %s1380_s22  ;;  %15 = sbr.rel (!%p13_p1) target bundleno = 5 (0x5), region = 72 }
 0x193   :  { %659 = vsyncpa [#allocation3], 1 }
 0x194   :  { %661 = vsyncpa [#allocation3 + $0x1], 1 }
 0x195   :  { %662 = vsyncpa [#allocation5], 1 }

// kernel: mha_forward.3
= control target key start
LH: loop header
LB: loop body
LE: loop exit
PB: predicated region body
PF: predicated region fallthrough
CT: control target
= control target key end

     0   :  { %s11937_s0 = inlined_call_operand.vmem [shape: f32[2,128,384], index: 0, kind: input, shape index: {}, may-alias: {0,1,2}]   ;;  %s11938_s1 = inlined_call_operand.vmem [shape: f32[2,128,384], index: 1, kind: input, shape index: {}, may-alias: {0,1,2}]   ;;  %s11939_s2 = inlined_call_operand.vmem [shape: f32[2,128,384], index: 2, kind: input, shape index: {}, may-alias: {0,1,2}]   ;;  %s11940_s3 = inlined_call_operand.vmem [shape: f32[128,128], index: 3, kind: input, shape index: {}]   ;;  %s11941_s4 = inlined_call_operand.vmem [shape: f32[1,128], index: 4, kind: input, shape index: {}]   ;;  %s11942_s5 = inlined_call_operand.hbm [shape: f32[2,128,128], index: 5, kind: output, shape index: {}]  }
   0x1   :  { %12026 = sst [smem:[#allocation112_spill]] %s11937_s0 }
   0x2   :  { %12027 = sst [smem:[#allocation113_spill]] %s11940_s3 }
   0x3   :  { %12028 = sst [smem:[#allocation114_spill]] %s11941_s4 }
   0x4   :  { %12029 = sst [smem:[#allocation115_spill]] %s11942_s5 }
   0x5   :  { %10 = vsyncpa [#allocation10], 0 }
   0x6   :  { %12 = vsyncpa [#allocation10 + $0x1], 0  ;;  %s8569_s18 = smov 0   ;;  %s8571_s19 = smov 0  }
   0x7   :  { %s8573_s20 = smov 0   ;;  %s8575_s21 = smov 0  }
   0x8   :  { %s8577_s22 = smov 0   ;;  %s8579_s23 = smov 0  }
   0x9   :  { %s8581_s24 = smov 0   ;;  %s8583_s25 = smov 0  }
   0xa   :  { %s8585_s26 = smov 0   ;;  %s8587_s27 = smov 0  }
   0xb   :  { %s8589_s28 = smov 0   ;;  %s8591_s29 = smov 0  }
   0xc LB: > { %12030 = sst [smem:[#allocation12_spill]] %s8502_s24  ;;  %s6282_s30 = sadd.s32 4294967295, %s8522_s29   ;;  %s8522_s29 = sphi %s8591_s29, %s18_s29   ;;  %s8518_s28 = sphi %s8589_s28, %s12332_s28   ;;  %s8514_s27 = sphi %s8587_s27, %s12331_s27   ;;  %s8510_s26 = sphi %s8585_s26, %s12330_s26   ;;  %s8506_s25 = sphi %s8583_s25, %s12329_s25   ;;  %s8502_s24 = sphi %s8581_s24, %s12328_s24   ;;  %s8498_s23 = sphi %s8579_s23, %s12321_s23   ;;  %s8494_s22 = sphi %s8577_s22, %s12327_s22   ;;  %s8490_s21 = sphi %s8575_s21, %s12326_s21   ;;  %s8486_s20 = sphi %s8573_s20, %s12325_s20   ;;  %s8482_s19 = sphi %s8571_s19, %s12324_s19   ;;  %s8478_s18 = sphi %s8569_s18, %s12323_s18  }
   0xd   : > { %12031 = sst [smem:[#allocation13_spill]] %s8506_s25  ;;  %s33_s7 = sadd.s32 1, %s8510_s26 }
   0xe   : > { %12032 = sst [smem:[#allocation14_spill]] %s8510_s26  ;;  %s40_s8 = sadd.s32 1, %s8514_s27 }
   0xf   : > { %p34_p0 = scmp.ge.s32.totalorder %s33_s7, 2  ;;  %s44_s9 = sadd.s32 1, %s8518_s28 }
  0x10   : > { %s55_s10 = sadd.s32 1, %s8494_s22  ;;  %p62_p1 = scmp.ne.s32.totalorder %s8494_s22, %s8490_s21 }
  0x11   : > { %s12334_s7 = smov (%p34_p0, %s33_s7), 0  ;;  %s12336_s8 = smov (!%p34_p0, %s40_s8), %s8514_s27 }
  0x12   : > { %p63_p2 = scmp.eq.s32.totalorder %s8522_s29, 0  ;;  %p78_p3 = scmp.lt.s32.totalorder %s8510_s26, %s8514_s27 }
  0x13   : > { %p42_p4 = scmp.ge.s32.totalorder %s12336_s8, 2  ;;  %s91_s11 = sadd.s32 1, %s8486_s20 }
  0x14   : > { %p8647_p5 = por %p63_p2, %p62_p1  ;;  %p98_p6 = scmp.ne.s32.totalorder %s8486_s20, %s8482_s19 }
  0x15   : > { %s12338_s8 = smov (%p42_p4, %s12336_s8), 0  ;;  %s12340_s9 = smov (!%p42_p4, %s44_s9), %s8518_s28 }
  0x16   : > { %s49_s13 = ssub.s32 %s8514_s27, %s12338_s8  ;;  %p81_p7 = scmp.lt.s32.totalorder %s12334_s7, %s12338_s8 }
  0x17   : > { %p46_p8 = scmp.ge.s32.totalorder %s12340_s9, 2  ;;  %p8660_p9 = por %p98_p6, %p63_p2 }
  0x18   : > { %s8666_s15 = scalar_select %p78_p3, %s8510_s26, %s8514_s27 }
  0x19   : > { %s12342_s9 = smov (%p46_p8, %s12340_s9), 0  ;;  %p213_p10 = scmp.eq.s32.totalorder %s6282_s30, 7 }
  0x1a   : > { %12035 = sst [smem:[#allocation15_spill]] %s12342_s9  ;;  %s48_s17 = ssub.s32 %s8518_s28, %s12342_s9 }
  0x1b   : > { %s82_s16 = scalar_select %p81_p7, %s12334_s7, %s12338_s8 }
  0x1c   : > { %s50_s6 = sor.u32 %s49_s13, %s48_s17  ;;  %p8678_p13 = por %p213_p10, %p62_p1 }
  0x1d   : > { %s85_s5 = ssub.s32 %s8666_s15, %s82_s16  ;;  %p53_p11 = scmp.eq.s32.totalorder %s50_s6, 0 }
  0x1e   : > { %s86_s25 = sor.u32 %s85_s5, %s48_s17  ;;  %p218_p0 = scmp.ne.s32.totalorder %s8490_s21, %s8478_s18 }
  0x1f   : > { %p89_p12 = scmp.eq.s32.totalorder %s86_s25, 0  ;;  %s12037_s24 = sadd.s32 4294967294, %s8522_s29  }
  0x20   : > { %s8683_s3 = scalar_select %p53_p11, %s8494_s22, %s55_s10  }
  0x21   : > { %s8686_s26 = scalar_select %p89_p12, %s8486_s20, %s91_s11  }
  0x22   : > { %p219_p2 = scmp.eq.s32.totalorder %s12037_s24, 7  ;;  %p6286_p4 = scmp.ge.s32.totalorder %s8522_s29, 8 }
  0x24   : > { %p8692_p3 = por %p219_p2, %p218_p0  ;;  %247 = sbr.rel (%p6286_p4) target bundleno = 81 (0x51), region = 24 }
  0x2b   : > { %250 = sbr.rel (!%p8647_p5) target bundleno = 57 (0x39), region = 28  ;;  %s252_s5 = sand.u32 (%p8647_p5), 1, %s8494_s22  }
  0x2c   : > { %s7663_s25 = smul.u32 (%p8647_p5), 24, %s8514_s27  ;;  %s6287_s30 = sshll.u32 (%p8647_p5), %s252_s5, 6 }
  0x2d   : > { %s7664_s6 = smul.u32 (%p8647_p5), 48, %s8518_s28  ;;  %s12039_s0 = sld [smem:[#allocation112_spill]] (%p8647_p5) }
  0x2e   : > { %s254_s17 = scalar_lea.vmem (%p8647_p5), [#allocation6], %s6287_s30 }
  0x2f   : > { %s259_s10 = sadd.s32 (%p8647_p5), %s7664_s6, %s7663_s25 }
  0x30   : > { %s6290_s11 = sshll.u32 (%p8647_p5), %s259_s10, 3 }
  0x33   : > { %s261_s16 = scalar_lea.vmem %s12039_s0, %s6290_s11 }
  0x34   : > { %v303_v0 = vld [vmem:[%s261_s16] sm:$0xff]  ;;  %v305_v1 = vld [vmem:[%s261_s16 + $0x18] sm:$0xff]  ;;  %v307_v2 = vld [vmem:[%s261_s16 + $0x30] sm:$0xff] }
  0x35   : > { %304 = vst [vmem:[%s254_s17] sm:$0xff] %v303_v0  ;;  %306 = vst [vmem:[%s254_s17 + $0x8] sm:$0xff] %v305_v1  ;;  %v309_v3 = vld [vmem:[%s261_s16 + $0x48] sm:$0xff]  ;;  %v311_v4 = vld [vmem:[%s261_s16 + $0x60] sm:$0xff] }
  0x36   : > { %308 = vst [vmem:[%s254_s17 + $0x10] sm:$0xff] %v307_v2  ;;  %v313_v5 = vld [vmem:[%s261_s16 + $0x78] sm:$0xff]  ;;  %310 = vst [vmem:[%s254_s17 + $0x18] sm:$0xff] %v309_v3  ;;  %v315_v6 = vld [vmem:[%s261_s16 + $0x90] sm:$0xff] }
  0x37   : > { %312 = vst [vmem:[%s254_s17 + $0x20] sm:$0xff] %v311_v4  ;;  %314 = vst [vmem:[%s254_s17 + $0x28] sm:$0xff] %v313_v5  ;;  %v317_v7 = vld [vmem:[%s261_s16 + $0xa8] sm:$0xff] }
  0x38   : > { %316 = vst [vmem:[%s254_s17 + $0x30] sm:$0xff] %v315_v6  ;;  %318 = vst [vmem:[%s254_s17 + $0x38] sm:$0xff] %v317_v7 }
  0x39 PF: > { %324 = sbr.rel (!%p8660_p9) target bundleno = 69 (0x45), region = 66  ;;  %s326_s12 = sand.u32 (%p8660_p9), 1, %s8486_s20  }
  0x3a   : > { %s6162_s5 = smul.u32 (%p8660_p9), 24, %s8666_s15  ;;  %s6291_s25 = sshll.u32 (%p8660_p9), %s326_s12, 6 }
  0x3b   : > { %s6164_s30 = smul.u32 (%p8660_p9), 48, %s8518_s28  ;;  %s328_s16 = scalar_lea.vmem (%p8660_p9), [#allocation7], %s6291_s25 }
  0x3d   : > { %s6165_s6 = sadd.s32 (%p8660_p9), %s6164_s30, %s6162_s5 }
  0x3e   : > { %s6292_s10 = sshll.u32 (%p8660_p9), %s6165_s6, 3 }
  0x3f   : > { %s6167_s13 = scalar_lea.vmem (%p8660_p9), %s11938_s1, %s6292_s10 }
  0x40   : > { %v6293_v8 = vld [vmem:[%s6167_s13 + $0x8] sm:$0xff]  ;;  %v6294_v9 = vld [vmem:[%s6167_s13 + $0x20] sm:$0xff]  ;;  %v6295_v10 = vld [vmem:[%s6167_s13 + $0x38] sm:$0xff] }
  0x41   : > { %381 = vst [vmem:[%s328_s16] sm:$0xff] %v6293_v8  ;;  %383 = vst [vmem:[%s328_s16 + $0x8] sm:$0xff] %v6294_v9  ;;  %v6296_v11 = vld [vmem:[%s6167_s13 + $0x50] sm:$0xff]  ;;  %v6297_v12 = vld [vmem:[%s6167_s13 + $0x68] sm:$0xff] }
  0x42   : > { %385 = vst [vmem:[%s328_s16 + $0x10] sm:$0xff] %v6295_v10  ;;  %v6298_v13 = vld [vmem:[%s6167_s13 + $0x80] sm:$0xff]  ;;  %387 = vst [vmem:[%s328_s16 + $0x18] sm:$0xff] %v6296_v11  ;;  %v6299_v14 = vld [vmem:[%s6167_s13 + $0x98] sm:$0xff] }
  0x43   : > { %389 = vst [vmem:[%s328_s16 + $0x20] sm:$0xff] %v6297_v12  ;;  %391 = vst [vmem:[%s328_s16 + $0x28] sm:$0xff] %v6298_v13  ;;  %v6300_v15 = vld [vmem:[%s6167_s13 + $0xb0] sm:$0xff] }
  0x44   : > { %393 = vst [vmem:[%s328_s16 + $0x30] sm:$0xff] %v6299_v14  ;;  %395 = vst [vmem:[%s328_s16 + $0x38] sm:$0xff] %v6300_v15 }
  0x45 PF: > { %401 = sbr.rel (!%p8660_p9) target bundleno = 81 (0x51), region = 104  ;;  %s403_s17 = sand.u32 (%p8660_p9), 1, %s8486_s20  }
  0x46   : > { %s6171_s12 = smul.u32 (%p8660_p9), 24, %s8666_s15  ;;  %s6301_s5 = sshll.u32 (%p8660_p9), %s403_s17, 6 }
  0x47   : > { %s6173_s25 = smul.u32 (%p8660_p9), 48, %s8518_s28  ;;  %s405_s13 = scalar_lea.vmem (%p8660_p9), [#allocation8], %s6301_s5 }
  0x49   : > { %s6174_s30 = sadd.s32 (%p8660_p9), %s6173_s25, %s6171_s12 }
  0x4a   : > { %s6302_s6 = sshll.u32 (%p8660_p9), %s6174_s30, 3 }
  0x4b   : > { %s6176_s24 = scalar_lea.vmem (%p8660_p9), %s11939_s2, %s6302_s6 }
  0x4c   : > { %v6303_v16 = vld [vmem:[%s6176_s24 + $0x10] sm:$0xff]  ;;  %v6304_v17 = vld [vmem:[%s6176_s24 + $0x28] sm:$0xff]  ;;  %v6305_v18 = vld [vmem:[%s6176_s24 + $0x40] sm:$0xff] }
  0x4d   : > { %458 = vst [vmem:[%s405_s13] sm:$0xff] %v6303_v16  ;;  %460 = vst [vmem:[%s405_s13 + $0x8] sm:$0xff] %v6304_v17  ;;  %v6306_v19 = vld [vmem:[%s6176_s24 + $0x58] sm:$0xff]  ;;  %v6307_v20 = vld [vmem:[%s6176_s24 + $0x70] sm:$0xff] }
  0x4e   : > { %462 = vst [vmem:[%s405_s13 + $0x10] sm:$0xff] %v6305_v18  ;;  %v6308_v21 = vld [vmem:[%s6176_s24 + $0x88] sm:$0xff]  ;;  %464 = vst [vmem:[%s405_s13 + $0x18] sm:$0xff] %v6306_v19  ;;  %v6309_v22 = vld [vmem:[%s6176_s24 + $0xa0] sm:$0xff] }
  0x4f   : > { %466 = vst [vmem:[%s405_s13 + $0x20] sm:$0xff] %v6307_v20  ;;  %468 = vst [vmem:[%s405_s13 + $0x28] sm:$0xff] %v6308_v21  ;;  %v6310_v23 = vld [vmem:[%s6176_s24 + $0xb8] sm:$0xff] }
  0x50   : > { %470 = vst [vmem:[%s405_s13 + $0x30] sm:$0xff] %v6309_v22  ;;  %472 = vst [vmem:[%s405_s13 + $0x38] sm:$0xff] %v6310_v23 }
  0x51 PF: > { %p6311_p1 = scmp.ge.s32.totalorder %s8522_s29, 1  ;;  %p477_p5 = scmp.lt.s32.totalorder %s8522_s29, 9 }
  0x53   : > { %p478_p6 = pnand %p6311_p1, %p477_p5 }
  0x54   : > { %s484_s14 = sand.u32 (!%p478_p6), 1, %s8490_s21   ;;  %s491_s15 = sand.u32 (!%p478_p6), 1, %s8482_s19  }
  0x55   : > { %481 = sbr.rel (%p478_p6) target bundleno = 5687 (0x1637), region = 142  ;;  %s6312_s16 = sshll.u32 (!%p478_p6), %s484_s14, 6 }
  0x56   : > { %s6313_s17 = sshll.u32 (!%p478_p6), %s491_s15, 6  ;;  %p554_p7 = scmp.eq.s32.totalorder (!%p478_p6), %s8498_s23, 0 }
  0x57   : > { %s8728_s12 = scalar_lea.vmem (!%p478_p6), [#allocation6], %s6312_s16  ;;  %s8730_s5 = scalar_lea.vmem (!%p478_p6), [#allocation7], %s6313_s17 }
  0x58   : > { %s8732_s25 = scalar_lea.vmem (!%p478_p6), [#allocation8], %s6313_s17  ;;  %s8734_s30 = scalar_lea.vmem (!%p478_p6), [#allocation9], %s6312_s16 }
  0x59   : > { %p6316_p8 = scmp.ne.s32.totalorder (!%p478_p6), %s8498_s23, 0 }
  0x5c   : > { %557 = sbr.rel (%p6316_p8) target bundleno = 129 (0x81), region = 158  ;;  %vm558_vm0 = vcmask (!%p6316_p8), 7168   ;;  %v8524_v24 = vmov (!%p6316_p8), -inf   ;;  %v8525_v25 = vmov (!%p6316_p8), 0.0  }
  0x5d   : > { %559 = vst.msk [vmem:[#allocation2] sm:$0xff] (!%p6316_p8), %vm558_vm0, %v8524_v24  ;;  %560 = vst.msk [vmem:[#allocation2 + $0x8] sm:$0xff] (!%p6316_p8), %vm558_vm0, %v8524_v24 }
  0x5e   : > { %561 = vst.msk [vmem:[#allocation2 + $0x10] sm:$0xff] (!%p6316_p8), %vm558_vm0, %v8524_v24  ;;  %562 = vst.msk [vmem:[#allocation2 + $0x18] sm:$0xff] (!%p6316_p8), %vm558_vm0, %v8524_v24 }
  0x5f   : > { %563 = vst.msk [vmem:[#allocation2 + $0x20] sm:$0xff] (!%p6316_p8), %vm558_vm0, %v8524_v24  ;;  %564 = vst.msk [vmem:[#allocation2 + $0x28] sm:$0xff] (!%p6316_p8), %vm558_vm0, %v8524_v24 }
  0x60   : > { %565 = vst.msk [vmem:[#allocation2 + $0x30] sm:$0xff] (!%p6316_p8), %vm558_vm0, %v8524_v24  ;;  %566 = vst.msk [vmem:[#allocation2 + $0x38] sm:$0xff] (!%p6316_p8), %vm558_vm0, %v8524_v24 }
  0x61   : > { %567 = vst.msk [vmem:[#allocation2 + $0x40] sm:$0xff] (!%p6316_p8), %vm558_vm0, %v8524_v24  ;;  %568 = vst.msk [vmem:[#allocation2 + $0x48] sm:$0xff] (!%p6316_p8), %vm558_vm0, %v8524_v24 }
  0x62   : > { %569 = vst.msk [vmem:[#allocation2 + $0x50] sm:$0xff] (!%p6316_p8), %vm558_vm0, %v8524_v24  ;;  %570 = vst.msk [vmem:[#allocation2 + $0x58] sm:$0xff] (!%p6316_p8), %vm558_vm0, %v8524_v24 }
  0x63   : > { %571 = vst.msk [vmem:[#allocation2 + $0x60] sm:$0xff] %vm558_vm0, %v8524_v24  ;;  %572 = vst.msk [vmem:[#allocation2 + $0x68] sm:$0xff] %vm558_vm0, %v8524_v24 }
  0x64   : > { %573 = vst.msk [vmem:[#allocation2 + $0x70] sm:$0xff] %vm558_vm0, %v8524_v24  ;;  %574 = vst.msk [vmem:[#allocation2 + $0x78] sm:$0xff] %vm558_vm0, %v8524_v24 }
  0x65   : > { %575 = vst.msk [vmem:[#allocation2 + $0x80] sm:$0xff] %vm558_vm0, %v8524_v24  ;;  %576 = vst.msk [vmem:[#allocation2 + $0x88] sm:$0xff] %vm558_vm0, %v8524_v24 }
  0x66   : > { %577 = vst.msk [vmem:[#allocation2 + $0x90] sm:$0xff] %vm558_vm0, %v8524_v24  ;;  %578 = vst.msk [vmem:[#allocation2 + $0x98] sm:$0xff] %vm558_vm0, %v8524_v24 }
  0x67   : > { %579 = vst.msk [vmem:[#allocation2 + $0xa0] sm:$0xff] %vm558_vm0, %v8524_v24  ;;  %580 = vst.msk [vmem:[#allocation2 + $0xa8] sm:$0xff] %vm558_vm0, %v8524_v24 }
  0x68   : > { %581 = vst.msk [vmem:[#allocation2 + $0xb0] sm:$0xff] %vm558_vm0, %v8524_v24  ;;  %582 = vst.msk [vmem:[#allocation2 + $0xb8] sm:$0xff] %vm558_vm0, %v8524_v24 }
  0x69   : > { %583 = vst.msk [vmem:[#allocation2 + $0xc0] sm:$0xff] %vm558_vm0, %v8524_v24  ;;  %584 = vst.msk [vmem:[#allocation2 + $0xc8] sm:$0xff] %vm558_vm0, %v8524_v24 }
  0x6a   : > { %585 = vst.msk [vmem:[#allocation2 + $0xd0] sm:$0xff] %vm558_vm0, %v8524_v24  ;;  %586 = vst.msk [vmem:[#allocation2 + $0xd8] sm:$0xff] %vm558_vm0, %v8524_v24 }
  0x6b   : > { %587 = vst.msk [vmem:[#allocation2 + $0xe0] sm:$0xff] %vm558_vm0, %v8524_v24  ;;  %588 = vst.msk [vmem:[#allocation2 + $0xe8] sm:$0xff] %vm558_vm0, %v8524_v24 }
  0x6c   : > { %589 = vst.msk [vmem:[#allocation2 + $0xf0] sm:$0xff] %vm558_vm0, %v8524_v24  ;;  %590 = vst.msk [vmem:[#allocation2 + $0xf8] sm:$0xff] %vm558_vm0, %v8524_v24 }
  0x6d   : > { %591 = vst.msk [vmem:[#allocation3] sm:$0xff] %vm558_vm0, %v8525_v25  ;;  %592 = vst.msk [vmem:[#allocation3 + $0x8] sm:$0xff] %vm558_vm0, %v8525_v25 }
  0x6e   : > { %593 = vst.msk [vmem:[#allocation3 + $0x10] sm:$0xff] %vm558_vm0, %v8525_v25  ;;  %594 = vst.msk [vmem:[#allocation3 + $0x18] sm:$0xff] %vm558_vm0, %v8525_v25 }
  0x6f   : > { %595 = vst.msk [vmem:[#allocation3 + $0x20] sm:$0xff] %vm558_vm0, %v8525_v25  ;;  %596 = vst.msk [vmem:[#allocation3 + $0x28] sm:$0xff] %vm558_vm0, %v8525_v25 }
  0x70   : > { %597 = vst.msk [vmem:[#allocation3 + $0x30] sm:$0xff] %vm558_vm0, %v8525_v25  ;;  %598 = vst.msk [vmem:[#allocation3 + $0x38] sm:$0xff] %vm558_vm0, %v8525_v25 }
  0x71   : > { %599 = vst.msk [vmem:[#allocation3 + $0x40] sm:$0xff] %vm558_vm0, %v8525_v25  ;;  %600 = vst.msk [vmem:[#allocation3 + $0x48] sm:$0xff] %vm558_vm0, %v8525_v25 }
  0x72   : > { %601 = vst.msk [vmem:[#allocation3 + $0x50] sm:$0xff] %vm558_vm0, %v8525_v25  ;;  %602 = vst.msk [vmem:[#allocation3 + $0x58] sm:$0xff] %vm558_vm0, %v8525_v25 }
  0x73   : > { %603 = vst.msk [vmem:[#allocation3 + $0x60] sm:$0xff] %vm558_vm0, %v8525_v25  ;;  %604 = vst.msk [vmem:[#allocation3 + $0x68] sm:$0xff] %vm558_vm0, %v8525_v25 }
  0x74   : > { %605 = vst.msk [vmem:[#allocation3 + $0x70] sm:$0xff] %vm558_vm0, %v8525_v25  ;;  %606 = vst.msk [vmem:[#allocation3 + $0x78] sm:$0xff] %vm558_vm0, %v8525_v25 }
  0x75   : > { %607 = vst.msk [vmem:[#allocation3 + $0x80] sm:$0xff] %vm558_vm0, %v8525_v25  ;;  %608 = vst.msk [vmem:[#allocation3 + $0x88] sm:$0xff] %vm558_vm0, %v8525_v25 }
  0x76   : > { %609 = vst.msk [vmem:[#allocation3 + $0x90] sm:$0xff] %vm558_vm0, %v8525_v25  ;;  %610 = vst.msk [vmem:[#allocation3 + $0x98] sm:$0xff] %vm558_vm0, %v8525_v25 }
  0x77   : > { %611 = vst.msk [vmem:[#allocation3 + $0xa0] sm:$0xff] %vm558_vm0, %v8525_v25  ;;  %612 = vst.msk [vmem:[#allocation3 + $0xa8] sm:$0xff] %vm558_vm0, %v8525_v25 }
  0x78   : > { %613 = vst.msk [vmem:[#allocation3 + $0xb0] sm:$0xff] %vm558_vm0, %v8525_v25  ;;  %614 = vst.msk [vmem:[#allocation3 + $0xb8] sm:$0xff] %vm558_vm0, %v8525_v25 }
  0x79   : > { %615 = vst.msk [vmem:[#allocation3 + $0xc0] sm:$0xff] %vm558_vm0, %v8525_v25  ;;  %616 = vst.msk [vmem:[#allocation3 + $0xc8] sm:$0xff] %vm558_vm0, %v8525_v25 }
  0x7a   : > { %617 = vst.msk [vmem:[#allocation3 + $0xd0] sm:$0xff] %vm558_vm0, %v8525_v25  ;;  %618 = vst.msk [vmem:[#allocation3 + $0xd8] sm:$0xff] %vm558_vm0, %v8525_v25 }
  0x7b   : > { %619 = vst.msk [vmem:[#allocation3 + $0xe0] sm:$0xff] %vm558_vm0, %v8525_v25  ;;  %620 = vst.msk [vmem:[#allocation3 + $0xe8] sm:$0xff] %vm558_vm0, %v8525_v25 }
  0x7c   : > { %621 = vst.msk [vmem:[#allocation3 + $0xf0] sm:$0xff] %vm558_vm0, %v8525_v25  ;;  %622 = vst.msk [vmem:[#allocation3 + $0xf8] sm:$0xff] %vm558_vm0, %v8525_v25 }
  0x7d   : > { %623 = vst [vmem:[#allocation4] sm:$0xff] %v8525_v25  ;;  %624 = vst [vmem:[#allocation4 + $0x8] sm:$0xff] %v8525_v25 }
  0x7e   : > { %625 = vst [vmem:[#allocation4 + $0x10] sm:$0xff] %v8525_v25  ;;  %626 = vst [vmem:[#allocation4 + $0x18] sm:$0xff] %v8525_v25 }
  0x7f   : > { %627 = vst [vmem:[#allocation4 + $0x20] sm:$0xff] %v8525_v25  ;;  %628 = vst [vmem:[#allocation4 + $0x28] sm:$0xff] %v8525_v25 }
  0x80   : > { %629 = vst [vmem:[#allocation4 + $0x30] sm:$0xff] %v8525_v25  ;;  %630 = vst [vmem:[#allocation4 + $0x38] sm:$0xff] %v8525_v25 }
  0x81 PF: > { %635 = sbr.rel (!%p554_p7) target bundleno = 136 (0x88), region = 162  ;;  %v8526_v26 = vmov (%p554_p7), 0.0  }
  0x82   : > { %636 = vst [vmem:[#allocation5] sm:$0xff] (%p554_p7), %v8526_v26  ;;  %637 = vst [vmem:[#allocation5 + $0x8] sm:$0xff] (%p554_p7), %v8526_v26 }
  0x83   : > { %638 = vst [vmem:[#allocation5 + $0x10] sm:$0xff] (%p554_p7), %v8526_v26  ;;  %639 = vst [vmem:[#allocation5 + $0x18] sm:$0xff] (%p554_p7), %v8526_v26 }
  0x84   : > { %640 = vst [vmem:[#allocation5 + $0x20] sm:$0xff] (%p554_p7), %v8526_v26  ;;  %641 = vst [vmem:[#allocation5 + $0x28] sm:$0xff] (%p554_p7), %v8526_v26 }
  0x85   : > { %642 = vst [vmem:[#allocation5 + $0x30] sm:$0xff] (%p554_p7), %v8526_v26  ;;  %643 = vst [vmem:[#allocation5 + $0x38] sm:$0xff] (%p554_p7), %v8526_v26 }
  0x88 PF: > { %s12040_s19 = sld [smem:[#allocation12_spill]] }
  0x8e   : > { %p6318_p9 = scmp.ge.s32.totalorder %s8498_s23, %s12040_s19 }
  0x90   : > { %647 = sbr.rel (%p6318_p9) target bundleno = 2674 (0xa72), region = 166 }
  0x97   : > { %v8806_v27 = vld [vmem:[%s8730_s5] sm:$0xff]  ;;  %v8809_v28 = vld [vmem:[%s8730_s5 + $0x8] sm:$0xff]  ;;  %vm672_vm1 = vcmask 261120   ;;  %v8812_v29 = vld [vmem:[%s8730_s5 + $0x10] sm:$0xff]  ;;  %vm834_vm3 = vcmask 523264   ;;  %v8527_v0 = vmov 0  }
  0x98   : > { %v7295_v30 = vpack.c.bf16 %v8809_v28, %v8806_v27  ;;  %vm8818_vm2 = vmpackc.low %vm672_vm1, %vm672_vm1  ;;  %v8823_v32 = vld [vmem:[%s8730_s5 + $0x18] sm:$0xff]  ;;  %v8830_v34 = vld [vmem:[%s8728_s12] sm:$0xff]  ;;  %7782 = vset.pattern.permute.xlu0 %v8527_v0  ;;  %7783 = vset.pattern.permute.xlu1 %v8527_v0  ;;  %vm1003_vm4 = vcmask 7168   ;;  %v8981_v21 = vpack.i.bf16 %v8809_v28, %v8806_v27  ;;  %s8528_s6 = smov 96   ;;  %s8529_s10 = smov 64   ;;  %vm1833_vm5 = vcmask 523520  }
  0x99   : > { %v7301_v33 = vpack.c.bf16 %v8823_v32, %v8812_v29  ;;  %6819 = vmatprep.mubr.msk.f32.mxu0 %vm672_vm1, %v8830_v34  ;;  %v8839_v35 = vld [vmem:[%s8730_s5 + $0x20] sm:$0xff]  ;;  %v8842_v36 = vld [vmem:[%s8730_s5 + $0x28] sm:$0xff]  ;;  %v8851_v38 = vld [vmem:[%s8730_s5 + $0x30] sm:$0xff]  ;;  %v8963_v13 = vpack.i.bf16 %v8823_v32, %v8812_v29  ;;  %s8530_s11 = smov 32   ;;  %vm2454_vm6 = vcmask 785920   ;;  %vm3075_vm7 = vcmask 1048320  }
  0x9a   : > { %7297 = vmatprep.subr.msk.bf16.mxu0 %vm8818_vm2, %v7295_v30  ;;  %v7307_v37 = vpack.c.bf16 %v8842_v36, %v8839_v35  ;;  %v8854_v39 = vld [vmem:[%s8730_s5 + $0x38] sm:$0xff]  ;;  %v8865_v41 = vld [vmem:[%s8728_s12 + $0x8] sm:$0xff]  ;;  %v8868_v42 = vld [vmem:[%s8728_s12 + $0x10] sm:$0xff] }
  0x9b   : > { %7300 = vmatpush3.bf16.xpose.msk.msra.mxu0 %vm8818_vm2, %v7295_v30  ;;  %v7313_v40 = vpack.c.bf16 %v8854_v39, %v8851_v38  ;;  %v8875_v43 = vld [vmem:[%s8728_s12 + $0x18] sm:$0xff]  ;;  %v8878_v44 = vld [vmem:[%s8728_s12 + $0x20] sm:$0xff]  ;;  %v8885_v45 = vld [vmem:[%s8728_s12 + $0x28] sm:$0xff]  ;;  %v9000_v26 = vpack.i.bf16 %v8854_v39, %v8851_v38 }
  0x9c   : > { %7303 = vmatprep.subr.msk.bf16.mxu0 %vm8818_vm2, %v7301_v33  ;;  %v8888_v46 = vld [vmem:[%s8728_s12 + $0x30] sm:$0xff]  ;;  %v8895_v47 = vld [vmem:[%s8728_s12 + $0x38] sm:$0xff]  ;;  %v8932_v1 = vld [vmem:[%s8732_s25] sm:$0xff] }
  0x9d   : > { %v8935_v2 = vld [vmem:[%s8732_s25 + $0x8] sm:$0xff]  ;;  %v8939_v4 = vld [vmem:[#allocation2] sm:$0xff]  ;;  %v8945_v7 = vld [vmem:[%s8732_s25 + $0x10] sm:$0xff] }
  0x9e   : > { %v7319_v3 = vpack.c.bf16 %v8935_v2, %v8932_v1  ;;  %v8948_v8 = vld [vmem:[%s8732_s25 + $0x18] sm:$0xff]  ;;  %v8950_v9 = vld [vmem:[#allocation2 + $0x8] sm:$0xff]  ;;  %v8952_v10 = vld [vmem:[#allocation2 + $0x10] sm:$0xff] }
  0x9f   : > { %v7323_v11 = vpack.c.bf16 %v8948_v8, %v8945_v7  ;;  %v8972_v18 = vld [vmem:[%s8732_s25 + $0x20] sm:$0xff]  ;;  %v8975_v19 = vld [vmem:[%s8732_s25 + $0x28] sm:$0xff]  ;;  %v8977_v20 = vld [vmem:[#allocation2 + $0x18] sm:$0xff] }
  0xa0   : > { %7320 = vmatprep.subr.bf16.mxu1 %v7319_v3  ;;  %v8983_v22 = vld [vmem:[#allocation2 + $0x20] sm:$0xff]  ;;  %v7327_v23 = vpack.c.bf16 %v8975_v19, %v8972_v18  ;;  %v9009_v32 = vld [vmem:[%s8732_s25 + $0x30] sm:$0xff] }
  0xa1   : > { %7322 = vmatpush3.bf16.msra.mxu1 %v7319_v3 }
  0xa2   : > { %7324 = vmatprep.subr.bf16.mxu1 %v7323_v11 }
  0xa3   : > { %7306 = vmatpush3.bf16.xpose.msk.msra.mxu0 %vm8818_vm2, %v7301_v33  ;;  %v9012_v33 = vld [vmem:[%s8732_s25 + $0x38] sm:$0xff] }
  0xa4   : > { %7309 = vmatprep.subr.msk.bf16.mxu0 %vm8818_vm2, %v7307_v37  ;;  %v7331_v38 = vpack.c.bf16 %v9012_v33, %v9009_v32 }
  0xa5   : > { %7326 = vmatpush3.bf16.msra.mxu1 %v7323_v11  ;;  %v9071_v11 = vpack.i.bf16 %v8842_v36, %v8839_v35 }
  0xa6   : > { %7328 = vmatprep.subr.bf16.mxu1 %v7327_v23 }
  0xa9   : > { %7330 = vmatpush3.bf16.msra.mxu1 %v7327_v23 }
  0xaa   : > { %7332 = vmatprep.subr.bf16.mxu1 %v7331_v38 }
  0xab   : > { %7312 = vmatpush3.bf16.xpose.msk.msra.mxu0 %vm8818_vm2, %v7307_v37  ;;  %v9014_v37 = vld [vmem:[#allocation2 + $0x28] sm:$0xff] }
  0xac   : > { %7315 = vmatprep.subr.msk.bf16.mxu0 %vm8818_vm2, %v7313_v40 }
  0xad   : > { %7334 = vmatpush3.bf16.msra.mxu1 %v7331_v38 }
  0xb3   : > { %7318 = vmatpush3.bf16.xpose.msk.msra.mxu0 %vm8818_vm2, %v7313_v40  ;;  %v9016_v40 = vld [vmem:[#allocation2 + $0x30] sm:$0xff] }
  0xba   : > { %6820 = vmatmul.mubr.msk.f32.vlgmr.msra.gmra.mrb[0].mxu0 %vm672_vm1, %v8865_v41 }
  0xbb   : > { %6822 = vmatprep.mubr.msk.f32.mxu0 %vm672_vm1, %v8868_v42 }
  0xbe   : > { %6823 = vmatmul.mubr.msk.f32.gmra.mrb[2].mxu0 %vm672_vm1, %v8875_v43 }
  0xbf   : > { %6825 = vmatprep.mubr.msk.f32.mxu0 %vm672_vm1, %v8878_v44 }
  0xc2   : > { %6826 = vmatmul.mubr.msk.f32.gmra.mrb[4].mxu0 %vm672_vm1, %v8885_v45 }
  0xc3   : > { %6828 = vmatprep.mubr.msk.f32.mxu0 %vm672_vm1, %v8888_v46 }
  0xc6   : > { %6829 = vmatmul.mubr.msk.f32.gmra.mrb[6].mxu0 %vm672_vm1, %v8895_v47 }
 0x18d   : > { %v8899_v48 = vpop.f32.mrb[0].mxu0 }
 0x18e   : > { %v8901_v49 = vpop.f32.mrb[1].mxu0  ;;  %v838_v53 = vsel %vm834_vm3, %v8899_v48, -inf }
 0x18f   : > { %v835_v50 = vsel %vm834_vm3, %v8901_v49, -inf }
 0x190   : > { %836 = vmax.xlane.f32.xlu0 %v835_v50 }
 0x191   : > { %v8905_v51 = vpop.f32.mrb[2].mxu0 }
 0x192   : > { %v8907_v52 = vpop.f32.mrb[3].mxu0  ;;  %v844_v55 = vsel %vm834_vm3, %v8905_v51, -inf }
 0x193   : > { %v841_v54 = vsel %vm834_vm3, %v8907_v52, -inf }
 0x194   : > { %839 = vmax.xlane.f32.xlu0 %v838_v53  ;;  %842 = vmax.xlane.f32.xlu1 %v841_v54 }
 0x195   : > { %v8915_v56 = vpop.f32.mrb[4].mxu0 }
 0x196   : > { %v8917_v57 = vpop.f32.mrb[5].mxu0  ;;  %v850_v59 = vsel %vm834_vm3, %v8915_v56, -inf }
 0x197   : > { %v847_v58 = vsel %vm834_vm3, %v8917_v57, -inf }
 0x198   : > { %845 = vmax.xlane.f32.xlu1 %v844_v55  ;;  %848 = vmax.xlane.f32.xlu0 %v847_v58 }
 0x199   : > { %v8923_v60 = vpop.f32.mrb[6].mxu0 }
 0x19a   : > { %v8925_v61 = vpop.f32.mrb[7].mxu0  ;;  %v856_v63 = vsel %vm834_vm3, %v8923_v60, -inf }
 0x19b   : > { %v853_v62 = vsel %vm834_vm3, %v8925_v61, -inf }
 0x19c   : > { %851 = vmax.xlane.f32.xlu1 %v850_v59  ;;  %854 = vmax.xlane.f32.xlu0 %v853_v62  ;;  %v9038_v59 = vld [vmem:[#allocation2 + $0x38] sm:$0xff] }
 0x1a0   : > { %857 = vmax.xlane.f32.xlu1 %v856_v63 }
 0x21d   : > { %v837_v5 = vpop.xlane.xlu0 %836 }
 0x21e   : > { %v8942_v6 = vmax.f32 %v8939_v4, %v837_v5 }
 0x220   : > { %1213 = vst.msk [vmem:[#allocation2] sm:$0xff] %vm1003_vm4, %v8942_v6  ;;  %893 = vperm.xlu0 %7782, %v8942_v6  }
 0x221   : > { %v840_v14 = vpop.xlane.xlu0 %839  ;;  %v843_v15 = vpop.xlane.xlu1 %842 }
 0x222   : > { %v8966_v16 = vmax.f32 %v8950_v9, %v840_v14  ;;  %v8969_v17 = vmax.f32 %v8952_v10, %v843_v15 }
 0x224   : > { %1214 = vst.msk [vmem:[#allocation2 + $0x8] sm:$0xff] %vm1003_vm4, %v8966_v16  ;;  %1215 = vst.msk [vmem:[#allocation2 + $0x10] sm:$0xff] %vm1003_vm4, %v8969_v17  ;;  %898 = vperm.xlu1 %7783, %v8966_v16   ;;  %7790 = vrot.lane.b32.xlu0 %v8963_v13, %s8528_s6 }
 0x225   : > { %v846_v27 = vpop.xlane.xlu1 %845  ;;  %v849_v28 = vpop.xlane.xlu0 %848 }
 0x226   : > { %v9003_v29 = vmax.f32 %v8977_v20, %v846_v27  ;;  %v9006_v30 = vmax.f32 %v8983_v22, %v849_v28 }
 0x228   : > { %1216 = vst.msk [vmem:[#allocation2 + $0x18] sm:$0xff] %vm1003_vm4, %v9003_v29  ;;  %7785 = vrot.lane.b32.xlu1 %v8981_v21, %s8528_s6  ;;  %1217 = vst.msk [vmem:[#allocation2 + $0x20] sm:$0xff] %vm1003_vm4, %v9006_v30  ;;  %7800 = vrot.lane.b32.xlu0 %v9000_v26, %s8528_s6  ;;  %v12081_v31 = vsub.f32 %v8983_v22, %v9006_v30 }
 0x229   : > { %v852_v53 = vpop.xlane.xlu1 %851  ;;  %v855_v54 = vpop.xlane.xlu0 %854 }
 0x22a   : > { %v9033_v55 = vmax.f32 %v9014_v37, %v852_v53  ;;  %v9036_v58 = vmax.f32 %v9016_v40, %v855_v54 }
 0x22c   : > { %908 = vperm.xlu1 %7783, %v9003_v29   ;;  %1218 = vst.msk [vmem:[#allocation2 + $0x28] sm:$0xff] %vm1003_vm4, %v9033_v55  ;;  %1219 = vst.msk [vmem:[#allocation2 + $0x30] sm:$0xff] %vm1003_vm4, %v9036_v58  ;;  %1223 = vrot.lane.b32.xlu0 %v8865_v41, %s8528_s6 }
 0x22d   : > { %v858_v0 = vpop.xlane.xlu1 %857 }
 0x22e   : > { %v9052_v3 = vmax.f32 %v9038_v59, %v858_v0 }
 0x230   : > { %903 = vperm.xlu1 %7783, %v8969_v17   ;;  %1220 = vst.msk [vmem:[#allocation2 + $0x38] sm:$0xff] %vm1003_vm4, %v9052_v3  ;;  %1227 = vrot.lane.b32.xlu0 %v8875_v43, %s8528_s6 }
 0x234   : > { %918 = vperm.xlu1 %7783, %v9033_v55   ;;  %1231 = vrot.lane.b32.xlu0 %v8885_v45, %s8528_s6 }
 0x238   : > { %913 = vperm.xlu1 %7783, %v9006_v30   ;;  %1235 = vrot.lane.b32.xlu0 %v8895_v47, %s8528_s6 }
 0x23c   : > { %923 = vperm.xlu1 %7783, %v9036_v58  }
 0x240   : > { %928 = vperm.xlu1 %7783, %v9052_v3  }
 0x244   : > { %7795 = vrot.lane.b32.xlu1 %v9071_v11, %s8528_s6 }
 0x248   : > { %1221 = vrot.lane.b32.xlu1 %v8830_v34, %s8528_s6 }
 0x24c   : > { %1225 = vrot.lane.b32.xlu1 %v8868_v42, %s8528_s6 }
 0x250   : > { %1229 = vrot.lane.b32.xlu1 %v8878_v44, %s8528_s6 }
 0x254   : > { %1233 = vrot.lane.b32.xlu1 %v8888_v46, %s8528_s6 }
 0x29f   : > { %v894_v14 = vpop.permute.xlu0 %893 }
 0x2a0   : > { %v931_v15 = vsub.f32 %v8901_v49, %v894_v14 }
 0x2a2   : > { %v939_v35 = vmul.f32 1.442695, %v931_v15 }
 0x2a3   : > { %v899_v36 = vpop.permute.xlu1 %898  ;;  %v7791_v0 = vpop.permute.xlu0 %7790 }
 0x2a4   : > { %7904 = vpow2.f32 %v939_v35  ;;  %v932_v23 = vsub.f32 %v8899_v48, %v899_v36  ;;  %v7793_v63 = vunpack.i.h.bf16 %v7791_v0  ;;  %v7792_v49 = vunpack.i.l.bf16 %v7791_v0 }
 0x2a6   : > { %v941_v27 = vmul.f32 1.442695, %v932_v23  ;;  %v7341_v36 = vpack.c.bf16 %v7793_v63, %v7792_v49 }
 0x2a7   : > { %v7786_v28 = vpop.permute.xlu1 %7785 }
 0x2a8   : > { %7906 = vpow2.f32 %v941_v27  ;;  %v7788_v38 = vunpack.i.h.bf16 %v7786_v28  ;;  %v7787_v53 = vunpack.i.l.bf16 %v7786_v28 }
 0x2aa   : > { %v7335_v54 = vpack.c.bf16 %v7788_v38, %v7787_v53 }
 0x2ab   : > { %v909_v5 = vpop.permute.xlu1 %908 }
 0x2ac   : > { %7337 = vmatprep.subr.msk.bf16.mxu1 %vm8818_vm2, %v7335_v54  ;;  %v934_v62 = vsub.f32 %v8905_v51, %v909_v5 }
 0x2ae   : > { %v9088_v14 = vpop.eup %7904  ;;  %v945_v35 = vmul.f32 1.442695, %v934_v62 }
 0x2af   : > { %v904_v15 = vpop.permute.xlu1 %903  ;;  %6847 = vmatprep.mubr.msk.f32.mxu1 %vm834_vm3, %v9088_v14 }
 0x2b0   : > { %v933_v48 = vsub.f32 %v8907_v52, %v904_v15 }
 0x2b2   : > { %v9093_v23 = vpop.eup %7906  ;;  %v943_v27 = vmul.f32 1.442695, %v933_v48 }
 0x2b3   : > { %v919_v28 = vpop.permute.xlu1 %918  ;;  %6848 = vmatmul.mubr.msk.f32.vlgmr.msra.gmra.mrb[0].mxu1 %vm834_vm3, %v9093_v23 }
 0x2b4   : > { %7908 = vpow2.f32 %v943_v27  ;;  %7340 = vmatpush3.bf16.xpose.msk.msra.mxu1 %vm8818_vm2, %v7335_v54  ;;  %v936_v51 = vsub.f32 %v8915_v56, %v919_v28 }
 0x2b5   : > { %7910 = vpow2.f32 %v945_v35  ;;  %7343 = vmatprep.subr.msk.bf16.mxu1 %vm8818_vm2, %v7341_v36 }
 0x2b6   : > { %v949_v63 = vmul.f32 1.442695, %v936_v51 }
 0x2b7   : > { %v914_v52 = vpop.permute.xlu1 %913 }
 0x2b8   : > { %v935_v62 = vsub.f32 %v8917_v57, %v914_v52  ;;  %v7801_v57 = vpop.permute.xlu0 %7800 }
 0x2b9   : > { %v7803_v48 = vunpack.i.h.bf16 %v7801_v57  ;;  %v7802_v35 = vunpack.i.l.bf16 %v7801_v57 }
 0x2ba   : > { %v947_v5 = vmul.f32 1.442695, %v935_v62 }
 0x2bb   : > { %v924_v38 = vpop.permute.xlu1 %923  ;;  %v7353_v62 = vpack.c.bf16 %v7803_v48, %v7802_v35 }
 0x2bc   : > { %7912 = vpow2.f32 %v947_v5  ;;  %v937_v53 = vsub.f32 %v8925_v61, %v924_v38  ;;  %7346 = vmatpush3.bf16.xpose.msk.msra.mxu1 %vm8818_vm2, %v7341_v36 }
 0x2bd   : > { %7914 = vpow2.f32 %v949_v63 }
 0x2be   : > { %v9106_v54 = vpop.eup %7908  ;;  %v951_v0 = vmul.f32 1.442695, %v937_v53  ;;  %v1224_v53 = vpop.permute.xlu0 %1223 }
 0x2bf   : > { %v9108_v56 = vpop.eup %7910  ;;  %v929_v49 = vpop.permute.xlu1 %928  ;;  %6850 = vmatprep.mubr.msk.f32.mxu1 %vm834_vm3, %v9106_v54 }
 0x2c0   : > { %7916 = vpow2.f32 %v951_v0  ;;  %v938_v15 = vsub.f32 %v8923_v60, %v929_v49  ;;  %6851 = vmatmul.mubr.msk.f32.gmra.mrb[2].mxu1 %vm834_vm3, %v9108_v56 }
 0x2c2   : > { %v953_v61 = vmul.f32 1.442695, %v938_v15  ;;  %v1228_v49 = vpop.permute.xlu0 %1227 }
 0x2c3   : > { %v7796_v36 = vpop.permute.xlu1 %7795 }
 0x2c4   : > { %7918 = vpow2.f32 %v953_v61  ;;  %v7798_v27 = vunpack.i.h.bf16 %v7796_v36  ;;  %v7797_v28 = vunpack.i.l.bf16 %v7796_v36 }
 0x2c6   : > { %v9115_v51 = vpop.eup %7912  ;;  %v7347_v52 = vpack.c.bf16 %v7798_v27, %v7797_v28  ;;  %v1232_v15 = vpop.permute.xlu0 %1231 }
 0x2c7   : > { %v9117_v63 = vpop.eup %7914  ;;  %6853 = vmatprep.mubr.msk.f32.mxu1 %vm834_vm3, %v9115_v51  ;;  %v1222_v5 = vpop.permute.xlu1 %1221 }
 0x2c8   : > { %6854 = vmatmul.mubr.msk.f32.gmra.mrb[4].mxu1 %vm834_vm3, %v9117_v63  ;;  %7349 = vmatprep.subr.msk.bf16.mxu1 %vm8818_vm2, %v7347_v52 }
 0x2c9   : > { %7352 = vmatpush3.bf16.xpose.msk.msra.mxu1 %vm8818_vm2, %v7347_v52 }
 0x2ca   : > { %v9127_v60 = vpop.eup %7916  ;;  %7355 = vmatprep.subr.msk.bf16.mxu1 %vm8818_vm2, %v7353_v62  ;;  %v1236_v48 = vpop.permute.xlu0 %1235 }
 0x2cb   : > { %6856 = vmatprep.mubr.msk.f32.mxu1 %vm834_vm3, %v9127_v60  ;;  %v1226_v0 = vpop.permute.xlu1 %1225 }
 0x2ce   : > { %v9133_v38 = vpop.eup %7918 }
 0x2cf   : > { %6857 = vmatmul.mubr.msk.f32.gmra.mrb[6].mxu1 %vm834_vm3, %v9133_v38  ;;  %v1230_v57 = vpop.permute.xlu1 %1229 }
 0x2d0   : > { %6875 = vmatprep.mubr.msk.f32.mxu1 %vm672_vm1, %v1222_v5 }
 0x2d1   : > { %7358 = vmatpush3.bf16.xpose.msk.msra.mxu1 %vm8818_vm2, %v7353_v62 }
 0x2d3   : > { %v1234_v61 = vpop.permute.xlu1 %1233 }
 0x2d8   : > { %6876 = vmatmul.mubr.msk.f32.vlgmr.msra.gmra.mrb[8].mxu1 %vm672_vm1, %v1224_v53 }
 0x2d9   : > { %6878 = vmatprep.mubr.msk.f32.mxu1 %vm672_vm1, %v1226_v0 }
 0x2dc   : > { %6879 = vmatmul.mubr.msk.f32.gmra.mrb[10].mxu1 %vm672_vm1, %v1228_v49 }
 0x2dd   : > { %6881 = vmatprep.mubr.msk.f32.mxu1 %vm672_vm1, %v1230_v57 }
 0x2e0   : > { %6882 = vmatmul.mubr.msk.f32.gmra.mrb[12].mxu1 %vm672_vm1, %v1232_v15 }
 0x2e1   : > { %6884 = vmatprep.mubr.msk.f32.mxu1 %vm672_vm1, %v1234_v61 }
 0x2e4   : > { %6885 = vmatmul.mubr.msk.f32.gmra.mrb[14].mxu1 %vm672_vm1, %v1236_v48 }
 0x386   : > { %v9147_v35 = vpop.f32.mrb[0].mxu1 }
 0x387   : > { %v9149_v36 = vpop.f32.mrb[1].mxu1 }
 0x388   : > { %12043 = vst [vmem:[#allocation16_spill] sm:$0xff] %v9149_v36 }
 0x393   : > { %v9151_v27 = vpop.f32.mrb[2].mxu1 }
 0x394   : > { %12044 = vst [vmem:[#allocation17_spill] sm:$0xff] %v9151_v27  ;;  %v9153_v28 = vpop.f32.mrb[3].mxu1 }
 0x39b   : > { %v9155_v52 = vpop.f32.mrb[4].mxu1 }
 0x39c   : > { %12045 = vst [vmem:[#allocation18_spill] sm:$0xff] %v9155_v52  ;;  %v9157_v62 = vpop.f32.mrb[5].mxu1  ;;  %v9197_v52 = vpack.i.bf16 %v8935_v2, %v8932_v1  ;;  %v9215_v1 = vld [vmem:[#allocation2 + $0x40] sm:$0xff] }
 0x39d   : > { %12046 = vst [vmem:[#allocation19_spill] sm:$0xff] %v9157_v62  ;;  %12050 = vst [vmem:[#allocation23_spill] sm:$0xff] %v9215_v1  ;;  %v9244_v62 = vld [vmem:[#allocation2 + $0x68] sm:$0xff] }
 0x39e   : > { %12057 = vst [vmem:[#allocation30_spill] sm:$0xff] %v9244_v62 }
 0x3a2   : > { %v9159_v5 = vpop.f32.mrb[6].mxu1 }
 0x3a3   : > { %12047 = vst [vmem:[#allocation20_spill] sm:$0xff] %v9159_v5  ;;  %v9161_v53 = vpop.f32.mrb[7].mxu1 }
 0x3a4   : > { %12048 = vst [vmem:[#allocation21_spill] sm:$0xff] %v9161_v53 }
 0x3ab   : > { %v9163_v0 = vpop.f32.mrb[8].mxu1 }
 0x3ac   : > { %v9165_v49 = vpop.f32.mrb[9].mxu1  ;;  %v1402_v57 = vsel %vm834_vm3, %v9163_v0, -inf }
 0x3ad   : > { %1403 = vmax.xlane.f32.xlu0 %v1402_v57  ;;  %v1399_v15 = vsel %vm834_vm3, %v9165_v49, -inf }
 0x3ae   : > { %1400 = vmax.xlane.f32.xlu1 %v1399_v15 }
 0x3af   : > { %v9171_v61 = vpop.f32.mrb[10].mxu1 }
 0x3b0   : > { %v9173_v48 = vpop.f32.mrb[11].mxu1  ;;  %v1408_v39 = vsel %vm834_vm3, %v9171_v61, -inf }
 0x3b1   : > { %v1405_v24 = vsel %vm834_vm3, %v9173_v48, -inf }
 0x3b2   : > { %1409 = vmax.xlane.f32.xlu1 %v1408_v39  ;;  %1406 = vmax.xlane.f32.xlu0 %v1405_v24 }
 0x3b3   : > { %v9179_v12 = vpop.f32.mrb[12].mxu1 }
 0x3b4   : > { %v9181_v50 = vpop.f32.mrb[13].mxu1  ;;  %v1414_v57 = vsel %vm834_vm3, %v9179_v12, -inf }
 0x3b5   : > { %v1411_v15 = vsel %vm834_vm3, %v9181_v50, -inf }
 0x3b6   : > { %1412 = vmax.xlane.f32.xlu0 %v1411_v15  ;;  %1415 = vmax.xlane.f32.xlu1 %v1414_v57  ;;  %v9203_v57 = vpack.i.bf16 %v8948_v8, %v8945_v7  ;;  %v9209_v15 = vpack.i.bf16 %v9012_v33, %v9009_v32  ;;  %v9227_v32 = vld [vmem:[#allocation2 + $0x58] sm:$0xff]  ;;  %v9229_v33 = vld [vmem:[#allocation2 + $0x50] sm:$0xff] }
 0x3b7   : > { %v9187_v25 = vpop.f32.mrb[14].mxu1  ;;  %12053 = vst [vmem:[#allocation26_spill] sm:$0xff] %v9227_v32  ;;  %12054 = vst [vmem:[#allocation27_spill] sm:$0xff] %v9229_v33 }
 0x3b8   : > { %v9189_v5 = vpop.f32.mrb[15].mxu1  ;;  %v1420_v39 = vsel %vm834_vm3, %v9187_v25, -inf }
 0x3b9   : > { %v1417_v24 = vsel %vm834_vm3, %v9189_v5, -inf }
 0x3ba   : > { %1418 = vmax.xlane.f32.xlu0 %v1417_v24  ;;  %1421 = vmax.xlane.f32.xlu1 %v1420_v39  ;;  %v9213_v39 = vld [vmem:[#allocation2 + $0x48] sm:$0xff] }
 0x3bb   : > { %12049 = vst [vmem:[#allocation22_spill] sm:$0xff] %v9213_v39 }
 0x3d0   : > { %7805 = vrot.lane.b32.xlu0 %v9197_v52, %s8528_s6 }
 0x3d4   : > { %7810 = vrot.lane.b32.xlu0 %v9203_v57, %s8528_s6 }
 0x3d8   : > { %7820 = vrot.lane.b32.xlu0 %v9209_v15, %s8528_s6 }
 0x43a   : > { %v1404_v2 = vpop.xlane.xlu0 %1403 }
 0x43b   : > { %v9218_v24 = vmax.f32 %v9213_v39, %v1404_v2  ;;  %v1401_v7 = vpop.xlane.xlu1 %1400  ;;  %v9242_v39 = vld [vmem:[#allocation2 + $0x60] sm:$0xff] }
 0x43c   : > { %v9221_v8 = vmax.f32 %v9215_v1, %v1401_v7  ;;  %12056 = vst [vmem:[#allocation29_spill] sm:$0xff] %v9242_v39 }
 0x43d   : > { %12051 = vst [vmem:[#allocation24_spill] sm:$0xff] %v9218_v24  ;;  %1843 = vst.msk [vmem:[#allocation2 + $0x48] sm:$0xff] %vm1003_vm4, %v9218_v24 }
 0x43e   : > { %12052 = vst [vmem:[#allocation25_spill] sm:$0xff] %v9221_v8  ;;  %1842 = vst.msk [vmem:[#allocation2 + $0x40] sm:$0xff] %vm1003_vm4, %v9221_v8  ;;  %1457 = vperm.xlu1 %7783, %v9221_v8   ;;  %v9266_v8 = vld [vmem:[#allocation2 + $0x70] sm:$0xff] }
 0x43f   : > { %v1410_v2 = vpop.xlane.xlu1 %1409  ;;  %v1407_v7 = vpop.xlane.xlu0 %1406  ;;  %12060 = vst [vmem:[#allocation33_spill] sm:$0xff] %v9266_v8 }
 0x440   : > { %v9237_v53 = vmax.f32 %v9227_v32, %v1410_v2  ;;  %v9240_v27 = vmax.f32 %v9229_v33, %v1407_v7  ;;  %v9258_v2 = vpack.i.bf16 %v8975_v19, %v8972_v18  ;;  %v9268_v33 = vld [vmem:[#allocation2 + $0x78] sm:$0xff] }
 0x441   : > { %12061 = vst [vmem:[#allocation34_spill] sm:$0xff] %v9268_v33 }
 0x442   : > { %12055 = vst [vmem:[#allocation28_spill] sm:$0xff] %v9237_v53  ;;  %1845 = vst.msk [vmem:[#allocation2 + $0x58] sm:$0xff] %vm1003_vm4, %v9237_v53  ;;  %1462 = vperm.xlu1 %7783, %v9218_v24   ;;  %1472 = vperm.xlu0 %7782, %v9237_v53  }
 0x443   : > { %1844 = vst.msk [vmem:[#allocation2 + $0x50] sm:$0xff] %vm1003_vm4, %v9240_v27  ;;  %v1413_v7 = vpop.xlane.xlu0 %1412  ;;  %v1416_v1 = vpop.xlane.xlu1 %1415 }
 0x444   : > { %v9261_v36 = vmax.f32 %v9242_v39, %v1413_v7  ;;  %v9264_v32 = vmax.f32 %v9244_v62, %v1416_v1 }
 0x446   : > { %12058 = vst [vmem:[#allocation31_spill] sm:$0xff] %v9261_v36  ;;  %12059 = vst [vmem:[#allocation32_spill] sm:$0xff] %v9264_v32  ;;  %7815 = vrot.lane.b32.xlu1 %v9258_v2, %s8528_s6  ;;  %1477 = vperm.xlu0 %7782, %v9261_v36  }
 0x447   : > { %1846 = vst.msk [vmem:[#allocation2 + $0x60] sm:$0xff] %vm1003_vm4, %v9261_v36  ;;  %1847 = vst.msk [vmem:[#allocation2 + $0x68] sm:$0xff] %vm1003_vm4, %v9264_v32  ;;  %v1419_v19 = vpop.xlane.xlu0 %1418  ;;  %v1422_v1 = vpop.xlane.xlu1 %1421 }
 0x448   : > { %v9282_v7 = vmax.f32 %v9266_v8, %v1419_v19  ;;  %v9285_v24 = vmax.f32 %v9268_v33, %v1422_v1 }
 0x44a   : > { %12062 = vst [vmem:[#allocation35_spill] sm:$0xff] %v9282_v7  ;;  %12063 = vst [vmem:[#allocation36_spill] sm:$0xff] %v9285_v24  ;;  %1467 = vperm.xlu1 %7783, %v9240_v27   ;;  %1487 = vperm.xlu0 %7782, %v9282_v7  }
 0x44b   : > { %1848 = vst.msk [vmem:[#allocation2 + $0x70] sm:$0xff] %vm1003_vm4, %v9282_v7  ;;  %1849 = vst.msk [vmem:[#allocation2 + $0x78] sm:$0xff] %vm1003_vm4, %v9285_v24  ;;  %v7806_v19 = vpop.permute.xlu0 %7805 }
 0x44c   : > { %v7808_v36 = vunpack.i.h.bf16 %v7806_v19  ;;  %v7807_v1 = vunpack.i.l.bf16 %v7806_v19 }
 0x44e   : > { %7825 = vrot.lane.b32.xlu1 %v8981_v21, %s8529_s10  ;;  %7830 = vrot.lane.b32.xlu0 %v8963_v13, %s8529_s10  ;;  %v7359_v39 = vpack.c.bf16 %v7808_v36, %v7807_v1 }
 0x44f   : > { %v7811_v8 = vpop.permute.xlu0 %7810 }
 0x450   : > { %v7813_v62 = vunpack.i.h.bf16 %v7811_v8  ;;  %v7812_v7 = vunpack.i.l.bf16 %v7811_v8  ;;  %7360 = vmatprep.subr.bf16.mxu0 %v7359_v39 }
 0x451   : > { %7362 = vmatpush3.bf16.msra.mxu0 %v7359_v39 }
 0x452   : > { %1482 = vperm.xlu1 %7783, %v9264_v32   ;;  %7840 = vrot.lane.b32.xlu0 %v9000_v26, %s8529_s10  ;;  %v7363_v18 = vpack.c.bf16 %v7813_v62, %v7812_v7 }
 0x454   : > { %7364 = vmatprep.subr.bf16.mxu0 %v7363_v18 }
 0x455   : > { %7366 = vmatpush3.bf16.msra.mxu0 %v7363_v18 }
 0x456   : > { %1492 = vperm.xlu1 %7783, %v9285_v24   ;;  %1852 = vrot.lane.b32.xlu0 %v8865_v41, %s8529_s10  ;;  %v7821_v41 = vpop.permute.xlu0 %7820 }
 0x457   : > { %v7822_v62 = vunpack.i.l.bf16 %v7821_v41 }
 0x45a   : > { %7835 = vrot.lane.b32.xlu1 %v9071_v11, %s8529_s10  ;;  %1856 = vrot.lane.b32.xlu0 %v8875_v43, %s8529_s10  ;;  %v7823_v11 = vunpack.i.h.bf16 %v7821_v41 }
 0x45c   : > { %v7371_v1 = vpack.c.bf16 %v7823_v11, %v7822_v62 }
 0x45e   : > { %1850 = vrot.lane.b32.xlu1 %v8830_v34, %s8529_s10  ;;  %1860 = vrot.lane.b32.xlu0 %v8885_v45, %s8529_s10 }
 0x462   : > { %1854 = vrot.lane.b32.xlu1 %v8868_v42, %s8529_s10  ;;  %1864 = vrot.lane.b32.xlu0 %v8895_v47, %s8529_s10 }
 0x466   : > { %1858 = vrot.lane.b32.xlu1 %v8878_v44, %s8529_s10 }
 0x46a   : > { %1862 = vrot.lane.b32.xlu1 %v8888_v46, %s8529_s10 }
 0x4bd   : > { %v1458_v43 = vpop.permute.xlu1 %1457 }
 0x4be   : > { %v1495_v13 = vsub.f32 %v9165_v49, %v1458_v43 }
 0x4c0   : > { %v1503_v34 = vmul.f32 1.442695, %v1495_v13 }
 0x4c1   : > { %v1463_v21 = vpop.permute.xlu1 %1462  ;;  %v1473_v26 = vpop.permute.xlu0 %1472 }
 0x4c2   : > { %7920 = vpow2.f32 %v1503_v34  ;;  %v1496_v45 = vsub.f32 %v9163_v0, %v1463_v21  ;;  %v1498_v46 = vsub.f32 %v9171_v61, %v1473_v26 }
 0x4c4   : > { %v1505_v42 = vmul.f32 1.442695, %v1496_v45  ;;  %v1509_v0 = vmul.f32 1.442695, %v1498_v46 }
 0x4c5   : > { %v7816_v36 = vpop.permute.xlu1 %7815  ;;  %v1478_v47 = vpop.permute.xlu0 %1477 }
 0x4c6   : > { %7922 = vpow2.f32 %v1505_v42  ;;  %v7818_v44 = vunpack.i.h.bf16 %v7816_v36  ;;  %v7817_v39 = vunpack.i.l.bf16 %v7816_v36  ;;  %v1499_v8 = vsub.f32 %v9181_v50, %v1478_v47 }
 0x4c8   : > { %v7367_v18 = vpack.c.bf16 %v7818_v44, %v7817_v39  ;;  %v1511_v13 = vmul.f32 1.442695, %v1499_v8 }
 0x4c9   : > { %v1468_v49 = vpop.permute.xlu1 %1467  ;;  %v1488_v19 = vpop.permute.xlu0 %1487 }
 0x4ca   : > { %v1497_v7 = vsub.f32 %v9173_v48, %v1468_v49  ;;  %7368 = vmatprep.subr.bf16.mxu0 %v7367_v18  ;;  %v1501_v48 = vsub.f32 %v9189_v5, %v1488_v19 }
 0x4cb   : > { %7370 = vmatpush3.bf16.msra.mxu0 %v7367_v18 }
 0x4cc   : > { %v9328_v43 = vpop.eup %7920  ;;  %v1507_v41 = vmul.f32 1.442695, %v1497_v7  ;;  %7372 = vmatprep.subr.bf16.mxu0 %v7371_v1  ;;  %v1515_v62 = vmul.f32 1.442695, %v1501_v48 }
 0x4cd   : > { %6903 = vmatprep.mubr.msk.f32.mxu0 %vm834_vm3, %v9328_v43  ;;  %v7826_v61 = vpop.permute.xlu1 %7825  ;;  %v7831_v21 = vpop.permute.xlu0 %7830 }
 0x4ce   : > { %7924 = vpow2.f32 %v1507_v41  ;;  %v7828_v50 = vunpack.i.h.bf16 %v7826_v61  ;;  %v7827_v34 = vunpack.i.l.bf16 %v7826_v61  ;;  %v7833_v11 = vunpack.i.h.bf16 %v7831_v21 }
 0x4cf   : > { %7926 = vpow2.f32 %v1509_v0  ;;  %7374 = vmatpush3.bf16.msra.mxu0 %v7371_v1  ;;  %v7832_v36 = vunpack.i.l.bf16 %v7831_v21 }
 0x4d0   : > { %v9333_v26 = vpop.eup %7922  ;;  %7928 = vpow2.f32 %v1511_v13  ;;  %v7375_v45 = vpack.c.bf16 %v7828_v50, %v7827_v34 }
 0x4d1   : > { %v1483_v42 = vpop.permute.xlu1 %1482  ;;  %v7381_v5 = vpack.c.bf16 %v7833_v11, %v7832_v36  ;;  %v7841_v0 = vpop.permute.xlu0 %7840 }
 0x4d2   : > { %v1500_v47 = vsub.f32 %v9179_v12, %v1483_v42  ;;  %6904 = vmatmul.mubr.msk.f32.vlgmr.msra.gmra.mrb[8].mxu0 %vm834_vm3, %v9333_v26  ;;  %7377 = vmatprep.subr.msk.bf16.mxu0 %vm8818_vm2, %v7375_v45  ;;  %v7843_v61 = vunpack.i.h.bf16 %v7841_v0  ;;  %v7842_v50 = vunpack.i.l.bf16 %v7841_v0 }
 0x4d4   : > { %v1513_v44 = vmul.f32 1.442695, %v1500_v47  ;;  %v7393_v48 = vpack.c.bf16 %v7843_v61, %v7842_v50 }
 0x4d5   : > { %v1493_v39 = vpop.permute.xlu1 %1492 }
 0x4d6   : > { %7930 = vpow2.f32 %v1513_v44  ;;  %v1502_v46 = vsub.f32 %v9187_v25, %v1493_v39 }
 0x4d7   : > { %7932 = vpow2.f32 %v1515_v62 }
 0x4d8   : > { %v9341_v8 = vpop.eup %7924  ;;  %v1517_v18 = vmul.f32 1.442695, %v1502_v46  ;;  %7380 = vmatpush3.bf16.xpose.msk.msra.mxu0 %vm8818_vm2, %v7375_v45  ;;  %v1853_v45 = vpop.permute.xlu0 %1852 }
 0x4d9   : > { %v9345_v12 = vpop.eup %7926  ;;  %6906 = vmatprep.mubr.msk.f32.mxu0 %vm834_vm3, %v9341_v8  ;;  %7383 = vmatprep.subr.msk.bf16.mxu0 %vm8818_vm2, %v7381_v5  ;;  %v7836_v49 = vpop.permute.xlu1 %7835 }
 0x4da   : > { %v9351_v7 = vpop.eup %7928  ;;  %7934 = vpow2.f32 %v1517_v18  ;;  %6907 = vmatmul.mubr.msk.f32.gmra.mrb[10].mxu0 %vm834_vm3, %v9345_v12  ;;  %v7838_v25 = vunpack.i.h.bf16 %v7836_v49  ;;  %v7837_v19 = vunpack.i.l.bf16 %v7836_v49 }
 0x4db   : > { %6909 = vmatprep.mubr.msk.f32.mxu0 %vm834_vm3, %v9351_v7 }
 0x4dc   : > { %v7387_v1 = vpack.c.bf16 %v7838_v25, %v7837_v19  ;;  %v1857_v11 = vpop.permute.xlu0 %1856 }
 0x4dd   : > { %v1851_v34 = vpop.permute.xlu1 %1850 }
 0x4e0   : > { %v9357_v13 = vpop.eup %7930  ;;  %7386 = vmatpush3.bf16.xpose.msk.msra.mxu0 %vm8818_vm2, %v7381_v5  ;;  %v1861_v47 = vpop.permute.xlu0 %1860 }
 0x4e1   : > { %v9361_v41 = vpop.eup %7932  ;;  %6910 = vmatmul.mubr.msk.f32.gmra.mrb[12].mxu0 %vm834_vm3, %v9357_v13  ;;  %7389 = vmatprep.subr.msk.bf16.mxu0 %vm8818_vm2, %v7387_v1  ;;  %v1855_v42 = vpop.permute.xlu1 %1854 }
 0x4e2   : > { %6912 = vmatprep.mubr.msk.f32.mxu0 %vm834_vm3, %v9361_v41 }
 0x4e4   : > { %v9369_v21 = vpop.eup %7934  ;;  %v1865_v44 = vpop.permute.xlu0 %1864 }
 0x4e5   : > { %6913 = vmatmul.mubr.msk.f32.gmra.mrb[14].mxu0 %vm834_vm3, %v9369_v21  ;;  %v1859_v36 = vpop.permute.xlu1 %1858 }
 0x4e6   : > { %6931 = vmatprep.mubr.msk.f32.mxu0 %vm672_vm1, %v1851_v34 }
 0x4e8   : > { %7392 = vmatpush3.bf16.xpose.msk.msra.mxu0 %vm8818_vm2, %v7387_v1 }
 0x4e9   : > { %7395 = vmatprep.subr.msk.bf16.mxu0 %vm8818_vm2, %v7393_v48  ;;  %v1863_v62 = vpop.permute.xlu1 %1862 }
 0x4f0   : > { %7398 = vmatpush3.bf16.xpose.msk.msra.mxu0 %vm8818_vm2, %v7393_v48 }
 0x4f7   : > { %6932 = vmatmul.mubr.msk.f32.vlgmr.msra.gmra.mrb[16].mxu0 %vm672_vm1, %v1853_v45 }
 0x4f8   : > { %6934 = vmatprep.mubr.msk.f32.mxu0 %vm672_vm1, %v1855_v42 }
 0x4fb   : > { %6935 = vmatmul.mubr.msk.f32.gmra.mrb[18].mxu0 %vm672_vm1, %v1857_v11 }
 0x4fc   : > { %6937 = vmatprep.mubr.msk.f32.mxu0 %vm672_vm1, %v1859_v36 }
 0x4ff   : > { %6938 = vmatmul.mubr.msk.f32.gmra.mrb[20].mxu0 %vm672_vm1, %v1861_v47 }
 0x500   : > { %6940 = vmatprep.mubr.msk.f32.mxu0 %vm672_vm1, %v1863_v62 }
 0x503   : > { %6941 = vmatmul.mubr.msk.f32.gmra.mrb[22].mxu0 %vm672_vm1, %v1865_v44 }
 0x5a5   : > { %v9387_v39 = vpop.f32.mrb[8].mxu0 }
 0x5a6   : > { %v9389_v5 = vpop.f32.mrb[9].mxu0 }
 0x5ad   : > { %v9391_v46 = vpop.f32.mrb[10].mxu0 }
 0x5ae   : > { %v9393_v18 = vpop.f32.mrb[11].mxu0 }
 0x5b4   : > { %v9395_v49 = vpop.f32.mrb[12].mxu0 }
 0x5b5   : > { %v9397_v25 = vpop.f32.mrb[13].mxu0 }
 0x5b6   : > { %12064 = vst [vmem:[#allocation37_spill] sm:$0xff] %v9397_v25  ;;  %v8033_v25 = vld [vmem:[%s8730_s5 + $0x8] sm:$0xff] }
 0x5b8   : > { %v9399_v19 = vpop.f32.mrb[14].mxu0 }
 0x5b9   : > { %v9401_v1 = vpop.f32.mrb[15].mxu0 }
 0x5ba   : > { %12065 = vst [vmem:[#allocation38_spill] sm:$0xff] %v9401_v1  ;;  %v9472_v1 = vld [vmem:[#allocation2 + $0xa8] sm:$0xff] }
 0x5bb   : > { %12075 = vst [vmem:[#allocation48_spill] sm:$0xff] %v9472_v1 }
 0x5ca   : > { %v9403_v0 = vpop.f32.mrb[16].mxu0 }
 0x5cb   : > { %v9405_v61 = vpop.f32.mrb[17].mxu0  ;;  %v2031_v50 = vsel %vm834_vm3, %v9403_v0, -inf }
 0x5cc   : > { %2032 = vmax.xlane.f32.xlu0 %v2031_v50  ;;  %v2028_v34 = vsel %vm834_vm3, %v9405_v61, -inf }
 0x5cd   : > { %2029 = vmax.xlane.f32.xlu1 %v2028_v34 }
 0x5ce   : > { %v9411_v48 = vpop.f32.mrb[18].mxu0 }
 0x5cf   : > { %v9413_v45 = vpop.f32.mrb[19].mxu0  ;;  %v2037_v42 = vsel %vm834_vm3, %v9411_v48, -inf }
 0x5d0   : > { %v2034_v11 = vsel %vm834_vm3, %v9413_v45, -inf }
 0x5d1   : > { %2038 = vmax.xlane.f32.xlu1 %v2037_v42  ;;  %2035 = vmax.xlane.f32.xlu0 %v2034_v11 }
 0x5d2   : > { %v9419_v36 = vpop.f32.mrb[20].mxu0 }
 0x5d3   : > { %v9421_v47 = vpop.f32.mrb[21].mxu0  ;;  %v2043_v62 = vsel %vm834_vm3, %v9419_v36, -inf }
 0x5d4   : > { %v2040_v44 = vsel %vm834_vm3, %v9421_v47, -inf }
 0x5d5   : > { %2041 = vmax.xlane.f32.xlu0 %v2040_v44  ;;  %2044 = vmax.xlane.f32.xlu1 %v2043_v62  ;;  %v9441_v62 = vld [vmem:[#allocation2 + $0x88] sm:$0xff]  ;;  %v9443_v44 = vld [vmem:[#allocation2 + $0x80] sm:$0xff] }
 0x5d6   : > { %v9427_v50 = vpop.f32.mrb[22].mxu0  ;;  %12066 = vst [vmem:[#allocation39_spill] sm:$0xff] %v9441_v62  ;;  %12067 = vst [vmem:[#allocation40_spill] sm:$0xff] %v9443_v44 }
 0x5d7   : > { %v9429_v34 = vpop.f32.mrb[23].mxu0  ;;  %v2049_v42 = vsel %vm834_vm3, %v9427_v50, -inf }
 0x5d8   : > { %v2046_v11 = vsel %vm834_vm3, %v9429_v34, -inf }
 0x5d9   : > { %2047 = vmax.xlane.f32.xlu0 %v2046_v11  ;;  %2050 = vmax.xlane.f32.xlu1 %v2049_v42 }
 0x5ef   : > { %7845 = vrot.lane.b32.xlu0 %v9197_v52, %s8529_s10 }
 0x5f3   : > { %7850 = vrot.lane.b32.xlu0 %v9203_v57, %s8529_s10  ;;  %v9455_v57 = vld [vmem:[#allocation2 + $0x98] sm:$0xff] }
 0x5f4   : > { %12070 = vst [vmem:[#allocation43_spill] sm:$0xff] %v9455_v57 }
 0x5f7   : > { %7860 = vrot.lane.b32.xlu0 %v9209_v15, %s8529_s10  ;;  %v9457_v15 = vld [vmem:[#allocation2 + $0x90] sm:$0xff] }
 0x5f8   : > { %12071 = vst [vmem:[#allocation44_spill] sm:$0xff] %v9457_v15 }
 0x659   : > { %v2033_v24 = vpop.xlane.xlu0 %2032 }
 0x65a   : > { %v9446_v33 = vmax.f32 %v9441_v62, %v2033_v24  ;;  %v2030_v32 = vpop.xlane.xlu1 %2029  ;;  %v9470_v62 = vld [vmem:[#allocation2 + $0xa0] sm:$0xff] }
 0x65b   : > { %v9449_v42 = vmax.f32 %v9443_v44, %v2030_v32  ;;  %12074 = vst [vmem:[#allocation47_spill] sm:$0xff] %v9470_v62 }
 0x65c   : > { %12068 = vst [vmem:[#allocation41_spill] sm:$0xff] %v9446_v33  ;;  %2464 = vst.msk [vmem:[#allocation2 + $0x88] sm:$0xff] %vm1003_vm4, %v9446_v33 }
 0x65d   : > { %12069 = vst [vmem:[#allocation42_spill] sm:$0xff] %v9449_v42  ;;  %2463 = vst.msk [vmem:[#allocation2 + $0x80] sm:$0xff] %vm1003_vm4, %v9449_v42  ;;  %2086 = vperm.xlu1 %7783, %v9449_v42   ;;  %v9492_v42 = vld [vmem:[#allocation2 + $0xb8] sm:$0xff] }
 0x65e   : > { %v2039_v24 = vpop.xlane.xlu1 %2038  ;;  %v2036_v32 = vpop.xlane.xlu0 %2035  ;;  %12078 = vst [vmem:[#allocation51_spill] sm:$0xff] %v9492_v42 }
 0x65f   : > { %v9465_v53 = vmax.f32 %v9455_v57, %v2039_v24  ;;  %v9468_v52 = vmax.f32 %v9457_v15, %v2036_v32  ;;  %v9490_v57 = vld [vmem:[#allocation2 + $0xb0] sm:$0xff] }
 0x660   : > { %12077 = vst [vmem:[#allocation50_spill] sm:$0xff] %v9490_v57 }
 0x661   : > { %12072 = vst [vmem:[#allocation45_spill] sm:$0xff] %v9465_v53  ;;  %12073 = vst [vmem:[#allocation46_spill] sm:$0xff] %v9468_v52  ;;  %2091 = vperm.xlu1 %7783, %v9446_v33   ;;  %2101 = vperm.xlu0 %7782, %v9465_v53  }
 0x662   : > { %2466 = vst.msk [vmem:[#allocation2 + $0x98] sm:$0xff] %vm1003_vm4, %v9465_v53  ;;  %2465 = vst.msk [vmem:[#allocation2 + $0x90] sm:$0xff] %vm1003_vm4, %v9468_v52  ;;  %v2042_v24 = vpop.xlane.xlu0 %2041  ;;  %v2045_v32 = vpop.xlane.xlu1 %2044  ;;  %v8032_v53 = vld [vmem:[%s8730_s5] sm:$0xff] }
 0x663   : > { %v9485_v44 = vmax.f32 %v9470_v62, %v2042_v24  ;;  %v9488_v11 = vmax.f32 %v9472_v1, %v2045_v32  ;;  %v8035_v24 = vld [vmem:[%s8730_s5 + $0x18] sm:$0xff] }
 0x665   : > { %12076 = vst [vmem:[#allocation49_spill] sm:$0xff] %v9485_v44  ;;  %2467 = vst.msk [vmem:[#allocation2 + $0xa0] sm:$0xff] %vm1003_vm4, %v9485_v44  ;;  %7855 = vrot.lane.b32.xlu1 %v9258_v2, %s8529_s10  ;;  %2106 = vperm.xlu0 %7782, %v9485_v44   ;;  %v7864_v2 = vpack.i.bf16 %v8033_v25, %v8032_v53 }
 0x666   : > { %2468 = vst.msk [vmem:[#allocation2 + $0xa8] sm:$0xff] %vm1003_vm4, %v9488_v11  ;;  %v2048_v32 = vpop.xlane.xlu0 %2047  ;;  %v2051_v33 = vpop.xlane.xlu1 %2050 }
 0x667   : > { %v9506_v15 = vmax.f32 %v9490_v57, %v2048_v32  ;;  %v9509_v62 = vmax.f32 %v9492_v42, %v2051_v33  ;;  %v8034_v32 = vld [vmem:[%s8730_s5 + $0x10] sm:$0xff] }
 0x668   : > { %v7869_v1 = vpack.i.bf16 %v8035_v24, %v8034_v32  ;;  %v8036_v57 = vld [vmem:[%s8730_s5 + $0x30] sm:$0xff] }
 0x669   : > { %12079 = vst [vmem:[#allocation52_spill] sm:$0xff] %v9506_v15  ;;  %2469 = vst.msk [vmem:[#allocation2 + $0xb0] sm:$0xff] %vm1003_vm4, %v9506_v15  ;;  %2096 = vperm.xlu1 %7783, %v9468_v52   ;;  %2116 = vperm.xlu0 %7782, %v9506_v15   ;;  %v8037_v15 = vld [vmem:[%s8730_s5 + $0x38] sm:$0xff] }
 0x66a   : > { %2470 = vst.msk [vmem:[#allocation2 + $0xb8] sm:$0xff] %vm1003_vm4, %v9509_v62  ;;  %v7846_v53 = vpop.permute.xlu0 %7845  ;;  %v7879_v52 = vpack.i.bf16 %v8037_v15, %v8036_v57  ;;  %v8039_v57 = vld [vmem:[%s8730_s5 + $0x20] sm:$0xff]  ;;  %v8040_v15 = vld [vmem:[%s8730_s5 + $0x28] sm:$0xff] }
 0x66b   : > { %v7848_v25 = vunpack.i.h.bf16 %v7846_v53  ;;  %v7847_v44 = vunpack.i.l.bf16 %v7846_v53  ;;  %v8041_v53 = vld [vmem:[%s8728_s12 + $0x18] sm:$0xff] }
 0x66d   : > { %7865 = vrot.lane.b32.xlu1 %v7864_v2, %s8530_s11  ;;  %7870 = vrot.lane.b32.xlu0 %v7869_v1, %s8530_s11  ;;  %v7399_v24 = vpack.c.bf16 %v7848_v25, %v7847_v44  ;;  %v8038_v44 = vld [vmem:[%s8728_s12 + $0x8] sm:$0xff]  ;;  %v7874_v2 = vpack.i.bf16 %v8040_v15, %v8039_v57  ;;  %v8045_v25 = vld [vmem:[%s8728_s12 + $0x38] sm:$0xff]  ;;  %v971_v57 = vsel %vm834_vm3, %v9088_v14, 0.0  ;;  %v974_v15 = vsel %vm834_vm3, %v9093_v23, 0.0 }
 0x66e   : > { %v7851_v32 = vpop.permute.xlu0 %7850 }
 0x66f   : > { %v7853_v33 = vunpack.i.h.bf16 %v7851_v32  ;;  %v7852_v42 = vunpack.i.l.bf16 %v7851_v32  ;;  %7400 = vmatprep.subr.bf16.mxu1 %v7399_v24  ;;  %v8047_v32 = vld [vmem:[%s8728_s12 + $0x30] sm:$0xff] }
 0x670   : > { %7402 = vmatpush3.bf16.msra.mxu1 %v7399_v24  ;;  %v8046_v24 = vld [vmem:[%s8728_s12 + $0x20] sm:$0xff] }
 0x671   : > { %2111 = vperm.xlu1 %7783, %v9488_v11   ;;  %7880 = vrot.lane.b32.xlu0 %v7879_v52, %s8530_s11  ;;  %v7403_v1 = vpack.c.bf16 %v7853_v33, %v7852_v42  ;;  %v8042_v42 = vld [vmem:[%s8728_s12] sm:$0xff]  ;;  %v8043_v52 = vld [vmem:[%s8728_s12 + $0x28] sm:$0xff]  ;;  %v8044_v33 = vld [vmem:[%s8728_s12 + $0x10] sm:$0xff] }
 0x673   : > { %7404 = vmatprep.subr.bf16.mxu1 %v7403_v1 }
 0x674   : > { %7406 = vmatpush3.bf16.msra.mxu1 %v7403_v1  ;;  %v977_v1 = vsel %vm834_vm3, %v9106_v54, 0.0 }
 0x675   : > { %2121 = vperm.xlu1 %7783, %v9509_v62   ;;  %2473 = vrot.lane.b32.xlu0 %v8038_v44, %s8530_s11  ;;  %v983_v44 = vsel %vm834_vm3, %v9115_v51, 0.0 }
 0x679   : > { %7875 = vrot.lane.b32.xlu1 %v7874_v2, %s8530_s11  ;;  %2477 = vrot.lane.b32.xlu0 %v8041_v53, %s8530_s11  ;;  %v980_v2 = vsel %vm834_vm3, %v9108_v56, 0.0  ;;  %v7861_v53 = vpop.permute.xlu0 %7860 }
 0x67a   : > { %v7862_v23 = vunpack.i.l.bf16 %v7861_v53 }
 0x67d   : > { %2471 = vrot.lane.b32.xlu1 %v8042_v42, %s8530_s11  ;;  %2481 = vrot.lane.b32.xlu0 %v8043_v52, %s8530_s11 }
 0x681   : > { %2475 = vrot.lane.b32.xlu1 %v8044_v33, %s8530_s11  ;;  %2485 = vrot.lane.b32.xlu0 %v8045_v25, %s8530_s11 }
 0x685   : > { %2479 = vrot.lane.b32.xlu1 %v8046_v24, %s8530_s11  ;;  %v7863_v24 = vunpack.i.h.bf16 %v7861_v53 }
 0x689   : > { %2483 = vrot.lane.b32.xlu1 %v8047_v32, %s8530_s11 }
 0x6a0   : > { %978 = vadd.xlane.f32.xlu0 %v977_v1 }
 0x6a4   : > { %984 = vadd.xlane.f32.xlu0 %v983_v44 }
 0x6ad   : > { %972 = vadd.xlane.f32.xlu1 %v971_v57 }
 0x6b1   : > { %975 = vadd.xlane.f32.xlu1 %v974_v15 }
 0x6b5   : > { %981 = vadd.xlane.f32.xlu1 %v980_v2 }
 0x6dc   : > { %v2087_v42 = vpop.permute.xlu1 %2086 }
 0x6dd   : > { %v2124_v54 = vsub.f32 %v9405_v61, %v2087_v42 }
 0x6df   : > { %v2132_v52 = vmul.f32 1.442695, %v2124_v54 }
 0x6e0   : > { %v2092_v33 = vpop.permute.xlu1 %2091  ;;  %v2102_v51 = vpop.permute.xlu0 %2101 }
 0x6e1   : > { %7936 = vpow2.f32 %v2132_v52  ;;  %v2125_v25 = vsub.f32 %v9403_v0, %v2092_v33  ;;  %v2127_v56 = vsub.f32 %v9411_v48, %v2102_v51  ;;  %v7411_v52 = vpack.c.bf16 %v7863_v24, %v7862_v23 }
 0x6e3   : > { %v2134_v14 = vmul.f32 1.442695, %v2125_v25  ;;  %v2138_v0 = vmul.f32 1.442695, %v2127_v56 }
 0x6e4   : > { %v7856_v32 = vpop.permute.xlu1 %7855  ;;  %v2107_v1 = vpop.permute.xlu0 %2106 }
 0x6e5   : > { %7938 = vpow2.f32 %v2134_v14  ;;  %v7858_v44 = vunpack.i.h.bf16 %v7856_v32  ;;  %v7857_v57 = vunpack.i.l.bf16 %v7856_v32  ;;  %v2128_v15 = vsub.f32 %v9421_v47, %v2107_v1 }
 0x6e7   : > { %v7407_v2 = vpack.c.bf16 %v7858_v44, %v7857_v57  ;;  %v2140_v25 = vmul.f32 1.442695, %v2128_v15 }
 0x6e8   : > { %v2097_v61 = vpop.permute.xlu1 %2096  ;;  %v2117_v54 = vpop.permute.xlu0 %2116 }
 0x6e9   : > { %v2126_v42 = vsub.f32 %v9413_v45, %v2097_v61  ;;  %7408 = vmatprep.subr.bf16.mxu1 %v7407_v2  ;;  %v2130_v45 = vsub.f32 %v9429_v34, %v2117_v54 }
 0x6ea   : > { %7410 = vmatpush3.bf16.msra.mxu1 %v7407_v2 }
 0x6eb   : > { %v9566_v33 = vpop.eup %7936  ;;  %v2136_v53 = vmul.f32 1.442695, %v2126_v42  ;;  %7412 = vmatprep.subr.bf16.mxu1 %v7411_v52  ;;  %v2144_v56 = vmul.f32 1.442695, %v2130_v45 }
 0x6ec   : > { %6959 = vmatprep.mubr.msk.f32.mxu1 %vm834_vm3, %v9566_v33  ;;  %v7866_v48 = vpop.permute.xlu1 %7865  ;;  %v7871_v14 = vpop.permute.xlu0 %7870 }
 0x6ed   : > { %7940 = vpow2.f32 %v2136_v53  ;;  %v7868_v47 = vunpack.i.h.bf16 %v7866_v48  ;;  %v7867_v51 = vunpack.i.l.bf16 %v7866_v48  ;;  %v7873_v23 = vunpack.i.h.bf16 %v7871_v14 }
 0x6ee   : > { %7942 = vpow2.f32 %v2138_v0  ;;  %7414 = vmatpush3.bf16.msra.mxu1 %v7411_v52  ;;  %v7872_v44 = vunpack.i.l.bf16 %v7871_v14 }
 0x6ef   : > { %v9571_v24 = vpop.eup %7938  ;;  %7944 = vpow2.f32 %v2140_v25  ;;  %v7415_v32 = vpack.c.bf16 %v7868_v47, %v7867_v51 }
 0x6f0   : > { %v2112_v1 = vpop.permute.xlu1 %2111  ;;  %v7421_v34 = vpack.c.bf16 %v7873_v23, %v7872_v44  ;;  %v7881_v48 = vpop.permute.xlu0 %7880 }
 0x6f1   : > { %v2129_v57 = vsub.f32 %v9419_v36, %v2112_v1  ;;  %6960 = vmatmul.mubr.msk.f32.vlgmr.msra.gmra.mrb[16].mxu1 %vm834_vm3, %v9571_v24  ;;  %7417 = vmatprep.subr.msk.bf16.mxu1 %vm8818_vm2, %v7415_v32  ;;  %v7883_v14 = vunpack.i.h.bf16 %v7881_v48  ;;  %v7882_v45 = vunpack.i.l.bf16 %v7881_v48  ;;  %v12083_v48 = vsub.f32 %v8950_v9, %v8966_v16  ;;  %v955_v16 = vld [vmem:[#allocation3] sm:$0xff] }
 0x6f3   : > { %v2142_v15 = vmul.f32 1.442695, %v2129_v57  ;;  %v7433_v23 = vpack.c.bf16 %v7883_v14, %v7882_v45  ;;  %v877_v14 = vmul.f32 1.442695, %v12083_v48 }
 0x6f4   : > { %v2122_v2 = vpop.permute.xlu1 %2121  ;;  %v2474_v44 = vpop.permute.xlu0 %2473 }
 0x6f5   : > { %7946 = vpow2.f32 %v2142_v15  ;;  %v2131_v61 = vsub.f32 %v9427_v50, %v2122_v2 }
 0x6f6   : > { %7948 = vpow2.f32 %v2144_v56 }
 0x6f7   : > { %v9579_v42 = vpop.eup %7940  ;;  %v2146_v54 = vmul.f32 1.442695, %v2131_v61  ;;  %7420 = vmatpush3.bf16.xpose.msk.msra.mxu1 %vm8818_vm2, %v7415_v32 }
 0x6f8   : > { %v9583_v36 = vpop.eup %7942  ;;  %6962 = vmatprep.mubr.msk.f32.mxu1 %vm834_vm3, %v9579_v42  ;;  %7423 = vmatprep.subr.msk.bf16.mxu1 %vm8818_vm2, %v7421_v34  ;;  %v7876_v52 = vpop.permute.xlu1 %7875 }
 0x6f9   : > { %v9589_v0 = vpop.eup %7944  ;;  %7950 = vpow2.f32 %v2146_v54  ;;  %6963 = vmatmul.mubr.msk.f32.gmra.mrb[18].mxu1 %vm834_vm3, %v9583_v36  ;;  %v7878_v50 = vunpack.i.h.bf16 %v7876_v52  ;;  %v7877_v25 = vunpack.i.l.bf16 %v7876_v52  ;;  %v2478_v56 = vpop.permute.xlu0 %2477  ;;  %v883_v52 = vmul.f32 1.442695, %v12081_v31 }
 0x6fa   : > { %6965 = vmatprep.mubr.msk.f32.mxu1 %vm834_vm3, %v9589_v0 }
 0x6fb   : > { %v7427_v53 = vpack.c.bf16 %v7878_v50, %v7877_v25 }
 0x6fc   : > { %v2472_v32 = vpop.permute.xlu1 %2471 }
 0x6fd   : > { %v2482_v2 = vpop.permute.xlu0 %2481 }
 0x6ff   : > { %v9595_v47 = vpop.eup %7946  ;;  %7426 = vmatpush3.bf16.xpose.msk.msra.mxu1 %vm8818_vm2, %v7421_v34  ;;  %v12080_v34 = vsub.f32 %v8952_v10, %v8969_v17  ;;  %v12082_v10 = vsub.f32 %v8939_v4, %v8942_v6  ;;  %v12084_v4 = vsub.f32 %v8977_v20, %v9003_v29 }
 0x700   : > { %v9599_v51 = vpop.eup %7948  ;;  %6966 = vmatmul.mubr.msk.f32.gmra.mrb[20].mxu1 %vm834_vm3, %v9595_v47  ;;  %7429 = vmatprep.subr.msk.bf16.mxu1 %vm8818_vm2, %v7427_v53  ;;  %v2476_v57 = vpop.permute.xlu1 %2475 }
 0x701   : > { %6968 = vmatprep.mubr.msk.f32.mxu1 %vm834_vm3, %v9599_v51  ;;  %v879_v61 = vmul.f32 1.442695, %v12080_v34  ;;  %v2486_v50 = vpop.permute.xlu0 %2485  ;;  %v875_v17 = vmul.f32 1.442695, %v12082_v10  ;;  %v881_v6 = vmul.f32 1.442695, %v12084_v4 }
 0x703   : > { %v9607_v1 = vpop.eup %7950  ;;  %7952 = vpow2.f32 %v879_v61  ;;  %v956_v61 = vld [vmem:[#allocation3 + $0x8] sm:$0xff] }
 0x704   : > { %6969 = vmatmul.mubr.msk.f32.gmra.mrb[22].mxu1 %vm834_vm3, %v9607_v1  ;;  %v2480_v15 = vpop.permute.xlu1 %2479  ;;  %7954 = vpow2.f32 %v883_v52  ;;  %v958_v52 = vld [vmem:[#allocation3 + $0x18] sm:$0xff] }
 0x705   : > { %6987 = vmatprep.mubr.msk.f32.mxu1 %vm672_vm1, %v2472_v32  ;;  %7956 = vpow2.f32 %v875_v17  ;;  %v959_v32 = vld [vmem:[#allocation3 + $0x20] sm:$0xff] }
 0x706   : > { %7958 = vpow2.f32 %v877_v14 }
 0x707   : > { %7432 = vmatpush3.bf16.xpose.msk.msra.mxu1 %vm8818_vm2, %v7427_v53  ;;  %v957_v53 = vld [vmem:[#allocation3 + $0x10] sm:$0xff]  ;;  %7960 = vpow2.f32 %v881_v6 }
 0x708   : > { %7435 = vmatprep.subr.msk.bf16.mxu1 %vm8818_vm2, %v7433_v23  ;;  %v2484_v54 = vpop.permute.xlu1 %2483 }
 0x70d   : > { %v9634_v25 = vpop.eup %7952 }
 0x70e   : > { %v965_v22 = vmul.f32 %v9634_v25, %v957_v53  ;;  %v9640_v30 = vpop.eup %7954 }
 0x70f   : > { %7438 = vmatpush3.bf16.xpose.msk.msra.mxu1 %vm8818_vm2, %v7433_v23  ;;  %v9648_v9 = vpop.eup %7956 }
 0x716   : > { %6988 = vmatmul.mubr.msk.f32.vlgmr.msra.gmra.mrb[24].mxu1 %vm672_vm1, %v2474_v44  ;;  %v967_v44 = vmul.f32 %v9640_v30, %v959_v32 }
 0x717   : > { %6990 = vmatprep.mubr.msk.f32.mxu1 %vm672_vm1, %v2476_v57 }
 0x71a   : > { %6991 = vmatmul.mubr.msk.f32.gmra.mrb[26].mxu1 %vm672_vm1, %v2478_v56 }
 0x71b   : > { %6993 = vmatprep.mubr.msk.f32.mxu1 %vm672_vm1, %v2480_v15  ;;  %v963_v15 = vmul.f32 %v9648_v9, %v955_v16 }
 0x71e   : > { %6994 = vmatmul.mubr.msk.f32.gmra.mrb[28].mxu1 %vm672_vm1, %v2482_v2  ;;  %v7959_v2 = vpop.eup %7958 }
 0x71f   : > { %6996 = vmatprep.mubr.msk.f32.mxu1 %vm672_vm1, %v2484_v54  ;;  %v964_v20 = vmul.f32 %v7959_v2, %v956_v61  ;;  %v9652_v29 = vpop.eup %7960 }
 0x720   : > { %v966_v10 = vmul.f32 %v9652_v29, %v958_v52 }
 0x722   : > { %6997 = vmatmul.mubr.msk.f32.gmra.mrb[30].mxu1 %vm672_vm1, %v2486_v50 }
 0x72d   : > { %v979_v45 = vpop.xlane.xlu0 %978 }
 0x72e   : > { %v997_v23 = vadd.f32 %v979_v45, %v965_v22 }
 0x730   : > { %1006 = vst.msk [vmem:[#allocation3 + $0x10] sm:$0xff] %vm1003_vm4, %v997_v23 }
 0x731   : > { %v985_v57 = vpop.xlane.xlu0 %984 }
 0x732   : > { %v999_v56 = vadd.f32 %v985_v57, %v967_v44 }
 0x734   : > { %1008 = vst.msk [vmem:[#allocation3 + $0x20] sm:$0xff] %vm1003_vm4, %v999_v56 }
 0x73a   : > { %v973_v34 = vpop.xlane.xlu1 %972 }
 0x73b   : > { %v995_v54 = vadd.f32 %v973_v34, %v963_v15 }
 0x73d   : > { %1004 = vst.msk [vmem:[#allocation3] sm:$0xff] %vm1003_vm4, %v995_v54 }
 0x73e   : > { %v976_v31 = vpop.xlane.xlu1 %975 }
 0x73f   : > { %v996_v50 = vadd.f32 %v976_v31, %v964_v20 }
 0x741   : > { %1005 = vst.msk [vmem:[#allocation3 + $0x8] sm:$0xff] %vm1003_vm4, %v996_v50 }
 0x742   : > { %v982_v17 = vpop.xlane.xlu1 %981 }
 0x743   : > { %v998_v53 = vadd.f32 %v982_v17, %v966_v10 }
 0x745   : > { %1007 = vst.msk [vmem:[#allocation3 + $0x18] sm:$0xff] %vm1003_vm4, %v998_v53 }
 0x7c4   : > { %v9657_v48 = vpop.f32.mrb[16].mxu1 }
 0x7c5   : > { %v9659_v14 = vpop.f32.mrb[17].mxu1 }
 0x7cc   : > { %v9661_v22 = vpop.f32.mrb[18].mxu1 }
 0x7cd   : > { %v9663_v45 = vpop.f32.mrb[19].mxu1 }
 0x7ce   : > { %12085 = vst [vmem:[#allocation53_spill] sm:$0xff] %v9663_v45  ;;  %v962_v45 = vld [vmem:[#allocation3 + $0x38] sm:$0xff] }
 0x7d3   : > { %v9665_v32 = vpop.f32.mrb[20].mxu1 }
 0x7d4   : > { %v9667_v23 = vpop.f32.mrb[21].mxu1 }
 0x7d5   : > { %12086 = vst [vmem:[#allocation54_spill] sm:$0xff] %v9667_v23  ;;  %v961_v23 = vld [vmem:[#allocation3 + $0x30] sm:$0xff] }
 0x7d7   : > { %v9669_v4 = vpop.f32.mrb[22].mxu1 }
 0x7d8   : > { %v9671_v6 = vpop.f32.mrb[23].mxu1 }
 0x7d9   : > { %12087 = vst [vmem:[#allocation55_spill] sm:$0xff] %v9671_v6 }
 0x7e9   : > { %v9673_v44 = vpop.f32.mrb[24].mxu1 }
 0x7ea   : > { %v9675_v57 = vpop.f32.mrb[25].mxu1  ;;  %v2652_v56 = vsel %vm834_vm3, %v9673_v44, -inf }
 0x7eb   : > { %2653 = vmax.xlane.f32.xlu0 %v2652_v56  ;;  %v2649_v34 = vsel %vm834_vm3, %v9675_v57, -inf }
 0x7ed   : > { %v9679_v16 = vpop.f32.mrb[26].mxu1 }
 0x7ee   : > { %v9681_v15 = vpop.f32.mrb[27].mxu1  ;;  %v2658_v54 = vsel %vm834_vm3, %v9679_v16, -inf }
 0x7ef   : > { %2650 = vmax.xlane.f32.xlu0 %v2649_v34  ;;  %v2655_v61 = vsel %vm834_vm3, %v9681_v15, -inf  ;;  %v986_v34 = vsel %vm834_vm3, %v9117_v63, 0.0  ;;  %v8050_v63 = vld [vmem:[%s8732_s25 + $0x20] sm:$0xff] }
 0x7f0   : > { %2656 = vmax.xlane.f32.xlu1 %v2655_v61  ;;  %v989_v61 = vsel %vm834_vm3, %v9127_v60, 0.0  ;;  %v8051_v60 = vld [vmem:[%s8732_s25 + $0x28] sm:$0xff] }
 0x7f1   : > { %v9689_v20 = vpop.f32.mrb[28].mxu1 }
 0x7f2   : > { %v9691_v31 = vpop.f32.mrb[29].mxu1  ;;  %v2664_v50 = vsel %vm834_vm3, %v9689_v20, -inf }
 0x7f3   : > { %2659 = vmax.xlane.f32.xlu0 %v2658_v54  ;;  %v2661_v52 = vsel %vm834_vm3, %v9691_v31, -inf  ;;  %v992_v54 = vsel %vm834_vm3, %v9133_v38, 0.0 }
 0x7f4   : > { %2662 = vmax.xlane.f32.xlu1 %v2661_v52  ;;  %v12088_v52 = vsub.f32 %v9016_v40, %v9036_v58  ;;  %v1539_v40 = vsel %vm834_vm3, %v9333_v26, 0.0  ;;  %v1542_v58 = vsel %vm834_vm3, %v9341_v8, 0.0  ;;  %v12090_v8 = vsub.f32 %v9038_v59, %v9052_v3  ;;  %v9757_v59 = vld [vmem:[#allocation2 + $0xd8] sm:$0xff]  ;;  %v1142_v3 = vld [vmem:[#allocation4 + $0x8] sm:$0xff] }
 0x7f5   : > { %v9697_v10 = vpop.f32.mrb[30].mxu1 }
 0x7f6   : > { %v9699_v17 = vpop.f32.mrb[31].mxu1  ;;  %v2670_v56 = vsel %vm834_vm3, %v9697_v10, -inf }
 0x7f7   : > { %v2667_v53 = vsel %vm834_vm3, %v9699_v17, -inf  ;;  %2665 = vmax.xlane.f32.xlu0 %v2664_v50  ;;  %v887_v50 = vmul.f32 1.442695, %v12088_v52 }
 0x7f8   : > { %2668 = vmax.xlane.f32.xlu1 %v2667_v53  ;;  %v8048_v53 = vld [vmem:[%s8732_s25] sm:$0xff] }
 0x7f9   : > { %7962 = vpow2.f32 %v887_v50 }
 0x7fb   : > { %2671 = vmax.xlane.f32.xlu0 %v2670_v56  ;;  %v8049_v56 = vld [vmem:[%s8732_s25 + $0x8] sm:$0xff] }
 0x7fc   : > { %987 = vadd.xlane.f32.xlu1 %v986_v34  ;;  %v7884_v6 = vpack.i.bf16 %v8049_v56, %v8048_v53  ;;  %v7894_v34 = vpack.i.bf16 %v8051_v60, %v8050_v63  ;;  %v9764_v56 = vld [vmem:[#allocation2 + $0xe0] sm:$0xff]  ;;  %v9796_v63 = vld [vmem:[#allocation2 + $0xf8] sm:$0xff] }
 0x7fd   : > { %12093 = vst [vmem:[#allocation58_spill] sm:$0xff] %v9764_v56  ;;  %12097 = vst [vmem:[#allocation62_spill] sm:$0xff] %v9796_v63 }
 0x7ff   : > { %990 = vadd.xlane.f32.xlu0 %v989_v61 }
 0x800   : > { %993 = vadd.xlane.f32.xlu1 %v992_v54  ;;  %v9739_v54 = vld [vmem:[#allocation2 + $0xc0] sm:$0xff] }
 0x803   : > { %v9722_v38 = vpop.eup %7962 }
 0x811   : > { %1156 = vperm.xlu1 %7783, %v7959_v2  }
 0x815   : > { %7885 = vrot.lane.b32.xlu0 %v7884_v6, %s8530_s11  ;;  %1161 = vperm.xlu1 %7783, %v9634_v25   ;;  %v12089_v25 = vsub.f32 %v9014_v37, %v9033_v55  ;;  %v9734_v6 = vld [vmem:[#allocation2 + $0xc8] sm:$0xff]  ;;  %v889_v37 = vmul.f32 1.442695, %v12090_v8  ;;  %v8052_v8 = vld [vmem:[%s8732_s25 + $0x10] sm:$0xff] }
 0x817   : > { %v885_v2 = vmul.f32 1.442695, %v12089_v25  ;;  %v9776_v25 = vld [vmem:[#allocation2 + $0xe8] sm:$0xff] }
 0x819   : > { %7895 = vrot.lane.b32.xlu0 %v7894_v34, %s8530_s11  ;;  %1171 = vperm.xlu1 %7783, %v9640_v30   ;;  %7964 = vpow2.f32 %v885_v2 }
 0x81a   : > { %7966 = vpow2.f32 %v889_v37 }
 0x81d   : > { %1181 = vperm.xlu1 %7783, %v9722_v38  }
 0x823   : > { %v7965_v30 = vpop.eup %7964 }
 0x824   : > { %v9810_v55 = vpop.eup %7966 }
 0x838   : > { %1540 = vadd.xlane.f32.xlu0 %v1539_v40 }
 0x83c   : > { %1543 = vadd.xlane.f32.xlu0 %v1542_v58 }
 0x852   : > { %1151 = vperm.xlu0 %7782, %v9648_v9   ;;  %v9749_v9 = vld [vmem:[#allocation2 + $0xd0] sm:$0xff] }
 0x853   : > { %12091 = vst [vmem:[#allocation56_spill] sm:$0xff] %v9749_v9 }
 0x856   : > { %1166 = vperm.xlu0 %7782, %v9652_v29  }
 0x85a   : > { %1176 = vperm.xlu0 %7782, %v7965_v30  }
 0x878   : > { %v2654_v61 = vpop.xlane.xlu0 %2653 }
 0x879   : > { %v9737_v26 = vmax.f32 %v9734_v6, %v2654_v61  ;;  %v9784_v61 = vld [vmem:[#allocation2 + $0xf0] sm:$0xff] }
 0x87a   : > { %12095 = vst [vmem:[#allocation60_spill] sm:$0xff] %v9784_v61 }
 0x87b   : > { %3085 = vst.msk [vmem:[#allocation2 + $0xc8] sm:$0xff] %vm1003_vm4, %v9737_v26  ;;  %2712 = vperm.xlu1 %7783, %v9737_v26  }
 0x87c   : > { %v2651_v29 = vpop.xlane.xlu0 %2650 }
 0x87d   : > { %v9752_v52 = vmax.f32 %v9739_v54, %v2651_v29  ;;  %v2657_v50 = vpop.xlane.xlu1 %2656 }
 0x87e   : > { %v9755_v53 = vmax.f32 %v9749_v9, %v2657_v50 }
 0x87f   : > { %3084 = vst.msk [vmem:[#allocation2 + $0xc0] sm:$0xff] %vm1003_vm4, %v9752_v52  ;;  %2707 = vperm.xlu0 %7782, %v9752_v52  }
 0x880   : > { %12092 = vst [vmem:[#allocation57_spill] sm:$0xff] %v9755_v53  ;;  %3086 = vst.msk [vmem:[#allocation2 + $0xd0] sm:$0xff] %vm1003_vm4, %v9755_v53  ;;  %v2660_v60 = vpop.xlane.xlu0 %2659 }
 0x881   : > { %v9771_v34 = vmax.f32 %v9757_v59, %v2660_v60  ;;  %v2663_v40 = vpop.xlane.xlu1 %2662  ;;  %v960_v60 = vld [vmem:[#allocation3 + $0x28] sm:$0xff] }
 0x882   : > { %v9774_v58 = vmax.f32 %v9764_v56, %v2663_v40  ;;  %v968_v56 = vmul.f32 %v7965_v30, %v960_v60  ;;  %v969_v30 = vmul.f32 %v9722_v38, %v961_v23 }
 0x883   : > { %3087 = vst.msk [vmem:[#allocation2 + $0xd8] sm:$0xff] %vm1003_vm4, %v9771_v34  ;;  %2717 = vperm.xlu0 %7782, %v9755_v53   ;;  %2722 = vperm.xlu1 %7783, %v9771_v34  }
 0x884   : > { %12094 = vst [vmem:[#allocation59_spill] sm:$0xff] %v9774_v58  ;;  %3088 = vst.msk [vmem:[#allocation2 + $0xe0] sm:$0xff] %vm1003_vm4, %v9774_v58  ;;  %v2666_v37 = vpop.xlane.xlu0 %2665 }
 0x885   : > { %v9791_v29 = vmax.f32 %v9776_v25, %v2666_v37  ;;  %v2669_v50 = vpop.xlane.xlu1 %2668  ;;  %v8053_v37 = vld [vmem:[%s8732_s25 + $0x18] sm:$0xff] }
 0x886   : > { %v9794_v40 = vmax.f32 %v9784_v61, %v2669_v50  ;;  %v7889_v2 = vpack.i.bf16 %v8053_v37, %v8052_v8  ;;  %v970_v37 = vmul.f32 %v9810_v55, %v962_v45  ;;  %v8054_v8 = vld [vmem:[%s8732_s25 + $0x30] sm:$0xff]  ;;  %v8055_v61 = vld [vmem:[%s8732_s25 + $0x38] sm:$0xff] }
 0x887   : > { %3089 = vst.msk [vmem:[#allocation2 + $0xe8] sm:$0xff] %vm1003_vm4, %v9791_v29  ;;  %2732 = vperm.xlu0 %7782, %v9791_v29   ;;  %2727 = vperm.xlu1 %7783, %v9774_v58   ;;  %v1143_v45 = vld [vmem:[#allocation4 + $0x10] sm:$0xff] }
 0x888   : > { %12096 = vst [vmem:[#allocation61_spill] sm:$0xff] %v9794_v40  ;;  %3090 = vst.msk [vmem:[#allocation2 + $0xf0] sm:$0xff] %vm1003_vm4, %v9794_v40  ;;  %v2672_v50 = vpop.xlane.xlu0 %2671 }
 0x889   : > { %v9813_v53 = vmax.f32 %v9796_v63, %v2672_v50  ;;  %v988_v9 = vpop.xlane.xlu1 %987 }
 0x88a   : > { %v1000_v58 = vadd.f32 %v988_v9, %v968_v56 }
 0x88b   : > { %3091 = vst.msk [vmem:[#allocation2 + $0xf8] sm:$0xff] %vm1003_vm4, %v9813_v53  ;;  %7890 = vrot.lane.b32.xlu1 %v7889_v2, %s8530_s11  ;;  %2737 = vperm.xlu0 %7782, %v9794_v40   ;;  %v7899_v2 = vpack.i.bf16 %v8055_v61, %v8054_v8  ;;  %v1145_v61 = vld [vmem:[#allocation4 + $0x20] sm:$0xff] }
 0x88c   : > { %1009 = vst.msk [vmem:[#allocation3 + $0x28] sm:$0xff] %vm1003_vm4, %v1000_v58  ;;  %v991_v60 = vpop.xlane.xlu0 %990 }
 0x88d   : > { %v1001_v50 = vadd.f32 %v991_v60, %v969_v30  ;;  %v994_v9 = vpop.xlane.xlu1 %993 }
 0x88e   : > { %v1002_v56 = vadd.f32 %v994_v9, %v970_v37 }
 0x88f   : > { %1010 = vst.msk [vmem:[#allocation3 + $0x30] sm:$0xff] %vm1003_vm4, %v1001_v50  ;;  %2742 = vperm.xlu1 %7783, %v9813_v53  }
 0x890   : > { %1011 = vst.msk [vmem:[#allocation3 + $0x38] sm:$0xff] %vm1003_vm4, %v1002_v56  ;;  %v7886_v40 = vpop.permute.xlu0 %7885  ;;  %v12098_v56 = vld [vmem:[#allocation19_spill] sm:$0xff] }
 0x891   : > { %v1157_v23 = vpop.permute.xlu1 %1156  ;;  %v7888_v38 = vunpack.i.h.bf16 %v7886_v40  ;;  %v7887_v58 = vunpack.i.l.bf16 %v7886_v40 }
 0x892   : > { %v1190_v63 = vmul.f32 %v1157_v23, %v1142_v3  ;;  %v1147_v3 = vld [vmem:[#allocation4 + $0x30] sm:$0xff] }
 0x893   : > { %7900 = vrot.lane.b32.xlu1 %v7899_v2, %s8530_s11  ;;  %v7439_v30 = vpack.c.bf16 %v7888_v38, %v7887_v58  ;;  %v1548_v58 = vsel %vm834_vm3, %v9351_v7, 0.0  ;;  %v1545_v7 = vsel %vm834_vm3, %v9345_v12, 0.0 }
 0x894   : > { %v1198_v60 = vadd.f32 %v9147_v35, %v1190_v63  ;;  %v12099_v63 = vld [vmem:[#allocation21_spill] sm:$0xff] }
 0x895   : > { %v1162_v37 = vpop.permute.xlu1 %1161  ;;  %7440 = vmatprep.subr.bf16.mxu0 %v7439_v30 }
 0x896   : > { %1206 = vst.msk [vmem:[#allocation4 + $0x8] sm:$0xff] %vm672_vm1, %v1198_v60  ;;  %v1191_v50 = vmul.f32 %v1162_v37, %v1143_v45  ;;  %7442 = vmatpush3.bf16.msra.mxu0 %v7439_v30  ;;  %v12100_v45 = vld [vmem:[#allocation22_spill] sm:$0xff]  ;;  %v12101_v30 = vld [vmem:[#allocation24_spill] sm:$0xff] }
 0x897   : > { %v12102_v60 = vsub.f32 %v12100_v45, %v12101_v30  ;;  %v12105_v45 = vld [vmem:[#allocation16_spill] sm:$0xff] }
 0x898   : > { %v1199_v8 = vadd.f32 %v1191_v50, %v9153_v28  ;;  %v1554_v28 = vsel %vm834_vm3, %v9361_v41, 0.0  ;;  %v1536_v50 = vsel %vm834_vm3, %v9328_v43, 0.0  ;;  %v1551_v41 = vsel %vm834_vm3, %v9357_v13, 0.0  ;;  %v1521_v43 = vld [vmem:[#allocation3 + $0x48] sm:$0xff] }
 0x899   : > { %v1172_v9 = vpop.permute.xlu1 %1171  ;;  %v1441_v37 = vmul.f32 1.442695, %v12102_v60 }
 0x89a   : > { %1207 = vst.msk [vmem:[#allocation4 + $0x10] sm:$0xff] %vm672_vm1, %v1199_v8  ;;  %v1193_v40 = vmul.f32 %v1172_v9, %v1145_v61  ;;  %v12103_v61 = vld [vmem:[#allocation27_spill] sm:$0xff] }
 0x89b   : > { %7968 = vpow2.f32 %v1441_v37  ;;  %v12104_v8 = vsub.f32 %v12103_v61, %v9240_v27  ;;  %v1146_v37 = vld [vmem:[#allocation4 + $0x28] sm:$0xff] }
 0x89c   : > { %v1201_v2 = vadd.f32 %v1193_v40, %v12098_v56  ;;  %v1557_v56 = vsel %vm834_vm3, %v9369_v21, 0.0 }
 0x89d   : > { %v1182_v23 = vpop.permute.xlu1 %1181  ;;  %v1443_v9 = vmul.f32 1.442695, %v12104_v8  ;;  %v12107_v8 = vld [vmem:[#allocation18_spill] sm:$0xff] }
 0x89e   : > { %1209 = vst.msk [vmem:[#allocation4 + $0x20] sm:$0xff] %vm672_vm1, %v1201_v2  ;;  %v1195_v35 = vmul.f32 %v1182_v23, %v1147_v3  ;;  %v9856_v3 = vpop.permute.xlu0 %7895  ;;  %v1522_v23 = vld [vmem:[#allocation3 + $0x50] sm:$0xff] }
 0x89f   : > { %7970 = vpow2.f32 %v1443_v9 }
 0x8a0   : > { %v1203_v38 = vadd.f32 %v1195_v35, %v12099_v63 }
 0x8a2   : > { %1211 = vst.msk [vmem:[#allocation4 + $0x30] sm:$0xff] %vm672_vm1, %v1203_v38 }
 0x8a5   : > { %v9854_v40 = vpop.eup %7968 }
 0x8a6   : > { %v1529_v27 = vmul.f32 %v9854_v40, %v1521_v43  ;;  %v2177_v43 = vsel %vm834_vm3, %v9589_v0, 0.0 }
 0x8a9   : > { %v9863_v12 = vpop.eup %7970 }
 0x8aa   : > { %1549 = vadd.xlane.f32.xlu0 %v1548_v58  ;;  %v1530_v35 = vmul.f32 %v9863_v12, %v1522_v23 }
 0x8ae   : > { %1555 = vadd.xlane.f32.xlu0 %v1554_v28  ;;  %v1144_v28 = vld [vmem:[#allocation4 + $0x18] sm:$0xff] }
 0x8b7   : > { %1537 = vadd.xlane.f32.xlu1 %v1536_v50  ;;  %v12106_v50 = vld [vmem:[#allocation17_spill] sm:$0xff] }
 0x8bb   : > { %1546 = vadd.xlane.f32.xlu1 %v1545_v7  ;;  %v12108_v7 = vld [vmem:[#allocation37_spill] sm:$0xff] }
 0x8bf   : > { %1552 = vadd.xlane.f32.xlu1 %v1551_v41  ;;  %v2168_v41 = vsel %vm834_vm3, %v9571_v24, 0.0 }
 0x8c3   : > { %1558 = vadd.xlane.f32.xlu1 %v1557_v56  ;;  %v2183_v56 = vsel %vm834_vm3, %v9599_v51, 0.0  ;;  %v2174_v51 = vsel %vm834_vm3, %v9583_v36, 0.0 }
 0x8c4   : > { %1803 = vrot.lane.b32.xlu0 %v9387_v39, %s8530_s11  ;;  %v1141_v39 = vld [vmem:[#allocation4] sm:$0xff] }
 0x8c5   : > { %v1541_v2 = vpop.xlane.xlu0 %1540 }
 0x8c6   : > { %v1561_v13 = vadd.f32 %v1541_v2, %v1529_v27 }
 0x8c8   : > { %1569 = vst.msk [vmem:[#allocation3 + $0x48] sm:$0xff] %vm1003_vm4, %v1561_v13  ;;  %1807 = vrot.lane.b32.xlu0 %v9391_v46, %s8530_s11 }
 0x8c9   : > { %v1544_v63 = vpop.xlane.xlu0 %1543 }
 0x8ca   : > { %v1562_v21 = vadd.f32 %v1544_v63, %v1530_v35  ;;  %v12110_v63 = vld [vmem:[#allocation23_spill] sm:$0xff] }
 0x8cc   : > { %1570 = vst.msk [vmem:[#allocation3 + $0x50] sm:$0xff] %vm1003_vm4, %v1562_v21  ;;  %1811 = vrot.lane.b32.xlu0 %v9395_v49, %s8530_s11  ;;  %v12111_v21 = vld [vmem:[#allocation25_spill] sm:$0xff] }
 0x8cd   : > { %v12112_v0 = vsub.f32 %v12110_v63, %v12111_v21 }
 0x8d0   : > { %1815 = vrot.lane.b32.xlu0 %v9399_v19, %s8530_s11 }
 0x8d1   : > { %v1152_v38 = vpop.permute.xlu0 %1151 }
 0x8d2   : > { %v1189_v58 = vmul.f32 %v1152_v38, %v1141_v39  ;;  %v1439_v39 = vmul.f32 1.442695, %v12112_v0 }
 0x8d4   : > { %v1197_v30 = vadd.f32 %v1189_v58, %v12105_v45  ;;  %1801 = vrot.lane.b32.xlu1 %v9389_v5, %s8530_s11  ;;  %v12109_v5 = vld [vmem:[#allocation38_spill] sm:$0xff] }
 0x8d5   : > { %v1167_v46 = vpop.permute.xlu0 %1166  ;;  %v12113_v45 = vld [vmem:[#allocation26_spill] sm:$0xff] }
 0x8d6   : > { %1205 = vst.msk [vmem:[#allocation4] sm:$0xff] %vm672_vm1, %v1197_v30  ;;  %v1192_v60 = vmul.f32 %v1167_v46, %v1144_v28  ;;  %v12114_v30 = vld [vmem:[#allocation28_spill] sm:$0xff] }
 0x8d7   : > { %v12115_v46 = vsub.f32 %v12113_v45, %v12114_v30  ;;  %v12125_v30 = vld [vmem:[#allocation29_spill] sm:$0xff] }
 0x8d8   : > { %v1200_v61 = vadd.f32 %v12106_v50, %v1192_v60  ;;  %1805 = vrot.lane.b32.xlu1 %v9393_v18, %s8530_s11  ;;  %v2171_v18 = vsel %vm834_vm3, %v9579_v42, 0.0  ;;  %v2165_v42 = vsel %vm834_vm3, %v9566_v33, 0.0  ;;  %v7898_v50 = vunpack.i.h.bf16 %v9856_v3 }
 0x8d9   : > { %v1177_v49 = vpop.permute.xlu0 %1176  ;;  %v1445_v33 = vmul.f32 1.442695, %v12115_v46  ;;  %v12126_v46 = vld [vmem:[#allocation31_spill] sm:$0xff] }
 0x8da   : > { %1208 = vst.msk [vmem:[#allocation4 + $0x18] sm:$0xff] %vm672_vm1, %v1200_v61  ;;  %v1194_v19 = vmul.f32 %v1177_v49, %v1146_v37  ;;  %v2180_v37 = vsel %vm834_vm3, %v9595_v47, 0.0  ;;  %v7897_v61 = vunpack.i.l.bf16 %v9856_v3 }
 0x8dc   : > { %v1202_v9 = vadd.f32 %v12107_v8, %v1194_v19  ;;  %1809 = vrot.lane.b32.xlu1 %v12108_v7, %s8530_s11 }
 0x8de   : > { %1210 = vst.msk [vmem:[#allocation4 + $0x28] sm:$0xff] %vm672_vm1, %v1202_v9 }
 0x8e0   : > { %1813 = vrot.lane.b32.xlu1 %v12109_v5, %s8530_s11  ;;  %v12116_v5 = vld [vmem:[#allocation30_spill] sm:$0xff] }
 0x8ef   : > { %2169 = vadd.xlane.f32.xlu0 %v2168_v41  ;;  %v12117_v41 = vld [vmem:[#allocation32_spill] sm:$0xff] }
 0x8f0   : > { %v12118_v47 = vsub.f32 %v12116_v5, %v12117_v41  ;;  %v12134_v41 = vld [vmem:[#allocation48_spill] sm:$0xff] }
 0x8f3   : > { %2172 = vadd.xlane.f32.xlu0 %v2171_v18  ;;  %v1449_v18 = vmul.f32 1.442695, %v12118_v47  ;;  %v12135_v47 = vsub.f32 %v12134_v41, %v9488_v11  ;;  %v12151_v41 = vsub.f32 %v9757_v59, %v9771_v34  ;;  %v1520_v59 = vld [vmem:[#allocation3 + $0x40] sm:$0xff]  ;;  %v12153_v34 = vsub.f32 %v9734_v6, %v9737_v26  ;;  %v12156_v26 = vld [vmem:[#allocation53_spill] sm:$0xff] }
 0x8f7   : > { %2178 = vadd.xlane.f32.xlu0 %v2177_v43 }
 0x8fa   : > { %v2713_v27 = vpop.permute.xlu1 %2712 }
 0x8fb   : > { %2184 = vadd.xlane.f32.xlu0 %v2183_v56  ;;  %v2746_v58 = vsub.f32 %v9673_v44, %v2713_v27  ;;  %v7447_v56 = vpack.c.bf16 %v7898_v50, %v7897_v61  ;;  %v12129_v50 = vld [vmem:[#allocation45_spill] sm:$0xff] }
 0x8fd   : > { %v2755_v44 = vmul.f32 1.442695, %v2746_v58 }
 0x8fe   : > { %v2708_v2 = vpop.permute.xlu0 %2707 }
 0x8ff   : > { %v2745_v23 = vsub.f32 %v9675_v57, %v2708_v2 }
 0x901   : > { %v2753_v13 = vmul.f32 1.442695, %v2745_v23 }
 0x902   : > { %v2718_v35 = vpop.permute.xlu0 %2717  ;;  %v2723_v24 = vpop.permute.xlu1 %2722 }
 0x903   : > { %7972 = vpow2.f32 %v2753_v13  ;;  %v2747_v57 = vsub.f32 %v9681_v15, %v2718_v35  ;;  %v2748_v19 = vsub.f32 %v9679_v16, %v2723_v24  ;;  %v2186_v16 = vsel %vm834_vm3, %v9607_v1, 0.0  ;;  %v12119_v13 = vld [vmem:[#allocation34_spill] sm:$0xff]  ;;  %v12120_v35 = vld [vmem:[#allocation36_spill] sm:$0xff] }
 0x904   : > { %2166 = vadd.xlane.f32.xlu1 %v2165_v42  ;;  %7974 = vpow2.f32 %v1439_v39  ;;  %v12121_v24 = vsub.f32 %v12119_v13, %v12120_v35 }
 0x905   : > { %v2757_v8 = vmul.f32 1.442695, %v2747_v57  ;;  %7976 = vpow2.f32 %v1445_v33  ;;  %v2759_v27 = vmul.f32 1.442695, %v2748_v19  ;;  %v12131_v19 = vld [vmem:[#allocation33_spill] sm:$0xff] }
 0x906   : > { %v2728_v38 = vpop.permute.xlu1 %2727  ;;  %v2733_v28 = vpop.permute.xlu0 %2732  ;;  %7978 = vpow2.f32 %v2755_v44  ;;  %v1453_v42 = vmul.f32 1.442695, %v12121_v24 }
 0x907   : > { %v2749_v9 = vsub.f32 %v9691_v31, %v2728_v38  ;;  %v2750_v31 = vsub.f32 %v9689_v20, %v2733_v28  ;;  %7980 = vpow2.f32 %v2757_v8  ;;  %v12132_v8 = vld [vmem:[#allocation35_spill] sm:$0xff] }
 0x908   : > { %2175 = vadd.xlane.f32.xlu1 %v2174_v51  ;;  %7982 = vpow2.f32 %v1449_v18  ;;  %v12123_v51 = vld [vmem:[#allocation42_spill] sm:$0xff]  ;;  %v2078_v18 = vmul.f32 1.442695, %v12135_v47 }
 0x909   : > { %v2761_v2 = vmul.f32 1.442695, %v2749_v9  ;;  %7984 = vpow2.f32 %v2759_v27  ;;  %v2763_v20 = vmul.f32 1.442695, %v2750_v31  ;;  %v12133_v9 = vsub.f32 %v12131_v19, %v12132_v8  ;;  %v1526_v8 = vld [vmem:[#allocation3 + $0x70] sm:$0xff] }
 0x90a   : > { %v7891_v60 = vpop.permute.xlu1 %7890  ;;  %v2738_v43 = vpop.permute.xlu0 %2737 }
 0x90b   : > { %v7893_v36 = vunpack.i.h.bf16 %v7891_v60  ;;  %v7892_v49 = vunpack.i.l.bf16 %v7891_v60  ;;  %v2751_v23 = vsub.f32 %v9699_v17, %v2738_v43  ;;  %7986 = vpow2.f32 %v2761_v2  ;;  %v12139_v2 = vld [vmem:[#allocation51_spill] sm:$0xff] }
 0x90c   : > { %2181 = vadd.xlane.f32.xlu1 %v2180_v37  ;;  %7988 = vpow2.f32 %v1453_v42  ;;  %v12128_v37 = vld [vmem:[#allocation43_spill] sm:$0xff]  ;;  %v12141_v42 = vld [vmem:[#allocation44_spill] sm:$0xff] }
 0x90d   : > { %v9914_v15 = vpop.eup %7972  ;;  %v7443_v7 = vpack.c.bf16 %v7893_v36, %v7892_v49  ;;  %v2765_v17 = vmul.f32 1.442695, %v2751_v23  ;;  %7990 = vpow2.f32 %v2763_v20  ;;  %v12130_v61 = vsub.f32 %v12128_v37, %v12129_v50 }
 0x90e   : > { %7015 = vmatprep.mubr.msk.f32.mxu0 %vm834_vm3, %v9914_v15  ;;  %v2743_v3 = vpop.permute.xlu1 %2742  ;;  %v9930_v0 = vpop.eup %7974  ;;  %v12140_v23 = vsub.f32 %v12139_v2, %v9509_v62  ;;  %v12142_v62 = vld [vmem:[#allocation46_spill] sm:$0xff]  ;;  %v12150_v50 = vsub.f32 %v9739_v54, %v9752_v52 }
 0x90f   : > { %7444 = vmatprep.subr.bf16.mxu0 %v7443_v7  ;;  %v2752_v39 = vsub.f32 %v9697_v10, %v2743_v3  ;;  %v9937_v57 = vpop.eup %7976  ;;  %v12127_v10 = vsub.f32 %v12125_v30, %v12126_v46  ;;  %7992 = vpow2.f32 %v2765_v17  ;;  %v2074_v36 = vmul.f32 1.442695, %v12130_v61 }
 0x910   : > { %2187 = vadd.xlane.f32.xlu1 %v2186_v16  ;;  %7446 = vmatpush3.bf16.msra.mxu0 %v7443_v7  ;;  %v9943_v60 = vpop.eup %7978  ;;  %v1451_v7 = vmul.f32 1.442695, %v12133_v9  ;;  %v12137_v16 = vld [vmem:[#allocation41_spill] sm:$0xff]  ;;  %v2082_v13 = vmul.f32 1.442695, %v12140_v23  ;;  %v1523_v23 = vld [vmem:[#allocation3 + $0x58] sm:$0xff] }
 0x911   : > { %1186 = vperm.xlu0 %7782, %v9810_v55   ;;  %7448 = vmatprep.subr.bf16.mxu0 %v7447_v56  ;;  %v12122_v55 = vld [vmem:[#allocation40_spill] sm:$0xff]  ;;  %v2767_v45 = vmul.f32 1.442695, %v2752_v39  ;;  %v1447_v33 = vmul.f32 1.442695, %v12127_v10  ;;  %v9948_v49 = vpop.eup %7980  ;;  %v12145_v39 = vld [vmem:[#allocation49_spill] sm:$0xff] }
 0x912   : > { %v7901_v63 = vpop.permute.xlu1 %7900  ;;  %v12124_v58 = vsub.f32 %v12122_v55, %v12123_v51  ;;  %v9952_v44 = vpop.eup %7982  ;;  %v2689_v61 = vmul.f32 1.442695, %v12150_v50  ;;  %v12166_v50 = vld [vmem:[#allocation61_spill] sm:$0xff] }
 0x913   : > { %v7903_v1 = vunpack.i.h.bf16 %v7901_v63  ;;  %v7902_v21 = vunpack.i.l.bf16 %v7901_v63  ;;  %v9960_v5 = vpop.eup %7984  ;;  %v12143_v63 = vsub.f32 %v12141_v42, %v12142_v62 }
 0x914   : > { %7450 = vmatpush3.bf16.msra.mxu0 %v7447_v56  ;;  %v2068_v28 = vmul.f32 1.442695, %v12124_v58  ;;  %v12136_v56 = vld [vmem:[#allocation39_spill] sm:$0xff]  ;;  %v12147_v58 = vld [vmem:[#allocation50_spill] sm:$0xff] }
 0x915   : > { %v7451_v38 = vpack.c.bf16 %v7903_v1, %v7902_v21  ;;  %1747 = vperm.xlu0 %7782, %v9930_v0   ;;  %v9965_v43 = vpop.eup %7986  ;;  %v12138_v27 = vsub.f32 %v12136_v56, %v12137_v16  ;;  %v2072_v1 = vmul.f32 1.442695, %v12143_v63  ;;  %v2691_v16 = vmul.f32 1.442695, %v12153_v34  ;;  %v1525_v63 = vld [vmem:[#allocation3 + $0x68] sm:$0xff] }
 0x916   : > { %7994 = vpow2.f32 %v2068_v28  ;;  %v9969_v3 = vpop.eup %7988  ;;  %v12148_v28 = vld [vmem:[#allocation52_spill] sm:$0xff]  ;;  %v2798_v34 = vsel %vm834_vm3, %v9965_v43, 0.0 }
 0x917   : > { %7452 = vmatprep.subr.bf16.mxu0 %v7451_v38  ;;  %7996 = vpow2.f32 %v2767_v45  ;;  %v2070_v31 = vmul.f32 1.442695, %v12138_v27  ;;  %v9978_v11 = vpop.eup %7990  ;;  %v12149_v45 = vsub.f32 %v12147_v58, %v12148_v28  ;;  %v1527_v28 = vld [vmem:[#allocation3 + $0x78] sm:$0xff] }
 0x918   : > { %7454 = vmatpush3.bf16.msra.mxu0 %v7451_v38  ;;  %7998 = vpow2.f32 %v1447_v33  ;;  %v1524_v33 = vld [vmem:[#allocation3 + $0x60] sm:$0xff] }
 0x919   : > { %1762 = vperm.xlu0 %7782, %v9937_v57   ;;  %8000 = vpow2.f32 %v2074_v36  ;;  %v9983_v35 = vpop.eup %7992  ;;  %v2080_v30 = vmul.f32 1.442695, %v12149_v45 }
 0x91a   : > { %8002 = vpow2.f32 %v1451_v7 }
 0x91b   : > { %7016 = vmatmul.mubr.msk.f32.vlgmr.msra.gmra.mrb[24].mxu0 %vm834_vm3, %v9943_v60  ;;  %8004 = vpow2.f32 %v2078_v18 }
 0x91c   : > { %7018 = vmatprep.mubr.msk.f32.mxu0 %vm834_vm3, %v9948_v49  ;;  %8006 = vpow2.f32 %v2070_v31 }
 0x91d   : > { %1772 = vperm.xlu0 %7782, %v9952_v44   ;;  %8008 = vpow2.f32 %v2082_v13 }
 0x91e   : > { %8010 = vpow2.f32 %v2072_v1 }
 0x91f   : > { %7019 = vmatmul.mubr.msk.f32.gmra.mrb[26].mxu0 %vm834_vm3, %v9960_v5 }
 0x920   : > { %7021 = vmatprep.mubr.msk.f32.mxu0 %vm834_vm3, %v9965_v43  ;;  %v9987_v24 = vpop.eup %7994  ;;  %v2786_v43 = vsel %vm834_vm3, %v9914_v15, 0.0 }
 0x921   : > { %1752 = vperm.xlu1 %7783, %v9854_v40   ;;  %1782 = vperm.xlu0 %7782, %v9969_v3   ;;  %v9993_v40 = vpop.eup %7996 }
 0x922   : > { %v7999_v21 = vpop.eup %7998 }
 0x923   : > { %7022 = vmatmul.mubr.msk.f32.gmra.mrb[28].mxu0 %vm834_vm3, %v9978_v11  ;;  %v10000_v20 = vpop.eup %8000  ;;  %v1532_v36 = vmul.f32 %v7999_v21, %v1524_v33  ;;  %v12165_v33 = vld [vmem:[#allocation60_spill] sm:$0xff] }
 0x924   : > { %7024 = vmatprep.mubr.msk.f32.mxu0 %vm834_vm3, %v9983_v35  ;;  %v8003_v55 = vpop.eup %8002 }
 0x925   : > { %1757 = vperm.xlu1 %7783, %v9863_v12   ;;  %2368 = vperm.xlu0 %7782, %v9987_v24   ;;  %v12144_v12 = vld [vmem:[#allocation47_spill] sm:$0xff]  ;;  %v10006_v51 = vpop.eup %8004  ;;  %v1534_v54 = vmul.f32 %v8003_v55, %v1526_v8 }
 0x926   : > { %v12146_v17 = vsub.f32 %v12144_v12, %v12145_v39  ;;  %v10012_v46 = vpop.eup %8006  ;;  %v12161_v12 = vld [vmem:[#allocation58_spill] sm:$0xff]  ;;  %v12162_v39 = vld [vmem:[#allocation59_spill] sm:$0xff] }
 0x927   : > { %7025 = vmatmul.mubr.msk.f32.gmra.mrb[30].mxu0 %vm834_vm3, %v9993_v40  ;;  %v10014_v10 = vpop.eup %8008 }
 0x928   : > { %v2076_v38 = vmul.f32 1.442695, %v12146_v17  ;;  %v10018_v37 = vpop.eup %8010  ;;  %v12163_v17 = vsub.f32 %v12161_v12, %v12162_v39  ;;  %v1148_v12 = vld [vmem:[#allocation4 + $0x38] sm:$0xff] }
 0x929   : > { %1767 = vperm.xlu1 %7783, %v7999_v21   ;;  %2383 = vperm.xlu0 %7782, %v10000_v20   ;;  %v12160_v21 = vld [vmem:[#allocation54_spill] sm:$0xff] }
 0x92a   : > { %8012 = vpow2.f32 %v2076_v38  ;;  %v2697_v38 = vmul.f32 1.442695, %v12163_v17 }
 0x92b   : > { %8014 = vpow2.f32 %v2080_v30  ;;  %v12164_v30 = vld [vmem:[#allocation55_spill] sm:$0xff] }
 0x92c   : > { %8016 = vpow2.f32 %v2689_v61  ;;  %v12167_v61 = vsub.f32 %v12165_v33, %v12166_v50 }
 0x92d   : > { %1777 = vperm.xlu1 %7783, %v8003_v55   ;;  %2393 = vperm.xlu0 %7782, %v10006_v51   ;;  %v1533_v55 = vmul.f32 %v9952_v44, %v1525_v63  ;;  %v1535_v44 = vmul.f32 %v9969_v3, %v1527_v28  ;;  %v2801_v63 = vsel %vm834_vm3, %v9978_v11, 0.0  ;;  %v12168_v11 = vld [vmem:[#allocation20_spill] sm:$0xff] }
 0x931   : > { %2373 = vperm.xlu1 %7783, %v10012_v46   ;;  %2403 = vperm.xlu0 %7782, %v10014_v10  }
 0x934   : > { %v10026_v9 = vpop.eup %8012 }
 0x935   : > { %2378 = vperm.xlu1 %7783, %v10018_v37   ;;  %2424 = vrot.lane.b32.xlu0 %v9657_v48, %s8529_s10  ;;  %v2695_v48 = vmul.f32 1.442695, %v12151_v41  ;;  %v10035_v47 = vpop.eup %8014 }
 0x937   : > { %v1550_v19 = vpop.xlane.xlu0 %1549  ;;  %8018 = vpow2.f32 %v2695_v48 }
 0x938   : > { %v1564_v7 = vadd.f32 %v1550_v19, %v1532_v36  ;;  %v2701_v36 = vmul.f32 1.442695, %v12167_v61  ;;  %v2154_v61 = vld [vmem:[#allocation3 + $0xa8] sm:$0xff] }
 0x939   : > { %2388 = vperm.xlu1 %7783, %v10026_v9   ;;  %2428 = vrot.lane.b32.xlu0 %v9661_v22, %s8529_s10  ;;  %v12152_v22 = vsub.f32 %v9776_v25, %v9791_v29  ;;  %v1528_v25 = vmul.f32 %v9930_v0, %v1520_v59  ;;  %v10055_v29 = vpop.eup %8016  ;;  %v2792_v59 = vsel %vm834_vm3, %v9948_v49, 0.0 }
 0x93a   : > { %1572 = vst.msk [vmem:[#allocation3 + $0x60] sm:$0xff] %vm1003_vm4, %v1564_v7 }
 0x93b   : > { %v1556_v52 = vpop.xlane.xlu0 %1555  ;;  %v2699_v56 = vmul.f32 1.442695, %v12152_v22  ;;  %v2789_v22 = vsel %vm834_vm3, %v9943_v60, 0.0  ;;  %v2804_v60 = vsel %vm834_vm3, %v9983_v35, 0.0 }
 0x93c   : > { %v1566_v18 = vadd.f32 %v1556_v52, %v1534_v54 }
 0x93d   : > { %2398 = vperm.xlu1 %7783, %v10035_v47   ;;  %2432 = vrot.lane.b32.xlu0 %v9665_v32, %s8529_s10  ;;  %8020 = vpow2.f32 %v2699_v56  ;;  %v12154_v32 = vld [vmem:[#allocation62_spill] sm:$0xff] }
 0x93e   : > { %1574 = vst.msk [vmem:[#allocation3 + $0x70] sm:$0xff] %vm1003_vm4, %v1566_v18  ;;  %v12155_v27 = vsub.f32 %v12154_v32, %v9813_v53  ;;  %8022 = vpow2.f32 %v2691_v16  ;;  %v1531_v53 = vmul.f32 %v9937_v57, %v1523_v23  ;;  %v2150_v32 = vld [vmem:[#allocation3 + $0x88] sm:$0xff] }
 0x93f   : > { %v10101_v52 = vpop.permute.xlu0 %1803 }
 0x940   : > { %v2703_v31 = vmul.f32 1.442695, %v12155_v27 }
 0x941   : > { %2422 = vrot.lane.b32.xlu1 %v9659_v14, %s8529_s10  ;;  %2436 = vrot.lane.b32.xlu0 %v9669_v4, %s8529_s10  ;;  %v12157_v14 = vld [vmem:[#allocation56_spill] sm:$0xff]  ;;  %v12158_v4 = vld [vmem:[#allocation57_spill] sm:$0xff]  ;;  %v10065_v0 = vpop.eup %8018 }
 0x942   : > { %v12159_v13 = vsub.f32 %v12157_v14, %v12158_v4  ;;  %8024 = vpow2.f32 %v2703_v31  ;;  %v2158_v31 = vmul.f32 %v10012_v46, %v2150_v32 }
 0x943   : > { %v10103_v18 = vpop.permute.xlu0 %1807 }
 0x944   : > { %v1538_v2 = vpop.xlane.xlu1 %1537  ;;  %v2693_v42 = vmul.f32 1.442695, %v12159_v13  ;;  %v2795_v13 = vsel %vm834_vm3, %v9960_v5, 0.0  ;;  %v2807_v5 = vsel %vm834_vm3, %v9993_v40, 0.0 }
 0x945   : > { %v1560_v6 = vadd.f32 %v1538_v2, %v1528_v25  ;;  %2426 = vrot.lane.b32.xlu1 %v12156_v26, %s8529_s10  ;;  %2989 = vperm.xlu0 %7782, %v10055_v29   ;;  %v2151_v2 = vld [vmem:[#allocation3 + $0x90] sm:$0xff]  ;;  %v2153_v26 = vld [vmem:[#allocation3 + $0xa0] sm:$0xff] }
 0x946   : > { %8026 = vpow2.f32 %v2693_v42  ;;  %v2159_v49 = vmul.f32 %v10018_v37, %v2151_v2  ;;  %v2161_v35 = vmul.f32 %v10026_v9, %v2153_v26  ;;  %v2155_v42 = vld [vmem:[#allocation3 + $0xb0] sm:$0xff] }
 0x947   : > { %1568 = vst.msk [vmem:[#allocation3 + $0x40] sm:$0xff] %vm1003_vm4, %v1560_v6  ;;  %v10075_v57 = vpop.eup %8020  ;;  %8028 = vpow2.f32 %v2697_v38  ;;  %v10107_v56 = vpop.permute.xlu0 %1811  ;;  %v2163_v15 = vmul.f32 %v10035_v47, %v2155_v42 }
 0x948   : > { %v1547_v62 = vpop.xlane.xlu1 %1546  ;;  %v10083_v19 = vpop.eup %8022  ;;  %8030 = vpow2.f32 %v2701_v36 }
 0x949   : > { %v1563_v1 = vadd.f32 %v1547_v62, %v1531_v53  ;;  %2430 = vrot.lane.b32.xlu1 %v12160_v21, %s8529_s10  ;;  %3004 = vperm.xlu0 %7782, %v10065_v0   ;;  %v2149_v21 = vld [vmem:[#allocation3 + $0x80] sm:$0xff] }
 0x94a   : > { %v2157_v17 = vmul.f32 %v9987_v24, %v2149_v21 }
 0x94b   : > { %1571 = vst.msk [vmem:[#allocation3 + $0x58] sm:$0xff] %vm1003_vm4, %v1563_v1  ;;  %v10113_v16 = vpop.permute.xlu0 %1815 }
 0x94c   : > { %v1553_v58 = vpop.xlane.xlu1 %1552  ;;  %v10087_v8 = vpop.eup %8024 }
 0x94d   : > { %v1565_v45 = vadd.f32 %v1553_v58, %v1533_v55  ;;  %2434 = vrot.lane.b32.xlu1 %v12164_v30, %s8529_s10  ;;  %3014 = vperm.xlu0 %7782, %v10075_v57   ;;  %v2152_v55 = vld [vmem:[#allocation3 + $0x98] sm:$0xff] }
 0x94e   : > { %v2160_v40 = vmul.f32 %v10000_v20, %v2152_v55 }
 0x94f   : > { %1573 = vst.msk [vmem:[#allocation3 + $0x68] sm:$0xff] %vm1003_vm4, %v1565_v45  ;;  %v1737_v45 = vld [vmem:[#allocation4] sm:$0xff] }
 0x950   : > { %v1559_v7 = vpop.xlane.xlu1 %1558  ;;  %v10092_v48 = vpop.eup %8026 }
 0x951   : > { %v1567_v41 = vadd.f32 %v1559_v7, %v1535_v44  ;;  %2994 = vperm.xlu1 %7783, %v10083_v19   ;;  %3024 = vperm.xlu0 %7782, %v10087_v8   ;;  %v10095_v54 = vpop.eup %8028  ;;  %v1740_v44 = vld [vmem:[#allocation4 + $0x18] sm:$0xff] }
 0x952   : > { %v10098_v3 = vpop.eup %8030 }
 0x953   : > { %1575 = vst.msk [vmem:[#allocation3 + $0x78] sm:$0xff] %vm1003_vm4, %v1567_v41  ;;  %v2162_v41 = vmul.f32 %v10006_v51, %v2154_v61 }
 0x954   : > { %v1802_v27 = vpop.permute.xlu1 %1801 }
 0x955   : > { %2999 = vperm.xlu1 %7783, %v10092_v48  }
 0x958   : > { %v10122_v14 = vpop.permute.xlu1 %1805 }
 0x959   : > { %3009 = vperm.xlu1 %7783, %v10095_v54  }
 0x95c   : > { %v10128_v37 = vpop.permute.xlu1 %1809 }
 0x95d   : > { %3019 = vperm.xlu1 %7783, %v10098_v3  }
 0x960   : > { %v10137_v9 = vpop.permute.xlu1 %1813 }
 0x970   : > { %2790 = vadd.xlane.f32.xlu0 %v2789_v22 }
 0x974   : > { %2793 = vadd.xlane.f32.xlu0 %v2792_v59 }
 0x978   : > { %2799 = vadd.xlane.f32.xlu0 %v2798_v34  ;;  %v2156_v34 = vld [vmem:[#allocation3 + $0xb8] sm:$0xff] }
 0x97c   : > { %v2170_v25 = vpop.xlane.xlu0 %2169  ;;  %2805 = vadd.xlane.f32.xlu0 %v2804_v60 }
 0x97d   : > { %v2190_v23 = vadd.f32 %v2170_v25, %v2158_v31  ;;  %v1742_v31 = vld [vmem:[#allocation4 + $0x28] sm:$0xff] }
 0x97f   : > { %2198 = vst.msk [vmem:[#allocation3 + $0x88] sm:$0xff] %vm1003_vm4, %v2190_v23 }
 0x980   : > { %v2173_v6 = vpop.xlane.xlu0 %2172 }
 0x981   : > { %v2191_v4 = vadd.f32 %v2173_v6, %v2159_v49  ;;  %2787 = vadd.xlane.f32.xlu1 %v2786_v43  ;;  %v1738_v43 = vld [vmem:[#allocation4 + $0x8] sm:$0xff] }
 0x983   : > { %2199 = vst.msk [vmem:[#allocation3 + $0x90] sm:$0xff] %vm1003_vm4, %v2191_v4 }
 0x984   : > { %v2179_v46 = vpop.xlane.xlu0 %2178 }
 0x985   : > { %v2193_v53 = vadd.f32 %v2179_v46, %v2161_v35  ;;  %2796 = vadd.xlane.f32.xlu1 %v2795_v13  ;;  %v1739_v13 = vld [vmem:[#allocation4 + $0x10] sm:$0xff] }
 0x987   : > { %2201 = vst.msk [vmem:[#allocation3 + $0xa0] sm:$0xff] %vm1003_vm4, %v2193_v53 }
 0x988   : > { %v2185_v62 = vpop.xlane.xlu0 %2184 }
 0x989   : > { %v2195_v1 = vadd.f32 %v2185_v62, %v2163_v15  ;;  %2802 = vadd.xlane.f32.xlu1 %v2801_v63  ;;  %v1741_v62 = vld [vmem:[#allocation4 + $0x20] sm:$0xff] }
 0x98b   : > { %2203 = vst.msk [vmem:[#allocation3 + $0xb0] sm:$0xff] %vm1003_vm4, %v2195_v1 }
 0x98d   : > { %2808 = vadd.xlane.f32.xlu1 %v2807_v5 }
 0x990   : > { %v1187_v39 = vpop.permute.xlu0 %1186 }
 0x991   : > { %v1196_v47 = vmul.f32 %v1187_v39, %v1148_v12  ;;  %v2167_v38 = vpop.xlane.xlu1 %2166 }
 0x992   : > { %v2189_v58 = vadd.f32 %v2167_v38, %v2157_v17 }
 0x993   : > { %v1204_v28 = vadd.f32 %v12168_v11, %v1196_v47 }
 0x994   : > { %2197 = vst.msk [vmem:[#allocation3 + $0x80] sm:$0xff] %vm1003_vm4, %v2189_v58  ;;  %v1748_v30 = vpop.permute.xlu0 %1747 }
 0x995   : > { %1212 = vst.msk [vmem:[#allocation4 + $0x38] sm:$0xff] %vm672_vm1, %v1204_v28  ;;  %v1785_v33 = vmul.f32 %v1748_v30, %v1737_v45  ;;  %v2176_v50 = vpop.xlane.xlu1 %2175 }
 0x996   : > { %v2192_v36 = vadd.f32 %v2176_v50, %v2160_v40 }
 0x997   : > { %v1825_v24 = vadd.f32 %v1802_v27, %v1785_v33  ;;  %v2164_v27 = vmul.f32 %v10014_v10, %v2156_v34 }
 0x998   : > { %2200 = vst.msk [vmem:[#allocation3 + $0x98] sm:$0xff] %vm1003_vm4, %v2192_v36  ;;  %v1763_v7 = vpop.permute.xlu0 %1762 }
 0x999   : > { %1834 = vst.msk [vmem:[#allocation4] sm:$0xff] %vm1833_vm5, %v1825_v24  ;;  %v1788_v22 = vmul.f32 %v1763_v7, %v1740_v44  ;;  %v2182_v59 = vpop.xlane.xlu1 %2181 }
 0x99a   : > { %v2194_v20 = vadd.f32 %v2182_v59, %v2162_v41 }
 0x99b   : > { %v1828_v32 = vadd.f32 %v10103_v18, %v1788_v22 }
 0x99c   : > { %2202 = vst.msk [vmem:[#allocation3 + $0xa8] sm:$0xff] %vm1003_vm4, %v2194_v20  ;;  %v1773_v60 = vpop.permute.xlu0 %1772  ;;  %v1744_v49 = vld [vmem:[#allocation4 + $0x38] sm:$0xff] }
 0x99d   : > { %1837 = vst.msk [vmem:[#allocation4 + $0x18] sm:$0xff] %vm1833_vm5, %v1828_v32  ;;  %v1790_v25 = vmul.f32 %v1773_v60, %v1742_v31  ;;  %v2188_v2 = vpop.xlane.xlu1 %2187 }
 0x99e   : > { %v2196_v23 = vadd.f32 %v2188_v2, %v2164_v27 }
 0x99f   : > { %v1830_v51 = vadd.f32 %v10107_v56, %v1790_v25 }
 0x9a0   : > { %2204 = vst.msk [vmem:[#allocation3 + $0xb8] sm:$0xff] %vm1003_vm4, %v2196_v23  ;;  %v1783_v6 = vpop.permute.xlu0 %1782  ;;  %v2358_v44 = vld [vmem:[#allocation4] sm:$0xff] }
 0x9a1   : > { %1839 = vst.msk [vmem:[#allocation4 + $0x28] sm:$0xff] %vm1833_vm5, %v1830_v51  ;;  %v1792_v18 = vmul.f32 %v1783_v6, %v1744_v49  ;;  %v1753_v26 = vpop.permute.xlu1 %1752 }
 0x9a2   : > { %v1786_v4 = vmul.f32 %v1753_v26, %v1738_v43 }
 0x9a3   : > { %v1832_v35 = vadd.f32 %v10113_v16, %v1792_v18 }
 0x9a4   : > { %v1826_v10 = vadd.f32 %v10101_v52, %v1786_v4  ;;  %v2369_v46 = vpop.permute.xlu0 %2368  ;;  %v1743_v52 = vld [vmem:[#allocation4 + $0x30] sm:$0xff]  ;;  %v2361_v28 = vld [vmem:[#allocation4 + $0x18] sm:$0xff] }
 0x9a5   : > { %1841 = vst.msk [vmem:[#allocation4 + $0x38] sm:$0xff] %vm1833_vm5, %v1832_v35  ;;  %v1758_v42 = vpop.permute.xlu1 %1757  ;;  %v2406_v41 = vmul.f32 %v2369_v46, %v2358_v44 }
 0x9a6   : > { %1835 = vst.msk [vmem:[#allocation4 + $0x8] sm:$0xff] %vm1833_vm5, %v1826_v10  ;;  %v1787_v56 = vmul.f32 %v1758_v42, %v1739_v13 }
 0x9a8   : > { %v1827_v53 = vadd.f32 %v10122_v14, %v1787_v56  ;;  %v2384_v15 = vpop.permute.xlu0 %2383  ;;  %v2363_v33 = vld [vmem:[#allocation4 + $0x28] sm:$0xff] }
 0x9a9   : > { %v1768_v63 = vpop.permute.xlu1 %1767 }
 0x9aa   : > { %1836 = vst.msk [vmem:[#allocation4 + $0x10] sm:$0xff] %vm1833_vm5, %v1827_v53  ;;  %v1789_v1 = vmul.f32 %v1768_v63, %v1741_v62  ;;  %v2771_v63 = vld [vmem:[#allocation3 + $0xc8] sm:$0xff] }
 0x9ac   : > { %v1829_v16 = vadd.f32 %v10128_v37, %v1789_v1  ;;  %v2394_v5 = vpop.permute.xlu0 %2393  ;;  %v2409_v37 = vmul.f32 %v2384_v15, %v2361_v28  ;;  %v2365_v24 = vld [vmem:[#allocation4 + $0x38] sm:$0xff]  ;;  %v2776_v28 = vld [vmem:[#allocation3 + $0xf0] sm:$0xff] }
 0x9ad   : > { %v1778_v21 = vpop.permute.xlu1 %1777  ;;  %v2359_v47 = vld [vmem:[#allocation4 + $0x8] sm:$0xff]  ;;  %v2411_v50 = vmul.f32 %v2394_v5, %v2363_v33  ;;  %v2779_v5 = vmul.f32 %v10083_v19, %v2771_v63  ;;  %v2784_v19 = vmul.f32 %v10098_v3, %v2776_v28  ;;  %v2770_v33 = vld [vmem:[#allocation3 + $0xc0] sm:$0xff] }
 0x9ae   : > { %1838 = vst.msk [vmem:[#allocation4 + $0x20] sm:$0xff] %vm1833_vm5, %v1829_v16  ;;  %v1791_v12 = vmul.f32 %v1778_v21, %v1743_v52  ;;  %v2772_v21 = vld [vmem:[#allocation3 + $0xd0] sm:$0xff] }
 0x9b0   : > { %v1831_v39 = vadd.f32 %v10137_v9, %v1791_v12  ;;  %v2404_v17 = vpop.permute.xlu0 %2403 }
 0x9b1   : > { %v2374_v38 = vpop.permute.xlu1 %2373  ;;  %v2413_v7 = vmul.f32 %v2404_v17, %v2365_v24  ;;  %v2360_v32 = vld [vmem:[#allocation4 + $0x10] sm:$0xff]  ;;  %v2780_v17 = vmul.f32 %v10092_v48, %v2772_v21  ;;  %v2778_v48 = vmul.f32 %v10055_v29, %v2770_v33  ;;  %v2775_v24 = vld [vmem:[#allocation3 + $0xe8] sm:$0xff] }
 0x9b2   : > { %1840 = vst.msk [vmem:[#allocation4 + $0x30] sm:$0xff] %vm1833_vm5, %v1831_v39  ;;  %v2407_v14 = vmul.f32 %v2374_v38, %v2359_v47  ;;  %v2774_v38 = vld [vmem:[#allocation3 + $0xe0] sm:$0xff]  ;;  %v2783_v3 = vmul.f32 %v10075_v57, %v2775_v24 }
 0x9b4   : > { %v2425_v55 = vpop.permute.xlu0 %2424 }
 0x9b5   : > { %v2447_v58 = vadd.f32 %v2425_v55, %v2407_v14  ;;  %v2379_v11 = vpop.permute.xlu1 %2378  ;;  %v2362_v25 = vld [vmem:[#allocation4 + $0x20] sm:$0xff] }
 0x9b6   : > { %v2408_v31 = vmul.f32 %v2379_v11, %v2360_v32 }
 0x9b7   : > { %2456 = vst.msk [vmem:[#allocation4 + $0x8] sm:$0xff] %vm2454_vm6, %v2447_v58  ;;  %v2782_v58 = vmul.f32 %v10095_v54, %v2774_v38 }
 0x9b8   : > { %v2429_v45 = vpop.permute.xlu0 %2428 }
 0x9b9   : > { %v2449_v30 = vadd.f32 %v2429_v45, %v2409_v37  ;;  %v2389_v40 = vpop.permute.xlu1 %2388  ;;  %v2364_v49 = vld [vmem:[#allocation4 + $0x30] sm:$0xff] }
 0x9ba   : > { %v2410_v2 = vmul.f32 %v2389_v40, %v2362_v25 }
 0x9bb   : > { %2458 = vst.msk [vmem:[#allocation4 + $0x18] sm:$0xff] %vm2454_vm6, %v2449_v30 }
 0x9bc   : > { %v2433_v9 = vpop.permute.xlu0 %2432 }
 0x9bd   : > { %v2451_v61 = vadd.f32 %v2433_v9, %v2411_v50  ;;  %v2399_v36 = vpop.permute.xlu1 %2398  ;;  %v2773_v9 = vld [vmem:[#allocation3 + $0xd8] sm:$0xff] }
 0x9be   : > { %v2412_v6 = vmul.f32 %v2399_v36, %v2364_v49  ;;  %v2781_v54 = vmul.f32 %v10065_v0, %v2773_v9  ;;  %v2980_v0 = vld [vmem:[#allocation4 + $0x8] sm:$0xff] }
 0x9bf   : > { %2460 = vst.msk [vmem:[#allocation4 + $0x28] sm:$0xff] %vm2454_vm6, %v2451_v61 }
 0x9c0   : > { %v2437_v22 = vpop.permute.xlu0 %2436 }
 0x9c1   : > { %v2453_v59 = vadd.f32 %v2437_v22, %v2413_v7  ;;  %v2423_v34 = vpop.permute.xlu1 %2422 }
 0x9c2   : > { %v2446_v20 = vadd.f32 %v2423_v34, %v2406_v41  ;;  %v2777_v41 = vld [vmem:[#allocation3 + $0xf8] sm:$0xff] }
 0x9c3   : > { %2462 = vst.msk [vmem:[#allocation4 + $0x38] sm:$0xff] %vm2454_vm6, %v2453_v59  ;;  %v2785_v29 = vmul.f32 %v10087_v8, %v2777_v41  ;;  %v2982_v25 = vld [vmem:[#allocation4 + $0x18] sm:$0xff] }
 0x9c4   : > { %2455 = vst.msk [vmem:[#allocation4] sm:$0xff] %vm2454_vm6, %v2446_v20  ;;  %v10172_v26 = vpop.permute.xlu0 %2989 }
 0x9c5   : > { %v2427_v60 = vpop.permute.xlu1 %2426 }
 0x9c6   : > { %v2448_v27 = vadd.f32 %v2427_v60, %v2408_v31 }
 0x9c8   : > { %2457 = vst.msk [vmem:[#allocation4 + $0x10] sm:$0xff] %vm2454_vm6, %v2448_v27  ;;  %v10174_v4 = vpop.permute.xlu0 %3004 }
 0x9c9   : > { %v2431_v23 = vpop.permute.xlu1 %2430 }
 0x9ca   : > { %v2450_v51 = vadd.f32 %v2431_v23, %v2410_v2  ;;  %v3030_v23 = vmul.f32 %v10174_v4, %v2982_v25 }
 0x9cb   : > { %v2979_v20 = vld [vmem:[#allocation4] sm:$0xff] }
 0x9cc   : > { %2459 = vst.msk [vmem:[#allocation4 + $0x20] sm:$0xff] %vm2454_vm6, %v2450_v51  ;;  %v10178_v13 = vpop.permute.xlu0 %3014  ;;  %v3027_v31 = vmul.f32 %v10172_v26, %v2979_v20 }
 0x9cd   : > { %v2435_v18 = vpop.permute.xlu1 %2434 }
 0x9ce   : > { %v2452_v43 = vadd.f32 %v2435_v18, %v2412_v6 }
 0x9cf   : > { %v2981_v51 = vld [vmem:[#allocation4 + $0x10] sm:$0xff] }
 0x9d0   : > { %2461 = vst.msk [vmem:[#allocation4 + $0x30] sm:$0xff] %vm2454_vm6, %v2452_v43  ;;  %v10184_v62 = vpop.permute.xlu0 %3024  ;;  %v2984_v43 = vld [vmem:[#allocation4 + $0x28] sm:$0xff] }
 0x9d1   : > { %v2995_v15 = vpop.permute.xlu1 %2994  ;;  %v3032_v26 = vmul.f32 %v10178_v13, %v2984_v43 }
 0x9d2   : > { %v3028_v32 = vmul.f32 %v2995_v15, %v2980_v0 }
 0x9d5   : > { %v3000_v12 = vpop.permute.xlu1 %2999 }
 0x9d6   : > { %v3029_v8 = vmul.f32 %v3000_v12, %v2981_v51 }
 0x9d9   : > { %v3010_v55 = vpop.permute.xlu1 %3009 }
 0x9dd   : > { %v3020_v30 = vpop.permute.xlu1 %3019 }
 0x9ee   : > { %v7017_v35 = vpop.f32.mrb[24].mxu0 }
 0x9ef   : > { %3045 = vrot.lane.b32.xlu0 %v7017_v35, %s8528_s6  ;;  %v2940_v10 = vpop.f32.mrb[25].mxu0 }
 0x9f0   : > { %3043 = vrot.lane.b32.xlu1 %v2940_v10, %s8528_s6  ;;  %v2983_v10 = vld [vmem:[#allocation4 + $0x20] sm:$0xff] }
 0x9f2   : > { %v7020_v46 = vpop.f32.mrb[26].mxu0 }
 0x9f3   : > { %3049 = vrot.lane.b32.xlu0 %v7020_v46, %s8528_s6  ;;  %v2950_v42 = vpop.f32.mrb[27].mxu0  ;;  %v3031_v46 = vmul.f32 %v3010_v55, %v2983_v10 }
 0x9f4   : > { %3047 = vrot.lane.b32.xlu1 %v2950_v42, %s8528_s6 }
 0x9f6   : > { %v7023_v56 = vpop.f32.mrb[28].mxu0 }
 0x9f7   : > { %3053 = vrot.lane.b32.xlu0 %v7023_v56, %s8528_s6  ;;  %v2960_v53 = vpop.f32.mrb[29].mxu0 }
 0x9f8   : > { %3051 = vrot.lane.b32.xlu1 %v2960_v53, %s8528_s6  ;;  %v2986_v53 = vld [vmem:[#allocation4 + $0x38] sm:$0xff] }
 0x9f9   : > { %v3034_v63 = vmul.f32 %v10184_v62, %v2986_v53 }
 0x9fa   : > { %v7026_v1 = vpop.f32.mrb[30].mxu0 }
 0x9fb   : > { %3057 = vrot.lane.b32.xlu0 %v7026_v1, %s8528_s6  ;;  %v2970_v16 = vpop.f32.mrb[31].mxu0  ;;  %v2985_v1 = vld [vmem:[#allocation4 + $0x30] sm:$0xff] }
 0x9fc   : > { %3055 = vrot.lane.b32.xlu1 %v2970_v16, %s8528_s6  ;;  %v3033_v16 = vmul.f32 %v3020_v30, %v2985_v1 }
 0x9fd   : > { %v2791_v52 = vpop.xlane.xlu0 %2790 }
 0x9fe   : > { %v2811_v39 = vadd.f32 %v2791_v52, %v2779_v5 }
 0xa00   : > { %2819 = vst.msk [vmem:[#allocation3 + $0xc8] sm:$0xff] %vm1003_vm4, %v2811_v39 }
 0xa01   : > { %v2794_v47 = vpop.xlane.xlu0 %2793 }
 0xa02   : > { %v2812_v14 = vadd.f32 %v2794_v47, %v2780_v17 }
 0xa04   : > { %2820 = vst.msk [vmem:[#allocation3 + $0xd0] sm:$0xff] %vm1003_vm4, %v2812_v14 }
 0xa05   : > { %v2800_v11 = vpop.xlane.xlu0 %2799 }
 0xa06   : > { %v2814_v37 = vadd.f32 %v2800_v11, %v2782_v58 }
 0xa08   : > { %2822 = vst.msk [vmem:[#allocation3 + $0xe0] sm:$0xff] %vm1003_vm4, %v2814_v37 }
 0xa09   : > { %v2806_v45 = vpop.xlane.xlu0 %2805 }
 0xa0a   : > { %v2816_v40 = vadd.f32 %v2806_v45, %v2784_v19 }
 0xa0c   : > { %2824 = vst.msk [vmem:[#allocation3 + $0xf0] sm:$0xff] %vm1003_vm4, %v2816_v40 }
 0xa0e   : > { %v2788_v50 = vpop.xlane.xlu1 %2787 }
 0xa0f   : > { %v2810_v61 = vadd.f32 %v2788_v50, %v2778_v48 }
 0xa11   : > { %2818 = vst.msk [vmem:[#allocation3 + $0xc0] sm:$0xff] %vm1003_vm4, %v2810_v61 }
 0xa12   : > { %v2797_v36 = vpop.xlane.xlu1 %2796 }
 0xa13   : > { %v2813_v44 = vadd.f32 %v2797_v36, %v2781_v54 }
 0xa15   : > { %2821 = vst.msk [vmem:[#allocation3 + $0xd8] sm:$0xff] %vm1003_vm4, %v2813_v44 }
 0xa16   : > { %v2803_v7 = vpop.xlane.xlu1 %2802 }
 0xa17   : > { %v2815_v22 = vadd.f32 %v2803_v7, %v2783_v3 }
 0xa19   : > { %2823 = vst.msk [vmem:[#allocation3 + $0xe8] sm:$0xff] %vm1003_vm4, %v2815_v22 }
 0xa1a   : > { %v2809_v59 = vpop.xlane.xlu1 %2808 }
 0xa1b   : > { %v2817_v34 = vadd.f32 %v2809_v59, %v2785_v29 }
 0xa1d   : > { %2825 = vst.msk [vmem:[#allocation3 + $0xf8] sm:$0xff] %vm1003_vm4, %v2817_v34 }
 0xa61   : > { %v3046_v60 = vpop.permute.xlu0 %3045 }
 0xa62   : > { %v3068_v27 = vadd.f32 %v3046_v60, %v3028_v32  ;;  %v3044_v57 = vpop.permute.xlu1 %3043 }
 0xa63   : > { %v3067_v2 = vadd.f32 %v3044_v57, %v3027_v31 }
 0xa64   : > { %3077 = vst.msk [vmem:[#allocation4 + $0x8] sm:$0xff] %vm3075_vm7, %v3068_v27 }
 0xa65   : > { %3076 = vst.msk [vmem:[#allocation4] sm:$0xff] %vm3075_vm7, %v3067_v2  ;;  %v3050_v49 = vpop.permute.xlu0 %3049 }
 0xa66   : > { %v3070_v6 = vadd.f32 %v3050_v49, %v3030_v23  ;;  %v3048_v18 = vpop.permute.xlu1 %3047 }
 0xa67   : > { %v3069_v35 = vadd.f32 %v3048_v18, %v3029_v8 }
 0xa68   : > { %3079 = vst.msk [vmem:[#allocation4 + $0x18] sm:$0xff] %vm3075_vm7, %v3070_v6 }
 0xa69   : > { %3078 = vst.msk [vmem:[#allocation4 + $0x10] sm:$0xff] %vm3075_vm7, %v3069_v35  ;;  %v3054_v4 = vpop.permute.xlu0 %3053 }
 0xa6a   : > { %v3072_v42 = vadd.f32 %v3054_v4, %v3032_v26  ;;  %v3052_v56 = vpop.permute.xlu1 %3051 }
 0xa6b   : > { %v3071_v15 = vadd.f32 %v3052_v56, %v3031_v46 }
 0xa6c   : > { %3081 = vst.msk [vmem:[#allocation4 + $0x28] sm:$0xff] %vm3075_vm7, %v3072_v42 }
 0xa6d   : > { %3080 = vst.msk [vmem:[#allocation4 + $0x20] sm:$0xff] %vm3075_vm7, %v3071_v15  ;;  %v3058_v13 = vpop.permute.xlu0 %3057 }
 0xa6e   : > { %v3074_v5 = vadd.f32 %v3058_v13, %v3034_v63  ;;  %v3056_v52 = vpop.permute.xlu1 %3055 }
 0xa6f   : > { %v3073_v21 = vadd.f32 %v3056_v52, %v3033_v16 }
 0xa70   : > { %3083 = vst.msk [vmem:[#allocation4 + $0x38] sm:$0xff] %vm3075_vm7, %v3074_v5 }
 0xa71   : > { %3082 = vst.msk [vmem:[#allocation4 + $0x30] sm:$0xff] %vm3075_vm7, %v3073_v21 }
 0xa72 PF: > { %s12169_s24 = sld [smem:[#allocation12_spill]] }
 0xa78   : > { %p6415_p10 = scmp.ne.s32.totalorder %s8498_s23, %s12169_s24 }
 0xa7a   : > { %3095 = sbr.rel (%p6415_p10) target bundleno = 5216 (0x1460), region = 170 }
 0xa81   : > { %v10219_v62 = vld [vmem:[%s8730_s5] sm:$0xff]  ;;  %v10222_v12 = vld [vmem:[%s8730_s5 + $0x8] sm:$0xff]  ;;  %vm3139_vm8 = vcmask 261120   ;;  %v10225_v39 = vld [vmem:[%s8730_s5 + $0x10] sm:$0xff]  ;;  %v3120_v54 = vlaneseq  ;;  %vm3309_vm11 = vcmask 523264   ;;  %v8531_v53 = vmov 0  }
 0xa82   : > { %v7455_v17 = vpack.c.bf16 %v10222_v12, %v10219_v62  ;;  %vm10231_vm9 = vmpackc.low %vm3139_vm8, %vm3139_vm8  ;;  %v10236_v38 = vld [vmem:[%s8730_s5 + $0x18] sm:$0xff]  ;;  %v10243_v55 = vld [vmem:[%s8728_s12] sm:$0xff]  ;;  %8056 = vset.pattern.permute.xlu0 %v8531_v53  ;;  %8057 = vset.pattern.permute.xlu1 %v8531_v53  ;;  %vm3478_vm3 = vcmask 7168   ;;  %s8532_s13 = smov 96   ;;  %s8533_s15 = smov 64   ;;  %vm4316_vm4 = vcmask 523520  }
 0xa83   : > { %v7461_v14 = vpack.c.bf16 %v10236_v38, %v10225_v39  ;;  %7043 = vmatprep.mubr.msk.f32.mxu0 %vm3139_vm8, %v10243_v55  ;;  %v10252_v58 = vld [vmem:[%s8730_s5 + $0x20] sm:$0xff]  ;;  %v10255_v11 = vld [vmem:[%s8730_s5 + $0x28] sm:$0xff]  ;;  %v10264_v37 = vld [vmem:[%s8730_s5 + $0x30] sm:$0xff]  ;;  %v10312_v36 = vshrl.u32 %v3120_v54, 7  ;;  %v10314_v24 = vand.u32 127, %v3120_v54  ;;  %v10441_v54 = vpack.i.bf16 %v10236_v38, %v10225_v39  ;;  %s8534_s16 = smov 32  }
 0xa84   : > { %7457 = vmatprep.subr.msk.bf16.mxu0 %vm10231_vm9, %v7455_v17  ;;  %v7467_v28 = vpack.c.bf16 %v10255_v11, %v10252_v58  ;;  %v10267_v19 = vld [vmem:[%s8730_s5 + $0x38] sm:$0xff]  ;;  %v10278_v30 = vld [vmem:[%s8728_s12 + $0x8] sm:$0xff]  ;;  %v10281_v40 = vld [vmem:[%s8728_s12 + $0x10] sm:$0xff]  ;;  %v10459_v39 = vpack.i.bf16 %v10222_v12, %v10219_v62  ;;  %vm4945_vm5 = vcmask 785920   ;;  %vm5574_vm6 = vcmask 1048320  }
 0xa85   : > { %7460 = vmatpush3.bf16.xpose.msk.msra.mxu0 %vm10231_vm9, %v7455_v17  ;;  %v7473_v45 = vpack.c.bf16 %v10267_v19, %v10264_v37  ;;  %v10288_v33 = vld [vmem:[%s8728_s12 + $0x18] sm:$0xff]  ;;  %v10291_v48 = vld [vmem:[%s8728_s12 + $0x20] sm:$0xff]  ;;  %v10298_v50 = vld [vmem:[%s8728_s12 + $0x28] sm:$0xff]  ;;  %v10317_v44 = vadd.s32 8, %v10312_v36  ;;  %vm3131_vm10 = vcmp.ge.s32.totalorder %v10312_v36, %v10314_v24  ;;  %v10322_v3 = vadd.s32 24, %v10312_v36 }
 0xa86   : > { %7463 = vmatprep.subr.msk.bf16.mxu0 %vm10231_vm9, %v7461_v14  ;;  %v10301_v9 = vld [vmem:[%s8728_s12 + $0x30] sm:$0xff]  ;;  %v10308_v61 = vld [vmem:[%s8728_s12 + $0x38] sm:$0xff]  ;;  %v10325_v7 = vadd.s32 16, %v10312_v36  ;;  %v10335_v59 = vadd.s32 40, %v10312_v36  ;;  %v10338_v34 = vadd.s32 32, %v10312_v36  ;;  %v10370_v2 = vadd.s32 56, %v10312_v36 }
 0xa87   : > { %vm3132_vm12 = vcmp.ge.s32.totalorder %v10317_v44, %v10314_v24  ;;  %vm3134_vm13 = vcmp.ge.s32.totalorder %v10322_v3, %v10314_v24  ;;  %v10373_v23 = vadd.s32 48, %v10312_v36  ;;  %v10410_v15 = vld [vmem:[%s8732_s25] sm:$0xff]  ;;  %v10413_v63 = vld [vmem:[%s8732_s25 + $0x8] sm:$0xff]  ;;  %v10423_v52 = vld [vmem:[%s8732_s25 + $0x10] sm:$0xff]  ;;  %v10478_v62 = vpack.i.bf16 %v10267_v19, %v10264_v37 }
 0xa88   : > { %vm3133_vm14 = vcmp.ge.s32.totalorder %v10325_v7, %v10314_v24  ;;  %vm3136_vm15 = vcmp.ge.s32.totalorder %v10335_v59, %v10314_v24  ;;  %vm3135_vm0 = vcmp.ge.s32.totalorder %v10338_v34, %v10314_v24  ;;  %vm3138_vm1 = vcmp.ge.s32.totalorder %v10370_v2, %v10314_v24  ;;  %v10417_v16 = vld [vmem:[#allocation2] sm:$0xff]  ;;  %v10426_v21 = vld [vmem:[%s8732_s25 + $0x18] sm:$0xff]  ;;  %v10428_v17 = vld [vmem:[#allocation2 + $0x8] sm:$0xff] }
 0xa89   : > { %vm3137_vm2 = vcmp.ge.s32.totalorder %v10373_v23, %v10314_v24  ;;  %v7479_v1 = vpack.c.bf16 %v10413_v63, %v10410_v15  ;;  %v10461_v38 = vld [vmem:[#allocation2 + $0x20] sm:$0xff]  ;;  %v10494_v53 = vld [vmem:[#allocation2 + $0x30] sm:$0xff] }
 0xa8a   : > { %12173 = vst [vmem:[#allocation64_spill] sm:$0xff] %v10494_v53 }
 0xa8b   : > { %7480 = vmatprep.subr.bf16.mxu1 %v7479_v1 }
 0xa8c   : > { %7482 = vmatpush3.bf16.msra.mxu1 %v7479_v1 }
 0xa8d   : > { %7466 = vmatpush3.bf16.xpose.msk.msra.mxu0 %vm10231_vm9, %v7461_v14  ;;  %v10430_v14 = vld [vmem:[#allocation2 + $0x10] sm:$0xff] }
 0xa8e   : > { %7469 = vmatprep.subr.msk.bf16.mxu0 %vm10231_vm9, %v7467_v28 }
 0xa95   : > { %7472 = vmatpush3.bf16.xpose.msk.msra.mxu0 %vm10231_vm9, %v7467_v28  ;;  %v7483_v28 = vpack.c.bf16 %v10426_v21, %v10423_v52 }
 0xa96   : > { %7475 = vmatprep.subr.msk.bf16.mxu0 %vm10231_vm9, %v7473_v45 }
 0xa97   : > { %7484 = vmatprep.subr.bf16.mxu1 %v7483_v28 }
 0xa98   : > { %7486 = vmatpush3.bf16.msra.mxu1 %v7483_v28 }
 0xa9d   : > { %7478 = vmatpush3.bf16.xpose.msk.msra.mxu0 %vm10231_vm9, %v7473_v45 }
 0xaa4   : > { %7044 = vmatmul.mubr.msk.f32.vlgmr.msra.gmra.mrb[0].mxu0 %vm3139_vm8, %v10278_v30 }
 0xaa5   : > { %7046 = vmatprep.mubr.msk.f32.mxu0 %vm3139_vm8, %v10281_v40 }
 0xaa8   : > { %7047 = vmatmul.mubr.msk.f32.gmra.mrb[2].mxu0 %vm3139_vm8, %v10288_v33 }
 0xaa9   : > { %7049 = vmatprep.mubr.msk.f32.mxu0 %vm3139_vm8, %v10291_v48 }
 0xaac   : > { %7050 = vmatmul.mubr.msk.f32.gmra.mrb[4].mxu0 %vm3139_vm8, %v10298_v50 }
 0xaad   : > { %7052 = vmatprep.mubr.msk.f32.mxu0 %vm3139_vm8, %v10301_v9 }
 0xab0   : > { %7053 = vmatmul.mubr.msk.f32.gmra.mrb[6].mxu0 %vm3139_vm8, %v10308_v61 }
 0xb77   : > { %v7045_v41 = vpop.f32.mrb[0].mxu0 }
 0xb78   : > { %v3254_v22 = vpop.f32.mrb[1].mxu0  ;;  %v10349_v0 = vsel %vm3132_vm12, %v7045_v41, -1e+30 }
 0xb79   : > { %v10332_v29 = vsel %vm3131_vm10, %v3254_v22, -1e+30  ;;  %v3313_v57 = vsel %vm3309_vm11, %v10349_v0, -inf }
 0xb7a   : > { %v3310_v20 = vsel %vm3309_vm11, %v10332_v29, -inf }
 0xb7b   : > { %3311 = vmax.xlane.f32.xlu0 %v3310_v20  ;;  %v7048_v32 = vpop.f32.mrb[2].mxu0 }
 0xb7c   : > { %v3264_v31 = vpop.f32.mrb[3].mxu0  ;;  %v10354_v60 = vsel %vm3134_vm13, %v7048_v32, -1e+30 }
 0xb7d   : > { %v10359_v27 = vsel %vm3133_vm14, %v3264_v31, -1e+30  ;;  %v3319_v8 = vsel %vm3309_vm11, %v10354_v60, -inf  ;;  %v10450_v31 = vld [vmem:[%s8732_s25 + $0x20] sm:$0xff] }
 0xb7e   : > { %v3316_v25 = vsel %vm3309_vm11, %v10359_v27, -inf }
 0xb7f   : > { %3314 = vmax.xlane.f32.xlu0 %v3313_v57  ;;  %3317 = vmax.xlane.f32.xlu1 %v3316_v25  ;;  %v7051_v51 = vpop.f32.mrb[4].mxu0  ;;  %v10453_v57 = vld [vmem:[%s8732_s25 + $0x28] sm:$0xff]  ;;  %v10455_v25 = vld [vmem:[#allocation2 + $0x18] sm:$0xff] }
 0xb80   : > { %v3274_v49 = vpop.f32.mrb[5].mxu0  ;;  %v10380_v6 = vsel %vm3136_vm15, %v7051_v51, -1e+30  ;;  %v7487_v51 = vpack.c.bf16 %v10453_v57, %v10450_v31 }
 0xb81   : > { %v10385_v18 = vsel %vm3135_vm0, %v3274_v49, -1e+30  ;;  %v3325_v26 = vsel %vm3309_vm11, %v10380_v6, -inf }
 0xb82   : > { %v3322_v43 = vsel %vm3309_vm11, %v10385_v18, -inf  ;;  %7488 = vmatprep.subr.bf16.mxu1 %v7487_v51 }
 0xb83   : > { %3320 = vmax.xlane.f32.xlu1 %v3319_v8  ;;  %3323 = vmax.xlane.f32.xlu0 %v3322_v43  ;;  %v7054_v35 = vpop.f32.mrb[6].mxu0 }
 0xb84   : > { %v3284_v10 = vpop.f32.mrb[7].mxu0  ;;  %v10398_v46 = vsel %vm3138_vm1, %v7054_v35, -1e+30  ;;  %7490 = vmatpush3.bf16.msra.mxu1 %v7487_v51  ;;  %v10516_v51 = vld [vmem:[#allocation2 + $0x38] sm:$0xff] }
 0xb85   : > { %v10403_v4 = vsel %vm3137_vm2, %v3284_v10, -1e+30  ;;  %v3331_v56 = vsel %vm3309_vm11, %v10398_v46, -inf  ;;  %v10487_v10 = vld [vmem:[%s8732_s25 + $0x30] sm:$0xff]  ;;  %12176 = vst [vmem:[#allocation67_spill] sm:$0xff] %v10516_v51 }
 0xb86   : > { %v3328_v42 = vsel %vm3309_vm11, %v10403_v4, -inf }
 0xb87   : > { %3326 = vmax.xlane.f32.xlu1 %v3325_v26  ;;  %3329 = vmax.xlane.f32.xlu0 %v3328_v42  ;;  %v10490_v42 = vld [vmem:[%s8732_s25 + $0x38] sm:$0xff] }
 0xb88   : > { %v7491_v37 = vpack.c.bf16 %v10490_v42, %v10487_v10 }
 0xb8a   : > { %7492 = vmatprep.subr.bf16.mxu1 %v7491_v37 }
 0xb8b   : > { %3332 = vmax.xlane.f32.xlu1 %v3331_v56  ;;  %v10492_v56 = vld [vmem:[#allocation2 + $0x28] sm:$0xff]  ;;  %7494 = vmatpush3.bf16.msra.mxu1 %v7491_v37 }
 0xb8c   : > { %12172 = vst [vmem:[#allocation63_spill] sm:$0xff] %v10492_v56 }
 0xc08   : > { %v3312_v13 = vpop.xlane.xlu0 %3311 }
 0xc09   : > { %v10420_v5 = vmax.f32 %v10417_v16, %v3312_v13 }
 0xc0b   : > { %3688 = vst.msk [vmem:[#allocation2] sm:$0xff] %vm3478_vm3, %v10420_v5  ;;  %3368 = vperm.xlu0 %8056, %v10420_v5  }
 0xc0c   : > { %v3315_v41 = vpop.xlane.xlu0 %3314  ;;  %v3318_v22 = vpop.xlane.xlu1 %3317 }
 0xc0d   : > { %v10444_v20 = vmax.f32 %v10428_v17, %v3315_v41  ;;  %v10447_v32 = vmax.f32 %v10430_v14, %v3318_v22 }
 0xc0f   : > { %3689 = vst.msk [vmem:[#allocation2 + $0x8] sm:$0xff] %vm3478_vm3, %v10444_v20  ;;  %3690 = vst.msk [vmem:[#allocation2 + $0x10] sm:$0xff] %vm3478_vm3, %v10447_v32  ;;  %3373 = vperm.xlu1 %8057, %v10444_v20   ;;  %8064 = vrot.lane.b32.xlu0 %v10441_v54, %s8532_s13 }
 0xc10   : > { %v3321_v12 = vpop.xlane.xlu1 %3320  ;;  %v3324_v43 = vpop.xlane.xlu0 %3323 }
 0xc11   : > { %v10481_v35 = vmax.f32 %v10455_v25, %v3321_v12  ;;  %v10484_v26 = vmax.f32 %v10461_v38, %v3324_v43 }
 0xc13   : > { %3691 = vst.msk [vmem:[#allocation2 + $0x18] sm:$0xff] %vm3478_vm3, %v10481_v35  ;;  %8059 = vrot.lane.b32.xlu1 %v10459_v39, %s8532_s13  ;;  %3692 = vst.msk [vmem:[#allocation2 + $0x20] sm:$0xff] %vm3478_vm3, %v10484_v26  ;;  %8074 = vrot.lane.b32.xlu0 %v10478_v62, %s8532_s13  ;;  %v12219_v47 = vsub.f32 %v10461_v38, %v10484_v26 }
 0xc14   : > { %v3327_v13 = vpop.xlane.xlu1 %3326  ;;  %v3330_v28 = vpop.xlane.xlu0 %3329 }
 0xc15   : > { %v10511_v41 = vmax.f32 %v10492_v56, %v3327_v13  ;;  %v10514_v22 = vmax.f32 %v10494_v53, %v3330_v28 }
 0xc17   : > { %12174 = vst [vmem:[#allocation65_spill] sm:$0xff] %v10511_v41  ;;  %12175 = vst [vmem:[#allocation66_spill] sm:$0xff] %v10514_v22  ;;  %3383 = vperm.xlu1 %8057, %v10481_v35   ;;  %3698 = vrot.lane.b32.xlu0 %v10278_v30, %s8532_s13 }
 0xc18   : > { %3693 = vst.msk [vmem:[#allocation2 + $0x28] sm:$0xff] %vm3478_vm3, %v10511_v41  ;;  %3694 = vst.msk [vmem:[#allocation2 + $0x30] sm:$0xff] %vm3478_vm3, %v10514_v22  ;;  %v3333_v37 = vpop.xlane.xlu1 %3332 }
 0xc19   : > { %v10530_v13 = vmax.f32 %v10516_v51, %v3333_v37  ;;  %v10549_v37 = vpack.i.bf16 %v10255_v11, %v10252_v58 }
 0xc1b   : > { %12177 = vst [vmem:[#allocation68_spill] sm:$0xff] %v10530_v13  ;;  %3378 = vperm.xlu1 %8057, %v10447_v32   ;;  %3695 = vst.msk [vmem:[#allocation2 + $0x38] sm:$0xff] %vm3478_vm3, %v10530_v13  ;;  %3702 = vrot.lane.b32.xlu0 %v10288_v33, %s8532_s13 }
 0xc1f   : > { %3393 = vperm.xlu1 %8057, %v10511_v41   ;;  %3706 = vrot.lane.b32.xlu0 %v10298_v50, %s8532_s13 }
 0xc23   : > { %3388 = vperm.xlu1 %8057, %v10484_v26   ;;  %3710 = vrot.lane.b32.xlu0 %v10308_v61, %s8532_s13 }
 0xc27   : > { %3398 = vperm.xlu1 %8057, %v10514_v22  }
 0xc2b   : > { %3403 = vperm.xlu1 %8057, %v10530_v13  }
 0xc2f   : > { %8069 = vrot.lane.b32.xlu1 %v10549_v37, %s8532_s13 }
 0xc33   : > { %3696 = vrot.lane.b32.xlu1 %v10243_v55, %s8532_s13 }
 0xc37   : > { %3700 = vrot.lane.b32.xlu1 %v10281_v40, %s8532_s13 }
 0xc3b   : > { %3704 = vrot.lane.b32.xlu1 %v10291_v48, %s8532_s13 }
 0xc3f   : > { %3708 = vrot.lane.b32.xlu1 %v10301_v9, %s8532_s13 }
 0xc8a   : > { %v3369_v28 = vpop.permute.xlu0 %3368 }
 0xc8b   : > { %v3406_v12 = vsub.f32 %v10332_v29, %v3369_v28 }
 0xc8d   : > { %v3414_v58 = vmul.f32 1.442695, %v3406_v12 }
 0xc8e   : > { %v3374_v11 = vpop.permute.xlu1 %3373  ;;  %v8065_v13 = vpop.permute.xlu0 %8064 }
 0xc8f   : > { %8178 = vpow2.f32 %v3414_v58  ;;  %v3407_v43 = vsub.f32 %v10349_v0, %v3374_v11  ;;  %v8067_v56 = vunpack.i.h.bf16 %v8065_v13  ;;  %v8066_v29 = vunpack.i.l.bf16 %v8065_v13 }
 0xc91   : > { %v3416_v19 = vmul.f32 1.442695, %v3407_v43 }
 0xc92   : > { %v8060_v8 = vpop.permute.xlu1 %8059 }
 0xc93   : > { %8180 = vpow2.f32 %v3416_v19  ;;  %v8062_v45 = vunpack.i.h.bf16 %v8060_v8  ;;  %v8061_v1 = vunpack.i.l.bf16 %v8060_v8  ;;  %v7501_v8 = vpack.c.bf16 %v8067_v56, %v8066_v29 }
 0xc95   : > { %v7495_v49 = vpack.c.bf16 %v8062_v45, %v8061_v1 }
 0xc96   : > { %v3384_v51 = vpop.permute.xlu1 %3383 }
 0xc97   : > { %7497 = vmatprep.subr.msk.bf16.mxu1 %vm10231_vm9, %v7495_v49  ;;  %v3409_v41 = vsub.f32 %v10354_v60, %v3384_v51 }
 0xc99   : > { %v10566_v12 = vpop.eup %8178  ;;  %v3420_v19 = vmul.f32 1.442695, %v3409_v41 }
 0xc9a   : > { %v3379_v28 = vpop.permute.xlu1 %3378  ;;  %7071 = vmatprep.mubr.msk.f32.mxu1 %vm3309_vm11, %v10566_v12 }
 0xc9b   : > { %v3408_v0 = vsub.f32 %v10359_v27, %v3379_v28 }
 0xc9d   : > { %v10571_v45 = vpop.eup %8180  ;;  %v3418_v1 = vmul.f32 1.442695, %v3408_v0 }
 0xc9e   : > { %v3394_v43 = vpop.permute.xlu1 %3393  ;;  %7072 = vmatmul.mubr.msk.f32.vlgmr.msra.gmra.mrb[0].mxu1 %vm3309_vm11, %v10571_v45 }
 0xc9f   : > { %8182 = vpow2.f32 %v3418_v1  ;;  %7500 = vmatpush3.bf16.xpose.msk.msra.mxu1 %vm10231_vm9, %v7495_v49  ;;  %v3411_v60 = vsub.f32 %v10380_v6, %v3394_v43 }
 0xca0   : > { %8184 = vpow2.f32 %v3420_v19  ;;  %7503 = vmatprep.subr.msk.bf16.mxu1 %vm10231_vm9, %v7501_v8 }
 0xca1   : > { %v3424_v41 = vmul.f32 1.442695, %v3411_v60 }
 0xca2   : > { %v3389_v27 = vpop.permute.xlu1 %3388 }
 0xca3   : > { %v3410_v56 = vsub.f32 %v10385_v18, %v3389_v27  ;;  %v8075_v18 = vpop.permute.xlu0 %8074 }
 0xca4   : > { %v8077_v0 = vunpack.i.h.bf16 %v8075_v18  ;;  %v8076_v19 = vunpack.i.l.bf16 %v8075_v18 }
 0xca5   : > { %v3422_v51 = vmul.f32 1.442695, %v3410_v56 }
 0xca6   : > { %v3399_v13 = vpop.permute.xlu1 %3398  ;;  %v7513_v56 = vpack.c.bf16 %v8077_v0, %v8076_v19 }
 0xca7   : > { %8186 = vpow2.f32 %v3422_v51  ;;  %v3412_v58 = vsub.f32 %v10403_v4, %v3399_v13  ;;  %7506 = vmatpush3.bf16.xpose.msk.msra.mxu1 %vm10231_vm9, %v7501_v8 }
 0xca8   : > { %8188 = vpow2.f32 %v3424_v41 }
 0xca9   : > { %v10584_v49 = vpop.eup %8182  ;;  %v3426_v11 = vmul.f32 1.442695, %v3412_v58  ;;  %v3699_v58 = vpop.permute.xlu0 %3698 }
 0xcaa   : > { %v10586_v6 = vpop.eup %8184  ;;  %v3404_v29 = vpop.permute.xlu1 %3403  ;;  %7074 = vmatprep.mubr.msk.f32.mxu1 %vm3309_vm11, %v10584_v49 }
 0xcab   : > { %8190 = vpow2.f32 %v3426_v11  ;;  %v3413_v28 = vsub.f32 %v10398_v46, %v3404_v29  ;;  %7075 = vmatmul.mubr.msk.f32.gmra.mrb[2].mxu1 %vm3309_vm11, %v10586_v6 }
 0xcad   : > { %v3428_v4 = vmul.f32 1.442695, %v3413_v28  ;;  %v3703_v29 = vpop.permute.xlu0 %3702 }
 0xcae   : > { %v8070_v8 = vpop.permute.xlu1 %8069 }
 0xcaf   : > { %8192 = vpow2.f32 %v3428_v4  ;;  %v8072_v1 = vunpack.i.h.bf16 %v8070_v8  ;;  %v8071_v43 = vunpack.i.l.bf16 %v8070_v8 }
 0xcb1   : > { %v10593_v60 = vpop.eup %8186  ;;  %v7507_v27 = vpack.c.bf16 %v8072_v1, %v8071_v43  ;;  %v3707_v28 = vpop.permute.xlu0 %3706 }
 0xcb2   : > { %v10595_v41 = vpop.eup %8188  ;;  %7077 = vmatprep.mubr.msk.f32.mxu1 %vm3309_vm11, %v10593_v60  ;;  %v3697_v51 = vpop.permute.xlu1 %3696 }
 0xcb3   : > { %7078 = vmatmul.mubr.msk.f32.gmra.mrb[4].mxu1 %vm3309_vm11, %v10595_v41  ;;  %7509 = vmatprep.subr.msk.bf16.mxu1 %vm10231_vm9, %v7507_v27  ;;  %v3461_v2 = vsel %vm3309_vm11, %v10595_v41, 0.0  ;;  %v8324_v41 = vld [vmem:[%s8732_s25 + $0x20] sm:$0xff] }
 0xcb4   : > { %7512 = vmatpush3.bf16.xpose.msk.msra.mxu1 %vm10231_vm9, %v7507_v27 }
 0xcb5   : > { %v10605_v46 = vpop.eup %8190  ;;  %7515 = vmatprep.subr.msk.bf16.mxu1 %vm10231_vm9, %v7513_v56  ;;  %v3711_v0 = vpop.permute.xlu0 %3710 }
 0xcb6   : > { %7080 = vmatprep.mubr.msk.f32.mxu1 %vm3309_vm11, %v10605_v46  ;;  %v3701_v11 = vpop.permute.xlu1 %3700  ;;  %v3464_v24 = vsel %vm3309_vm11, %v10605_v46, 0.0  ;;  %v8325_v46 = vld [vmem:[%s8732_s25 + $0x28] sm:$0xff] }
 0xcb9   : > { %v10611_v13 = vpop.eup %8192 }
 0xcba   : > { %12178 = vst [vmem:[#allocation69_spill] sm:$0xff] %v10611_v13  ;;  %7081 = vmatmul.mubr.msk.f32.gmra.mrb[6].mxu1 %vm3309_vm11, %v10611_v13  ;;  %v3705_v18 = vpop.permute.xlu1 %3704  ;;  %v10746_v13 = vld [vmem:[#allocation2 + $0x68] sm:$0xff] }
 0xcbb   : > { %7099 = vmatprep.mubr.msk.f32.mxu1 %vm3139_vm8, %v3697_v51  ;;  %12195 = vst [vmem:[#allocation86_spill] sm:$0xff] %v10746_v13 }
 0xcbc   : > { %7518 = vmatpush3.bf16.xpose.msk.msra.mxu1 %vm10231_vm9, %v7513_v56 }
 0xcbe   : > { %v3709_v4 = vpop.permute.xlu1 %3708 }
 0xcc1   : > { %v12226_v23 = vld [vmem:[#allocation69_spill] sm:$0xff] }
 0xcc3   : > { %7100 = vmatmul.mubr.msk.f32.vlgmr.msra.gmra.mrb[8].mxu1 %vm3139_vm8, %v3699_v58 }
 0xcc4   : > { %7102 = vmatprep.mubr.msk.f32.mxu1 %vm3139_vm8, %v3701_v11 }
 0xcc7   : > { %7103 = vmatmul.mubr.msk.f32.gmra.mrb[10].mxu1 %vm3139_vm8, %v3703_v29 }
 0xcc8   : > { %7105 = vmatprep.mubr.msk.f32.mxu1 %vm3139_vm8, %v3705_v18 }
 0xccb   : > { %7106 = vmatmul.mubr.msk.f32.gmra.mrb[12].mxu1 %vm3139_vm8, %v3707_v28 }
 0xccc   : > { %7108 = vmatprep.mubr.msk.f32.mxu1 %vm3139_vm8, %v3709_v4 }
 0xccf   : > { %7109 = vmatmul.mubr.msk.f32.gmra.mrb[14].mxu1 %vm3139_vm8, %v3711_v0 }
 0xd71   : > { %v10625_v19 = vpop.f32.mrb[0].mxu1 }
 0xd72   : > { %12179 = vst [vmem:[#allocation70_spill] sm:$0xff] %v10625_v19  ;;  %v10627_v8 = vpop.f32.mrb[1].mxu1 }
 0xd73   : > { %12180 = vst [vmem:[#allocation71_spill] sm:$0xff] %v10627_v8 }
 0xd7e   : > { %v10629_v1 = vpop.f32.mrb[2].mxu1 }
 0xd7f   : > { %12181 = vst [vmem:[#allocation72_spill] sm:$0xff] %v10629_v1  ;;  %v10631_v43 = vpop.f32.mrb[3].mxu1 }
 0xd80   : > { %12182 = vst [vmem:[#allocation73_spill] sm:$0xff] %v10631_v43 }
 0xd86   : > { %v10633_v27 = vpop.f32.mrb[4].mxu1 }
 0xd87   : > { %12183 = vst [vmem:[#allocation74_spill] sm:$0xff] %v10633_v27  ;;  %v10635_v56 = vpop.f32.mrb[5].mxu1 }
 0xd88   : > { %12184 = vst [vmem:[#allocation75_spill] sm:$0xff] %v10635_v56 }
 0xd8d   : > { %v10637_v51 = vpop.f32.mrb[6].mxu1 }
 0xd8e   : > { %12185 = vst [vmem:[#allocation76_spill] sm:$0xff] %v10637_v51  ;;  %v10639_v58 = vpop.f32.mrb[7].mxu1 }
 0xd8f   : > { %12186 = vst [vmem:[#allocation77_spill] sm:$0xff] %v10639_v58 }
 0xd96   : > { %v7101_v11 = vpop.f32.mrb[8].mxu1 }
 0xd97   : > { %v10644_v29 = vsel %vm3132_vm12, %v7101_v11, -1e+30  ;;  %v3826_v18 = vpop.f32.mrb[9].mxu1 }
 0xd98   : > { %v10649_v28 = vsel %vm3131_vm10, %v3826_v18, -1e+30  ;;  %v3885_v4 = vsel %vm3309_vm11, %v10644_v29, -inf }
 0xd99   : > { %3886 = vmax.xlane.f32.xlu0 %v3885_v4  ;;  %v3882_v0 = vsel %vm3309_vm11, %v10649_v28, -inf }
 0xd9a   : > { %3883 = vmax.xlane.f32.xlu1 %v3882_v0  ;;  %v7104_v51 = vpop.f32.mrb[10].mxu1 }
 0xd9b   : > { %v10658_v11 = vsel %vm3134_vm13, %v7104_v51, -1e+30  ;;  %v3836_v27 = vpop.f32.mrb[11].mxu1 }
 0xd9c   : > { %v10663_v18 = vsel %vm3133_vm14, %v3836_v27, -1e+30  ;;  %v3891_v1 = vsel %vm3309_vm11, %v10658_v11, -inf }
 0xd9d   : > { %v3888_v4 = vsel %vm3309_vm11, %v10663_v18, -inf }
 0xd9e   : > { %3892 = vmax.xlane.f32.xlu1 %v3891_v1  ;;  %3889 = vmax.xlane.f32.xlu0 %v3888_v4  ;;  %v7107_v0 = vpop.f32.mrb[12].mxu1 }
 0xd9f   : > { %v10672_v51 = vsel %vm3136_vm15, %v7107_v0, -1e+30  ;;  %v3846_v8 = vpop.f32.mrb[13].mxu1 }
 0xda0   : > { %v10677_v27 = vsel %vm3135_vm0, %v3846_v8, -1e+30  ;;  %v3897_v58 = vsel %vm3309_vm11, %v10672_v51, -inf }
 0xda1   : > { %v3894_v56 = vsel %vm3309_vm11, %v10677_v27, -inf }
 0xda2   : > { %3895 = vmax.xlane.f32.xlu0 %v3894_v56  ;;  %v7110_v1 = vpop.f32.mrb[14].mxu1  ;;  %3898 = vmax.xlane.f32.xlu1 %v3897_v58  ;;  %v10699_v56 = vpack.i.bf16 %v10413_v63, %v10410_v15  ;;  %v10705_v58 = vpack.i.bf16 %v10426_v21, %v10423_v52  ;;  %v10717_v15 = vld [vmem:[#allocation2 + $0x40] sm:$0xff] }
 0xda3   : > { %v10686_v4 = vsel %vm3138_vm1, %v7110_v1, -1e+30  ;;  %v3856_v0 = vpop.f32.mrb[15].mxu1  ;;  %v10711_v1 = vpack.i.bf16 %v10490_v42, %v10487_v10  ;;  %12188 = vst [vmem:[#allocation79_spill] sm:$0xff] %v10717_v15  ;;  %v10729_v10 = vld [vmem:[#allocation2 + $0x58] sm:$0xff]  ;;  %v10731_v42 = vld [vmem:[#allocation2 + $0x50] sm:$0xff] }
 0xda4   : > { %v10691_v8 = vsel %vm3137_vm2, %v3856_v0, -1e+30  ;;  %v3903_v43 = vsel %vm3309_vm11, %v10686_v4, -inf  ;;  %12191 = vst [vmem:[#allocation82_spill] sm:$0xff] %v10729_v10  ;;  %12192 = vst [vmem:[#allocation83_spill] sm:$0xff] %v10731_v42 }
 0xda5   : > { %v3900_v19 = vsel %vm3309_vm11, %v10691_v8, -inf }
 0xda6   : > { %3901 = vmax.xlane.f32.xlu0 %v3900_v19  ;;  %3904 = vmax.xlane.f32.xlu1 %v3903_v43  ;;  %v10715_v19 = vld [vmem:[#allocation2 + $0x48] sm:$0xff] }
 0xda7   : > { %12187 = vst [vmem:[#allocation78_spill] sm:$0xff] %v10715_v19 }
 0xdbc   : > { %8079 = vrot.lane.b32.xlu0 %v10699_v56, %s8532_s13 }
 0xdc0   : > { %8084 = vrot.lane.b32.xlu0 %v10705_v58, %s8532_s13 }
 0xdc4   : > { %8094 = vrot.lane.b32.xlu0 %v10711_v1, %s8532_s13 }
 0xe26   : > { %v3887_v63 = vpop.xlane.xlu0 %3886 }
 0xe27   : > { %v10720_v43 = vmax.f32 %v10715_v19, %v3887_v63  ;;  %v3884_v52 = vpop.xlane.xlu1 %3883  ;;  %v10744_v19 = vld [vmem:[#allocation2 + $0x60] sm:$0xff] }
 0xe28   : > { %v10723_v21 = vmax.f32 %v10717_v15, %v3884_v52  ;;  %12194 = vst [vmem:[#allocation85_spill] sm:$0xff] %v10744_v19 }
 0xe29   : > { %12189 = vst [vmem:[#allocation80_spill] sm:$0xff] %v10720_v43  ;;  %4326 = vst.msk [vmem:[#allocation2 + $0x48] sm:$0xff] %vm3478_vm3, %v10720_v43 }
 0xe2a   : > { %12190 = vst [vmem:[#allocation81_spill] sm:$0xff] %v10723_v21  ;;  %4325 = vst.msk [vmem:[#allocation2 + $0x40] sm:$0xff] %vm3478_vm3, %v10723_v21  ;;  %3940 = vperm.xlu1 %8057, %v10723_v21   ;;  %v10768_v21 = vld [vmem:[#allocation2 + $0x70] sm:$0xff] }
 0xe2b   : > { %v3893_v63 = vpop.xlane.xlu1 %3892  ;;  %v3890_v52 = vpop.xlane.xlu0 %3889  ;;  %12198 = vst [vmem:[#allocation89_spill] sm:$0xff] %v10768_v21 }
 0xe2c   : > { %v10739_v53 = vmax.f32 %v10729_v10, %v3893_v63  ;;  %v10742_v0 = vmax.f32 %v10731_v42, %v3890_v52  ;;  %v10760_v63 = vpack.i.bf16 %v10453_v57, %v10450_v31  ;;  %v10770_v42 = vld [vmem:[#allocation2 + $0x78] sm:$0xff] }
 0xe2d   : > { %12199 = vst [vmem:[#allocation90_spill] sm:$0xff] %v10770_v42 }
 0xe2e   : > { %12193 = vst [vmem:[#allocation84_spill] sm:$0xff] %v10739_v53  ;;  %4328 = vst.msk [vmem:[#allocation2 + $0x58] sm:$0xff] %vm3478_vm3, %v10739_v53  ;;  %3945 = vperm.xlu1 %8057, %v10720_v43   ;;  %3955 = vperm.xlu0 %8056, %v10739_v53  }
 0xe2f   : > { %4327 = vst.msk [vmem:[#allocation2 + $0x50] sm:$0xff] %vm3478_vm3, %v10742_v0  ;;  %v3896_v52 = vpop.xlane.xlu0 %3895  ;;  %v3899_v15 = vpop.xlane.xlu1 %3898 }
 0xe30   : > { %v10763_v22 = vmax.f32 %v10744_v19, %v3896_v52  ;;  %v10766_v10 = vmax.f32 %v10746_v13, %v3899_v15 }
 0xe32   : > { %12196 = vst [vmem:[#allocation87_spill] sm:$0xff] %v10763_v22  ;;  %12197 = vst [vmem:[#allocation88_spill] sm:$0xff] %v10766_v10  ;;  %8089 = vrot.lane.b32.xlu1 %v10760_v63, %s8532_s13  ;;  %3960 = vperm.xlu0 %8056, %v10763_v22  }
 0xe33   : > { %4329 = vst.msk [vmem:[#allocation2 + $0x60] sm:$0xff] %vm3478_vm3, %v10763_v22  ;;  %4330 = vst.msk [vmem:[#allocation2 + $0x68] sm:$0xff] %vm3478_vm3, %v10766_v10  ;;  %v3902_v57 = vpop.xlane.xlu0 %3901  ;;  %v3905_v15 = vpop.xlane.xlu1 %3904 }
 0xe34   : > { %v10784_v52 = vmax.f32 %v10768_v21, %v3902_v57  ;;  %v10787_v43 = vmax.f32 %v10770_v42, %v3905_v15 }
 0xe36   : > { %12200 = vst [vmem:[#allocation91_spill] sm:$0xff] %v10784_v52  ;;  %12201 = vst [vmem:[#allocation92_spill] sm:$0xff] %v10787_v43  ;;  %3950 = vperm.xlu1 %8057, %v10742_v0   ;;  %3970 = vperm.xlu0 %8056, %v10784_v52  }
 0xe37   : > { %4331 = vst.msk [vmem:[#allocation2 + $0x70] sm:$0xff] %vm3478_vm3, %v10784_v52  ;;  %4332 = vst.msk [vmem:[#allocation2 + $0x78] sm:$0xff] %vm3478_vm3, %v10787_v43  ;;  %v8080_v57 = vpop.permute.xlu0 %8079 }
 0xe38   : > { %v8082_v22 = vunpack.i.h.bf16 %v8080_v57  ;;  %v8081_v15 = vunpack.i.l.bf16 %v8080_v57 }
 0xe3a   : > { %8099 = vrot.lane.b32.xlu1 %v10459_v39, %s8533_s15  ;;  %8104 = vrot.lane.b32.xlu0 %v10441_v54, %s8533_s15  ;;  %v7519_v19 = vpack.c.bf16 %v8082_v22, %v8081_v15 }
 0xe3b   : > { %v8085_v21 = vpop.permute.xlu0 %8084 }
 0xe3c   : > { %v8087_v13 = vunpack.i.h.bf16 %v8085_v21  ;;  %v8086_v52 = vunpack.i.l.bf16 %v8085_v21  ;;  %7520 = vmatprep.subr.bf16.mxu0 %v7519_v19 }
 0xe3d   : > { %7522 = vmatpush3.bf16.msra.mxu0 %v7519_v19 }
 0xe3e   : > { %3965 = vperm.xlu1 %8057, %v10766_v10   ;;  %8114 = vrot.lane.b32.xlu0 %v10478_v62, %s8533_s15  ;;  %v7523_v31 = vpack.c.bf16 %v8087_v13, %v8086_v52 }
 0xe40   : > { %7524 = vmatprep.subr.bf16.mxu0 %v7523_v31 }
 0xe41   : > { %7526 = vmatpush3.bf16.msra.mxu0 %v7523_v31 }
 0xe42   : > { %3975 = vperm.xlu1 %8057, %v10787_v43   ;;  %4335 = vrot.lane.b32.xlu0 %v10278_v30, %s8533_s15  ;;  %v8095_v30 = vpop.permute.xlu0 %8094 }
 0xe43   : > { %v8097_v22 = vunpack.i.h.bf16 %v8095_v30  ;;  %v8096_v13 = vunpack.i.l.bf16 %v8095_v30 }
 0xe45   : > { %v7531_v15 = vpack.c.bf16 %v8097_v22, %v8096_v13 }
 0xe46   : > { %8109 = vrot.lane.b32.xlu1 %v10549_v37, %s8533_s15  ;;  %4339 = vrot.lane.b32.xlu0 %v10288_v33, %s8533_s15 }
 0xe4a   : > { %4333 = vrot.lane.b32.xlu1 %v10243_v55, %s8533_s15  ;;  %4343 = vrot.lane.b32.xlu0 %v10298_v50, %s8533_s15 }
 0xe4e   : > { %4337 = vrot.lane.b32.xlu1 %v10281_v40, %s8533_s15  ;;  %4347 = vrot.lane.b32.xlu0 %v10308_v61, %s8533_s15 }
 0xe52   : > { %4341 = vrot.lane.b32.xlu1 %v10291_v48, %s8533_s15 }
 0xe56   : > { %4345 = vrot.lane.b32.xlu1 %v10301_v9, %s8533_s15 }
 0xea9   : > { %v3941_v33 = vpop.permute.xlu1 %3940 }
 0xeaa   : > { %v3978_v54 = vsub.f32 %v10649_v28, %v3941_v33 }
 0xeac   : > { %v3986_v55 = vmul.f32 1.442695, %v3978_v54 }
 0xead   : > { %v3946_v39 = vpop.permute.xlu1 %3945  ;;  %v3956_v62 = vpop.permute.xlu0 %3955 }
 0xeae   : > { %8194 = vpow2.f32 %v3986_v55  ;;  %v3979_v50 = vsub.f32 %v10644_v29, %v3946_v39  ;;  %v3981_v9 = vsub.f32 %v10658_v11, %v3956_v62 }
 0xeb0   : > { %v3988_v40 = vmul.f32 1.442695, %v3979_v50  ;;  %v3992_v29 = vmul.f32 1.442695, %v3981_v9 }
 0xeb1   : > { %v8090_v37 = vpop.permute.xlu1 %8089  ;;  %v3961_v61 = vpop.permute.xlu0 %3960 }
 0xeb2   : > { %8196 = vpow2.f32 %v3988_v40  ;;  %v8092_v48 = vunpack.i.h.bf16 %v8090_v37  ;;  %v8091_v19 = vunpack.i.l.bf16 %v8090_v37  ;;  %v3982_v21 = vsub.f32 %v10677_v27, %v3961_v61 }
 0xeb4   : > { %v7527_v31 = vpack.c.bf16 %v8092_v48, %v8091_v19  ;;  %v3994_v54 = vmul.f32 1.442695, %v3982_v21 }
 0xeb5   : > { %v3951_v28 = vpop.permute.xlu1 %3950  ;;  %v3971_v57 = vpop.permute.xlu0 %3970 }
 0xeb6   : > { %v3980_v52 = vsub.f32 %v10663_v18, %v3951_v28  ;;  %7528 = vmatprep.subr.bf16.mxu0 %v7527_v31  ;;  %v3984_v18 = vsub.f32 %v10691_v8, %v3971_v57 }
 0xeb7   : > { %7530 = vmatpush3.bf16.msra.mxu0 %v7527_v31 }
 0xeb8   : > { %v10830_v33 = vpop.eup %8194  ;;  %v3990_v30 = vmul.f32 1.442695, %v3980_v52  ;;  %7532 = vmatprep.subr.bf16.mxu0 %v7531_v15  ;;  %v3998_v13 = vmul.f32 1.442695, %v3984_v18 }
 0xeb9   : > { %7127 = vmatprep.mubr.msk.f32.mxu0 %vm3309_vm11, %v10830_v33  ;;  %v8100_v11 = vpop.permute.xlu1 %8099  ;;  %v8105_v39 = vpop.permute.xlu0 %8104 }
 0xeba   : > { %8198 = vpow2.f32 %v3990_v30  ;;  %v8102_v27 = vunpack.i.h.bf16 %v8100_v11  ;;  %v8101_v55 = vunpack.i.l.bf16 %v8100_v11  ;;  %v8107_v22 = vunpack.i.h.bf16 %v8105_v39 }
 0xebb   : > { %8200 = vpow2.f32 %v3992_v29  ;;  %7534 = vmatpush3.bf16.msra.mxu0 %v7531_v15  ;;  %v8106_v37 = vunpack.i.l.bf16 %v8105_v39 }
 0xebc   : > { %v10835_v62 = vpop.eup %8196  ;;  %8202 = vpow2.f32 %v3994_v54  ;;  %v7535_v50 = vpack.c.bf16 %v8102_v27, %v8101_v55 }
 0xebd   : > { %v3966_v40 = vpop.permute.xlu1 %3965  ;;  %v7541_v8 = vpack.c.bf16 %v8107_v22, %v8106_v37  ;;  %v8115_v29 = vpop.permute.xlu0 %8114 }
 0xebe   : > { %v3983_v61 = vsub.f32 %v10672_v51, %v3966_v40  ;;  %7128 = vmatmul.mubr.msk.f32.vlgmr.msra.gmra.mrb[8].mxu0 %vm3309_vm11, %v10835_v62  ;;  %7537 = vmatprep.subr.msk.bf16.mxu0 %vm10231_vm9, %v7535_v50  ;;  %v8117_v11 = vunpack.i.h.bf16 %v8115_v29  ;;  %v8116_v27 = vunpack.i.l.bf16 %v8115_v29 }
 0xec0   : > { %v3996_v48 = vmul.f32 1.442695, %v3983_v61  ;;  %v7553_v18 = vpack.c.bf16 %v8117_v11, %v8116_v27 }
 0xec1   : > { %v3976_v19 = vpop.permute.xlu1 %3975 }
 0xec2   : > { %8204 = vpow2.f32 %v3996_v48  ;;  %v3985_v9 = vsub.f32 %v10686_v4, %v3976_v19 }
 0xec3   : > { %8206 = vpow2.f32 %v3998_v13 }
 0xec4   : > { %v10843_v21 = vpop.eup %8198  ;;  %v4000_v31 = vmul.f32 1.442695, %v3985_v9  ;;  %7540 = vmatpush3.bf16.xpose.msk.msra.mxu0 %vm10231_vm9, %v7535_v50  ;;  %v4336_v50 = vpop.permute.xlu0 %4335 }
 0xec5   : > { %v10847_v51 = vpop.eup %8200  ;;  %7130 = vmatprep.mubr.msk.f32.mxu0 %vm3309_vm11, %v10843_v21  ;;  %7543 = vmatprep.subr.msk.bf16.mxu0 %vm10231_vm9, %v7541_v8  ;;  %v8110_v28 = vpop.permute.xlu1 %8109 }
 0xec6   : > { %v10853_v52 = vpop.eup %8202  ;;  %8208 = vpow2.f32 %v4000_v31  ;;  %7131 = vmatmul.mubr.msk.f32.gmra.mrb[10].mxu0 %vm3309_vm11, %v10847_v51  ;;  %v8112_v4 = vunpack.i.h.bf16 %v8110_v28  ;;  %v8111_v57 = vunpack.i.l.bf16 %v8110_v28 }
 0xec7   : > { %7133 = vmatprep.mubr.msk.f32.mxu0 %vm3309_vm11, %v10853_v52 }
 0xec8   : > { %v7547_v15 = vpack.c.bf16 %v8112_v4, %v8111_v57  ;;  %v4340_v22 = vpop.permute.xlu0 %4339 }
 0xec9   : > { %v4334_v55 = vpop.permute.xlu1 %4333 }
 0xecc   : > { %v10859_v54 = vpop.eup %8204  ;;  %7546 = vmatpush3.bf16.xpose.msk.msra.mxu0 %vm10231_vm9, %v7541_v8  ;;  %v4344_v61 = vpop.permute.xlu0 %4343 }
 0xecd   : > { %v10863_v30 = vpop.eup %8206  ;;  %7134 = vmatmul.mubr.msk.f32.gmra.mrb[12].mxu0 %vm3309_vm11, %v10859_v54  ;;  %7549 = vmatprep.subr.msk.bf16.mxu0 %vm10231_vm9, %v7547_v15  ;;  %v4338_v40 = vpop.permute.xlu1 %4337 }
 0xece   : > { %7136 = vmatprep.mubr.msk.f32.mxu0 %vm3309_vm11, %v10863_v30 }
 0xed0   : > { %v10871_v39 = vpop.eup %8208  ;;  %v4348_v48 = vpop.permute.xlu0 %4347 }
 0xed1   : > { %7137 = vmatmul.mubr.msk.f32.gmra.mrb[14].mxu0 %vm3309_vm11, %v10871_v39  ;;  %v4342_v37 = vpop.permute.xlu1 %4341 }
 0xed2   : > { %7155 = vmatprep.mubr.msk.f32.mxu0 %vm3139_vm8, %v4334_v55 }
 0xed4   : > { %7552 = vmatpush3.bf16.xpose.msk.msra.mxu0 %vm10231_vm9, %v7547_v15 }
 0xed5   : > { %7555 = vmatprep.subr.msk.bf16.mxu0 %vm10231_vm9, %v7553_v18  ;;  %v4346_v13 = vpop.permute.xlu1 %4345 }
 0xedc   : > { %7558 = vmatpush3.bf16.xpose.msk.msra.mxu0 %vm10231_vm9, %v7553_v18 }
 0xee3   : > { %7156 = vmatmul.mubr.msk.f32.vlgmr.msra.gmra.mrb[16].mxu0 %vm3139_vm8, %v4336_v50 }
 0xee4   : > { %7158 = vmatprep.mubr.msk.f32.mxu0 %vm3139_vm8, %v4338_v40 }
 0xee7   : > { %7159 = vmatmul.mubr.msk.f32.gmra.mrb[18].mxu0 %vm3139_vm8, %v4340_v22 }
 0xee8   : > { %7161 = vmatprep.mubr.msk.f32.mxu0 %vm3139_vm8, %v4342_v37 }
 0xeeb   : > { %7162 = vmatmul.mubr.msk.f32.gmra.mrb[20].mxu0 %vm3139_vm8, %v4344_v61 }
 0xeec   : > { %7164 = vmatprep.mubr.msk.f32.mxu0 %vm3139_vm8, %v4346_v13 }
 0xeef   : > { %7165 = vmatmul.mubr.msk.f32.gmra.mrb[22].mxu0 %vm3139_vm8, %v4348_v48 }
 0xf91   : > { %v10889_v19 = vpop.f32.mrb[8].mxu0 }
 0xf92   : > { %v10891_v8 = vpop.f32.mrb[9].mxu0 }
 0xf99   : > { %v10893_v9 = vpop.f32.mrb[10].mxu0 }
 0xf9a   : > { %v10895_v31 = vpop.f32.mrb[11].mxu0 }
 0xfa0   : > { %v10897_v28 = vpop.f32.mrb[12].mxu0 }
 0xfa1   : > { %v10899_v4 = vpop.f32.mrb[13].mxu0 }
 0xfa2   : > { %12202 = vst [vmem:[#allocation93_spill] sm:$0xff] %v10899_v4  ;;  %v8307_v4 = vld [vmem:[%s8730_s5 + $0x8] sm:$0xff] }
 0xfa4   : > { %v10901_v57 = vpop.f32.mrb[14].mxu0 }
 0xfa5   : > { %v10903_v15 = vpop.f32.mrb[15].mxu0 }
 0xfa6   : > { %12203 = vst [vmem:[#allocation94_spill] sm:$0xff] %v10903_v15  ;;  %v10998_v15 = vld [vmem:[#allocation2 + $0xa8] sm:$0xff] }
 0xfa7   : > { %12213 = vst [vmem:[#allocation104_spill] sm:$0xff] %v10998_v15 }
 0xfb6   : > { %v7157_v29 = vpop.f32.mrb[16].mxu0 }
 0xfb7   : > { %v10908_v11 = vsel %vm3132_vm12, %v7157_v29, -1e+30  ;;  %v4463_v27 = vpop.f32.mrb[17].mxu0 }
 0xfb8   : > { %v10913_v55 = vsel %vm3131_vm10, %v4463_v27, -1e+30  ;;  %v4522_v18 = vsel %vm3309_vm11, %v10908_v11, -inf }
 0xfb9   : > { %4523 = vmax.xlane.f32.xlu0 %v4522_v18  ;;  %v4519_v50 = vsel %vm3309_vm11, %v10913_v55, -inf }
 0xfba   : > { %4520 = vmax.xlane.f32.xlu1 %v4519_v50  ;;  %v7160_v40 = vpop.f32.mrb[18].mxu0 }
 0xfbb   : > { %v10922_v22 = vsel %vm3134_vm13, %v7160_v40, -1e+30  ;;  %v4473_v37 = vpop.f32.mrb[19].mxu0 }
 0xfbc   : > { %v10927_v61 = vsel %vm3133_vm14, %v4473_v37, -1e+30  ;;  %v4528_v13 = vsel %vm3309_vm11, %v10922_v22, -inf }
 0xfbd   : > { %v4525_v48 = vsel %vm3309_vm11, %v10927_v61, -inf }
 0xfbe   : > { %4529 = vmax.xlane.f32.xlu1 %v4528_v13  ;;  %4526 = vmax.xlane.f32.xlu0 %v4525_v48  ;;  %v7163_v29 = vpop.f32.mrb[20].mxu0 }
 0xfbf   : > { %v10936_v27 = vsel %vm3136_vm15, %v7163_v29, -1e+30  ;;  %v4483_v18 = vpop.f32.mrb[21].mxu0 }
 0xfc0   : > { %v10941_v50 = vsel %vm3135_vm0, %v4483_v18, -1e+30  ;;  %v4534_v40 = vsel %vm3309_vm11, %v10936_v27, -inf }
 0xfc1   : > { %v4531_v37 = vsel %vm3309_vm11, %v10941_v50, -inf }
 0xfc2   : > { %4532 = vmax.xlane.f32.xlu0 %v4531_v37  ;;  %v7166_v13 = vpop.f32.mrb[22].mxu0  ;;  %4535 = vmax.xlane.f32.xlu1 %v4534_v40  ;;  %v10967_v40 = vld [vmem:[#allocation2 + $0x88] sm:$0xff]  ;;  %v10969_v37 = vld [vmem:[#allocation2 + $0x80] sm:$0xff] }
 0xfc3   : > { %v10950_v48 = vsel %vm3138_vm1, %v7166_v13, -1e+30  ;;  %v4493_v29 = vpop.f32.mrb[23].mxu0  ;;  %12204 = vst [vmem:[#allocation95_spill] sm:$0xff] %v10967_v40  ;;  %12205 = vst [vmem:[#allocation96_spill] sm:$0xff] %v10969_v37 }
 0xfc4   : > { %v10955_v18 = vsel %vm3137_vm2, %v4493_v29, -1e+30  ;;  %v4540_v43 = vsel %vm3309_vm11, %v10950_v48, -inf }
 0xfc5   : > { %v4537_v42 = vsel %vm3309_vm11, %v10955_v18, -inf }
 0xfc6   : > { %4538 = vmax.xlane.f32.xlu0 %v4537_v42  ;;  %4541 = vmax.xlane.f32.xlu1 %v4540_v43 }
 0xfdc   : > { %8119 = vrot.lane.b32.xlu0 %v10699_v56, %s8533_s15 }
 0xfe0   : > { %8124 = vrot.lane.b32.xlu0 %v10705_v58, %s8533_s15  ;;  %v10981_v58 = vld [vmem:[#allocation2 + $0x98] sm:$0xff] }
 0xfe1   : > { %12208 = vst [vmem:[#allocation99_spill] sm:$0xff] %v10981_v58 }
 0xfe4   : > { %8134 = vrot.lane.b32.xlu0 %v10711_v1, %s8533_s15  ;;  %v10983_v1 = vld [vmem:[#allocation2 + $0x90] sm:$0xff] }
 0xfe5   : > { %12209 = vst [vmem:[#allocation100_spill] sm:$0xff] %v10983_v1 }
0x1046   : > { %v4524_v13 = vpop.xlane.xlu0 %4523 }
0x1047   : > { %v10972_v29 = vmax.f32 %v10967_v40, %v4524_v13  ;;  %v4521_v10 = vpop.xlane.xlu1 %4520  ;;  %v10996_v40 = vld [vmem:[#allocation2 + $0xa0] sm:$0xff] }
0x1048   : > { %v10975_v43 = vmax.f32 %v10969_v37, %v4521_v10  ;;  %12212 = vst [vmem:[#allocation103_spill] sm:$0xff] %v10996_v40 }
0x1049   : > { %12206 = vst [vmem:[#allocation97_spill] sm:$0xff] %v10972_v29  ;;  %4955 = vst.msk [vmem:[#allocation2 + $0x88] sm:$0xff] %vm3478_vm3, %v10972_v29 }
0x104a   : > { %12207 = vst [vmem:[#allocation98_spill] sm:$0xff] %v10975_v43  ;;  %4954 = vst.msk [vmem:[#allocation2 + $0x80] sm:$0xff] %vm3478_vm3, %v10975_v43  ;;  %4577 = vperm.xlu1 %8057, %v10975_v43   ;;  %v11018_v43 = vld [vmem:[#allocation2 + $0xb8] sm:$0xff] }
0x104b   : > { %v4530_v10 = vpop.xlane.xlu1 %4529  ;;  %v4527_v13 = vpop.xlane.xlu0 %4526  ;;  %12216 = vst [vmem:[#allocation107_spill] sm:$0xff] %v11018_v43 }
0x104c   : > { %v10991_v53 = vmax.f32 %v10981_v58, %v4530_v10  ;;  %v10994_v56 = vmax.f32 %v10983_v1, %v4527_v13  ;;  %v11016_v58 = vld [vmem:[#allocation2 + $0xb0] sm:$0xff] }
0x104d   : > { %12215 = vst [vmem:[#allocation106_spill] sm:$0xff] %v11016_v58 }
0x104e   : > { %12210 = vst [vmem:[#allocation101_spill] sm:$0xff] %v10991_v53  ;;  %12211 = vst [vmem:[#allocation102_spill] sm:$0xff] %v10994_v56  ;;  %4582 = vperm.xlu1 %8057, %v10972_v29   ;;  %4592 = vperm.xlu0 %8056, %v10991_v53  }
0x104f   : > { %4957 = vst.msk [vmem:[#allocation2 + $0x98] sm:$0xff] %vm3478_vm3, %v10991_v53  ;;  %4956 = vst.msk [vmem:[#allocation2 + $0x90] sm:$0xff] %vm3478_vm3, %v10994_v56  ;;  %v4533_v10 = vpop.xlane.xlu0 %4532  ;;  %v4536_v13 = vpop.xlane.xlu1 %4535  ;;  %v8306_v53 = vld [vmem:[%s8730_s5] sm:$0xff] }
0x1050   : > { %v11011_v37 = vmax.f32 %v10996_v40, %v4533_v10  ;;  %v11014_v42 = vmax.f32 %v10998_v15, %v4536_v13  ;;  %v8309_v10 = vld [vmem:[%s8730_s5 + $0x18] sm:$0xff] }
0x1052   : > { %12214 = vst [vmem:[#allocation105_spill] sm:$0xff] %v11011_v37  ;;  %4958 = vst.msk [vmem:[#allocation2 + $0xa0] sm:$0xff] %vm3478_vm3, %v11011_v37  ;;  %8129 = vrot.lane.b32.xlu1 %v10760_v63, %s8533_s15  ;;  %4597 = vperm.xlu0 %8056, %v11011_v37   ;;  %v8138_v63 = vpack.i.bf16 %v8307_v4, %v8306_v53 }
0x1053   : > { %4959 = vst.msk [vmem:[#allocation2 + $0xa8] sm:$0xff] %vm3478_vm3, %v11014_v42  ;;  %v4539_v13 = vpop.xlane.xlu0 %4538  ;;  %v4542_v29 = vpop.xlane.xlu1 %4541 }
0x1054   : > { %v11032_v1 = vmax.f32 %v11016_v58, %v4539_v13  ;;  %v11035_v40 = vmax.f32 %v11018_v43, %v4542_v29  ;;  %v8308_v13 = vld [vmem:[%s8730_s5 + $0x10] sm:$0xff] }
0x1055   : > { %v8143_v15 = vpack.i.bf16 %v8309_v10, %v8308_v13  ;;  %v8310_v58 = vld [vmem:[%s8730_s5 + $0x30] sm:$0xff] }
0x1056   : > { %12217 = vst [vmem:[#allocation108_spill] sm:$0xff] %v11032_v1  ;;  %4960 = vst.msk [vmem:[#allocation2 + $0xb0] sm:$0xff] %vm3478_vm3, %v11032_v1  ;;  %4587 = vperm.xlu1 %8057, %v10994_v56   ;;  %4607 = vperm.xlu0 %8056, %v11032_v1   ;;  %v8311_v1 = vld [vmem:[%s8730_s5 + $0x38] sm:$0xff] }
0x1057   : > { %4961 = vst.msk [vmem:[#allocation2 + $0xb8] sm:$0xff] %vm3478_vm3, %v11035_v40  ;;  %v8120_v53 = vpop.permute.xlu0 %8119  ;;  %v8153_v56 = vpack.i.bf16 %v8311_v1, %v8310_v58  ;;  %v8313_v58 = vld [vmem:[%s8730_s5 + $0x20] sm:$0xff]  ;;  %v8314_v1 = vld [vmem:[%s8730_s5 + $0x28] sm:$0xff] }
0x1058   : > { %v8122_v4 = vunpack.i.h.bf16 %v8120_v53  ;;  %v8121_v37 = vunpack.i.l.bf16 %v8120_v53  ;;  %v8315_v53 = vld [vmem:[%s8728_s12 + $0x18] sm:$0xff] }
0x105a   : > { %8139 = vrot.lane.b32.xlu1 %v8138_v63, %s8534_s16  ;;  %8144 = vrot.lane.b32.xlu0 %v8143_v15, %s8534_s16  ;;  %v7559_v10 = vpack.c.bf16 %v8122_v4, %v8121_v37  ;;  %v8312_v37 = vld [vmem:[%s8728_s12 + $0x8] sm:$0xff]  ;;  %v8148_v63 = vpack.i.bf16 %v8314_v1, %v8313_v58  ;;  %v8319_v4 = vld [vmem:[%s8728_s12 + $0x38] sm:$0xff]  ;;  %v3446_v58 = vsel %vm3309_vm11, %v10566_v12, 0.0  ;;  %v3449_v1 = vsel %vm3309_vm11, %v10571_v45, 0.0 }
0x105b   : > { %v8125_v13 = vpop.permute.xlu0 %8124 }
0x105c   : > { %v8127_v29 = vunpack.i.h.bf16 %v8125_v13  ;;  %v8126_v43 = vunpack.i.l.bf16 %v8125_v13  ;;  %7560 = vmatprep.subr.bf16.mxu1 %v7559_v10  ;;  %v8321_v13 = vld [vmem:[%s8728_s12 + $0x30] sm:$0xff] }
0x105d   : > { %7562 = vmatpush3.bf16.msra.mxu1 %v7559_v10  ;;  %v8320_v10 = vld [vmem:[%s8728_s12 + $0x20] sm:$0xff] }
0x105e   : > { %4602 = vperm.xlu1 %8057, %v11014_v42   ;;  %8154 = vrot.lane.b32.xlu0 %v8153_v56, %s8534_s16  ;;  %v7563_v15 = vpack.c.bf16 %v8127_v29, %v8126_v43  ;;  %v8316_v43 = vld [vmem:[%s8728_s12] sm:$0xff]  ;;  %v8317_v56 = vld [vmem:[%s8728_s12 + $0x28] sm:$0xff]  ;;  %v8318_v29 = vld [vmem:[%s8728_s12 + $0x10] sm:$0xff] }
0x1060   : > { %7564 = vmatprep.subr.bf16.mxu1 %v7563_v15 }
0x1061   : > { %7566 = vmatpush3.bf16.msra.mxu1 %v7563_v15  ;;  %v3452_v15 = vsel %vm3309_vm11, %v10584_v49, 0.0 }
0x1062   : > { %4612 = vperm.xlu1 %8057, %v11035_v40   ;;  %4964 = vrot.lane.b32.xlu0 %v8312_v37, %s8534_s16  ;;  %v3458_v37 = vsel %vm3309_vm11, %v10593_v60, 0.0 }
0x1066   : > { %8149 = vrot.lane.b32.xlu1 %v8148_v63, %s8534_s16  ;;  %4968 = vrot.lane.b32.xlu0 %v8315_v53, %s8534_s16  ;;  %v3455_v63 = vsel %vm3309_vm11, %v10586_v6, 0.0  ;;  %v8135_v53 = vpop.permute.xlu0 %8134 }
0x1067   : > { %v8136_v45 = vunpack.i.l.bf16 %v8135_v53 }
0x106a   : > { %4962 = vrot.lane.b32.xlu1 %v8316_v43, %s8534_s16  ;;  %4972 = vrot.lane.b32.xlu0 %v8317_v56, %s8534_s16 }
0x106e   : > { %4966 = vrot.lane.b32.xlu1 %v8318_v29, %s8534_s16  ;;  %4976 = vrot.lane.b32.xlu0 %v8319_v4, %s8534_s16 }
0x1072   : > { %4970 = vrot.lane.b32.xlu1 %v8320_v10, %s8534_s16  ;;  %v8137_v10 = vunpack.i.h.bf16 %v8135_v53 }
0x1076   : > { %4974 = vrot.lane.b32.xlu1 %v8321_v13, %s8534_s16 }
0x108d   : > { %3453 = vadd.xlane.f32.xlu0 %v3452_v15 }
0x1091   : > { %3459 = vadd.xlane.f32.xlu0 %v3458_v37 }
0x109a   : > { %3447 = vadd.xlane.f32.xlu1 %v3446_v58 }
0x109e   : > { %3450 = vadd.xlane.f32.xlu1 %v3449_v1 }
0x10a2   : > { %3456 = vadd.xlane.f32.xlu1 %v3455_v63 }
0x10c9   : > { %v4578_v43 = vpop.permute.xlu1 %4577 }
0x10ca   : > { %v4615_v49 = vsub.f32 %v10913_v55, %v4578_v43 }
0x10cc   : > { %v4623_v56 = vmul.f32 1.442695, %v4615_v49 }
0x10cd   : > { %v4583_v29 = vpop.permute.xlu1 %4582  ;;  %v4593_v60 = vpop.permute.xlu0 %4592 }
0x10ce   : > { %8210 = vpow2.f32 %v4623_v56  ;;  %v4616_v4 = vsub.f32 %v10908_v11, %v4583_v29  ;;  %v4618_v6 = vsub.f32 %v10922_v22, %v4593_v60  ;;  %v7571_v56 = vpack.c.bf16 %v8137_v10, %v8136_v45 }
0x10d0   : > { %v4625_v12 = vmul.f32 1.442695, %v4616_v4  ;;  %v4629_v11 = vmul.f32 1.442695, %v4618_v6 }
0x10d1   : > { %v8130_v13 = vpop.permute.xlu1 %8129  ;;  %v4598_v15 = vpop.permute.xlu0 %4597 }
0x10d2   : > { %8212 = vpow2.f32 %v4625_v12  ;;  %v8132_v37 = vunpack.i.h.bf16 %v8130_v13  ;;  %v8131_v58 = vunpack.i.l.bf16 %v8130_v13  ;;  %v4619_v1 = vsub.f32 %v10941_v50, %v4598_v15 }
0x10d4   : > { %v7567_v63 = vpack.c.bf16 %v8132_v37, %v8131_v58  ;;  %v4631_v4 = vmul.f32 1.442695, %v4619_v1 }
0x10d5   : > { %v4588_v55 = vpop.permute.xlu1 %4587  ;;  %v4608_v49 = vpop.permute.xlu0 %4607 }
0x10d6   : > { %v4617_v43 = vsub.f32 %v10927_v61, %v4588_v55  ;;  %7568 = vmatprep.subr.bf16.mxu1 %v7567_v63  ;;  %v4621_v61 = vsub.f32 %v10955_v18, %v4608_v49 }
0x10d7   : > { %7570 = vmatpush3.bf16.msra.mxu1 %v7567_v63 }
0x10d8   : > { %v11092_v29 = vpop.eup %8210  ;;  %v4627_v53 = vmul.f32 1.442695, %v4617_v43  ;;  %7572 = vmatprep.subr.bf16.mxu1 %v7571_v56  ;;  %v4635_v6 = vmul.f32 1.442695, %v4621_v61 }
0x10d9   : > { %7183 = vmatprep.mubr.msk.f32.mxu1 %vm3309_vm11, %v11092_v29  ;;  %v8140_v22 = vpop.permute.xlu1 %8139  ;;  %v8145_v12 = vpop.permute.xlu0 %8144 }
0x10da   : > { %8214 = vpow2.f32 %v4627_v53  ;;  %v8142_v50 = vunpack.i.h.bf16 %v8140_v22  ;;  %v8141_v60 = vunpack.i.l.bf16 %v8140_v22  ;;  %v8147_v45 = vunpack.i.h.bf16 %v8145_v12 }
0x10db   : > { %8216 = vpow2.f32 %v4629_v11  ;;  %7574 = vmatpush3.bf16.msra.mxu1 %v7571_v56  ;;  %v8146_v37 = vunpack.i.l.bf16 %v8145_v12 }
0x10dc   : > { %v11097_v10 = vpop.eup %8212  ;;  %8218 = vpow2.f32 %v4631_v4  ;;  %v7575_v13 = vpack.c.bf16 %v8142_v50, %v8141_v60 }
0x10dd   : > { %v4603_v15 = vpop.permute.xlu1 %4602  ;;  %v7581_v18 = vpack.c.bf16 %v8147_v45, %v8146_v37  ;;  %v8155_v22 = vpop.permute.xlu0 %8154 }
0x10de   : > { %v4620_v58 = vsub.f32 %v10936_v27, %v4603_v15  ;;  %7184 = vmatmul.mubr.msk.f32.vlgmr.msra.gmra.mrb[16].mxu1 %vm3309_vm11, %v11097_v10  ;;  %7577 = vmatprep.subr.msk.bf16.mxu1 %vm10231_vm9, %v7575_v13  ;;  %v8157_v12 = vunpack.i.h.bf16 %v8155_v22  ;;  %v8156_v61 = vunpack.i.l.bf16 %v8155_v22  ;;  %v12221_v22 = vsub.f32 %v10428_v17, %v10444_v20  ;;  %v3430_v20 = vld [vmem:[#allocation3] sm:$0xff] }
0x10e0   : > { %v4633_v1 = vmul.f32 1.442695, %v4620_v58  ;;  %v7593_v45 = vpack.c.bf16 %v8157_v12, %v8156_v61  ;;  %v3352_v12 = vmul.f32 1.442695, %v12221_v22 }
0x10e1   : > { %v4613_v63 = vpop.permute.xlu1 %4612  ;;  %v4965_v37 = vpop.permute.xlu0 %4964 }
0x10e2   : > { %8220 = vpow2.f32 %v4633_v1  ;;  %v4622_v55 = vsub.f32 %v10950_v48, %v4613_v63 }
0x10e3   : > { %8222 = vpow2.f32 %v4635_v6 }
0x10e4   : > { %v11105_v43 = vpop.eup %8214  ;;  %v4637_v49 = vmul.f32 1.442695, %v4622_v55  ;;  %7580 = vmatpush3.bf16.xpose.msk.msra.mxu1 %vm10231_vm9, %v7575_v13 }
0x10e5   : > { %v11109_v27 = vpop.eup %8216  ;;  %7186 = vmatprep.mubr.msk.f32.mxu1 %vm3309_vm11, %v11105_v43  ;;  %7583 = vmatprep.subr.msk.bf16.mxu1 %vm10231_vm9, %v7581_v18  ;;  %v8150_v56 = vpop.permute.xlu1 %8149 }
0x10e6   : > { %v11115_v11 = vpop.eup %8218  ;;  %8224 = vpow2.f32 %v4637_v49  ;;  %7187 = vmatmul.mubr.msk.f32.gmra.mrb[18].mxu1 %vm3309_vm11, %v11109_v27  ;;  %v8152_v48 = vunpack.i.h.bf16 %v8150_v56  ;;  %v8151_v4 = vunpack.i.l.bf16 %v8150_v56  ;;  %v4969_v6 = vpop.permute.xlu0 %4968  ;;  %v3358_v56 = vmul.f32 1.442695, %v12219_v47 }
0x10e7   : > { %7189 = vmatprep.mubr.msk.f32.mxu1 %vm3309_vm11, %v11115_v11 }
0x10e8   : > { %v7587_v53 = vpack.c.bf16 %v8152_v48, %v8151_v4 }
0x10e9   : > { %v4963_v13 = vpop.permute.xlu1 %4962 }
0x10ea   : > { %v4973_v63 = vpop.permute.xlu0 %4972 }
0x10ec   : > { %v11121_v50 = vpop.eup %8220  ;;  %7586 = vmatpush3.bf16.xpose.msk.msra.mxu1 %vm10231_vm9, %v7581_v18  ;;  %v12218_v18 = vsub.f32 %v10430_v14, %v10447_v32  ;;  %v12220_v14 = vsub.f32 %v10417_v16, %v10420_v5  ;;  %v12222_v16 = vsub.f32 %v10455_v25, %v10481_v35 }
0x10ed   : > { %v11125_v60 = vpop.eup %8222  ;;  %7190 = vmatmul.mubr.msk.f32.gmra.mrb[20].mxu1 %vm3309_vm11, %v11121_v50  ;;  %7589 = vmatprep.subr.msk.bf16.mxu1 %vm10231_vm9, %v7587_v53  ;;  %v4967_v58 = vpop.permute.xlu1 %4966 }
0x10ee   : > { %7192 = vmatprep.mubr.msk.f32.mxu1 %vm3309_vm11, %v11125_v60  ;;  %v3354_v55 = vmul.f32 1.442695, %v12218_v18  ;;  %v4977_v48 = vpop.permute.xlu0 %4976  ;;  %v3350_v32 = vmul.f32 1.442695, %v12220_v14  ;;  %v3356_v5 = vmul.f32 1.442695, %v12222_v16 }
0x10f0   : > { %v11133_v15 = vpop.eup %8224  ;;  %8226 = vpow2.f32 %v3354_v55  ;;  %v3431_v55 = vld [vmem:[#allocation3 + $0x8] sm:$0xff] }
0x10f1   : > { %7193 = vmatmul.mubr.msk.f32.gmra.mrb[22].mxu1 %vm3309_vm11, %v11133_v15  ;;  %v4971_v1 = vpop.permute.xlu1 %4970  ;;  %8228 = vpow2.f32 %v3358_v56  ;;  %v3433_v56 = vld [vmem:[#allocation3 + $0x18] sm:$0xff] }
0x10f2   : > { %7211 = vmatprep.mubr.msk.f32.mxu1 %vm3139_vm8, %v4963_v13  ;;  %8230 = vpow2.f32 %v3350_v32  ;;  %v3434_v13 = vld [vmem:[#allocation3 + $0x20] sm:$0xff] }
0x10f3   : > { %8232 = vpow2.f32 %v3352_v12 }
0x10f4   : > { %7592 = vmatpush3.bf16.xpose.msk.msra.mxu1 %vm10231_vm9, %v7587_v53  ;;  %v3432_v53 = vld [vmem:[#allocation3 + $0x10] sm:$0xff]  ;;  %8234 = vpow2.f32 %v3356_v5 }
0x10f5   : > { %7595 = vmatprep.subr.msk.bf16.mxu1 %vm10231_vm9, %v7593_v45  ;;  %v4975_v49 = vpop.permute.xlu1 %4974 }
0x10fa   : > { %v11160_v4 = vpop.eup %8226 }
0x10fb   : > { %v3440_v38 = vmul.f32 %v11160_v4, %v3432_v53  ;;  %v11166_v26 = vpop.eup %8228 }
0x10fc   : > { %7598 = vmatpush3.bf16.xpose.msk.msra.mxu1 %vm10231_vm9, %v7593_v45  ;;  %v11174_v17 = vpop.eup %8230 }
0x1103   : > { %7212 = vmatmul.mubr.msk.f32.vlgmr.msra.gmra.mrb[24].mxu1 %vm3139_vm8, %v4965_v37  ;;  %v3442_v37 = vmul.f32 %v11166_v26, %v3434_v13 }
0x1104   : > { %7214 = vmatprep.mubr.msk.f32.mxu1 %vm3139_vm8, %v4967_v58 }
0x1107   : > { %7215 = vmatmul.mubr.msk.f32.gmra.mrb[26].mxu1 %vm3139_vm8, %v4969_v6 }
0x1108   : > { %7217 = vmatprep.mubr.msk.f32.mxu1 %vm3139_vm8, %v4971_v1  ;;  %v3438_v1 = vmul.f32 %v11174_v17, %v3430_v20 }
0x110b   : > { %7218 = vmatmul.mubr.msk.f32.gmra.mrb[28].mxu1 %vm3139_vm8, %v4973_v63  ;;  %v8233_v63 = vpop.eup %8232 }
0x110c   : > { %7220 = vmatprep.mubr.msk.f32.mxu1 %vm3139_vm8, %v4975_v49  ;;  %v3439_v25 = vmul.f32 %v8233_v63, %v3431_v55  ;;  %v11178_v35 = vpop.eup %8234 }
0x110d   : > { %v3441_v14 = vmul.f32 %v11178_v35, %v3433_v56 }
0x110f   : > { %7221 = vmatmul.mubr.msk.f32.gmra.mrb[30].mxu1 %vm3139_vm8, %v4977_v48 }
0x111a   : > { %v3454_v61 = vpop.xlane.xlu0 %3453 }
0x111b   : > { %v3472_v45 = vadd.f32 %v3454_v61, %v3440_v38 }
0x111d   : > { %3481 = vst.msk [vmem:[#allocation3 + $0x10] sm:$0xff] %vm3478_vm3, %v3472_v45 }
0x111e   : > { %v3460_v58 = vpop.xlane.xlu0 %3459 }
0x111f   : > { %v3474_v6 = vadd.f32 %v3460_v58, %v3442_v37 }
0x1121   : > { %3483 = vst.msk [vmem:[#allocation3 + $0x20] sm:$0xff] %vm3478_vm3, %v3474_v6 }
0x1127   : > { %v3448_v18 = vpop.xlane.xlu1 %3447 }
0x1128   : > { %v3470_v49 = vadd.f32 %v3448_v18, %v3438_v1 }
0x112a   : > { %3479 = vst.msk [vmem:[#allocation3] sm:$0xff] %vm3478_vm3, %v3470_v49 }
0x112b   : > { %v3451_v47 = vpop.xlane.xlu1 %3450 }
0x112c   : > { %v3471_v48 = vadd.f32 %v3451_v47, %v3439_v25 }
0x112e   : > { %3480 = vst.msk [vmem:[#allocation3 + $0x8] sm:$0xff] %vm3478_vm3, %v3471_v48 }
0x112f   : > { %v3457_v32 = vpop.xlane.xlu1 %3456 }
0x1130   : > { %v3473_v53 = vadd.f32 %v3457_v32, %v3441_v14 }
0x1132   : > { %3482 = vst.msk [vmem:[#allocation3 + $0x18] sm:$0xff] %vm3478_vm3, %v3473_v53 }
0x11b1   : > { %v11183_v22 = vpop.f32.mrb[16].mxu1 }
0x11b2   : > { %v11185_v12 = vpop.f32.mrb[17].mxu1 }
0x11b9   : > { %v11187_v38 = vpop.f32.mrb[18].mxu1 }
0x11ba   : > { %v11189_v61 = vpop.f32.mrb[19].mxu1 }
0x11bb   : > { %12223 = vst [vmem:[#allocation109_spill] sm:$0xff] %v11189_v61 }
0x11c0   : > { %v11191_v13 = vpop.f32.mrb[20].mxu1 }
0x11c1   : > { %v11193_v45 = vpop.f32.mrb[21].mxu1 }
0x11c2   : > { %12224 = vst [vmem:[#allocation110_spill] sm:$0xff] %v11193_v45 }
0x11c4   : > { %v11195_v16 = vpop.f32.mrb[22].mxu1 }
0x11c5   : > { %v11197_v5 = vpop.f32.mrb[23].mxu1 }
0x11c6   : > { %12225 = vst [vmem:[#allocation111_spill] sm:$0xff] %v11197_v5  ;;  %v3436_v5 = vld [vmem:[#allocation3 + $0x30] sm:$0xff] }
0x11d6   : > { %v7213_v37 = vpop.f32.mrb[24].mxu1 }
0x11d7   : > { %v11202_v58 = vsel %vm3132_vm12, %v7213_v37, -1e+30  ;;  %v5092_v6 = vpop.f32.mrb[25].mxu1 }
0x11d8   : > { %v5151_v20 = vsel %vm3309_vm11, %v11202_v58, -inf  ;;  %v11209_v1 = vsel %vm3131_vm10, %v5092_v6, -1e+30 }
0x11d9   : > { %5152 = vmax.xlane.f32.xlu0 %v5151_v20  ;;  %v5148_v25 = vsel %vm3309_vm11, %v11209_v1, -inf }
0x11da   : > { %v7216_v18 = vpop.f32.mrb[26].mxu1 }
0x11db   : > { %v11214_v55 = vsel %vm3134_vm13, %v7216_v18, -1e+30  ;;  %v5102_v49 = vpop.f32.mrb[27].mxu1  ;;  %v3467_v18 = vsel %vm3309_vm11, %v12226_v23, 0.0 }
0x11dc   : > { %v11219_v44 = vsel %vm3133_vm14, %v5102_v49, -1e+30  ;;  %v5157_v3 = vsel %vm3309_vm11, %v11214_v55, -inf  ;;  %v12227_v49 = vld [vmem:[#allocation64_spill] sm:$0xff] }
0x11dd   : > { %v5154_v36 = vsel %vm3309_vm11, %v11219_v44, -inf  ;;  %5149 = vmax.xlane.f32.xlu0 %v5148_v25  ;;  %v12228_v25 = vld [vmem:[#allocation66_spill] sm:$0xff] }
0x11de   : > { %5155 = vmax.xlane.f32.xlu1 %v5154_v36  ;;  %v7219_v47 = vpop.f32.mrb[28].mxu1  ;;  %v12229_v36 = vsub.f32 %v12227_v49, %v12228_v25  ;;  %v12234_v49 = vld [vmem:[#allocation68_spill] sm:$0xff] }
0x11df   : > { %v11230_v56 = vsel %vm3136_vm15, %v7219_v47, -1e+30  ;;  %v5112_v7 = vpop.f32.mrb[29].mxu1 }
0x11e0   : > { %v11235_v48 = vsel %vm3135_vm0, %v5112_v7, -1e+30  ;;  %v5163_v53 = vsel %vm3309_vm11, %v11230_v56, -inf  ;;  %v3362_v47 = vmul.f32 1.442695, %v12229_v36  ;;  %v8323_v7 = vld [vmem:[%s8732_s25 + $0x8] sm:$0xff] }
0x11e1   : > { %v5160_v14 = vsel %vm3309_vm11, %v11235_v48, -inf  ;;  %5158 = vmax.xlane.f32.xlu0 %v5157_v3  ;;  %v8322_v3 = vld [vmem:[%s8732_s25] sm:$0xff] }
0x11e2   : > { %5161 = vmax.xlane.f32.xlu1 %v5160_v14  ;;  %v7222_v32 = vpop.f32.mrb[30].mxu1  ;;  %v8158_v14 = vpack.i.bf16 %v8323_v7, %v8322_v3  ;;  %8236 = vpow2.f32 %v3362_v47 }
0x11e3   : > { %v11244_v59 = vsel %vm3138_vm1, %v7222_v32, -1e+30  ;;  %v5122_v37 = vpop.f32.mrb[31].mxu1  ;;  %v8168_v32 = vpack.i.bf16 %v8325_v46, %v8324_v41  ;;  %v11307_v41 = vld [vmem:[#allocation2 + $0xd8] sm:$0xff] }
0x11e4   : > { %v11249_v34 = vsel %vm3137_vm2, %v5122_v37, -1e+30  ;;  %v5169_v20 = vsel %vm3309_vm11, %v11244_v59, -inf  ;;  %v4025_v37 = vsel %vm3309_vm11, %v10843_v21, 0.0  ;;  %v12233_v21 = vld [vmem:[#allocation67_spill] sm:$0xff] }
0x11e5   : > { %v5166_v6 = vsel %vm3309_vm11, %v11249_v34, -inf  ;;  %5164 = vmax.xlane.f32.xlu0 %v5163_v53  ;;  %v12235_v25 = vsub.f32 %v12233_v21, %v12234_v49  ;;  %v11334_v21 = vld [vmem:[#allocation2 + $0xf0] sm:$0xff] }
0x11e6   : > { %5167 = vmax.xlane.f32.xlu1 %v5166_v6  ;;  %v12231_v6 = vld [vmem:[#allocation65_spill] sm:$0xff] }
0x11e7   : > { %v3364_v36 = vmul.f32 1.442695, %v12235_v25  ;;  %12240 = vst [vmem:[#allocation65_spill] sm:$0xff] %v11334_v21  ;;  %v8326_v49 = vld [vmem:[%s8732_s25 + $0x10] sm:$0xff] }
0x11e9   : > { %5170 = vmax.xlane.f32.xlu0 %v5169_v20 }
0x11ea   : > { %3462 = vadd.xlane.f32.xlu1 %v3461_v2 }
0x11ec   : > { %v11272_v53 = vpop.eup %8236 }
0x11ed   : > { %3465 = vadd.xlane.f32.xlu0 %v3464_v24  ;;  %v11284_v24 = vld [vmem:[#allocation2 + $0xc8] sm:$0xff] }
0x11ee   : > { %3468 = vadd.xlane.f32.xlu1 %v3467_v18  ;;  %v11289_v18 = vld [vmem:[#allocation2 + $0xc0] sm:$0xff] }
0x11ff   : > { %3631 = vperm.xlu1 %8057, %v8233_v63   ;;  %v4022_v63 = vsel %vm3309_vm11, %v10835_v62, 0.0 }
0x1203   : > { %8159 = vrot.lane.b32.xlu0 %v8158_v14, %s8534_s16  ;;  %3636 = vperm.xlu1 %8057, %v11160_v4   ;;  %v12230_v4 = vld [vmem:[#allocation63_spill] sm:$0xff] }
0x1204   : > { %v12232_v20 = vsub.f32 %v12230_v4, %v12231_v6 }
0x1206   : > { %v3360_v2 = vmul.f32 1.442695, %v12232_v20 }
0x1207   : > { %8169 = vrot.lane.b32.xlu0 %v8168_v32, %s8534_s16  ;;  %3646 = vperm.xlu1 %8057, %v11166_v26   ;;  %v11314_v32 = vld [vmem:[#allocation2 + $0xe0] sm:$0xff] }
0x1208   : > { %8238 = vpow2.f32 %v3360_v2  ;;  %12238 = vst [vmem:[#allocation66_spill] sm:$0xff] %v11314_v32  ;;  %v11326_v2 = vld [vmem:[#allocation2 + $0xe8] sm:$0xff] }
0x1209   : > { %8240 = vpow2.f32 %v3364_v36 }
0x120b   : > { %3656 = vperm.xlu1 %8057, %v11272_v53  }
0x1212   : > { %v8239_v26 = vpop.eup %8238 }
0x1226   : > { %4023 = vadd.xlane.f32.xlu0 %v4022_v63  ;;  %v11360_v63 = vpop.eup %8240 }
0x122a   : > { %4026 = vadd.xlane.f32.xlu0 %v4025_v37 }
0x1240   : > { %3626 = vperm.xlu0 %8056, %v11174_v17   ;;  %v11299_v17 = vld [vmem:[#allocation2 + $0xd0] sm:$0xff] }
0x1241   : > { %12236 = vst [vmem:[#allocation69_spill] sm:$0xff] %v11299_v17 }
0x1244   : > { %3641 = vperm.xlu0 %8056, %v11178_v35  }
0x1248   : > { %3651 = vperm.xlu0 %8056, %v8239_v26  }
0x1266   : > { %v5153_v23 = vpop.xlane.xlu0 %5152 }
0x1267   : > { %v11287_v62 = vmax.f32 %v11284_v24, %v5153_v23  ;;  %v3617_v23 = vld [vmem:[#allocation4 + $0x8] sm:$0xff] }
0x1269   : > { %5584 = vst.msk [vmem:[#allocation2 + $0xc8] sm:$0xff] %vm3478_vm3, %v11287_v62  ;;  %5211 = vperm.xlu1 %8057, %v11287_v62  }
0x126a   : > { %v5150_v35 = vpop.xlane.xlu0 %5149 }
0x126b   : > { %v11302_v3 = vmax.f32 %v11289_v18, %v5150_v35  ;;  %v5156_v7 = vpop.xlane.xlu1 %5155 }
0x126c   : > { %v11305_v14 = vmax.f32 %v11299_v17, %v5156_v7  ;;  %v3435_v7 = vld [vmem:[#allocation3 + $0x28] sm:$0xff] }
0x126d   : > { %5583 = vst.msk [vmem:[#allocation2 + $0xc0] sm:$0xff] %vm3478_vm3, %v11302_v3  ;;  %5206 = vperm.xlu0 %8056, %v11302_v3   ;;  %v3443_v46 = vmul.f32 %v8239_v26, %v3435_v7  ;;  %v3444_v26 = vmul.f32 %v11272_v53, %v3436_v5 }
0x126e   : > { %12237 = vst [vmem:[#allocation64_spill] sm:$0xff] %v11305_v14  ;;  %5585 = vst.msk [vmem:[#allocation2 + $0xd0] sm:$0xff] %vm3478_vm3, %v11305_v14  ;;  %v5159_v37 = vpop.xlane.xlu0 %5158 }
0x126f   : > { %v11321_v4 = vmax.f32 %v11307_v41, %v5159_v37  ;;  %v5162_v6 = vpop.xlane.xlu1 %5161 }
0x1270   : > { %v11324_v20 = vmax.f32 %v11314_v32, %v5162_v6  ;;  %v11346_v6 = vld [vmem:[#allocation2 + $0xf8] sm:$0xff] }
0x1271   : > { %5586 = vst.msk [vmem:[#allocation2 + $0xd8] sm:$0xff] %vm3478_vm3, %v11321_v4  ;;  %5216 = vperm.xlu0 %8056, %v11305_v14   ;;  %5221 = vperm.xlu1 %8057, %v11321_v4   ;;  %v3437_v14 = vld [vmem:[#allocation3 + $0x38] sm:$0xff] }
0x1272   : > { %12239 = vst [vmem:[#allocation63_spill] sm:$0xff] %v11324_v20  ;;  %5587 = vst.msk [vmem:[#allocation2 + $0xe0] sm:$0xff] %vm3478_vm3, %v11324_v20  ;;  %v5165_v25 = vpop.xlane.xlu0 %5164 }
0x1273   : > { %v11341_v36 = vmax.f32 %v11326_v2, %v5165_v25  ;;  %v5168_v35 = vpop.xlane.xlu1 %5167  ;;  %v8327_v25 = vld [vmem:[%s8732_s25 + $0x18] sm:$0xff] }
0x1274   : > { %v11344_v37 = vmax.f32 %v11334_v21, %v5168_v35  ;;  %v8163_v47 = vpack.i.bf16 %v8327_v25, %v8326_v49  ;;  %v3445_v25 = vmul.f32 %v11360_v63, %v3437_v14  ;;  %v8328_v49 = vld [vmem:[%s8732_s25 + $0x30] sm:$0xff]  ;;  %v8329_v21 = vld [vmem:[%s8732_s25 + $0x38] sm:$0xff] }
0x1275   : > { %5588 = vst.msk [vmem:[#allocation2 + $0xe8] sm:$0xff] %vm3478_vm3, %v11341_v36  ;;  %5231 = vperm.xlu0 %8056, %v11341_v36   ;;  %5226 = vperm.xlu1 %8057, %v11324_v20   ;;  %v3618_v14 = vld [vmem:[#allocation4 + $0x10] sm:$0xff] }
0x1276   : > { %12241 = vst [vmem:[#allocation67_spill] sm:$0xff] %v11344_v37  ;;  %5589 = vst.msk [vmem:[#allocation2 + $0xf0] sm:$0xff] %vm3478_vm3, %v11344_v37  ;;  %v5171_v35 = vpop.xlane.xlu0 %5170 }
0x1277   : > { %v11363_v32 = vmax.f32 %v11346_v6, %v5171_v35  ;;  %v3463_v45 = vpop.xlane.xlu1 %3462 }
0x1278   : > { %v3475_v20 = vadd.f32 %v3463_v45, %v3443_v46 }
0x1279   : > { %12242 = vst [vmem:[#allocation68_spill] sm:$0xff] %v11363_v32  ;;  %5590 = vst.msk [vmem:[#allocation2 + $0xf8] sm:$0xff] %vm3478_vm3, %v11363_v32  ;;  %8164 = vrot.lane.b32.xlu1 %v8163_v47, %s8534_s16  ;;  %5236 = vperm.xlu0 %8056, %v11344_v37   ;;  %v8173_v47 = vpack.i.bf16 %v8329_v21, %v8328_v49  ;;  %v3620_v21 = vld [vmem:[#allocation4 + $0x20] sm:$0xff]  ;;  %v12244_v49 = vld [vmem:[#allocation73_spill] sm:$0xff] }
0x127a   : > { %3484 = vst.msk [vmem:[#allocation3 + $0x28] sm:$0xff] %vm3478_vm3, %v3475_v20  ;;  %v3466_v7 = vpop.xlane.xlu0 %3465 }
0x127b   : > { %v3476_v35 = vadd.f32 %v3466_v7, %v3444_v26  ;;  %v3469_v45 = vpop.xlane.xlu1 %3468  ;;  %v12243_v7 = vld [vmem:[#allocation70_spill] sm:$0xff] }
0x127c   : > { %v3477_v46 = vadd.f32 %v3469_v45, %v3445_v25 }
0x127d   : > { %3485 = vst.msk [vmem:[#allocation3 + $0x30] sm:$0xff] %vm3478_vm3, %v3476_v35  ;;  %5241 = vperm.xlu1 %8057, %v11363_v32  }
0x127e   : > { %3486 = vst.msk [vmem:[#allocation3 + $0x38] sm:$0xff] %vm3478_vm3, %v3477_v46  ;;  %v8160_v37 = vpop.permute.xlu0 %8159 }
0x127f   : > { %v3632_v5 = vpop.permute.xlu1 %3631  ;;  %v8162_v53 = vunpack.i.h.bf16 %v8160_v37  ;;  %v8161_v20 = vunpack.i.l.bf16 %v8160_v37 }
0x1280   : > { %v3665_v17 = vmul.f32 %v3632_v5, %v3617_v23  ;;  %v3622_v23 = vld [vmem:[#allocation4 + $0x30] sm:$0xff]  ;;  %v12245_v5 = vld [vmem:[#allocation75_spill] sm:$0xff] }
0x1281   : > { %8174 = vrot.lane.b32.xlu1 %v8173_v47, %s8534_s16  ;;  %v7599_v26 = vpack.c.bf16 %v8162_v53, %v8161_v20  ;;  %v12246_v53 = vld [vmem:[#allocation77_spill] sm:$0xff] }
0x1282   : > { %v3673_v25 = vadd.f32 %v12243_v7, %v3665_v17  ;;  %v12248_v7 = vld [vmem:[#allocation80_spill] sm:$0xff] }
0x1283   : > { %v3637_v35 = vpop.permute.xlu1 %3636  ;;  %7600 = vmatprep.subr.bf16.mxu0 %v7599_v26 }
0x1284   : > { %3681 = vst.msk [vmem:[#allocation4 + $0x8] sm:$0xff] %vm3139_vm8, %v3673_v25  ;;  %v3666_v45 = vmul.f32 %v3637_v35, %v3618_v14  ;;  %7602 = vmatpush3.bf16.msra.mxu0 %v7599_v26  ;;  %v4031_v14 = vsel %vm3309_vm11, %v10853_v52, 0.0  ;;  %v4037_v26 = vsel %vm3309_vm11, %v10863_v30, 0.0  ;;  %v4028_v52 = vsel %vm3309_vm11, %v10847_v51, 0.0 }
0x1285   : > { %v4034_v30 = vsel %vm3309_vm11, %v10859_v54, 0.0 }
0x1286   : > { %v3674_v46 = vadd.f32 %v3666_v45, %v12244_v49  ;;  %v4019_v45 = vsel %vm3309_vm11, %v10830_v33, 0.0  ;;  %v4004_v33 = vld [vmem:[#allocation3 + $0x48] sm:$0xff] }
0x1287   : > { %v3647_v61 = vpop.permute.xlu1 %3646 }
0x1288   : > { %3682 = vst.msk [vmem:[#allocation4 + $0x10] sm:$0xff] %vm3139_vm8, %v3674_v46  ;;  %v3668_v37 = vmul.f32 %v3647_v61, %v3620_v21  ;;  %v12247_v61 = vld [vmem:[#allocation78_spill] sm:$0xff] }
0x1289   : > { %v12249_v25 = vsub.f32 %v12247_v61, %v12248_v7  ;;  %v12252_v61 = vld [vmem:[#allocation71_spill] sm:$0xff] }
0x128a   : > { %v3676_v47 = vadd.f32 %v3668_v37, %v12245_v5  ;;  %v11406_v37 = vpop.permute.xlu0 %8169 }
0x128b   : > { %v3657_v32 = vpop.permute.xlu1 %3656  ;;  %v3924_v35 = vmul.f32 1.442695, %v12249_v25 }
0x128c   : > { %3684 = vst.msk [vmem:[#allocation4 + $0x20] sm:$0xff] %vm3139_vm8, %v3676_v47  ;;  %v3670_v17 = vmul.f32 %v3657_v32, %v3622_v23  ;;  %v12250_v32 = vld [vmem:[#allocation83_spill] sm:$0xff]  ;;  %v4040_v23 = vsel %vm3309_vm11, %v10871_v39, 0.0  ;;  %v4005_v47 = vld [vmem:[#allocation3 + $0x50] sm:$0xff] }
0x128d   : > { %8242 = vpow2.f32 %v3924_v35  ;;  %v12251_v21 = vsub.f32 %v12250_v32, %v10742_v0  ;;  %v3621_v35 = vld [vmem:[#allocation4 + $0x28] sm:$0xff] }
0x128e   : > { %v3678_v20 = vadd.f32 %v3670_v17, %v12246_v53 }
0x128f   : > { %v3926_v49 = vmul.f32 1.442695, %v12251_v21  ;;  %v12254_v21 = vld [vmem:[#allocation74_spill] sm:$0xff] }
0x1290   : > { %3686 = vst.msk [vmem:[#allocation4 + $0x30] sm:$0xff] %vm3139_vm8, %v3678_v20 }
0x1291   : > { %8244 = vpow2.f32 %v3926_v49 }
0x1297   : > { %v11404_v46 = vpop.eup %8242 }
0x1298   : > { %4032 = vadd.xlane.f32.xlu0 %v4031_v14  ;;  %v4012_v0 = vmul.f32 %v11404_v46, %v4004_v33  ;;  %v4668_v33 = vsel %vm3309_vm11, %v11115_v11, 0.0 }
0x129b   : > { %v11413_v51 = vpop.eup %8244 }
0x129c   : > { %4038 = vadd.xlane.f32.xlu0 %v4037_v26  ;;  %v4013_v17 = vmul.f32 %v11413_v51, %v4005_v47  ;;  %v3619_v26 = vld [vmem:[#allocation4 + $0x18] sm:$0xff] }
0x12a5   : > { %4020 = vadd.xlane.f32.xlu1 %v4019_v45  ;;  %v12253_v45 = vld [vmem:[#allocation72_spill] sm:$0xff] }
0x12a9   : > { %4029 = vadd.xlane.f32.xlu1 %v4028_v52  ;;  %v12255_v52 = vld [vmem:[#allocation93_spill] sm:$0xff] }
0x12ad   : > { %4035 = vadd.xlane.f32.xlu1 %v4034_v30  ;;  %v4659_v30 = vsel %vm3309_vm11, %v11097_v10, 0.0 }
0x12b1   : > { %4041 = vadd.xlane.f32.xlu1 %v4040_v23  ;;  %v4674_v23 = vsel %vm3309_vm11, %v11125_v60, 0.0  ;;  %v4665_v60 = vsel %vm3309_vm11, %v11109_v27, 0.0 }
0x12b2   : > { %4286 = vrot.lane.b32.xlu0 %v10889_v19, %s8534_s16  ;;  %v3616_v19 = vld [vmem:[#allocation4] sm:$0xff] }
0x12b3   : > { %v4024_v5 = vpop.xlane.xlu0 %4023 }
0x12b4   : > { %v4044_v54 = vadd.f32 %v4024_v5, %v4012_v0 }
0x12b6   : > { %4052 = vst.msk [vmem:[#allocation3 + $0x48] sm:$0xff] %vm3478_vm3, %v4044_v54  ;;  %4290 = vrot.lane.b32.xlu0 %v10893_v9, %s8534_s16 }
0x12b7   : > { %v4027_v53 = vpop.xlane.xlu0 %4026 }
0x12b8   : > { %v4045_v39 = vadd.f32 %v4027_v53, %v4013_v17  ;;  %v12257_v53 = vld [vmem:[#allocation79_spill] sm:$0xff] }
0x12ba   : > { %4053 = vst.msk [vmem:[#allocation3 + $0x50] sm:$0xff] %vm3478_vm3, %v4045_v39  ;;  %4294 = vrot.lane.b32.xlu0 %v10897_v28, %s8534_s16  ;;  %v12258_v39 = vld [vmem:[#allocation81_spill] sm:$0xff] }
0x12bb   : > { %v12259_v11 = vsub.f32 %v12257_v53, %v12258_v39 }
0x12be   : > { %4298 = vrot.lane.b32.xlu0 %v10901_v57, %s8534_s16 }
0x12bf   : > { %v3627_v20 = vpop.permute.xlu0 %3626 }
0x12c0   : > { %v3664_v14 = vmul.f32 %v3627_v20, %v3616_v19  ;;  %v3922_v19 = vmul.f32 1.442695, %v12259_v11 }
0x12c2   : > { %v3672_v7 = vadd.f32 %v3664_v14, %v12252_v61  ;;  %4284 = vrot.lane.b32.xlu1 %v10891_v8, %s8534_s16  ;;  %v12256_v8 = vld [vmem:[#allocation94_spill] sm:$0xff] }
0x12c3   : > { %v3642_v9 = vpop.permute.xlu0 %3641  ;;  %v12260_v61 = vld [vmem:[#allocation82_spill] sm:$0xff] }
0x12c4   : > { %3680 = vst.msk [vmem:[#allocation4] sm:$0xff] %vm3139_vm8, %v3672_v7  ;;  %v3667_v25 = vmul.f32 %v3642_v9, %v3619_v26  ;;  %v12261_v7 = vld [vmem:[#allocation84_spill] sm:$0xff] }
0x12c5   : > { %v12262_v9 = vsub.f32 %v12260_v61, %v12261_v7  ;;  %v12272_v7 = vld [vmem:[#allocation85_spill] sm:$0xff] }
0x12c6   : > { %v3675_v32 = vadd.f32 %v12253_v45, %v3667_v25  ;;  %4288 = vrot.lane.b32.xlu1 %v10895_v31, %s8534_s16  ;;  %v4662_v31 = vsel %vm3309_vm11, %v11105_v43, 0.0  ;;  %v4656_v43 = vsel %vm3309_vm11, %v11092_v29, 0.0  ;;  %v8172_v45 = vunpack.i.h.bf16 %v11406_v37 }
0x12c7   : > { %v3652_v28 = vpop.permute.xlu0 %3651  ;;  %v3928_v29 = vmul.f32 1.442695, %v12262_v9  ;;  %v12273_v9 = vld [vmem:[#allocation87_spill] sm:$0xff] }
0x12c8   : > { %3683 = vst.msk [vmem:[#allocation4 + $0x18] sm:$0xff] %vm3139_vm8, %v3675_v32  ;;  %v3669_v57 = vmul.f32 %v3652_v28, %v3621_v35  ;;  %v4671_v35 = vsel %vm3309_vm11, %v11121_v50, 0.0  ;;  %v8171_v32 = vunpack.i.l.bf16 %v11406_v37 }
0x12ca   : > { %v3677_v49 = vadd.f32 %v12254_v21, %v3669_v57  ;;  %4292 = vrot.lane.b32.xlu1 %v12255_v52, %s8534_s16 }
0x12cc   : > { %3685 = vst.msk [vmem:[#allocation4 + $0x28] sm:$0xff] %vm3139_vm8, %v3677_v49 }
0x12ce   : > { %4296 = vrot.lane.b32.xlu1 %v12256_v8, %s8534_s16  ;;  %v12263_v8 = vld [vmem:[#allocation86_spill] sm:$0xff] }
0x12dd   : > { %4660 = vadd.xlane.f32.xlu0 %v4659_v30  ;;  %v12264_v30 = vld [vmem:[#allocation88_spill] sm:$0xff] }
0x12de   : > { %v12265_v50 = vsub.f32 %v12263_v8, %v12264_v30  ;;  %v12281_v30 = vld [vmem:[#allocation104_spill] sm:$0xff] }
0x12e1   : > { %4663 = vadd.xlane.f32.xlu0 %v4662_v31  ;;  %v3932_v31 = vmul.f32 1.442695, %v12265_v50  ;;  %v12282_v50 = vsub.f32 %v12281_v30, %v11014_v42  ;;  %v12298_v30 = vsub.f32 %v11307_v41, %v11321_v4  ;;  %v4003_v41 = vld [vmem:[#allocation3 + $0x40] sm:$0xff]  ;;  %v12300_v4 = vsub.f32 %v11284_v24, %v11287_v62  ;;  %v12303_v62 = vld [vmem:[#allocation109_spill] sm:$0xff] }
0x12e5   : > { %4669 = vadd.xlane.f32.xlu0 %v4668_v33 }
0x12e8   : > { %v5212_v0 = vpop.permute.xlu1 %5211 }
0x12e9   : > { %4675 = vadd.xlane.f32.xlu0 %v4674_v23  ;;  %v5245_v14 = vsub.f32 %v11202_v58, %v5212_v0  ;;  %v7607_v23 = vpack.c.bf16 %v8172_v45, %v8171_v32  ;;  %v12276_v45 = vld [vmem:[#allocation101_spill] sm:$0xff] }
0x12eb   : > { %v5254_v58 = vmul.f32 1.442695, %v5245_v14 }
0x12ec   : > { %v5207_v5 = vpop.permute.xlu0 %5206 }
0x12ed   : > { %v5244_v47 = vsub.f32 %v11209_v1, %v5207_v5 }
0x12ef   : > { %v5252_v54 = vmul.f32 1.442695, %v5244_v47 }
0x12f0   : > { %v5217_v17 = vpop.permute.xlu0 %5216  ;;  %v5222_v10 = vpop.permute.xlu1 %5221 }
0x12f1   : > { %8246 = vpow2.f32 %v5252_v54  ;;  %v5246_v1 = vsub.f32 %v11219_v44, %v5217_v17  ;;  %v5247_v57 = vsub.f32 %v11214_v55, %v5222_v10  ;;  %v4677_v55 = vsel %vm3309_vm11, %v11133_v15, 0.0  ;;  %v12266_v54 = vld [vmem:[#allocation90_spill] sm:$0xff]  ;;  %v12267_v17 = vld [vmem:[#allocation92_spill] sm:$0xff] }
0x12f2   : > { %4657 = vadd.xlane.f32.xlu1 %v4656_v43  ;;  %8248 = vpow2.f32 %v3922_v19  ;;  %v12268_v10 = vsub.f32 %v12266_v54, %v12267_v17 }
0x12f3   : > { %v5256_v21 = vmul.f32 1.442695, %v5246_v1  ;;  %8250 = vpow2.f32 %v3928_v29  ;;  %v5258_v0 = vmul.f32 1.442695, %v5247_v57  ;;  %v12278_v57 = vld [vmem:[#allocation89_spill] sm:$0xff] }
0x12f4   : > { %v5227_v20 = vpop.permute.xlu1 %5226  ;;  %v5232_v26 = vpop.permute.xlu0 %5231  ;;  %8252 = vpow2.f32 %v5254_v58  ;;  %v3936_v43 = vmul.f32 1.442695, %v12268_v10 }
0x12f5   : > { %v5248_v49 = vsub.f32 %v11235_v48, %v5227_v20  ;;  %v5249_v48 = vsub.f32 %v11230_v56, %v5232_v26  ;;  %8254 = vpow2.f32 %v5256_v21  ;;  %v12279_v21 = vld [vmem:[#allocation91_spill] sm:$0xff] }
0x12f6   : > { %4666 = vadd.xlane.f32.xlu1 %v4665_v60  ;;  %8256 = vpow2.f32 %v3932_v31  ;;  %v12270_v60 = vld [vmem:[#allocation98_spill] sm:$0xff]  ;;  %v4569_v31 = vmul.f32 1.442695, %v12282_v50 }
0x12f7   : > { %v5260_v5 = vmul.f32 1.442695, %v5248_v49  ;;  %8258 = vpow2.f32 %v5258_v0  ;;  %v5262_v56 = vmul.f32 1.442695, %v5249_v48  ;;  %v12280_v49 = vsub.f32 %v12278_v57, %v12279_v21  ;;  %v4009_v21 = vld [vmem:[#allocation3 + $0x70] sm:$0xff] }
0x12f8   : > { %v8165_v25 = vpop.permute.xlu1 %8164  ;;  %v5237_v33 = vpop.permute.xlu0 %5236 }
0x12f9   : > { %v8167_v27 = vunpack.i.h.bf16 %v8165_v25  ;;  %v8166_v28 = vunpack.i.l.bf16 %v8165_v25  ;;  %v5250_v47 = vsub.f32 %v11249_v34, %v5237_v33  ;;  %8260 = vpow2.f32 %v5260_v5  ;;  %v12286_v5 = vld [vmem:[#allocation107_spill] sm:$0xff] }
0x12fa   : > { %4672 = vadd.xlane.f32.xlu1 %v4671_v35  ;;  %8262 = vpow2.f32 %v3936_v43  ;;  %v12275_v35 = vld [vmem:[#allocation99_spill] sm:$0xff]  ;;  %v12288_v43 = vld [vmem:[#allocation100_spill] sm:$0xff] }
0x12fb   : > { %v11464_v44 = vpop.eup %8246  ;;  %v7603_v52 = vpack.c.bf16 %v8167_v27, %v8166_v28  ;;  %v5264_v34 = vmul.f32 1.442695, %v5250_v47  ;;  %8264 = vpow2.f32 %v5262_v56  ;;  %v12277_v32 = vsub.f32 %v12275_v35, %v12276_v45 }
0x12fc   : > { %7239 = vmatprep.mubr.msk.f32.mxu0 %vm3309_vm11, %v11464_v44  ;;  %v5242_v37 = vpop.permute.xlu1 %5241  ;;  %v11480_v11 = vpop.eup %8248  ;;  %v12287_v47 = vsub.f32 %v12286_v5, %v11035_v40  ;;  %v12289_v40 = vld [vmem:[#allocation102_spill] sm:$0xff]  ;;  %v12297_v45 = vsub.f32 %v11289_v18, %v11302_v3 }
0x12fd   : > { %7604 = vmatprep.subr.bf16.mxu0 %v7603_v52  ;;  %v5251_v19 = vsub.f32 %v11244_v59, %v5242_v37  ;;  %v11487_v1 = vpop.eup %8250  ;;  %v12274_v59 = vsub.f32 %v12272_v7, %v12273_v9  ;;  %8266 = vpow2.f32 %v5264_v34  ;;  %v4565_v27 = vmul.f32 1.442695, %v12277_v32 }
0x12fe   : > { %4678 = vadd.xlane.f32.xlu1 %v4677_v55  ;;  %7606 = vmatpush3.bf16.msra.mxu0 %v7603_v52  ;;  %v11493_v25 = vpop.eup %8252  ;;  %v3934_v52 = vmul.f32 1.442695, %v12280_v49  ;;  %v12284_v55 = vld [vmem:[#allocation97_spill] sm:$0xff]  ;;  %v4573_v54 = vmul.f32 1.442695, %v12287_v47  ;;  %v4006_v47 = vld [vmem:[#allocation3 + $0x58] sm:$0xff] }
0x12ff   : > { %3661 = vperm.xlu0 %8056, %v11360_v63   ;;  %7608 = vmatprep.subr.bf16.mxu0 %v7607_v23  ;;  %v12269_v63 = vld [vmem:[#allocation96_spill] sm:$0xff]  ;;  %v5266_v61 = vmul.f32 1.442695, %v5251_v19  ;;  %v3930_v29 = vmul.f32 1.442695, %v12274_v59  ;;  %v11498_v28 = vpop.eup %8254  ;;  %v12292_v19 = vld [vmem:[#allocation105_spill] sm:$0xff] }
0x1300   : > { %v8175_v53 = vpop.permute.xlu1 %8174  ;;  %v12271_v14 = vsub.f32 %v12269_v63, %v12270_v60  ;;  %v11502_v58 = vpop.eup %8256  ;;  %v5188_v32 = vmul.f32 1.442695, %v12297_v45  ;;  %v12313_v45 = vld [vmem:[#allocation67_spill] sm:$0xff] }
0x1301   : > { %v8177_v15 = vunpack.i.h.bf16 %v8175_v53  ;;  %v8176_v39 = vunpack.i.l.bf16 %v8175_v53  ;;  %v11510_v8 = vpop.eup %8258  ;;  %v12290_v53 = vsub.f32 %v12288_v43, %v12289_v40 }
0x1302   : > { %7610 = vmatpush3.bf16.msra.mxu0 %v7607_v23  ;;  %v4559_v26 = vmul.f32 1.442695, %v12271_v14  ;;  %v12283_v23 = vld [vmem:[#allocation95_spill] sm:$0xff]  ;;  %v12294_v14 = vld [vmem:[#allocation106_spill] sm:$0xff] }
0x1303   : > { %v7611_v20 = vpack.c.bf16 %v8177_v15, %v8176_v39  ;;  %4230 = vperm.xlu0 %8056, %v11480_v11   ;;  %v11515_v33 = vpop.eup %8260  ;;  %v12285_v0 = vsub.f32 %v12283_v23, %v12284_v55  ;;  %v4563_v15 = vmul.f32 1.442695, %v12290_v53  ;;  %v5190_v55 = vmul.f32 1.442695, %v12300_v4  ;;  %v4008_v53 = vld [vmem:[#allocation3 + $0x68] sm:$0xff] }
0x1304   : > { %8268 = vpow2.f32 %v4559_v26  ;;  %v11519_v37 = vpop.eup %8262  ;;  %v12295_v26 = vld [vmem:[#allocation108_spill] sm:$0xff]  ;;  %v5297_v4 = vsel %vm3309_vm11, %v11515_v33, 0.0 }
0x1305   : > { %7612 = vmatprep.subr.bf16.mxu0 %v7611_v20  ;;  %8270 = vpow2.f32 %v5266_v61  ;;  %v4561_v48 = vmul.f32 1.442695, %v12285_v0  ;;  %v11528_v42 = vpop.eup %8264  ;;  %v12296_v61 = vsub.f32 %v12294_v14, %v12295_v26  ;;  %v4010_v26 = vld [vmem:[#allocation3 + $0x78] sm:$0xff] }
0x1306   : > { %7614 = vmatpush3.bf16.msra.mxu0 %v7611_v20  ;;  %8272 = vpow2.f32 %v3930_v29  ;;  %v4007_v29 = vld [vmem:[#allocation3 + $0x60] sm:$0xff] }
0x1307   : > { %4245 = vperm.xlu0 %8056, %v11487_v1   ;;  %8274 = vpow2.f32 %v4565_v27  ;;  %v11533_v17 = vpop.eup %8266  ;;  %v4571_v7 = vmul.f32 1.442695, %v12296_v61 }
0x1308   : > { %8276 = vpow2.f32 %v3934_v52 }
0x1309   : > { %7240 = vmatmul.mubr.msk.f32.vlgmr.msra.gmra.mrb[24].mxu0 %vm3309_vm11, %v11493_v25  ;;  %8278 = vpow2.f32 %v4569_v31 }
0x130a   : > { %7242 = vmatprep.mubr.msk.f32.mxu0 %vm3309_vm11, %v11498_v28  ;;  %8280 = vpow2.f32 %v4561_v48 }
0x130b   : > { %4255 = vperm.xlu0 %8056, %v11502_v58   ;;  %8282 = vpow2.f32 %v4573_v54 }
0x130c   : > { %8284 = vpow2.f32 %v4563_v15 }
0x130d   : > { %7243 = vmatmul.mubr.msk.f32.gmra.mrb[26].mxu0 %vm3309_vm11, %v11510_v8 }
0x130e   : > { %7245 = vmatprep.mubr.msk.f32.mxu0 %vm3309_vm11, %v11515_v33  ;;  %v11537_v10 = vpop.eup %8268  ;;  %v5285_v33 = vsel %vm3309_vm11, %v11464_v44, 0.0 }
0x130f   : > { %4235 = vperm.xlu1 %8057, %v11404_v46   ;;  %4265 = vperm.xlu0 %8056, %v11519_v37   ;;  %v11543_v46 = vpop.eup %8270 }
0x1310   : > { %v8273_v39 = vpop.eup %8272 }
0x1311   : > { %7246 = vmatmul.mubr.msk.f32.gmra.mrb[28].mxu0 %vm3309_vm11, %v11528_v42  ;;  %v11550_v56 = vpop.eup %8274  ;;  %v4015_v27 = vmul.f32 %v8273_v39, %v4007_v29  ;;  %v12312_v29 = vld [vmem:[#allocation65_spill] sm:$0xff] }
0x1312   : > { %7248 = vmatprep.mubr.msk.f32.mxu0 %vm3309_vm11, %v11533_v17  ;;  %v8277_v63 = vpop.eup %8276 }
0x1313   : > { %4240 = vperm.xlu1 %8057, %v11413_v51   ;;  %4859 = vperm.xlu0 %8056, %v11537_v10   ;;  %v12291_v51 = vld [vmem:[#allocation103_spill] sm:$0xff]  ;;  %v11556_v60 = vpop.eup %8278  ;;  %v4017_v18 = vmul.f32 %v8277_v63, %v4009_v21 }
0x1314   : > { %v12293_v34 = vsub.f32 %v12291_v51, %v12292_v19  ;;  %v11562_v9 = vpop.eup %8280  ;;  %v12308_v51 = vld [vmem:[#allocation66_spill] sm:$0xff]  ;;  %v12309_v19 = vld [vmem:[#allocation63_spill] sm:$0xff] }
0x1315   : > { %7249 = vmatmul.mubr.msk.f32.gmra.mrb[30].mxu0 %vm3309_vm11, %v11543_v46  ;;  %v11564_v59 = vpop.eup %8282 }
0x1316   : > { %v4567_v20 = vmul.f32 1.442695, %v12293_v34  ;;  %v11568_v35 = vpop.eup %8284  ;;  %v12310_v34 = vsub.f32 %v12308_v51, %v12309_v19  ;;  %v3623_v51 = vld [vmem:[#allocation4 + $0x38] sm:$0xff] }
0x1317   : > { %4250 = vperm.xlu1 %8057, %v8273_v39   ;;  %4874 = vperm.xlu0 %8056, %v11550_v56   ;;  %v12307_v39 = vld [vmem:[#allocation110_spill] sm:$0xff] }
0x1318   : > { %8286 = vpow2.f32 %v4567_v20  ;;  %v5196_v20 = vmul.f32 1.442695, %v12310_v34 }
0x1319   : > { %8288 = vpow2.f32 %v4571_v7  ;;  %v12311_v7 = vld [vmem:[#allocation111_spill] sm:$0xff] }
0x131a   : > { %8290 = vpow2.f32 %v5188_v32  ;;  %v12314_v32 = vsub.f32 %v12312_v29, %v12313_v45 }
0x131b   : > { %4260 = vperm.xlu1 %8057, %v8277_v63   ;;  %4884 = vperm.xlu0 %8056, %v11556_v60   ;;  %v4016_v63 = vmul.f32 %v11502_v58, %v4008_v53  ;;  %v4018_v58 = vmul.f32 %v11519_v37, %v4010_v26  ;;  %v5300_v53 = vsel %vm3309_vm11, %v11528_v42, 0.0  ;;  %v12315_v42 = vld [vmem:[#allocation76_spill] sm:$0xff] }
0x131f   : > { %4864 = vperm.xlu1 %8057, %v11562_v9   ;;  %4894 = vperm.xlu0 %8056, %v11564_v59  }
0x1322   : > { %v11576_v49 = vpop.eup %8286 }
0x1323   : > { %4869 = vperm.xlu1 %8057, %v11568_v35   ;;  %4915 = vrot.lane.b32.xlu0 %v11183_v22, %s8533_s15  ;;  %v5194_v22 = vmul.f32 1.442695, %v12298_v30  ;;  %v11585_v50 = vpop.eup %8288 }
0x1325   : > { %v4033_v57 = vpop.xlane.xlu0 %4032  ;;  %8292 = vpow2.f32 %v5194_v22 }
0x1326   : > { %v4047_v52 = vadd.f32 %v4033_v57, %v4015_v27  ;;  %v5200_v27 = vmul.f32 1.442695, %v12314_v32  ;;  %v4645_v32 = vld [vmem:[#allocation3 + $0xa8] sm:$0xff] }
0x1327   : > { %4879 = vperm.xlu1 %8057, %v11576_v49   ;;  %4919 = vrot.lane.b32.xlu0 %v11187_v38, %s8533_s15  ;;  %v12299_v38 = vsub.f32 %v11326_v2, %v11341_v36  ;;  %v4011_v2 = vmul.f32 %v11480_v11, %v4003_v41  ;;  %v11605_v36 = vpop.eup %8290  ;;  %v5291_v41 = vsel %vm3309_vm11, %v11498_v28, 0.0 }
0x1328   : > { %4055 = vst.msk [vmem:[#allocation3 + $0x60] sm:$0xff] %vm3478_vm3, %v4047_v52 }
0x1329   : > { %v4039_v3 = vpop.xlane.xlu0 %4038  ;;  %v5198_v23 = vmul.f32 1.442695, %v12299_v38  ;;  %v5288_v38 = vsel %vm3309_vm11, %v11493_v25, 0.0  ;;  %v5303_v25 = vsel %vm3309_vm11, %v11533_v17, 0.0 }
0x132a   : > { %v4049_v31 = vadd.f32 %v4039_v3, %v4017_v18 }
0x132b   : > { %4889 = vperm.xlu1 %8057, %v11585_v50   ;;  %4923 = vrot.lane.b32.xlu0 %v11191_v13, %s8533_s15  ;;  %8294 = vpow2.f32 %v5198_v23  ;;  %v12301_v13 = vld [vmem:[#allocation68_spill] sm:$0xff] }
0x132c   : > { %4057 = vst.msk [vmem:[#allocation3 + $0x70] sm:$0xff] %vm3478_vm3, %v4049_v31  ;;  %v12302_v0 = vsub.f32 %v11346_v6, %v12301_v13  ;;  %8296 = vpow2.f32 %v5190_v55  ;;  %v4014_v6 = vmul.f32 %v11487_v1, %v4006_v47  ;;  %v4641_v13 = vld [vmem:[#allocation3 + $0x88] sm:$0xff] }
0x132d   : > { %v11651_v3 = vpop.permute.xlu0 %4286 }
0x132e   : > { %v5202_v48 = vmul.f32 1.442695, %v12302_v0 }
0x132f   : > { %4913 = vrot.lane.b32.xlu1 %v11185_v12, %s8533_s15  ;;  %4927 = vrot.lane.b32.xlu0 %v11195_v16, %s8533_s15  ;;  %v12304_v12 = vld [vmem:[#allocation69_spill] sm:$0xff]  ;;  %v12305_v16 = vld [vmem:[#allocation64_spill] sm:$0xff]  ;;  %v11615_v11 = vpop.eup %8292 }
0x1330   : > { %v12306_v54 = vsub.f32 %v12304_v12, %v12305_v16  ;;  %8298 = vpow2.f32 %v5202_v48  ;;  %v4649_v48 = vmul.f32 %v11562_v9, %v4641_v13 }
0x1331   : > { %v11653_v31 = vpop.permute.xlu0 %4290 }
0x1332   : > { %v4021_v5 = vpop.xlane.xlu1 %4020  ;;  %v5192_v43 = vmul.f32 1.442695, %v12306_v54  ;;  %v5294_v54 = vsel %vm3309_vm11, %v11510_v8, 0.0  ;;  %v5306_v8 = vsel %vm3309_vm11, %v11543_v46, 0.0 }
0x1333   : > { %v4043_v24 = vadd.f32 %v4021_v5, %v4011_v2  ;;  %4917 = vrot.lane.b32.xlu1 %v12303_v62, %s8533_s15  ;;  %5488 = vperm.xlu0 %8056, %v11605_v36   ;;  %v4642_v5 = vld [vmem:[#allocation3 + $0x90] sm:$0xff]  ;;  %v4644_v62 = vld [vmem:[#allocation3 + $0xa0] sm:$0xff] }
0x1334   : > { %8300 = vpow2.f32 %v5192_v43  ;;  %v4650_v28 = vmul.f32 %v11568_v35, %v4642_v5  ;;  %v4652_v17 = vmul.f32 %v11576_v49, %v4644_v62  ;;  %v4646_v43 = vld [vmem:[#allocation3 + $0xb0] sm:$0xff] }
0x1335   : > { %4051 = vst.msk [vmem:[#allocation3 + $0x40] sm:$0xff] %vm3478_vm3, %v4043_v24  ;;  %v11625_v1 = vpop.eup %8294  ;;  %8302 = vpow2.f32 %v5196_v20  ;;  %v11657_v23 = vpop.permute.xlu0 %4294  ;;  %v4654_v44 = vmul.f32 %v11585_v50, %v4646_v43 }
0x1336   : > { %v4030_v40 = vpop.xlane.xlu1 %4029  ;;  %v11633_v57 = vpop.eup %8296  ;;  %8304 = vpow2.f32 %v5200_v27 }
0x1337   : > { %v4046_v15 = vadd.f32 %v4030_v40, %v4014_v6  ;;  %4921 = vrot.lane.b32.xlu1 %v12307_v39, %s8533_s15  ;;  %5503 = vperm.xlu0 %8056, %v11615_v11   ;;  %v4640_v39 = vld [vmem:[#allocation3 + $0x80] sm:$0xff] }
0x1338   : > { %v4648_v34 = vmul.f32 %v11537_v10, %v4640_v39 }
0x1339   : > { %4054 = vst.msk [vmem:[#allocation3 + $0x58] sm:$0xff] %vm3478_vm3, %v4046_v15  ;;  %v11663_v55 = vpop.permute.xlu0 %4298 }
0x133a   : > { %v4036_v14 = vpop.xlane.xlu1 %4035  ;;  %v11637_v21 = vpop.eup %8298 }
0x133b   : > { %v4048_v61 = vadd.f32 %v4036_v14, %v4016_v63  ;;  %4925 = vrot.lane.b32.xlu1 %v12311_v7, %s8533_s15  ;;  %5513 = vperm.xlu0 %8056, %v11625_v1   ;;  %v4643_v63 = vld [vmem:[#allocation3 + $0x98] sm:$0xff] }
0x133c   : > { %v4651_v46 = vmul.f32 %v11550_v56, %v4643_v63 }
0x133d   : > { %4056 = vst.msk [vmem:[#allocation3 + $0x68] sm:$0xff] %vm3478_vm3, %v4048_v61  ;;  %v4220_v61 = vld [vmem:[#allocation4] sm:$0xff] }
0x133e   : > { %v4042_v52 = vpop.xlane.xlu1 %4041  ;;  %v11642_v22 = vpop.eup %8300 }
0x133f   : > { %v4050_v30 = vadd.f32 %v4042_v52, %v4018_v58  ;;  %5493 = vperm.xlu1 %8057, %v11633_v57   ;;  %5523 = vperm.xlu0 %8056, %v11637_v21   ;;  %v11645_v18 = vpop.eup %8302  ;;  %v4223_v58 = vld [vmem:[#allocation4 + $0x18] sm:$0xff] }
0x1340   : > { %v11648_v37 = vpop.eup %8304 }
0x1341   : > { %4058 = vst.msk [vmem:[#allocation3 + $0x78] sm:$0xff] %vm3478_vm3, %v4050_v30  ;;  %v4653_v30 = vmul.f32 %v11556_v60, %v4645_v32 }
0x1342   : > { %v4285_v0 = vpop.permute.xlu1 %4284 }
0x1343   : > { %5498 = vperm.xlu1 %8057, %v11642_v22  }
0x1346   : > { %v11672_v12 = vpop.permute.xlu1 %4288 }
0x1347   : > { %5508 = vperm.xlu1 %8057, %v11645_v18  }
0x134a   : > { %v11678_v35 = vpop.permute.xlu1 %4292 }
0x134b   : > { %5518 = vperm.xlu1 %8057, %v11648_v37  }
0x134e   : > { %v11687_v49 = vpop.permute.xlu1 %4296 }
0x135e   : > { %5289 = vadd.xlane.f32.xlu0 %v5288_v38 }
0x1362   : > { %5292 = vadd.xlane.f32.xlu0 %v5291_v41 }
0x1366   : > { %5298 = vadd.xlane.f32.xlu0 %v5297_v4  ;;  %v4647_v4 = vld [vmem:[#allocation3 + $0xb8] sm:$0xff] }
0x136a   : > { %v4661_v2 = vpop.xlane.xlu0 %4660  ;;  %5304 = vadd.xlane.f32.xlu0 %v5303_v25 }
0x136b   : > { %v4681_v47 = vadd.f32 %v4661_v2, %v4649_v48  ;;  %v4225_v48 = vld [vmem:[#allocation4 + $0x28] sm:$0xff] }
0x136d   : > { %4689 = vst.msk [vmem:[#allocation3 + $0x88] sm:$0xff] %vm3478_vm3, %v4681_v47 }
0x136e   : > { %v4664_v24 = vpop.xlane.xlu0 %4663 }
0x136f   : > { %v4682_v16 = vadd.f32 %v4664_v24, %v4650_v28  ;;  %5286 = vadd.xlane.f32.xlu1 %v5285_v33  ;;  %v4221_v33 = vld [vmem:[#allocation4 + $0x8] sm:$0xff] }
0x1371   : > { %4690 = vst.msk [vmem:[#allocation3 + $0x90] sm:$0xff] %vm3478_vm3, %v4682_v16 }
0x1372   : > { %v4670_v9 = vpop.xlane.xlu0 %4669 }
0x1373   : > { %v4684_v6 = vadd.f32 %v4670_v9, %v4652_v17  ;;  %5295 = vadd.xlane.f32.xlu1 %v5294_v54  ;;  %v4222_v54 = vld [vmem:[#allocation4 + $0x10] sm:$0xff] }
0x1375   : > { %4692 = vst.msk [vmem:[#allocation3 + $0xa0] sm:$0xff] %vm3478_vm3, %v4684_v6 }
0x1376   : > { %v4676_v40 = vpop.xlane.xlu0 %4675 }
0x1377   : > { %v4686_v15 = vadd.f32 %v4676_v40, %v4654_v44  ;;  %5301 = vadd.xlane.f32.xlu1 %v5300_v53  ;;  %v4224_v40 = vld [vmem:[#allocation4 + $0x20] sm:$0xff] }
0x1379   : > { %4694 = vst.msk [vmem:[#allocation3 + $0xb0] sm:$0xff] %vm3478_vm3, %v4686_v15 }
0x137b   : > { %5307 = vadd.xlane.f32.xlu1 %v5306_v8 }
0x137e   : > { %v3662_v19 = vpop.permute.xlu0 %3661 }
0x137f   : > { %v3671_v50 = vmul.f32 %v3662_v19, %v3623_v51  ;;  %v4658_v20 = vpop.xlane.xlu1 %4657 }
0x1380   : > { %v4680_v14 = vadd.f32 %v4658_v20, %v4648_v34 }
0x1381   : > { %v3679_v26 = vadd.f32 %v12315_v42, %v3671_v50 }
0x1382   : > { %4688 = vst.msk [vmem:[#allocation3 + $0x80] sm:$0xff] %vm3478_vm3, %v4680_v14  ;;  %v4231_v7 = vpop.permute.xlu0 %4230 }
0x1383   : > { %3687 = vst.msk [vmem:[#allocation4 + $0x38] sm:$0xff] %vm3139_vm8, %v3679_v26  ;;  %v4268_v29 = vmul.f32 %v4231_v7, %v4220_v61  ;;  %v4667_v45 = vpop.xlane.xlu1 %4666 }
0x1384   : > { %v4683_v27 = vadd.f32 %v4667_v45, %v4651_v46 }
0x1385   : > { %v4308_v10 = vadd.f32 %v4285_v0, %v4268_v29  ;;  %v4655_v0 = vmul.f32 %v11564_v59, %v4647_v4 }
0x1386   : > { %4691 = vst.msk [vmem:[#allocation3 + $0x98] sm:$0xff] %vm3478_vm3, %v4683_v27  ;;  %v4246_v52 = vpop.permute.xlu0 %4245 }
0x1387   : > { %4317 = vst.msk [vmem:[#allocation4] sm:$0xff] %vm4316_vm4, %v4308_v10  ;;  %v4271_v38 = vmul.f32 %v4246_v52, %v4223_v58  ;;  %v4673_v41 = vpop.xlane.xlu1 %4672 }
0x1388   : > { %v4685_v56 = vadd.f32 %v4673_v41, %v4653_v30 }
0x1389   : > { %v4311_v13 = vadd.f32 %v11653_v31, %v4271_v38 }
0x138a   : > { %4693 = vst.msk [vmem:[#allocation3 + $0xa8] sm:$0xff] %vm3478_vm3, %v4685_v56  ;;  %v4256_v25 = vpop.permute.xlu0 %4255  ;;  %v4227_v28 = vld [vmem:[#allocation4 + $0x38] sm:$0xff] }
0x138b   : > { %4320 = vst.msk [vmem:[#allocation4 + $0x18] sm:$0xff] %vm4316_vm4, %v4311_v13  ;;  %v4273_v2 = vmul.f32 %v4256_v25, %v4225_v48  ;;  %v4679_v5 = vpop.xlane.xlu1 %4678 }
0x138c   : > { %v4687_v47 = vadd.f32 %v4679_v5, %v4655_v0 }
0x138d   : > { %v4313_v60 = vadd.f32 %v11657_v23, %v4273_v2 }
0x138e   : > { %4695 = vst.msk [vmem:[#allocation3 + $0xb8] sm:$0xff] %vm3478_vm3, %v4687_v47  ;;  %v4266_v24 = vpop.permute.xlu0 %4265  ;;  %v4849_v58 = vld [vmem:[#allocation4] sm:$0xff] }
0x138f   : > { %4322 = vst.msk [vmem:[#allocation4 + $0x28] sm:$0xff] %vm4316_vm4, %v4313_v60  ;;  %v4275_v31 = vmul.f32 %v4266_v24, %v4227_v28  ;;  %v4236_v62 = vpop.permute.xlu1 %4235 }
0x1390   : > { %v4269_v16 = vmul.f32 %v4236_v62, %v4221_v33 }
0x1391   : > { %v4315_v17 = vadd.f32 %v11663_v55, %v4275_v31 }
0x1392   : > { %v4309_v59 = vadd.f32 %v11651_v3, %v4269_v16  ;;  %v4860_v9 = vpop.permute.xlu0 %4859  ;;  %v4226_v3 = vld [vmem:[#allocation4 + $0x30] sm:$0xff]  ;;  %v4852_v26 = vld [vmem:[#allocation4 + $0x18] sm:$0xff] }
0x1393   : > { %4324 = vst.msk [vmem:[#allocation4 + $0x38] sm:$0xff] %vm4316_vm4, %v4315_v17  ;;  %v4241_v43 = vpop.permute.xlu1 %4240  ;;  %v4897_v30 = vmul.f32 %v4860_v9, %v4849_v58 }
0x1394   : > { %4318 = vst.msk [vmem:[#allocation4 + $0x8] sm:$0xff] %vm4316_vm4, %v4309_v59  ;;  %v4270_v23 = vmul.f32 %v4241_v43, %v4222_v54 }
0x1396   : > { %v4310_v6 = vadd.f32 %v11672_v12, %v4270_v23  ;;  %v4875_v44 = vpop.permute.xlu0 %4874  ;;  %v4854_v29 = vld [vmem:[#allocation4 + $0x28] sm:$0xff] }
0x1397   : > { %v4251_v53 = vpop.permute.xlu1 %4250 }
0x1398   : > { %4319 = vst.msk [vmem:[#allocation4 + $0x10] sm:$0xff] %vm4316_vm4, %v4310_v6  ;;  %v4272_v15 = vmul.f32 %v4251_v53, %v4224_v40  ;;  %v5270_v53 = vld [vmem:[#allocation3 + $0xc8] sm:$0xff] }
0x139a   : > { %v4312_v55 = vadd.f32 %v11678_v35, %v4272_v15  ;;  %v4885_v8 = vpop.permute.xlu0 %4884  ;;  %v4900_v35 = vmul.f32 %v4875_v44, %v4852_v26  ;;  %v4856_v10 = vld [vmem:[#allocation4 + $0x38] sm:$0xff]  ;;  %v5275_v26 = vld [vmem:[#allocation3 + $0xf0] sm:$0xff] }
0x139b   : > { %v4261_v39 = vpop.permute.xlu1 %4260  ;;  %v4850_v50 = vld [vmem:[#allocation4 + $0x8] sm:$0xff]  ;;  %v4902_v45 = vmul.f32 %v4885_v8, %v4854_v29  ;;  %v5278_v8 = vmul.f32 %v11633_v57, %v5270_v53  ;;  %v5283_v57 = vmul.f32 %v11648_v37, %v5275_v26  ;;  %v5269_v29 = vld [vmem:[#allocation3 + $0xc0] sm:$0xff] }
0x139c   : > { %4321 = vst.msk [vmem:[#allocation4 + $0x20] sm:$0xff] %vm4316_vm4, %v4312_v55  ;;  %v4274_v51 = vmul.f32 %v4261_v39, %v4226_v3  ;;  %v5271_v39 = vld [vmem:[#allocation3 + $0xd0] sm:$0xff] }
0x139e   : > { %v4314_v19 = vadd.f32 %v11687_v49, %v4274_v51  ;;  %v4895_v34 = vpop.permute.xlu0 %4894 }
0x139f   : > { %v4865_v20 = vpop.permute.xlu1 %4864  ;;  %v4904_v52 = vmul.f32 %v4895_v34, %v4856_v10  ;;  %v4851_v13 = vld [vmem:[#allocation4 + $0x10] sm:$0xff]  ;;  %v5279_v34 = vmul.f32 %v11642_v22, %v5271_v39  ;;  %v5277_v22 = vmul.f32 %v11605_v36, %v5269_v29  ;;  %v5274_v10 = vld [vmem:[#allocation3 + $0xe8] sm:$0xff] }
0x13a0   : > { %4323 = vst.msk [vmem:[#allocation4 + $0x30] sm:$0xff] %vm4316_vm4, %v4314_v19  ;;  %v4898_v12 = vmul.f32 %v4865_v20, %v4850_v50  ;;  %v5273_v20 = vld [vmem:[#allocation3 + $0xe0] sm:$0xff]  ;;  %v5282_v37 = vmul.f32 %v11625_v1, %v5274_v10 }
0x13a2   : > { %v4916_v63 = vpop.permute.xlu0 %4915 }
0x13a3   : > { %v4938_v14 = vadd.f32 %v4916_v63, %v4898_v12  ;;  %v4870_v42 = vpop.permute.xlu1 %4869  ;;  %v4853_v2 = vld [vmem:[#allocation4 + $0x20] sm:$0xff] }
0x13a4   : > { %v4899_v48 = vmul.f32 %v4870_v42, %v4851_v13 }
0x13a5   : > { %4947 = vst.msk [vmem:[#allocation4 + $0x8] sm:$0xff] %vm4945_vm5, %v4938_v14  ;;  %v5281_v14 = vmul.f32 %v11645_v18, %v5273_v20 }
0x13a6   : > { %v4920_v61 = vpop.permute.xlu0 %4919 }
0x13a7   : > { %v4940_v7 = vadd.f32 %v4920_v61, %v4900_v35  ;;  %v4880_v46 = vpop.permute.xlu1 %4879  ;;  %v4855_v28 = vld [vmem:[#allocation4 + $0x30] sm:$0xff] }
0x13a8   : > { %v4901_v5 = vmul.f32 %v4880_v46, %v4853_v2 }
0x13a9   : > { %4949 = vst.msk [vmem:[#allocation4 + $0x18] sm:$0xff] %vm4945_vm5, %v4940_v7 }
0x13aa   : > { %v4924_v49 = vpop.permute.xlu0 %4923 }
0x13ab   : > { %v4942_v32 = vadd.f32 %v4924_v49, %v4902_v45  ;;  %v4890_v27 = vpop.permute.xlu1 %4889  ;;  %v5272_v49 = vld [vmem:[#allocation3 + $0xd8] sm:$0xff] }
0x13ac   : > { %v4903_v24 = vmul.f32 %v4890_v27, %v4855_v28  ;;  %v5280_v18 = vmul.f32 %v11615_v11, %v5272_v49  ;;  %v5479_v11 = vld [vmem:[#allocation4 + $0x8] sm:$0xff] }
0x13ad   : > { %4951 = vst.msk [vmem:[#allocation4 + $0x28] sm:$0xff] %vm4945_vm5, %v4942_v32 }
0x13ae   : > { %v4928_v38 = vpop.permute.xlu0 %4927 }
0x13af   : > { %v4944_v41 = vadd.f32 %v4928_v38, %v4904_v52  ;;  %v4914_v4 = vpop.permute.xlu1 %4913 }
0x13b0   : > { %v4937_v56 = vadd.f32 %v4914_v4, %v4897_v30  ;;  %v5276_v30 = vld [vmem:[#allocation3 + $0xf8] sm:$0xff] }
0x13b1   : > { %4953 = vst.msk [vmem:[#allocation4 + $0x38] sm:$0xff] %vm4945_vm5, %v4944_v41  ;;  %v5284_v36 = vmul.f32 %v11637_v21, %v5276_v30  ;;  %v5481_v2 = vld [vmem:[#allocation4 + $0x18] sm:$0xff] }
0x13b2   : > { %4946 = vst.msk [vmem:[#allocation4] sm:$0xff] %vm4945_vm5, %v4937_v56  ;;  %v11722_v62 = vpop.permute.xlu0 %5488 }
0x13b3   : > { %v4918_v25 = vpop.permute.xlu1 %4917 }
0x13b4   : > { %v4939_v0 = vadd.f32 %v4918_v25, %v4899_v48 }
0x13b6   : > { %4948 = vst.msk [vmem:[#allocation4 + $0x10] sm:$0xff] %vm4945_vm5, %v4939_v0  ;;  %v11724_v16 = vpop.permute.xlu0 %5503 }
0x13b7   : > { %v4922_v47 = vpop.permute.xlu1 %4921 }
0x13b8   : > { %v4941_v60 = vadd.f32 %v4922_v47, %v4901_v5  ;;  %v5529_v47 = vmul.f32 %v11724_v16, %v5481_v2 }
0x13b9   : > { %v5478_v56 = vld [vmem:[#allocation4] sm:$0xff] }
0x13ba   : > { %4950 = vst.msk [vmem:[#allocation4 + $0x20] sm:$0xff] %vm4945_vm5, %v4941_v60  ;;  %v11728_v54 = vpop.permute.xlu0 %5513  ;;  %v5526_v48 = vmul.f32 %v11722_v62, %v5478_v56 }
0x13bb   : > { %v4926_v31 = vpop.permute.xlu1 %4925 }
0x13bc   : > { %v4943_v33 = vadd.f32 %v4926_v31, %v4903_v24 }
0x13bd   : > { %v5480_v60 = vld [vmem:[#allocation4 + $0x10] sm:$0xff] }
0x13be   : > { %4952 = vst.msk [vmem:[#allocation4 + $0x30] sm:$0xff] %vm4945_vm5, %v4943_v33  ;;  %v11734_v40 = vpop.permute.xlu0 %5523  ;;  %v5483_v33 = vld [vmem:[#allocation4 + $0x28] sm:$0xff] }
0x13bf   : > { %v5494_v44 = vpop.permute.xlu1 %5493  ;;  %v5531_v62 = vmul.f32 %v11728_v54, %v5483_v33 }
0x13c0   : > { %v5527_v13 = vmul.f32 %v5494_v44, %v5479_v11 }
0x13c3   : > { %v5499_v51 = vpop.permute.xlu1 %5498 }
0x13c4   : > { %v5528_v21 = vmul.f32 %v5499_v51, %v5480_v60 }
0x13c7   : > { %v5509_v63 = vpop.permute.xlu1 %5508 }
0x13cb   : > { %v5519_v7 = vpop.permute.xlu1 %5518 }
0x13dc   : > { %v7241_v17 = vpop.f32.mrb[24].mxu0 }
0x13dd   : > { %5544 = vrot.lane.b32.xlu0 %v7241_v17, %s8532_s13  ;;  %v5439_v59 = vpop.f32.mrb[25].mxu0 }
0x13de   : > { %5542 = vrot.lane.b32.xlu1 %v5439_v59, %s8532_s13  ;;  %v5482_v59 = vld [vmem:[#allocation4 + $0x20] sm:$0xff] }
0x13e0   : > { %v7244_v9 = vpop.f32.mrb[26].mxu0 }
0x13e1   : > { %5548 = vrot.lane.b32.xlu0 %v7244_v9, %s8532_s13  ;;  %v5449_v43 = vpop.f32.mrb[27].mxu0  ;;  %v5530_v9 = vmul.f32 %v5509_v63, %v5482_v59 }
0x13e2   : > { %5546 = vrot.lane.b32.xlu1 %v5449_v43, %s8532_s13 }
0x13e4   : > { %v7247_v23 = vpop.f32.mrb[28].mxu0 }
0x13e5   : > { %5552 = vrot.lane.b32.xlu0 %v7247_v23, %s8532_s13  ;;  %v5459_v6 = vpop.f32.mrb[29].mxu0 }
0x13e6   : > { %5550 = vrot.lane.b32.xlu1 %v5459_v6, %s8532_s13  ;;  %v5485_v6 = vld [vmem:[#allocation4 + $0x38] sm:$0xff] }
0x13e7   : > { %v5533_v53 = vmul.f32 %v11734_v40, %v5485_v6 }
0x13e8   : > { %v7250_v15 = vpop.f32.mrb[30].mxu0 }
0x13e9   : > { %5556 = vrot.lane.b32.xlu0 %v7250_v15, %s8532_s13  ;;  %v5469_v55 = vpop.f32.mrb[31].mxu0  ;;  %v5484_v15 = vld [vmem:[#allocation4 + $0x30] sm:$0xff] }
0x13ea   : > { %5554 = vrot.lane.b32.xlu1 %v5469_v55, %s8532_s13  ;;  %v5532_v55 = vmul.f32 %v5519_v7, %v5484_v15 }
0x13eb   : > { %v5290_v3 = vpop.xlane.xlu0 %5289 }
0x13ec   : > { %v5310_v19 = vadd.f32 %v5290_v3, %v5278_v8 }
0x13ee   : > { %5318 = vst.msk [vmem:[#allocation3 + $0xc8] sm:$0xff] %vm3478_vm3, %v5310_v19 }
0x13ef   : > { %v5293_v50 = vpop.xlane.xlu0 %5292 }
0x13f0   : > { %v5311_v12 = vadd.f32 %v5293_v50, %v5279_v34 }
0x13f2   : > { %5319 = vst.msk [vmem:[#allocation3 + $0xd0] sm:$0xff] %vm3478_vm3, %v5311_v12 }
0x13f3   : > { %v5299_v42 = vpop.xlane.xlu0 %5298 }
0x13f4   : > { %v5313_v35 = vadd.f32 %v5299_v42, %v5281_v14 }
0x13f6   : > { %5321 = vst.msk [vmem:[#allocation3 + $0xe0] sm:$0xff] %vm3478_vm3, %v5313_v35 }
0x13f7   : > { %v5305_v61 = vpop.xlane.xlu0 %5304 }
0x13f8   : > { %v5315_v46 = vadd.f32 %v5305_v61, %v5283_v57 }
0x13fa   : > { %5323 = vst.msk [vmem:[#allocation3 + $0xf0] sm:$0xff] %vm3478_vm3, %v5315_v46 }
0x13fc   : > { %v5287_v45 = vpop.xlane.xlu1 %5286 }
0x13fd   : > { %v5309_v32 = vadd.f32 %v5287_v45, %v5277_v22 }
0x13ff   : > { %5317 = vst.msk [vmem:[#allocation3 + $0xc0] sm:$0xff] %vm3478_vm3, %v5309_v32 }
0x1400   : > { %v5296_v27 = vpop.xlane.xlu1 %5295 }
0x1401   : > { %v5312_v58 = vadd.f32 %v5296_v27, %v5280_v18 }
0x1403   : > { %5320 = vst.msk [vmem:[#allocation3 + $0xd8] sm:$0xff] %vm3478_vm3, %v5312_v58 }
0x1404   : > { %v5302_v52 = vpop.xlane.xlu1 %5301 }
0x1405   : > { %v5314_v38 = vadd.f32 %v5302_v52, %v5282_v37 }
0x1407   : > { %5322 = vst.msk [vmem:[#allocation3 + $0xe8] sm:$0xff] %vm3478_vm3, %v5314_v38 }
0x1408   : > { %v5308_v41 = vpop.xlane.xlu1 %5307 }
0x1409   : > { %v5316_v4 = vadd.f32 %v5308_v41, %v5284_v36 }
0x140b   : > { %5324 = vst.msk [vmem:[#allocation3 + $0xf8] sm:$0xff] %vm3478_vm3, %v5316_v4 }
0x144f   : > { %v5545_v25 = vpop.permute.xlu0 %5544 }
0x1450   : > { %v5567_v0 = vadd.f32 %v5545_v25, %v5527_v13  ;;  %v5543_v1 = vpop.permute.xlu1 %5542 }
0x1451   : > { %v5566_v5 = vadd.f32 %v5543_v1, %v5526_v48 }
0x1452   : > { %5576 = vst.msk [vmem:[#allocation4 + $0x8] sm:$0xff] %vm5574_vm6, %v5567_v0 }
0x1453   : > { %5575 = vst.msk [vmem:[#allocation4] sm:$0xff] %vm5574_vm6, %v5566_v5  ;;  %v5549_v28 = vpop.permute.xlu0 %5548 }
0x1454   : > { %v5569_v24 = vadd.f32 %v5549_v28, %v5529_v47  ;;  %v5547_v31 = vpop.permute.xlu1 %5546 }
0x1455   : > { %v5568_v17 = vadd.f32 %v5547_v31, %v5528_v21 }
0x1456   : > { %5578 = vst.msk [vmem:[#allocation4 + $0x18] sm:$0xff] %vm5574_vm6, %v5569_v24 }
0x1457   : > { %5577 = vst.msk [vmem:[#allocation4 + $0x10] sm:$0xff] %vm5574_vm6, %v5568_v17  ;;  %v5553_v16 = vpop.permute.xlu0 %5552 }
0x1458   : > { %v5571_v43 = vadd.f32 %v5553_v16, %v5531_v62  ;;  %v5551_v23 = vpop.permute.xlu1 %5550 }
0x1459   : > { %v5570_v44 = vadd.f32 %v5551_v23, %v5530_v9 }
0x145a   : > { %5580 = vst.msk [vmem:[#allocation4 + $0x28] sm:$0xff] %vm5574_vm6, %v5571_v43 }
0x145b   : > { %5579 = vst.msk [vmem:[#allocation4 + $0x20] sm:$0xff] %vm5574_vm6, %v5570_v44  ;;  %v5557_v54 = vpop.permute.xlu0 %5556 }
0x145c   : > { %v5573_v8 = vadd.f32 %v5557_v54, %v5533_v53  ;;  %v5555_v3 = vpop.permute.xlu1 %5554 }
0x145d   : > { %v5572_v39 = vadd.f32 %v5555_v3, %v5532_v55 }
0x145e   : > { %5582 = vst.msk [vmem:[#allocation4 + $0x38] sm:$0xff] %vm5574_vm6, %v5573_v8 }
0x145f   : > { %5581 = vst.msk [vmem:[#allocation4 + $0x30] sm:$0xff] %vm5574_vm6, %v5572_v39 }
0x1460 PF: > { %p5591_p11 = scmp.eq.s32.totalorder %s8498_s23, 1  ;;  %p6512_p12 = scmp.ne.s32.totalorder %s8498_s23, 1 }
0x1461   : > { %v5604_v40 = vld [vmem:[#allocation3 + $0x8] sm:$0xff] (!%p6512_p12)  ;;  %v5603_v51 = vld [vmem:[#allocation3] sm:$0xff] (!%p6512_p12)  ;;  %v8535_v34 = vmov (!%p6512_p12), 0   ;;  %v5609_v20 = vld [vmem:[#allocation3 + $0x30] sm:$0xff] (!%p6512_p12)  ;;  %s12316_s5 = sld [smem:[#allocation113_spill]] (!%p6512_p12)  ;;  %vm5667_vm7 = vcmask (!%p6512_p12), 261120  }
0x1462   : > { %5594 = sbr.rel (%p6512_p12) target bundleno = 5644 (0x160c), region = 174  ;;  %v5608_v19 = vld [vmem:[#allocation3 + $0x28] sm:$0xff] (!%p6512_p12)  ;;  %8331 = vset.pattern.permute.xlu1 (!%p6512_p12), %v8535_v34  ;;  %8330 = vset.pattern.permute.xlu0 (!%p6512_p12), %v8535_v34  ;;  %8332 = vrcp.f32 (!%p6512_p12), %v5604_v40  ;;  %v5607_v50 = vld [vmem:[#allocation3 + $0x20] sm:$0xff] (!%p6512_p12)  ;;  %v5605_v12 = vld [vmem:[#allocation3 + $0x10] sm:$0xff] (!%p6512_p12)  ;;  %vm5749_vm8 = vcmask (!%p6512_p12), 523520   ;;  %vm5831_vm9 = vcmask (!%p6512_p12), 785920  }
0x1463   : > { %8334 = vrcp.f32 (!%p6512_p12), %v5603_v51  ;;  %v5610_v63 = vld [vmem:[#allocation3 + $0x38] sm:$0xff] (!%p6512_p12)  ;;  %v5689_v35 = vld [vmem:[#allocation3 + $0x60] sm:$0xff] (!%p6512_p12)  ;;  %v5690_v46 = vld [vmem:[#allocation3 + $0x68] sm:$0xff] (!%p6512_p12)  ;;  %vm5913_vm10 = vcmask (!%p6512_p12), 1048320  }
0x1464   : > { %8336 = vrcp.f32 (!%p6512_p12), %v5608_v19  ;;  %v5606_v14 = vld [vmem:[#allocation3 + $0x18] sm:$0xff] (!%p6512_p12)  ;;  %v5685_v61 = vld [vmem:[#allocation3 + $0x40] sm:$0xff] (!%p6512_p12)  ;;  %v5686_v22 = vld [vmem:[#allocation3 + $0x48] sm:$0xff] (!%p6512_p12) }
0x1465   : > { %8338 = vrcp.f32 (!%p6512_p12), %v5607_v50  ;;  %v5691_v49 = vld [vmem:[#allocation3 + $0x70] sm:$0xff] (!%p6512_p12)  ;;  %v5692_v10 = vld [vmem:[#allocation3 + $0x78] sm:$0xff] (!%p6512_p12)  ;;  %v5771_v30 = vld [vmem:[#allocation3 + $0xa0] sm:$0xff] (!%p6512_p12) }
0x1466   : > { %8340 = vrcp.f32 (!%p6512_p12), %v5609_v20  ;;  %v5687_v18 = vld [vmem:[#allocation3 + $0x50] sm:$0xff] (!%p6512_p12)  ;;  %v5688_v37 = vld [vmem:[#allocation3 + $0x58] sm:$0xff] (!%p6512_p12)  ;;  %v5767_v36 = vld [vmem:[#allocation3 + $0x80] sm:$0xff] (!%p6512_p12) }
0x1467   : > { %8342 = vrcp.f32 (!%p6512_p12), %v5605_v12  ;;  %v5772_v4 = vld [vmem:[#allocation3 + $0xa8] sm:$0xff] (!%p6512_p12)  ;;  %v5773_v48 = vld [vmem:[#allocation3 + $0xb0] sm:$0xff] (!%p6512_p12)  ;;  %v5774_v2 = vld [vmem:[#allocation3 + $0xb8] sm:$0xff] (!%p6512_p12) }
0x1468   : > { %8344 = vrcp.f32 (!%p6512_p12), %v5610_v63  ;;  %v5768_v11 = vld [vmem:[#allocation3 + $0x88] sm:$0xff] (!%p6512_p12)  ;;  %v5769_v0 = vld [vmem:[#allocation3 + $0x90] sm:$0xff] (!%p6512_p12)  ;;  %v5938_v5 = vld [vmem:[%s12316_s5] sm:$0xff] (!%p6512_p12) }
0x1469   : > { %8346 = vrcp.f32 %v5606_v14  ;;  %v5939_v47 = vld [vmem:[%s12316_s5 + $0x8] sm:$0xff]  ;;  %v5770_v21 = vld [vmem:[#allocation3 + $0x98] sm:$0xff]  ;;  %v5853_v31 = vld [vmem:[#allocation3 + $0xe0] sm:$0xff] }
0x146a   : > { %8348 = vrcp.f32 %v5689_v35  ;;  %v7615_v28 = vpack.c.bf16 %v5939_v47, %v5938_v5  ;;  %v5940_v33 = vld [vmem:[%s12316_s5 + $0x10] sm:$0xff]  ;;  %v5941_v17 = vld [vmem:[%s12316_s5 + $0x18] sm:$0xff]  ;;  %v5849_v59 = vld [vmem:[#allocation3 + $0xc0] sm:$0xff] }
0x146b   : > { %8350 = vrcp.f32 %v5685_v61  ;;  %v7619_v9 = vpack.c.bf16 %v5941_v17, %v5940_v33  ;;  %v5854_v43 = vld [vmem:[#allocation3 + $0xe8] sm:$0xff]  ;;  %v5942_v23 = vld [vmem:[%s12316_s5 + $0x20] sm:$0xff]  ;;  %v5855_v54 = vld [vmem:[#allocation3 + $0xf0] sm:$0xff] }
0x146c   : > { %v8333_v42 = vpop.eup %8332  ;;  %8352 = vrcp.f32 %v5690_v46  ;;  %7616 = vmatprep.subr.bf16.mxu0 %v7615_v28  ;;  %7647 = vmatprep.subr.bf16.mxu1 %v7615_v28  ;;  %v5943_v6 = vld [vmem:[%s12316_s5 + $0x28] sm:$0xff]  ;;  %v5944_v8 = vld [vmem:[%s12316_s5 + $0x30] sm:$0xff]  ;;  %v5945_v3 = vld [vmem:[%s12316_s5 + $0x38] sm:$0xff] }
0x146d   : > { %v8335_v26 = vpop.eup %8334  ;;  %5626 = vperm.xlu1 %8331, %v8333_v42   ;;  %8354 = vrcp.f32 %v5686_v22  ;;  %7618 = vmatpush3.bf16.msra.mxu0 %v7615_v28  ;;  %v5850_v53 = vld [vmem:[#allocation3 + $0xc8] sm:$0xff]  ;;  %v7623_v15 = vpack.c.bf16 %v5943_v6, %v5942_v23  ;;  %v5851_v40 = vld [vmem:[#allocation3 + $0xd0] sm:$0xff]  ;;  %v7627_v51 = vpack.c.bf16 %v5945_v3, %v5944_v8  ;;  %v5856_v34 = vld [vmem:[#allocation3 + $0xf8] sm:$0xff] }
0x146e   : > { %v8337_v57 = vpop.eup %8336  ;;  %5621 = vperm.xlu0 %8330, %v8335_v26   ;;  %8356 = vrcp.f32 %v5691_v49  ;;  %7655 = vmatpush3.bf16.msra.mxu1 %v7615_v28  ;;  %v5946_v50 = vld [vmem:[%s12316_s5 + $0x40] sm:$0xff]  ;;  %v5947_v20 = vld [vmem:[%s12316_s5 + $0x48] sm:$0xff]  ;;  %v5852_v63 = vld [vmem:[#allocation3 + $0xd8] sm:$0xff] }
0x146f   : > { %v8339_v7 = vpop.eup %8338  ;;  %8358 = vrcp.f32 %v5687_v18  ;;  %7620 = vmatprep.subr.bf16.mxu0 %v7619_v9  ;;  %7648 = vmatprep.subr.bf16.mxu1 %v7619_v9  ;;  %v7631_v14 = vpack.c.bf16 %v5947_v20, %v5946_v50  ;;  %v5948_v26 = vld [vmem:[%s12316_s5 + $0x50] sm:$0xff]  ;;  %v5949_v35 = vld [vmem:[%s12316_s5 + $0x58] sm:$0xff]  ;;  %v5950_v46 = vld [vmem:[%s12316_s5 + $0x60] sm:$0xff] }
0x1470   : > { %v8341_v29 = vpop.eup %8340  ;;  %8360 = vrcp.f32 %v5692_v10  ;;  %v7635_v61 = vpack.c.bf16 %v5949_v35, %v5948_v26  ;;  %v5953_v18 = vld [vmem:[%s12316_s5 + $0x78] sm:$0xff] }
0x1471   : > { %5646 = vperm.xlu1 %8331, %v8337_v57   ;;  %v8343_v45 = vpop.eup %8342  ;;  %8362 = vrcp.f32 %v5688_v37  ;;  %7622 = vmatpush3.bf16.msra.mxu0 %v7619_v9  ;;  %v5596_v37 = vld [vmem:[#allocation4 + $0x8] sm:$0xff]  ;;  %v5598_v28 = vld [vmem:[#allocation4 + $0x18] sm:$0xff] }
0x1472   : > { %5641 = vperm.xlu0 %8330, %v8339_v7   ;;  %v8345_v32 = vpop.eup %8344  ;;  %8364 = vrcp.f32 %v5771_v30  ;;  %7656 = vmatpush3.bf16.msra.mxu1 %v7619_v9 }
0x1473   : > { %v8347_v27 = vpop.eup %8346  ;;  %8366 = vrcp.f32 %v5767_v36  ;;  %7624 = vmatprep.subr.bf16.mxu0 %v7623_v15  ;;  %7649 = vmatprep.subr.bf16.mxu1 %v7623_v15 }
0x1474   : > { %v8349_v58 = vpop.eup %8348  ;;  %8368 = vrcp.f32 %v5772_v4  ;;  %v5600_v4 = vld [vmem:[#allocation4 + $0x28] sm:$0xff] }
0x1475   : > { %5651 = vperm.xlu1 %8331, %v8341_v29   ;;  %v8351_v52 = vpop.eup %8350  ;;  %8370 = vrcp.f32 %v5768_v11  ;;  %7626 = vmatpush3.bf16.msra.mxu0 %v7623_v15  ;;  %v5951_v29 = vld [vmem:[%s12316_s5 + $0x68] sm:$0xff] }
0x1476   : > { %5631 = vperm.xlu0 %8330, %v8343_v45   ;;  %v8353_v38 = vpop.eup %8352  ;;  %8372 = vrcp.f32 %v5773_v48  ;;  %7657 = vmatpush3.bf16.msra.mxu1 %v7623_v15  ;;  %v7639_v45 = vpack.c.bf16 %v5951_v29, %v5950_v46 }
0x1477   : > { %v8355_v41 = vpop.eup %8354  ;;  %8374 = vrcp.f32 %v5769_v0  ;;  %7628 = vmatprep.subr.bf16.mxu0 %v7627_v51  ;;  %7650 = vmatprep.subr.bf16.mxu1 %v7627_v51  ;;  %v5601_v0 = vld [vmem:[#allocation4 + $0x30] sm:$0xff] }
0x1478   : > { %v8357_v56 = vpop.eup %8356  ;;  %8376 = vrcp.f32 %v5774_v2 }
0x1479   : > { %5656 = vperm.xlu1 %8331, %v8345_v32   ;;  %v8359_v13 = vpop.eup %8358  ;;  %8378 = vrcp.f32 %v5770_v21  ;;  %7630 = vmatpush3.bf16.msra.mxu0 %v7627_v51  ;;  %v5952_v32 = vld [vmem:[%s12316_s5 + $0x70] sm:$0xff]  ;;  %v5602_v21 = vld [vmem:[#allocation4 + $0x38] sm:$0xff] }
0x147a   : > { %5636 = vperm.xlu0 %8330, %v8347_v27   ;;  %v8361_v25 = vpop.eup %8360  ;;  %8380 = vrcp.f32 %v5853_v31  ;;  %7658 = vmatpush3.bf16.msra.mxu1 %v7627_v51  ;;  %v7643_v10 = vpack.c.bf16 %v5953_v18, %v5952_v32 }
0x147b   : > { %v8363_v1 = vpop.eup %8362  ;;  %8382 = vrcp.f32 %v5849_v59  ;;  %7632 = vmatprep.subr.bf16.mxu0 %v7631_v14  ;;  %7651 = vmatprep.subr.bf16.mxu1 %v7631_v14 }
0x147c   : > { %v8365_v60 = vpop.eup %8364  ;;  %8384 = vrcp.f32 %v5854_v43 }
0x147d   : > { %5723 = vperm.xlu1 %8331, %v8349_v58   ;;  %v8367_v24 = vpop.eup %8366  ;;  %8386 = vrcp.f32 %v5850_v53  ;;  %7634 = vmatpush3.bf16.msra.mxu0 %v7631_v14 }
0x147e   : > { %5703 = vperm.xlu0 %8330, %v8351_v52   ;;  %v8369_v62 = vpop.eup %8368  ;;  %8388 = vrcp.f32 %v5855_v54  ;;  %7659 = vmatpush3.bf16.msra.mxu1 %v7631_v14  ;;  %v5595_v52 = vld [vmem:[#allocation4] sm:$0xff] }
0x147f   : > { %v8371_v16 = vpop.eup %8370  ;;  %8390 = vrcp.f32 %v5851_v40  ;;  %7636 = vmatprep.subr.bf16.mxu0 %v7635_v61  ;;  %7652 = vmatprep.subr.bf16.mxu1 %v7635_v61 }
0x1480   : > { %v8373_v44 = vpop.eup %8372  ;;  %8392 = vrcp.f32 %v5856_v34 }
0x1481   : > { %5728 = vperm.xlu1 %8331, %v8353_v38   ;;  %v8375_v55 = vpop.eup %8374  ;;  %8394 = vrcp.f32 %v5852_v63  ;;  %7638 = vmatpush3.bf16.msra.mxu0 %v7635_v61 }
0x1482   : > { %5708 = vperm.xlu0 %8330, %v8355_v41   ;;  %v8377_v39 = vpop.eup %8376  ;;  %7660 = vmatpush3.bf16.msra.mxu1 %v7635_v61 }
0x1483   : > { %v8379_v19 = vpop.eup %8378  ;;  %7640 = vmatprep.subr.bf16.mxu0 %v7639_v45  ;;  %7653 = vmatprep.subr.bf16.mxu1 %v7639_v45 }
0x1484   : > { %v8381_v12 = vpop.eup %8380 }
0x1485   : > { %5733 = vperm.xlu1 %8331, %v8357_v56   ;;  %v8383_v42 = vpop.eup %8382  ;;  %7642 = vmatpush3.bf16.msra.mxu0 %v7639_v45  ;;  %v5599_v56 = vld [vmem:[#allocation4 + $0x20] sm:$0xff] }
0x1486   : > { %5713 = vperm.xlu0 %8330, %v8359_v13   ;;  %v8385_v57 = vpop.eup %8384  ;;  %7661 = vmatpush3.bf16.msra.mxu1 %v7639_v45 }
0x1487   : > { %v8387_v7 = vpop.eup %8386  ;;  %7644 = vmatprep.subr.bf16.mxu0 %v7643_v10  ;;  %7654 = vmatprep.subr.bf16.mxu1 %v7643_v10 }
0x1488   : > { %v8389_v22 = vpop.eup %8388 }
0x1489   : > { %5738 = vperm.xlu1 %8331, %v8361_v25   ;;  %v8391_v49 = vpop.eup %8390  ;;  %7646 = vmatpush3.bf16.msra.mxu0 %v7643_v10 }
0x148a   : > { %5718 = vperm.xlu0 %8330, %v8363_v1   ;;  %v8393_v27 = vpop.eup %8392  ;;  %7662 = vmatpush3.bf16.msra.mxu1 %v7643_v10  ;;  %v5597_v1 = vld [vmem:[#allocation4 + $0x10] sm:$0xff] }
0x148b   : > { %v8395_v58 = vpop.eup %8394 }
0x148d   : > { %5805 = vperm.xlu1 %8331, %v8365_v60  }
0x148e   : > { %5785 = vperm.xlu0 %8330, %v8367_v24  }
0x1491   : > { %5810 = vperm.xlu1 %8331, %v8369_v62  }
0x1492   : > { %5790 = vperm.xlu0 %8330, %v8371_v16  }
0x1495   : > { %5815 = vperm.xlu1 %8331, %v8373_v44  }
0x1496   : > { %5795 = vperm.xlu0 %8330, %v8375_v55  }
0x1499   : > { %5820 = vperm.xlu1 %8331, %v8377_v39  }
0x149a   : > { %5800 = vperm.xlu0 %8330, %v8379_v19  }
0x149d   : > { %5887 = vperm.xlu1 %8331, %v8381_v12  }
0x149e   : > { %5867 = vperm.xlu0 %8330, %v8383_v42  }
0x14a1   : > { %5892 = vperm.xlu1 %8331, %v8385_v57  }
0x14a2   : > { %5872 = vperm.xlu0 %8330, %v8387_v7  }
0x14a5   : > { %5897 = vperm.xlu1 %8331, %v8389_v22  }
0x14a6   : > { %5877 = vperm.xlu0 %8330, %v8391_v49  }
0x14a9   : > { %5902 = vperm.xlu1 %8331, %v8393_v27  }
0x14aa   : > { %5882 = vperm.xlu0 %8330, %v8395_v58  }
0x14ec   : > { %v5627_v30 = vpop.permute.xlu1 %5626 }
0x14ed   : > { %v5660_v38 = vmul.f32 %v5627_v30, %v5596_v37  ;;  %v5622_v36 = vpop.permute.xlu0 %5621 }
0x14ee   : > { %v5659_v41 = vmul.f32 %v5622_v36, %v5595_v52 }
0x14ef   : > { %5669 = vst.msk [vmem:[#allocation4 + $0x8] sm:$0xff] %vm5667_vm7, %v5660_v38 }
0x14f0   : > { %5668 = vst.msk [vmem:[#allocation4] sm:$0xff] %vm5667_vm7, %v5659_v41  ;;  %v5647_v11 = vpop.permute.xlu1 %5646 }
0x14f1   : > { %v5664_v13 = vmul.f32 %v5647_v11, %v5600_v4  ;;  %v5642_v48 = vpop.permute.xlu0 %5641 }
0x14f2   : > { %v5663_v25 = vmul.f32 %v5642_v48, %v5599_v56 }
0x14f3   : > { %5673 = vst.msk [vmem:[#allocation4 + $0x28] sm:$0xff] %vm5667_vm7, %v5664_v13 }
0x14f4   : > { %5672 = vst.msk [vmem:[#allocation4 + $0x20] sm:$0xff] %vm5667_vm7, %v5663_v25  ;;  %v5652_v2 = vpop.permute.xlu1 %5651 }
0x14f5   : > { %v5665_v5 = vmul.f32 %v5652_v2, %v5601_v0  ;;  %v5632_v47 = vpop.permute.xlu0 %5631 }
0x14f6   : > { %v5661_v60 = vmul.f32 %v5632_v47, %v5597_v1  ;;  %v5677_v55 = vld [vmem:[#allocation4 + $0x8] sm:$0xff] }
0x14f7   : > { %5674 = vst.msk [vmem:[#allocation4 + $0x30] sm:$0xff] %vm5667_vm7, %v5665_v5  ;;  %v5676_v43 = vld [vmem:[#allocation4] sm:$0xff] }
0x14f8   : > { %5670 = vst.msk [vmem:[#allocation4 + $0x10] sm:$0xff] %vm5667_vm7, %v5661_v60  ;;  %v5657_v24 = vpop.permute.xlu1 %5656 }
0x14f9   : > { %v5666_v31 = vmul.f32 %v5657_v24, %v5602_v21  ;;  %v5637_v33 = vpop.permute.xlu0 %5636 }
0x14fa   : > { %v5662_v17 = vmul.f32 %v5637_v33, %v5598_v28  ;;  %v5681_v44 = vld [vmem:[#allocation4 + $0x28] sm:$0xff] }
0x14fb   : > { %5675 = vst.msk [vmem:[#allocation4 + $0x38] sm:$0xff] %vm5667_vm7, %v5666_v31  ;;  %v5680_v59 = vld [vmem:[#allocation4 + $0x20] sm:$0xff] }
0x14fc   : > { %5671 = vst.msk [vmem:[#allocation4 + $0x18] sm:$0xff] %vm5667_vm7, %v5662_v17  ;;  %v5724_v62 = vpop.permute.xlu1 %5723 }
0x14fd   : > { %v5745_v9 = vmul.f32 %v5724_v62, %v5680_v59  ;;  %v5704_v16 = vpop.permute.xlu0 %5703 }
0x14fe   : > { %v5741_v23 = vmul.f32 %v5704_v16, %v5676_v43  ;;  %v5682_v3 = vld [vmem:[#allocation4 + $0x30] sm:$0xff] }
0x14ff   : > { %5754 = vst.msk [vmem:[#allocation4 + $0x20] sm:$0xff] %vm5749_vm8, %v5745_v9  ;;  %v5678_v51 = vld [vmem:[#allocation4 + $0x10] sm:$0xff] }
0x1500   : > { %5750 = vst.msk [vmem:[#allocation4] sm:$0xff] %vm5749_vm8, %v5741_v23  ;;  %v5729_v6 = vpop.permute.xlu1 %5728 }
0x1501   : > { %v5746_v53 = vmul.f32 %v5729_v6, %v5681_v44  ;;  %v5709_v15 = vpop.permute.xlu0 %5708 }
0x1502   : > { %v5742_v54 = vmul.f32 %v5709_v15, %v5677_v55  ;;  %v5683_v50 = vld [vmem:[#allocation4 + $0x38] sm:$0xff] }
0x1503   : > { %5755 = vst.msk [vmem:[#allocation4 + $0x28] sm:$0xff] %vm5749_vm8, %v5746_v53  ;;  %v5679_v63 = vld [vmem:[#allocation4 + $0x18] sm:$0xff] }
0x1504   : > { %5751 = vst.msk [vmem:[#allocation4 + $0x8] sm:$0xff] %vm5749_vm8, %v5742_v54  ;;  %v5734_v8 = vpop.permute.xlu1 %5733 }
0x1505   : > { %v5747_v39 = vmul.f32 %v5734_v8, %v5682_v3  ;;  %v5714_v40 = vpop.permute.xlu0 %5713 }
0x1506   : > { %v5743_v19 = vmul.f32 %v5714_v40, %v5678_v51  ;;  %v5762_v26 = vld [vmem:[#allocation4 + $0x20] sm:$0xff]  ;;  %v5935_v51 = vld [vmem:[#allocation5 + $0x28] sm:$0xff] }
0x1507   : > { %5756 = vst.msk [vmem:[#allocation4 + $0x30] sm:$0xff] %vm5749_vm8, %v5747_v39  ;;  %v5758_v61 = vld [vmem:[#allocation4] sm:$0xff] }
0x1508   : > { %5752 = vst.msk [vmem:[#allocation4 + $0x10] sm:$0xff] %vm5749_vm8, %v5743_v19  ;;  %v5739_v34 = vpop.permute.xlu1 %5738  ;;  %v5931_v19 = vld [vmem:[#allocation5 + $0x8] sm:$0xff] }
0x1509   : > { %v5748_v20 = vmul.f32 %v5739_v34, %v5683_v50  ;;  %v5719_v12 = vpop.permute.xlu0 %5718  ;;  %v5934_v34 = vld [vmem:[#allocation5 + $0x20] sm:$0xff] }
0x150a   : > { %v5744_v14 = vmul.f32 %v5719_v12, %v5679_v63  ;;  %v5763_v29 = vld [vmem:[#allocation4 + $0x28] sm:$0xff] }
0x150b   : > { %5757 = vst.msk [vmem:[#allocation4 + $0x38] sm:$0xff] %vm5749_vm8, %v5748_v20  ;;  %v5759_v49 = vld [vmem:[#allocation4 + $0x8] sm:$0xff]  ;;  %v5930_v20 = vld [vmem:[#allocation5] sm:$0xff] }
0x150c   : > { %5753 = vst.msk [vmem:[#allocation4 + $0x18] sm:$0xff] %vm5749_vm8, %v5744_v14  ;;  %v5806_v42 = vpop.permute.xlu1 %5805 }
0x150d   : > { %v5827_v35 = vmul.f32 %v5806_v42, %v5762_v26  ;;  %v5786_v57 = vpop.permute.xlu0 %5785 }
0x150e   : > { %v5823_v7 = vmul.f32 %v5786_v57, %v5758_v61  ;;  %v5764_v27 = vld [vmem:[#allocation4 + $0x30] sm:$0xff]  ;;  %v5937_v61 = vld [vmem:[#allocation5 + $0x38] sm:$0xff] }
0x150f   : > { %5836 = vst.msk [vmem:[#allocation4 + $0x20] sm:$0xff] %vm5831_vm9, %v5827_v35  ;;  %v5760_v37 = vld [vmem:[#allocation4 + $0x10] sm:$0xff] }
0x1510   : > { %5832 = vst.msk [vmem:[#allocation4] sm:$0xff] %vm5831_vm9, %v5823_v7  ;;  %v5811_v46 = vpop.permute.xlu1 %5810  ;;  %v5933_v7 = vld [vmem:[#allocation5 + $0x18] sm:$0xff] }
0x1511   : > { %v5828_v22 = vmul.f32 %v5811_v46, %v5763_v29  ;;  %v5791_v45 = vpop.permute.xlu0 %5790  ;;  %v5936_v46 = vld [vmem:[#allocation5 + $0x30] sm:$0xff] }
0x1512   : > { %v5824_v32 = vmul.f32 %v5791_v45, %v5759_v49  ;;  %v5765_v38 = vld [vmem:[#allocation4 + $0x38] sm:$0xff] }
0x1513   : > { %5837 = vst.msk [vmem:[#allocation4 + $0x28] sm:$0xff] %vm5831_vm9, %v5828_v22  ;;  %v5761_v4 = vld [vmem:[#allocation4 + $0x18] sm:$0xff]  ;;  %v5932_v22 = vld [vmem:[#allocation5 + $0x10] sm:$0xff] }
0x1514   : > { %5833 = vst.msk [vmem:[#allocation4 + $0x8] sm:$0xff] %vm5831_vm9, %v5824_v32  ;;  %v5816_v18 = vpop.permute.xlu1 %5815 }
0x1515   : > { %v5829_v10 = vmul.f32 %v5816_v18, %v5764_v27  ;;  %v5796_v58 = vpop.permute.xlu0 %5795 }
0x1516   : > { %v5825_v52 = vmul.f32 %v5796_v58, %v5760_v37  ;;  %v5844_v13 = vld [vmem:[#allocation4 + $0x20] sm:$0xff] }
0x1517   : > { %5838 = vst.msk [vmem:[#allocation4 + $0x30] sm:$0xff] %vm5831_vm9, %v5829_v10  ;;  %v5840_v0 = vld [vmem:[#allocation4] sm:$0xff] }
0x1518   : > { %5834 = vst.msk [vmem:[#allocation4 + $0x10] sm:$0xff] %vm5831_vm9, %v5825_v52  ;;  %v5821_v30 = vpop.permute.xlu1 %5820 }
0x1519   : > { %v5830_v36 = vmul.f32 %v5821_v30, %v5765_v38  ;;  %v5801_v41 = vpop.permute.xlu0 %5800 }
0x151a   : > { %v5826_v56 = vmul.f32 %v5801_v41, %v5761_v4  ;;  %v5845_v5 = vld [vmem:[#allocation4 + $0x28] sm:$0xff] }
0x151b   : > { %5839 = vst.msk [vmem:[#allocation4 + $0x38] sm:$0xff] %vm5831_vm9, %v5830_v36  ;;  %v5841_v21 = vld [vmem:[#allocation4 + $0x8] sm:$0xff] }
0x151c   : > { %5835 = vst.msk [vmem:[#allocation4 + $0x18] sm:$0xff] %vm5831_vm9, %v5826_v56  ;;  %v5888_v11 = vpop.permute.xlu1 %5887 }
0x151d   : > { %v5909_v48 = vmul.f32 %v5888_v11, %v5844_v13  ;;  %v5868_v25 = vpop.permute.xlu0 %5867 }
0x151e   : > { %v5905_v1 = vmul.f32 %v5868_v25, %v5840_v0  ;;  %v5846_v31 = vld [vmem:[#allocation4 + $0x30] sm:$0xff] }
0x151f   : > { %5918 = vst.msk [vmem:[#allocation4 + $0x20] sm:$0xff] %vm5913_vm10, %v5909_v48  ;;  %v5842_v62 = vld [vmem:[#allocation4 + $0x10] sm:$0xff] }
0x1520   : > { %5914 = vst.msk [vmem:[#allocation4] sm:$0xff] %vm5913_vm10, %v5905_v1  ;;  %v5893_v2 = vpop.permute.xlu1 %5892 }
0x1521   : > { %v5910_v47 = vmul.f32 %v5893_v2, %v5845_v5  ;;  %v5873_v60 = vpop.permute.xlu0 %5872 }
0x1522   : > { %v5906_v28 = vmul.f32 %v5873_v60, %v5841_v21  ;;  %v5847_v23 = vld [vmem:[#allocation4 + $0x38] sm:$0xff] }
0x1523   : > { %5919 = vst.msk [vmem:[#allocation4 + $0x28] sm:$0xff] %vm5913_vm10, %v5910_v47  ;;  %v5843_v53 = vld [vmem:[#allocation4 + $0x18] sm:$0xff] }
0x1524   : > { %5915 = vst.msk [vmem:[#allocation4 + $0x8] sm:$0xff] %vm5913_vm10, %v5906_v28  ;;  %v5898_v24 = vpop.permute.xlu1 %5897 }
0x1525   : > { %v5911_v33 = vmul.f32 %v5898_v24, %v5846_v31  ;;  %v5878_v17 = vpop.permute.xlu0 %5877 }
0x1526   : > { %v5907_v59 = vmul.f32 %v5878_v17, %v5842_v62  ;;  %v5926_v9 = vld [vmem:[#allocation4 + $0x20] sm:$0xff] }
0x1527   : > { %5920 = vst.msk [vmem:[#allocation4 + $0x30] sm:$0xff] %vm5913_vm10, %v5911_v33  ;;  %v5922_v16 = vld [vmem:[#allocation4] sm:$0xff]  ;;  %7289 = vmatprep.mubr.f32.mxu1 %v5926_v9 }
0x1528   : > { %5916 = vst.msk [vmem:[#allocation4 + $0x10] sm:$0xff] %vm5913_vm10, %v5907_v59  ;;  %7283 = vmatprep.mubr.f32.mxu0 %v5922_v16  ;;  %v5903_v43 = vpop.permute.xlu1 %5902 }
0x1529   : > { %v5912_v6 = vmul.f32 %v5903_v43, %v5847_v23  ;;  %v5883_v44 = vpop.permute.xlu0 %5882 }
0x152a   : > { %v5908_v15 = vmul.f32 %v5883_v44, %v5843_v53  ;;  %v5927_v55 = vld [vmem:[#allocation4 + $0x28] sm:$0xff] }
0x152b   : > { %5921 = vst.msk [vmem:[#allocation4 + $0x38] sm:$0xff] %vm5913_vm10, %v5912_v6  ;;  %v5923_v54 = vld [vmem:[#allocation4 + $0x8] sm:$0xff]  ;;  %7290 = vmatmul.mubr.f32.vlgmr.msra.gmra.mrb[0].mxu1 %v5927_v55 }
0x152c   : > { %5917 = vst.msk [vmem:[#allocation4 + $0x18] sm:$0xff] %vm5913_vm10, %v5908_v15  ;;  %7284 = vmatmul.mubr.f32.vlgmr.msra.gmra.mrb[0].mxu0 %v5923_v54 }
0x152e   : > { %v5928_v8 = vld [vmem:[#allocation4 + $0x30] sm:$0xff] }
0x152f   : > { %v5924_v3 = vld [vmem:[#allocation4 + $0x10] sm:$0xff]  ;;  %7292 = vmatprep.mubr.f32.mxu1 %v5928_v8 }
0x1530   : > { %7286 = vmatprep.mubr.f32.mxu0 %v5924_v3 }
0x1532   : > { %v5929_v39 = vld [vmem:[#allocation4 + $0x38] sm:$0xff] }
0x1533   : > { %v5925_v40 = vld [vmem:[#allocation4 + $0x18] sm:$0xff]  ;;  %7293 = vmatmul.mubr.f32.gmra.mrb[2].mxu1 %v5929_v39 }
0x1534   : > { %7287 = vmatmul.mubr.f32.gmra.mrb[2].mxu0 %v5925_v40 }
0x15fe   : > { %v7291_v50 = vpop.f32.mrb[0].mxu1 }
0x15ff   : > { %v7285_v12 = vpop.f32.mrb[0].mxu0  ;;  %v6064_v63 = vadd.f32 %v7291_v50, %v5935_v51  ;;  %v6040_v14 = vpop.f32.mrb[1].mxu1 }
0x1600   : > { %v6060_v42 = vadd.f32 %v7285_v12, %v5931_v19  ;;  %v6020_v26 = vpop.f32.mrb[1].mxu0  ;;  %v6063_v35 = vadd.f32 %v6040_v14, %v5934_v34 }
0x1601   : > { %6072 = vst [vmem:[#allocation5 + $0x28] sm:$0xff] %v6064_v63  ;;  %v6059_v57 = vadd.f32 %v6020_v26, %v5930_v20 }
0x1602   : > { %6068 = vst [vmem:[#allocation5 + $0x8] sm:$0xff] %v6060_v42  ;;  %6071 = vst [vmem:[#allocation5 + $0x20] sm:$0xff] %v6063_v35 }
0x1603   : > { %6067 = vst [vmem:[#allocation5] sm:$0xff] %v6059_v57 }
0x1606   : > { %v7294_v29 = vpop.f32.mrb[2].mxu1 }
0x1607   : > { %v7288_v45 = vpop.f32.mrb[2].mxu0  ;;  %v6066_v49 = vadd.f32 %v7294_v29, %v5937_v61  ;;  %v6050_v32 = vpop.f32.mrb[3].mxu1 }
0x1608   : > { %v6062_v18 = vadd.f32 %v7288_v45, %v5933_v7  ;;  %v6030_v27 = vpop.f32.mrb[3].mxu0  ;;  %v6065_v10 = vadd.f32 %v6050_v32, %v5936_v46 }
0x1609   : > { %6074 = vst [vmem:[#allocation5 + $0x38] sm:$0xff] %v6066_v49  ;;  %v6061_v58 = vadd.f32 %v6030_v27, %v5932_v22 }
0x160a   : > { %6070 = vst [vmem:[#allocation5 + $0x18] sm:$0xff] %v6062_v18  ;;  %6073 = vst [vmem:[#allocation5 + $0x30] sm:$0xff] %v6065_v10 }
0x160b   : > { %6069 = vst [vmem:[#allocation5 + $0x10] sm:$0xff] %v6061_v58 }
0x160c PF: > { %6078 = sbr.rel (!%p5591_p11) target bundleno = 5657 (0x1619), region = 178  ;;  %v6079_v37 = vld [vmem:[#allocation5] sm:$0xff] (%p5591_p11)  ;;  %s12317_s12 = sld [smem:[#allocation114_spill]] (%p5591_p11)  ;;  %v6080_v30 = vld [vmem:[#allocation5 + $0x8] sm:$0xff] (%p5591_p11) }
0x160d   : > { %v6083_v56 = vld [vmem:[#allocation5 + $0x20] sm:$0xff] (%p5591_p11)  ;;  %v6084_v25 = vld [vmem:[#allocation5 + $0x28] sm:$0xff] (%p5591_p11) }
0x1610   : > { %v6086_v1 = vld [vmem:[#allocation5 + $0x38] sm:$0xff] (%p5591_p11) }
0x1611   : > { %v6082_v4 = vld [vmem:[#allocation5 + $0x18] sm:$0xff] (%p5591_p11)  ;;  %v6085_v0 = vld [vmem:[#allocation5 + $0x30] sm:$0xff] (%p5591_p11) }
0x1612   : > { %v6514_v52 = vld [vmem:[%s12317_s12] ss:$0 sm:$0xff] (%p5591_p11)  ;;  %v6081_v41 = vld [vmem:[#allocation5 + $0x10] sm:$0xff] (%p5591_p11) }
0x1613   : > { %v6094_v38 = vadd.f32 %v6514_v52, %v6079_v37  ;;  %v6095_v36 = vadd.f32 %v6514_v52, %v6080_v30  ;;  %v6096_v11 = vadd.f32 %v6514_v52, %v6081_v41  ;;  %v6097_v13 = vadd.f32 %v6514_v52, %v6082_v4 }
0x1614   : > { %v6098_v48 = vadd.f32 %v6514_v52, %v6083_v56  ;;  %v6099_v2 = vadd.f32 %v6514_v52, %v6084_v25  ;;  %v6100_v5 = vadd.f32 %v6514_v52, %v6085_v0  ;;  %v6101_v47 = vadd.f32 %v6514_v52, %v6086_v1 }
0x1615   : > { %6102 = vst [vmem:[%s8734_s30] sm:$0xff] %v6094_v38  ;;  %6103 = vst [vmem:[%s8734_s30 + $0x8] sm:$0xff] %v6095_v36 }
0x1616   : > { %6104 = vst [vmem:[%s8734_s30 + $0x10] sm:$0xff] %v6096_v11  ;;  %6105 = vst [vmem:[%s8734_s30 + $0x18] sm:$0xff] %v6097_v13 }
0x1617   : > { %6106 = vst [vmem:[%s8734_s30 + $0x20] sm:$0xff] %v6098_v48  ;;  %6107 = vst [vmem:[%s8734_s30 + $0x28] sm:$0xff] %v6099_v2 }
0x1618   : > { %6108 = vst [vmem:[%s8734_s30 + $0x30] sm:$0xff] %v6100_v5  ;;  %6109 = vst [vmem:[%s8734_s30 + $0x38] sm:$0xff] %v6101_v47 }
0x1619 PF: > { %s12318_s23 = sld [smem:[#allocation12_spill]]  ;;  %s12319_s25 = sld [smem:[#allocation13_spill]] }
0x161a   : > { %s6126_s10 = sshll.u32 %s8734_s30, 4  ;;  %s12320_s16 = sld [smem:[#allocation115_spill]]  ;;  %s11864_s10 = int_to_ptr.vmem [resolvable:$true] %s6126_s10 }
0x161b   : > { %s11873_s12 = scalar_lea.sflag [#allocation10], %s484_s14  ;;  %s8396_s0 = scalar_lea.vmem %s11864_s10, 1024 }
0x161c   : > { %p8397_p0 = scmp.ne.s32.totalorder %s11864_s10, %s8396_s0  ;;  %s8536_s30 = smov [#allocation9]  }
0x161e   : > { %p8398_p2 = pnand %p8397_p0, %p8678_p13 }
0x161f   : > { %s6516_s19 = sshll.u32 %s12318_s23, 3  ;;  %s6517_s6 = sshll.u32 %s12319_s25, 4 }
0x1620   : > { %s6123_s11 = sadd.s32 %s6517_s6, %s6516_s19  ;;  %p8399_p4 = pneg %p8398_p2 }
0x1621   : > { %s6518_s24 = sshll.u32 %s6123_s11, 7  ;;  %s8400_s23 = sshll.u32 %s8536_s30, 4  ;;  %s8401_s23 = int_to_ptr.vmem [resolvable:$false] %s8400_s23 }
0x1622   : > { %s11869_s17 = scalar_lea.hbm %s12320_s16, %s6518_s24  ;;  %s8402_s25 = scalar_lea.vmem %s8401_s23, 2048 }
0x1623   : > { %p8403_p1 = scmp.lt.s32.totalorder %s11864_s10, %s8401_s23  ;;  %p8404_p5 = scmp.lt.s32.totalorder %s8402_s25, %s8396_s0 }
0x1625   : > { %p8405_p6 = por %p8404_p5, %p8403_p1 }
0x1627   : > { %p8406_p7 = pnand %p8405_p6, %p8399_p4 }
0x1629   : > { %8409 = shalt.err (!%p8406_p7)
}
0x162a   : > { %s8410_s14 = scalar_lea.hbm %s11869_s17, 1024  ;;  %s8414_s11 = scalar_lea.hbm %s12320_s16, 4096 }
0x162b   : > { %p8411_p8 = scmp.ne.s32.totalorder %s11869_s17, %s8410_s14  ;;  %p8415_p11 = scmp.lt.u32.totalorder %s11869_s17, %s12320_s16 }
0x162c   : > { %p8416_p12 = scmp.lt.u32.totalorder %s8414_s11, %s8410_s14  ;;  %p8418_p2 = scmp.lt.u32.totalorder %s8410_s14, %s11869_s17 }
0x162d   : > { %p8412_p9 = pnand %p8411_p8, %p8678_p13 }
0x162e   : > { %p8417_p0 = por %p8416_p12, %p8415_p11 }
0x162f   : > { %p8413_p10 = pneg %p8412_p9 }
0x1630   : > { %p8419_p4 = por %p8418_p2, %p8417_p0 }
0x1632   : > { %p8420_p1 = pnand %p8419_p4, %p8413_p10 }
0x1634   : > { %8423 = shalt.err (!%p8420_p1)
}
0x1635   : > { %s8537_s0 = smov 128   ;;  %s8538_s15 = smov 8  }
0x1636   : > { %7665 = dma.vmem_to_hbm [thread:$0]  (%p8678_p13), %s11864_s10, 1024, %s11869_s17, %s11873_s12, %s8537_s0, %s8537_s0, %s8538_s15  }
0x1637 PF: > { %p7671_p5 = scmp.ge.s32.totalorder %s8522_s29, 2  ;;  %s6141_s30 = sand.u32 1, %s8478_s18  }
0x1638   : > { %s6142_s23 = scalar_lea.sflag [#allocation10], %s6141_s30 }
0x1639   : > { %p7668_p6 = pnand %p7671_p5, %p8692_p3 }
0x163b   : > { %8473 = dma.done.wait (!%p7668_p6), %s6142_s23, 1024  }
0x163c   : > { %8475 = vsyncadd (!%p7668_p6), %s6142_s23, 4294966272  ;;  %s18_s29 = sadd.s32 1, %s8522_s29   ;;  %s12321_s23 = sld [smem:[#allocation14_spill]] }
0x163d   : > { %p15_p7 = scmp.ge.s32.totalorder %s18_s29, 10   ;;  %s12322_s4 = sld [smem:[#allocation15_spill]] }
0x163e   : > { %s12323_s18 = smov %s8490_s21  ;;  %s12324_s19 = smov %s8486_s20 }
0x163f   : > { %s12325_s20 = smov %s8686_s26  ;;  %s12326_s21 = smov %s8494_s22 }
0x1640   : > { %s12327_s22 = smov %s8683_s3  ;;  %s12328_s24 = smov %s8514_s27 }
0x1641   : > { %s12329_s25 = smov %s8518_s28  ;;  %s12330_s26 = smov %s12334_s7 }
0x1642   : > { %s12331_s27 = smov %s12338_s8  ;;  %17 = sbr.rel (!%p15_p7) target bundleno = 12 (0xc), region = 252 }
0x1643   : > { %s12332_s28 = smov %s12322_s4 }
0x1649   :  { %6147 = vsyncpa [#allocation10], 1 }
0x164a   :  { %6149 = vsyncpa [#allocation10 + $0x1], 1 }

</bundles_post_ra>
